<compile_context>
chip_gen: v7x
topology: tpu7x:2x2x1
jax: 0.10.0
libtpu: 0.0.40
codegen_flags: <defaults>
</compile_context>

<pallas_src>
import functools

import jax
import jax.numpy as jnp
from jax.experimental import pallas as pl
from jax.experimental.pallas import tpu as pltpu


def _round_up(x, m):
    return (x + m - 1) // m * m


# ----------------------------------------------------------------------------
# Fused kernel: conv3x3+ReLU -> conv3x3+ReLU -> KHxKW Siamese cross-correlation
#
# One image per grid step.  The zero-padded NHWC frame (Hp, Wp, C) is
# flattened to rows r = yp*Wp + xp (channels last), so a conv/x-corr tap is a
# pure row shift and each stage becomes a single concat-K MXU matmul:
#   conv1 : (Mp, 9*Cin)        @ (9*Cin,        Cmid)
#   conv2 : (Mp, 9*Cmid)       @ (9*Cmid,       Cfeat)
#   xcorr : (Mr, KH*KW*Cfeat)  @ (KH*KW*Cfeat,  T)
# The input rows carry G zero guard rows on each side so all shifted slices
# stay in bounds; the frame-border rows of conv1's output are zeroed with an
# in-kernel mask (that *is* conv2's zero padding).  Rows whose shifted x-corr
# reads fall outside the valid window produce garbage that the wrapper crops.
# ----------------------------------------------------------------------------
def _siammot_kernel(x_ref, w1_ref, b1_ref, w2_ref, b2_ref, t_ref,
                    o_ref, mid_ref, *, H, W, G, Mp, Mr, shifts3, shifts4):
    Wp = W + 2
    c_mid = w1_ref.shape[1]

    # ---- conv1: one concat-K MXU matmul over 9 row-shifted input views ----
    xall = x_ref[0]                                               # (Mg, Cin) bf16
    slab1 = jnp.concatenate(
        [xall[G + s:G + s + Mp, :] for s in shifts3], axis=1)     # (Mp, 9*Cin)
    h1 = jnp.dot(slab1, w1_ref[...], preferred_element_type=jnp.float32)
    h1 = jnp.maximum(h1 + b1_ref[...], 0.0)                       # (Mp, Cmid) f32

    # in-kernel interior mask (no mask DMA).  ypos = floor(r / Wp) is computed
    # exactly as a sum of range comparisons (avoids vector integer division).
    r = jax.lax.broadcasted_iota(jnp.int32, (Mp, 1), 0)
    ypos = jnp.zeros((Mp, 1), jnp.int32)
    for k in range(1, H + 2):
        ypos = ypos + (r >= k * Wp).astype(jnp.int32)
    xpos = r - ypos * Wp
    interior = (ypos >= 1) & (ypos <= H) & (xpos >= 1) & (xpos <= W)
    h1 = jnp.where(interior, h1, 0.0)          # border rows -> conv2's padding

    # conv1 activations stay in VMEM as bf16; zero only the guard rows.
    mid_ref[0:G, :] = jnp.zeros((G, c_mid), mid_ref.dtype)
    mid_ref[G + Mp:G + Mp + G, :] = jnp.zeros((G, c_mid), mid_ref.dtype)
    mid_ref[G:G + Mp, :] = h1.astype(mid_ref.dtype)

    # ---- conv2: one concat-K MXU matmul over the VMEM-resident conv1 out ----
    mid = mid_ref[...]                                            # (Mg, Cmid) bf16
    slab2 = jnp.concatenate(
        [mid[G + s:G + s + Mp, :] for s in shifts3], axis=1)      # (Mp, 9*Cmid)
    h2 = jnp.dot(slab2, w2_ref[...], preferred_element_type=jnp.float32)
    feats = jnp.maximum(h2 + b2_ref[...], 0.0).astype(jnp.bfloat16)  # (Mp, Cfeat)

    # ---- Siamese x-corr (fused): one concat-K MXU matmul over KHxKW taps ----
    slab3 = jnp.concatenate(
        [feats[s:s + Mr, :] for s in shifts4], axis=1)            # (Mr, KH*KW*Cfeat)
    o_ref[0] = jnp.dot(slab3, t_ref[...], preferred_element_type=jnp.float32)


# ----------------------------------------------------------------------------
# Parameter init + one-time packing (hoisted out of the hot path)
# ----------------------------------------------------------------------------
def init_params(key, *, cin=4, cmid=32, cfeat=32, num_tracks=2, ksz=4):
    k1, k2, k3, k4, k5 = jax.random.split(key, 5)
    return {
        # backbone
        "conv1_w": 0.1 * jax.random.normal(k1, (cmid, cin, 3, 3), jnp.float32),
        "conv1_b": 0.01 * jax.random.normal(k2, (cmid,), jnp.float32),
        "conv2_w": 0.1 * jax.random.normal(k3, (cfeat, cmid, 3, 3), jnp.float32),
        "conv2_b": 0.01 * jax.random.normal(k4, (cfeat,), jnp.float32),
        # track memory (stand-in for the track_pool's exemplar features)
        "templates": 0.1 * jax.random.normal(
            k5, (num_tracks, cfeat, ksz, ksz), jnp.float32),
    }


def pack_params(params):
    """One-time packing of weights into MXU-ready (K, Cout) bf16 slabs."""
    w1 = params["conv1_w"]                      # (Cmid, Cin, 3, 3)
    w2 = params["conv2_w"]                      # (Cfeat, Cmid, 3, 3)
    tm = params["templates"]                    # (T, Cfeat, KH, KW)
    cmid, cin = w1.shape[0], w1.shape[1]
    cfeat = w2.shape[0]
    t, _, kh, kw = tm.shape
    packed = {
        # row index = (i*3 + j)*Cin + c  <->  concat order of the in-kernel slab
        "w1": w1.transpose(2, 3, 1, 0).reshape(9 * cin, cmid).astype(jnp.bfloat16),
        "b1": params["conv1_b"].reshape(1, cmid).astype(jnp.float32),
        "w2": w2.transpose(2, 3, 1, 0).reshape(9 * cmid, cfeat).astype(jnp.bfloat16),
        "b2": params["conv2_b"].reshape(1, cfeat).astype(jnp.float32),
        # row index = (i*KW + j)*Cfeat + c
        "tmat": tm.transpose(2, 3, 1, 0).reshape(kh * kw * cfeat, t).astype(jnp.bfloat16),
    }
    return packed, (kh, kw)


# ----------------------------------------------------------------------------
# SiamMOT forward (inference path)
# ----------------------------------------------------------------------------
@functools.partial(jax.jit, static_argnames=("KH", "KW"))
def siammot_forward(images_nchw, w1, b1, w2, b2, tmat, *, KH, KW):
    """Inference-mode SiamMOT.forward: images -> (tracks, response)."""
    B, Cin, H, W = images_nchw.shape
    Cmid = w1.shape[1]
    Cfeat = w2.shape[1]
    T = tmat.shape[1]
    Hp, Wp = H + 2, W + 2
    Mp = Hp * Wp
    HO, WO = H - KH + 1, W - KW + 1

    # guard rows must cover the largest conv row shift (Wp + 1); 16-aligned so
    # bf16 (16,128)-tiled stores into the mid scratch start aligned.
    G = _round_up(Wp + 1, 16)
    # x-corr row count: enough frame rows to cover every valid output position,
    # rounded to a sublane multiple; all shifted reads must stay inside Mp.
    Mr = _round_up((HO + 1) * Wp, 8)
    max_shift4 = (KH - 1) * Wp + (KW - 1)
    assert G >= Wp + 1
    assert Mr + max_shift4 <= Mp, "image too small for the fused x-corr window"
    Mg = Mp + 2 * G

    # images -> zero-padded NHWC frame rows with guard rows, bf16 (halves DMA)
    x = images_nchw.transpose(0, 2, 3, 1)                      # NHWC
    x = jnp.pad(x, ((0, 0), (1, 1), (1, 1), (0, 0)))           # (B, Hp, Wp, Cin)
    rows = x.reshape(B, Mp, Cin).astype(jnp.bfloat16)
    rows = jnp.pad(rows, ((0, 0), (G, G), (0, 0)))             # (B, Mg, Cin)

    # row shift of conv tap (i, j): (i-1)*Wp + (j-1);  x-corr tap: i*Wp + j
    shifts3 = tuple((i - 1) * Wp + (j - 1) for i in range(3) for j in range(3))
    shifts4 = tuple(i * Wp + j for i in range(KH) for j in range(KW))

    kernel = functools.partial(_siammot_kernel, H=H, W=W, G=G, Mp=Mp, Mr=Mr,
                               shifts3=shifts3, shifts4=shifts4)

    flops = 2 * B * (Mp * 9 * Cin * Cmid
                     + Mp * 9 * Cmid * Cfeat
                     + Mr * KH * KW * Cfeat * T)
    bytes_accessed = (B * Mg * Cin * 2 + w1.size * 2 + w2.size * 2
                      + tmat.size * 2 + b1.size * 4 + b2.size * 4
                      + B * Mr * T * 4)

    out = pl.pallas_call(
        kernel,
        out_shape=jax.ShapeDtypeStruct((B, Mr, T), jnp.float32),
        grid=(B,),
        in_specs=[
            pl.BlockSpec((1, Mg, Cin), lambda b: (b, 0, 0)),
            pl.BlockSpec((9 * Cin, Cmid), lambda b: (0, 0)),
            pl.BlockSpec((1, Cmid), lambda b: (0, 0)),
            pl.BlockSpec((9 * Cmid, Cfeat), lambda b: (0, 0)),
            pl.BlockSpec((1, Cfeat), lambda b: (0, 0)),
            pl.BlockSpec((KH * KW * Cfeat, T), lambda b: (0, 0)),
        ],
        out_specs=pl.BlockSpec((1, Mr, T), lambda b: (b, 0, 0)),
        scratch_shapes=[pltpu.VMEM((Mg, Cmid), jnp.bfloat16)],
        # "parallel" so v7x's two TensorCores each take an image; at
        # production sizes this would become (batch, M-tile) with a halo and
        # an explicit vmem_limit_bytes (v7x has 64 MiB physical VMEM).
        compiler_params=pltpu.CompilerParams(
            dimension_semantics=("parallel",)),
        cost_estimate=pl.CostEstimate(flops=flops, transcendentals=0,
                                      bytes_accessed=bytes_accessed),
    )(rows, w1, b1, w2, b2, tmat)

    # crop the per-image frame-row response to the valid (HO, WO) window
    resp = out[:, :(HO + 1) * Wp, :].reshape(B, HO + 1, Wp, T)
    resp = resp[:, 1:, 1:1 + WO, :].transpose(0, 3, 1, 2)      # (B, T, HO, WO)

    # Track decoding + BoxList field plumbing (glue, plain JAX):
    flat = resp.reshape(B, T, HO * WO)
    scores = jax.nn.sigmoid(jnp.max(flat, axis=-1))            # (B, T)
    idx = jnp.argmax(flat, axis=-1)
    ys = (idx // WO).astype(jnp.float32)
    xs = (idx % WO).astype(jnp.float32)
    boxes = jnp.stack([xs, ys, xs + KW, ys + KH], axis=-1)     # (B, T, 4) xyxy
    tracks = {
        "bbox": boxes,
        # postprocess_proposals semantics: ids = -1, objectness = 0.99
        # (int64/float64 in PyTorch; int32/float32 here under default JAX x32)
        "ids": jnp.full((B, T), -1, dtype=jnp.int32),
        "labels": jnp.ones((B, T), dtype=jnp.int32),
        "scores": scores,
        "objectness": jnp.full((B, T), 0.99, dtype=jnp.float32),
    }
    # TODO(synk): solver(detections) + track.flush_track_memory() mutate a
    # Python-side track pool (BoxList objects, id assignment); no tensor hot
    # path to port, so that stateful bookkeeping is omitted here.
    return tracks, resp


# ----------------------------------------------------------------------------
# Pure-JAX reference using the same bf16-multiply / f32-accumulate recipe
# ----------------------------------------------------------------------------
def reference_forward(images, params):
    f32 = jnp.float32
    bf = lambda a: a.astype(jnp.bfloat16).astype(f32)
    x = bf(images)
    w1 = bf(params["conv1_w"])
    b1 = params["conv1_b"].astype(f32)
    w2 = bf(params["conv2_w"])
    b2 = params["conv2_b"].astype(f32)
    tm = bf(params["templates"])
    B, Cin, H, W = x.shape

    def conv3x3(inp, w, b):
        cout = w.shape[0]
        xp = jnp.pad(inp, ((0, 0), (0, 0), (1, 1), (1, 1)))
        out = jnp.zeros((B, cout, H, W), f32)
        for i in range(3):
            for j in range(3):
                out = out + jnp.einsum("bchw,oc->bohw",
                                       xp[:, :, i:i + H, j:j + W], w[:, :, i, j])
        return jnp.maximum(out + b[None, :, None, None], 0.0)

    h1 = bf(conv3x3(x, w1, b1))
    feats = bf(conv3x3(h1, w2, b2))
    T, _, KH, KW = tm.shape
    HO, WO = H - KH + 1, W - KW + 1
    resp = jnp.zeros((B, T, HO, WO), f32)
    for i in range(KH):
        for j in range(KW):
            resp = resp + jnp.einsum("bchw,tc->bthw",
                                     feats[:, :, i:i + HO, j:j + WO],
                                     tm[:, :, i, j])
    return resp


if __name__ == "__main__":
    key = jax.random.PRNGKey(0)
    pkey, xkey = jax.random.split(key)
    params = init_params(pkey, cin=4, cmid=32, cfeat=32, num_tracks=2, ksz=4)
    # images: NCHW, batch=2, channels=4, spatial=16 (like to_image_list(...).tensors)
    images = jax.random.normal(xkey, (2, 4, 16, 16), jnp.float32)

    packed, (KH, KW) = pack_params(params)            # one-time weight packing
    tracks, response = siammot_forward(
        images, packed["w1"], packed["b1"], packed["w2"], packed["b2"],
        packed["tmat"], KH=KH, KW=KW)
    jax.block_until_ready(tracks["bbox"])
    response = jax.block_until_ready(response)

    assert tracks["bbox"].shape == (2, 2, 4)
    assert response.shape == (2, 2, 13, 13)

    # correctness vs a pure-JAX reference with the same precision recipe
    ref = reference_forward(images, params)
    err = float(jnp.max(jnp.abs(response - ref)))
    assert err < 5e-2, f"max |pallas - ref| = {err}"
    print("KERNEL_OK")
</pallas_src>

<mosaic_0001>
module attributes {stable_mosaic.version = 11 : i64} {
  func.func @_siammot_kernel(%arg0: i32, %arg1: memref<1x388x4xbf16, #tpu.memory_space<vmem>>, %arg2: memref<36x32xbf16, #tpu.memory_space<vmem>>, %arg3: memref<1x32xf32, #tpu.memory_space<vmem>>, %arg4: memref<288x32xbf16, #tpu.memory_space<vmem>>, %arg5: memref<1x32xf32, #tpu.memory_space<vmem>>, %arg6: memref<512x2xbf16, #tpu.memory_space<vmem>>, %arg7: memref<1x256x2xf32, #tpu.memory_space<vmem>>, %arg8: memref<388x32xbf16, #tpu.memory_space<vmem>>) attributes {dimension_semantics = [#tpu.dimension_semantics<parallel>], iteration_bounds = array<i64: 2>, scalar_prefetch = 0 : i64, scratch_operands = 1 : i64, tpu.core_type = #tpu.core_type<tc>, window_params = [{transform_indices = @transform_0, window_bounds = array<i64: 1, 388, 4>}, {pipeline_mode = #tpu.pipeline_mode<synchronous>, transform_indices = @transform_1, window_bounds = array<i64: 36, 32>}, {pipeline_mode = #tpu.pipeline_mode<synchronous>, transform_indices = @transform_2, window_bounds = array<i64: 1, 32>}, {pipeline_mode = #tpu.pipeline_mode<synchronous>, transform_indices = @transform_3, window_bounds = array<i64: 288, 32>}, {pipeline_mode = #tpu.pipeline_mode<synchronous>, transform_indices = @transform_4, window_bounds = array<i64: 1, 32>}, {pipeline_mode = #tpu.pipeline_mode<synchronous>, transform_indices = @transform_5, window_bounds = array<i64: 512, 2>}, {transform_indices = @transform_6, window_bounds = array<i64: 1, 256, 2>}]} {
    %c0 = arith.constant 0 : index
    %c0_0 = arith.constant 0 : index
    %c0_1 = arith.constant 0 : index
    %0 = vector.load %arg1[%c0, %c0_0, %c0_1] : memref<1x388x4xbf16, #tpu.memory_space<vmem>>, vector<1x388x4xbf16>
    %1 = vector.shape_cast %0 : vector<1x388x4xbf16> to vector<388x4xbf16>
    %2 = vector.extract_strided_slice %1 {offsets = [13, 0], sizes = [324, 4], strides = [1, 1]} : vector<388x4xbf16> to vector<324x4xbf16>
    %3 = vector.extract_strided_slice %1 {offsets = [14, 0], sizes = [324, 4], strides = [1, 1]} : vector<388x4xbf16> to vector<324x4xbf16>
    %4 = vector.extract_strided_slice %1 {offsets = [15, 0], sizes = [324, 4], strides = [1, 1]} : vector<388x4xbf16> to vector<324x4xbf16>
    %5 = vector.extract_strided_slice %1 {offsets = [31, 0], sizes = [324, 4], strides = [1, 1]} : vector<388x4xbf16> to vector<324x4xbf16>
    %6 = vector.extract_strided_slice %1 {offsets = [32, 0], sizes = [324, 4], strides = [1, 1]} : vector<388x4xbf16> to vector<324x4xbf16>
    %7 = vector.extract_strided_slice %1 {offsets = [33, 0], sizes = [324, 4], strides = [1, 1]} : vector<388x4xbf16> to vector<324x4xbf16>
    %8 = vector.extract_strided_slice %1 {offsets = [49, 0], sizes = [324, 4], strides = [1, 1]} : vector<388x4xbf16> to vector<324x4xbf16>
    %9 = vector.extract_strided_slice %1 {offsets = [50, 0], sizes = [324, 4], strides = [1, 1]} : vector<388x4xbf16> to vector<324x4xbf16>
    %10 = vector.extract_strided_slice %1 {offsets = [51, 0], sizes = [324, 4], strides = [1, 1]} : vector<388x4xbf16> to vector<324x4xbf16>
    %11 = tpu.concatenate %2, %3, %4, %5, %6, %7, %8, %9, %10 in 1 : vector<324x4xbf16>, vector<324x4xbf16>, vector<324x4xbf16>, vector<324x4xbf16>, vector<324x4xbf16>, vector<324x4xbf16>, vector<324x4xbf16>, vector<324x4xbf16>, vector<324x4xbf16> -> vector<324x36xbf16>
    %c0_2 = arith.constant 0 : index
    %c0_3 = arith.constant 0 : index
    %12 = vector.load %arg2[%c0_2, %c0_3] : memref<36x32xbf16, #tpu.memory_space<vmem>>, vector<36x32xbf16>
    %cst = arith.constant dense<0.000000e+00> : vector<324x32xf32>
    %13 = tpu.matmul %11, %12, %cst {dimension_numbers = #tpu.dot_dimension_numbers<[1], [0], [0], [1], [0, 0, 1, 1], [], []>} : vector<324x36xbf16>, vector<36x32xbf16>, vector<324x32xf32> -> vector<324x32xf32>
    %c0_4 = arith.constant 0 : index
    %c0_5 = arith.constant 0 : index
    %14 = vector.load %arg3[%c0_4, %c0_5] : memref<1x32xf32, #tpu.memory_space<vmem>>, vector<1x32xf32>
    %15 = vector.broadcast %14 : vector<1x32xf32> to vector<324x32xf32>
    %16 = arith.addf %13, %15 : vector<324x32xf32>
    %cst_6 = arith.constant 0.000000e+00 : f32
    %17 = vector.broadcast %cst_6 : f32 to vector<324x32xf32>
    %18 = arith.maximumf %16, %17 : vector<324x32xf32>
    %19 = tpu.iota {dimensions = array<i32: 0>} : vector<324x1xi32>
    %c0_i32 = arith.constant 0 : i32
    %20 = vector.broadcast %c0_i32 : i32 to vector<324x1xi32>
    %c18_i32 = arith.constant 18 : i32
    %21 = vector.broadcast %c18_i32 : i32 to vector<324x1xi32>
    %22 = arith.cmpi sge, %19, %21 : vector<324x1xi32>
    %23 = arith.extui %22 : vector<324x1xi1> to vector<324x1xi32>
    %24 = arith.addi %20, %23 : vector<324x1xi32>
    %c36_i32 = arith.constant 36 : i32
    %25 = vector.broadcast %c36_i32 : i32 to vector<324x1xi32>
    %26 = arith.cmpi sge, %19, %25 : vector<324x1xi32>
    %27 = arith.extui %26 : vector<324x1xi1> to vector<324x1xi32>
    %28 = arith.addi %24, %27 : vector<324x1xi32>
    %c54_i32 = arith.constant 54 : i32
    %29 = vector.broadcast %c54_i32 : i32 to vector<324x1xi32>
    %30 = arith.cmpi sge, %19, %29 : vector<324x1xi32>
    %31 = arith.extui %30 : vector<324x1xi1> to vector<324x1xi32>
    %32 = arith.addi %28, %31 : vector<324x1xi32>
    %c72_i32 = arith.constant 72 : i32
    %33 = vector.broadcast %c72_i32 : i32 to vector<324x1xi32>
    %34 = arith.cmpi sge, %19, %33 : vector<324x1xi32>
    %35 = arith.extui %34 : vector<324x1xi1> to vector<324x1xi32>
    %36 = arith.addi %32, %35 : vector<324x1xi32>
    %c90_i32 = arith.constant 90 : i32
    %37 = vector.broadcast %c90_i32 : i32 to vector<324x1xi32>
    %38 = arith.cmpi sge, %19, %37 : vector<324x1xi32>
    %39 = arith.extui %38 : vector<324x1xi1> to vector<324x1xi32>
    %40 = arith.addi %36, %39 : vector<324x1xi32>
    %c108_i32 = arith.constant 108 : i32
    %41 = vector.broadcast %c108_i32 : i32 to vector<324x1xi32>
    %42 = arith.cmpi sge, %19, %41 : vector<324x1xi32>
    %43 = arith.extui %42 : vector<324x1xi1> to vector<324x1xi32>
    %44 = arith.addi %40, %43 : vector<324x1xi32>
    %c126_i32 = arith.constant 126 : i32
    %45 = vector.broadcast %c126_i32 : i32 to vector<324x1xi32>
    %46 = arith.cmpi sge, %19, %45 : vector<324x1xi32>
    %47 = arith.extui %46 : vector<324x1xi1> to vector<324x1xi32>
    %48 = arith.addi %44, %47 : vector<324x1xi32>
    %c144_i32 = arith.constant 144 : i32
    %49 = vector.broadcast %c144_i32 : i32 to vector<324x1xi32>
    %50 = arith.cmpi sge, %19, %49 : vector<324x1xi32>
    %51 = arith.extui %50 : vector<324x1xi1> to vector<324x1xi32>
    %52 = arith.addi %48, %51 : vector<324x1xi32>
    %c162_i32 = arith.constant 162 : i32
    %53 = vector.broadcast %c162_i32 : i32 to vector<324x1xi32>
    %54 = arith.cmpi sge, %19, %53 : vector<324x1xi32>
    %55 = arith.extui %54 : vector<324x1xi1> to vector<324x1xi32>
    %56 = arith.addi %52, %55 : vector<324x1xi32>
    %c180_i32 = arith.constant 180 : i32
    %57 = vector.broadcast %c180_i32 : i32 to vector<324x1xi32>
    %58 = arith.cmpi sge, %19, %57 : vector<324x1xi32>
    %59 = arith.extui %58 : vector<324x1xi1> to vector<324x1xi32>
    %60 = arith.addi %56, %59 : vector<324x1xi32>
    %c198_i32 = arith.constant 198 : i32
    %61 = vector.broadcast %c198_i32 : i32 to vector<324x1xi32>
    %62 = arith.cmpi sge, %19, %61 : vector<324x1xi32>
    %63 = arith.extui %62 : vector<324x1xi1> to vector<324x1xi32>
    %64 = arith.addi %60, %63 : vector<324x1xi32>
    %c216_i32 = arith.constant 216 : i32
    %65 = vector.broadcast %c216_i32 : i32 to vector<324x1xi32>
    %66 = arith.cmpi sge, %19, %65 : vector<324x1xi32>
    %67 = arith.extui %66 : vector<324x1xi1> to vector<324x1xi32>
    %68 = arith.addi %64, %67 : vector<324x1xi32>
    %c234_i32 = arith.constant 234 : i32
    %69 = vector.broadcast %c234_i32 : i32 to vector<324x1xi32>
    %70 = arith.cmpi sge, %19, %69 : vector<324x1xi32>
    %71 = arith.extui %70 : vector<324x1xi1> to vector<324x1xi32>
    %72 = arith.addi %68, %71 : vector<324x1xi32>
    %c252_i32 = arith.constant 252 : i32
    %73 = vector.broadcast %c252_i32 : i32 to vector<324x1xi32>
    %74 = arith.cmpi sge, %19, %73 : vector<324x1xi32>
    %75 = arith.extui %74 : vector<324x1xi1> to vector<324x1xi32>
    %76 = arith.addi %72, %75 : vector<324x1xi32>
    %c270_i32 = arith.constant 270 : i32
    %77 = vector.broadcast %c270_i32 : i32 to vector<324x1xi32>
    %78 = arith.cmpi sge, %19, %77 : vector<324x1xi32>
    %79 = arith.extui %78 : vector<324x1xi1> to vector<324x1xi32>
    %80 = arith.addi %76, %79 : vector<324x1xi32>
    %c288_i32 = arith.constant 288 : i32
    %81 = vector.broadcast %c288_i32 : i32 to vector<324x1xi32>
    %82 = arith.cmpi sge, %19, %81 : vector<324x1xi32>
    %83 = arith.extui %82 : vector<324x1xi1> to vector<324x1xi32>
    %84 = arith.addi %80, %83 : vector<324x1xi32>
    %c306_i32 = arith.constant 306 : i32
    %85 = vector.broadcast %c306_i32 : i32 to vector<324x1xi32>
    %86 = arith.cmpi sge, %19, %85 : vector<324x1xi32>
    %87 = arith.extui %86 : vector<324x1xi1> to vector<324x1xi32>
    %88 = arith.addi %84, %87 : vector<324x1xi32>
    %c18_i32_7 = arith.constant 18 : i32
    %89 = vector.broadcast %c18_i32_7 : i32 to vector<324x1xi32>
    %90 = arith.muli %88, %89 : vector<324x1xi32>
    %91 = arith.subi %19, %90 : vector<324x1xi32>
    %c1_i32 = arith.constant 1 : i32
    %92 = vector.broadcast %c1_i32 : i32 to vector<324x1xi32>
    %93 = arith.cmpi sge, %88, %92 : vector<324x1xi32>
    %c16_i32 = arith.constant 16 : i32
    %94 = vector.broadcast %c16_i32 : i32 to vector<324x1xi32>
    %95 = arith.cmpi sle, %88, %94 : vector<324x1xi32>
    %96 = arith.andi %93, %95 : vector<324x1xi1>
    %c1_i32_8 = arith.constant 1 : i32
    %97 = vector.broadcast %c1_i32_8 : i32 to vector<324x1xi32>
    %98 = arith.cmpi sge, %91, %97 : vector<324x1xi32>
    %99 = arith.andi %96, %98 : vector<324x1xi1>
    %c16_i32_9 = arith.constant 16 : i32
    %100 = vector.broadcast %c16_i32_9 : i32 to vector<324x1xi32>
    %101 = arith.cmpi sle, %91, %100 : vector<324x1xi32>
    %102 = arith.andi %99, %101 : vector<324x1xi1>
    %cst_10 = arith.constant 0.000000e+00 : f32
    %103 = vector.shape_cast %102 : vector<324x1xi1> to vector<324x1xi1>
    %104 = vector.broadcast %103 : vector<324x1xi1> to vector<324x32xi1>
    %105 = vector.broadcast %cst_10 : f32 to vector<324x32xf32>
    %106 = arith.select %104, %18, %105 : vector<324x32xi1>, vector<324x32xf32>
    %cst_11 = arith.constant 0.000000e+00 : bf16
    %107 = vector.broadcast %cst_11 : bf16 to vector<32x32xbf16>
    %c0_12 = arith.constant 0 : index
    %c0_13 = arith.constant 0 : index
    %108 = vector.load %arg8[%c0_12, %c0_13] : memref<388x32xbf16, #tpu.memory_space<vmem>>, vector<32x32xbf16>
    tpu.vector_store %arg8[%c0_12, %c0_13], %107 {strides = array<i32>} : memref<388x32xbf16, #tpu.memory_space<vmem>>, vector<32x32xbf16>,
    %cst_14 = arith.constant 0.000000e+00 : bf16
    %109 = vector.broadcast %cst_14 : bf16 to vector<32x32xbf16>
    %c356 = arith.constant 356 : index
    %c0_15 = arith.constant 0 : index
    %110 = vector.load %arg8[%c356, %c0_15] : memref<388x32xbf16, #tpu.memory_space<vmem>>, vector<32x32xbf16>
    tpu.vector_store %arg8[%c356, %c0_15], %109 {strides = array<i32>} : memref<388x32xbf16, #tpu.memory_space<vmem>>, vector<32x32xbf16>,
    %111 = arith.truncf %106 : vector<324x32xf32> to vector<324x32xbf16>
    %c32 = arith.constant 32 : index
    %c0_16 = arith.constant 0 : index
    %112 = vector.load %arg8[%c32, %c0_16] : memref<388x32xbf16, #tpu.memory_space<vmem>>, vector<324x32xbf16>
    tpu.vector_store %arg8[%c32, %c0_16], %111 {strides = array<i32>} : memref<388x32xbf16, #tpu.memory_space<vmem>>, vector<324x32xbf16>,
    %c0_17 = arith.constant 0 : index
    %c0_18 = arith.constant 0 : index
    %113 = vector.load %arg8[%c0_17, %c0_18] : memref<388x32xbf16, #tpu.memory_space<vmem>>, vector<388x32xbf16>
    %114 = vector.extract_strided_slice %113 {offsets = [13, 0], sizes = [324, 32], strides = [1, 1]} : vector<388x32xbf16> to vector<324x32xbf16>
    %115 = vector.extract_strided_slice %113 {offsets = [14, 0], sizes = [324, 32], strides = [1, 1]} : vector<388x32xbf16> to vector<324x32xbf16>
    %116 = vector.extract_strided_slice %113 {offsets = [15, 0], sizes = [324, 32], strides = [1, 1]} : vector<388x32xbf16> to vector<324x32xbf16>
    %117 = vector.extract_strided_slice %113 {offsets = [31, 0], sizes = [324, 32], strides = [1, 1]} : vector<388x32xbf16> to vector<324x32xbf16>
    %118 = vector.extract_strided_slice %113 {offsets = [32, 0], sizes = [324, 32], strides = [1, 1]} : vector<388x32xbf16> to vector<324x32xbf16>
    %119 = vector.extract_strided_slice %113 {offsets = [33, 0], sizes = [324, 32], strides = [1, 1]} : vector<388x32xbf16> to vector<324x32xbf16>
    %120 = vector.extract_strided_slice %113 {offsets = [49, 0], sizes = [324, 32], strides = [1, 1]} : vector<388x32xbf16> to vector<324x32xbf16>
    %121 = vector.extract_strided_slice %113 {offsets = [50, 0], sizes = [324, 32], strides = [1, 1]} : vector<388x32xbf16> to vector<324x32xbf16>
    %122 = vector.extract_strided_slice %113 {offsets = [51, 0], sizes = [324, 32], strides = [1, 1]} : vector<388x32xbf16> to vector<324x32xbf16>
    %123 = tpu.concatenate %114, %115, %116, %117, %118, %119, %120, %121, %122 in 1 : vector<324x32xbf16>, vector<324x32xbf16>, vector<324x32xbf16>, vector<324x32xbf16>, vector<324x32xbf16>, vector<324x32xbf16>, vector<324x32xbf16>, vector<324x32xbf16>, vector<324x32xbf16> -> vector<324x288xbf16>
    %c0_19 = arith.constant 0 : index
    %c0_20 = arith.constant 0 : index
    %124 = vector.load %arg4[%c0_19, %c0_20] : memref<288x32xbf16, #tpu.memory_space<vmem>>, vector<288x32xbf16>
    %cst_21 = arith.constant dense<0.000000e+00> : vector<324x32xf32>
    %125 = tpu.matmul %123, %124, %cst_21 {dimension_numbers = #tpu.dot_dimension_numbers<[1], [0], [0], [1], [0, 0, 1, 1], [], []>} : vector<324x288xbf16>, vector<288x32xbf16>, vector<324x32xf32> -> vector<324x32xf32>
    %c0_22 = arith.constant 0 : index
    %c0_23 = arith.constant 0 : index
    %126 = vector.load %arg5[%c0_22, %c0_23] : memref<1x32xf32, #tpu.memory_space<vmem>>, vector<1x32xf32>
    %127 = vector.broadcast %126 : vector<1x32xf32> to vector<324x32xf32>
    %128 = arith.addf %125, %127 : vector<324x32xf32>
    %cst_24 = arith.constant 0.000000e+00 : f32
    %129 = vector.broadcast %cst_24 : f32 to vector<324x32xf32>
    %130 = arith.maximumf %128, %129 : vector<324x32xf32>
    %131 = arith.truncf %130 : vector<324x32xf32> to vector<324x32xbf16>
    %132 = vector.extract_strided_slice %131 {offsets = [0, 0], sizes = [256, 32], strides = [1, 1]} : vector<324x32xbf16> to vector<256x32xbf16>
    %133 = vector.extract_strided_slice %131 {offsets = [1, 0], sizes = [256, 32], strides = [1, 1]} : vector<324x32xbf16> to vector<256x32xbf16>
    %134 = vector.extract_strided_slice %131 {offsets = [2, 0], sizes = [256, 32], strides = [1, 1]} : vector<324x32xbf16> to vector<256x32xbf16>
    %135 = vector.extract_strided_slice %131 {offsets = [3, 0], sizes = [256, 32], strides = [1, 1]} : vector<324x32xbf16> to vector<256x32xbf16>
    %136 = vector.extract_strided_slice %131 {offsets = [18, 0], sizes = [256, 32], strides = [1, 1]} : vector<324x32xbf16> to vector<256x32xbf16>
    %137 = vector.extract_strided_slice %131 {offsets = [19, 0], sizes = [256, 32], strides = [1, 1]} : vector<324x32xbf16> to vector<256x32xbf16>
    %138 = vector.extract_strided_slice %131 {offsets = [20, 0], sizes = [256, 32], strides = [1, 1]} : vector<324x32xbf16> to vector<256x32xbf16>
    %139 = vector.extract_strided_slice %131 {offsets = [21, 0], sizes = [256, 32], strides = [1, 1]} : vector<324x32xbf16> to vector<256x32xbf16>
    %140 = vector.extract_strided_slice %131 {offsets = [36, 0], sizes = [256, 32], strides = [1, 1]} : vector<324x32xbf16> to vector<256x32xbf16>
    %141 = vector.extract_strided_slice %131 {offsets = [37, 0], sizes = [256, 32], strides = [1, 1]} : vector<324x32xbf16> to vector<256x32xbf16>
    %142 = vector.extract_strided_slice %131 {offsets = [38, 0], sizes = [256, 32], strides = [1, 1]} : vector<324x32xbf16> to vector<256x32xbf16>
    %143 = vector.extract_strided_slice %131 {offsets = [39, 0], sizes = [256, 32], strides = [1, 1]} : vector<324x32xbf16> to vector<256x32xbf16>
    %144 = vector.extract_strided_slice %131 {offsets = [54, 0], sizes = [256, 32], strides = [1, 1]} : vector<324x32xbf16> to vector<256x32xbf16>
    %145 = vector.extract_strided_slice %131 {offsets = [55, 0], sizes = [256, 32], strides = [1, 1]} : vector<324x32xbf16> to vector<256x32xbf16>
    %146 = vector.extract_strided_slice %131 {offsets = [56, 0], sizes = [256, 32], strides = [1, 1]} : vector<324x32xbf16> to vector<256x32xbf16>
    %147 = vector.extract_strided_slice %131 {offsets = [57, 0], sizes = [256, 32], strides = [1, 1]} : vector<324x32xbf16> to vector<256x32xbf16>
    %148 = tpu.concatenate %132, %133, %134, %135, %136, %137, %138, %139, %140, %141, %142, %143, %144, %145, %146, %147 in 1 : vector<256x32xbf16>, vector<256x32xbf16>, vector<256x32xbf16>, vector<256x32xbf16>, vector<256x32xbf16>, vector<256x32xbf16>, vector<256x32xbf16>, vector<256x32xbf16>, vector<256x32xbf16>, vector<256x32xbf16>, vector<256x32xbf16>, vector<256x32xbf16>, vector<256x32xbf16>, vector<256x32xbf16>, vector<256x32xbf16>, vector<256x32xbf16> -> vector<256x512xbf16>
    %c0_25 = arith.constant 0 : index
    %c0_26 = arith.constant 0 : index
    %149 = vector.load %arg6[%c0_25, %c0_26] : memref<512x2xbf16, #tpu.memory_space<vmem>>, vector<512x2xbf16>
    %cst_27 = arith.constant dense<0.000000e+00> : vector<256x2xf32>
    %150 = tpu.matmul %148, %149, %cst_27 {dimension_numbers = #tpu.dot_dimension_numbers<[1], [0], [0], [1], [0, 0, 1, 1], [], []>} : vector<256x512xbf16>, vector<512x2xbf16>, vector<256x2xf32> -> vector<256x2xf32>
    %c0_28 = arith.constant 0 : index
    %c0_29 = arith.constant 0 : index
    %c0_30 = arith.constant 0 : index
    %151 = vector.load %arg7[%c0_28, %c0_29, %c0_30] : memref<1x256x2xf32, #tpu.memory_space<vmem>>, vector<1x256x2xf32>
    %152 = vector.shape_cast %151 : vector<1x256x2xf32> to vector<256x2xf32>
    %153 = vector.shape_cast %150 : vector<256x2xf32> to vector<1x256x2xf32>
    tpu.vector_store %arg7[%c0_28, %c0_29, %c0_30], %153 {strides = array<i32>} : memref<1x256x2xf32, #tpu.memory_space<vmem>>, vector<1x256x2xf32>,
    return
  }
  func.func @transform_0(%arg0: i32) -> (i32, i32, i32) {
    %c0_i32 = arith.constant 0 : i32
    %c0_i32_0 = arith.constant 0 : i32
    %c0_i32_1 = arith.constant 0 : i32
    return %arg0, %c0_i32, %c0_i32_0 : i32, i32, i32
  }
  func.func @transform_1(%arg0: i32) -> (i32, i32) {
    %c0_i32 = arith.constant 0 : i32
    %c0_i32_0 = arith.constant 0 : i32
    %c0_i32_1 = arith.constant 0 : i32
    return %c0_i32, %c0_i32_0 : i32, i32
  }
  func.func @transform_2(%arg0: i32) -> (i32, i32) {
    %c0_i32 = arith.constant 0 : i32
    %c0_i32_0 = arith.constant 0 : i32
    %c0_i32_1 = arith.constant 0 : i32
    return %c0_i32, %c0_i32_0 : i32, i32
  }
  func.func @transform_3(%arg0: i32) -> (i32, i32) {
    %c0_i32 = arith.constant 0 : i32
    %c0_i32_0 = arith.constant 0 : i32
    %c0_i32_1 = arith.constant 0 : i32
    return %c0_i32, %c0_i32_0 : i32, i32
  }
  func.func @transform_4(%arg0: i32) -> (i32, i32) {
    %c0_i32 = arith.constant 0 : i32
    %c0_i32_0 = arith.constant 0 : i32
    %c0_i32_1 = arith.constant 0 : i32
    return %c0_i32, %c0_i32_0 : i32, i32
  }
  func.func @transform_5(%arg0: i32) -> (i32, i32) {
    %c0_i32 = arith.constant 0 : i32
    %c0_i32_0 = arith.constant 0 : i32
    %c0_i32_1 = arith.constant 0 : i32
    return %c0_i32, %c0_i32_0 : i32, i32
  }
  func.func @transform_6(%arg0: i32) -> (i32, i32, i32) {
    %c0_i32 = arith.constant 0 : i32
    %c0_i32_0 = arith.constant 0 : i32
    %c0_i32_1 = arith.constant 0 : i32
    return %arg0, %c0_i32, %c0_i32_0 : i32, i32, i32
  }
}

</mosaic_0001>

<bundles_post_ra>
// kernel: siammot_forward.1
= control target key start
LH: loop header
LB: loop body
LE: loop exit
PB: predicated region body
PF: predicated region fallthrough
CT: control target
= control target key end

     0   :  { %s10764_s21 = smov 0   ;;  %s16404_s0 = inlined_call_operand.vmem [shape: bf16[2,388,4], index: 0, kind: input, shape index: {}]   ;;  %s16405_s1 = inlined_call_operand.vmem [shape: bf16[36,32], index: 1, kind: input, shape index: {}]   ;;  %s16406_s2 = inlined_call_operand.vmem [shape: f32[1,32], index: 2, kind: input, shape index: {}]   ;;  %s16407_s3 = inlined_call_operand.vmem [shape: bf16[288,32], index: 3, kind: input, shape index: {}]   ;;  %s16408_s4 = inlined_call_operand.vmem [shape: f32[1,32], index: 4, kind: input, shape index: {}]   ;;  %s16409_s5 = inlined_call_operand.vmem [shape: bf16[512,2], index: 5, kind: input, shape index: {}]   ;;  %s16410_s6 = inlined_call_operand.vmem [shape: f32[2,256,2], index: 6, kind: output, shape index: {}]  }
   0x1 LB: > { %s9667_s22 = sadd.s32 4294967295, %s10713_s21   ;;  %p9671_p0 = scmp.ge.s32.totalorder %s10713_s21, 1  ;;  %s10713_s21 = sphi %s10764_s21, %s16_s21  }
   0x2   : > { %p212_p1 = scmp.lt.s32.totalorder %s10713_s21, 3 }
   0x4   : > { %p213_p2 = pnand %p9671_p0, %p212_p1 }
   0x6   : > { %216 = sbr.rel (%p213_p2) target bundleno = 1848 (0x738), region = 44 }
   0xd   : > { %p242_p3 = scmp.lt.s32.totalorder %s9667_s22, 1  ;;  %vm16412_vm0 = vcmask 1046528   ;;  %s10715_s27 = smov 20   ;;  %vm16417_vm1 = vsmask.f32 7424  ;;  %vm16418_vm2 = vcmask 1041408  }
   0xe   : > { %s10716_s28 = smov 8   ;;  %s10717_s29 = smov 12   ;;  %vm16411_vm3 = vsmask.f32 2304  ;;  %vm16415_vm4 = vsmask.f32 1280 }
   0xf   : > { %s17035_s22 = smov (!%p242_p3, %s9667_s22), 1  ;;  %s10718_s30 = smov 16   ;;  %vm16416_vm5 = vcmask 1040384   ;;  %vm10724_vm6 = vmmov 0   ;;  %vm1355_vm7 = vcmask 31744   ;;  %vm1398_vm8 = vcmask 64512  }
  0x10   : > { %s10555_s23 = smul.u32 196, %s17035_s22  ;;  %s10719_s7 = smov 4   ;;  %vm1441_vm9 = vcmask 97280   ;;  %vm1484_vm10 = vcmask 130048   ;;  %vm1527_vm11 = vcmask 162816   ;;  %vm1570_vm12 = vcmask 195584  }
  0x11   : > { %s10720_s8 = smov 24   ;;  %s10721_s9 = smov 28   ;;  %vm16413_vm13 = vcmask 228352   ;;  %vm1656_vm14 = vcmask 261120   ;;  %vm1711_vm15 = vsmask.f32 5376 }
  0x12   : > { %s10778_s26 = scalar_lea.vmem %s16404_s0, %s10555_s23  ;;  %s10722_s10 = smov 32  }
  0x13   : > { %v256_v0 = vld [vmem:[%s10778_s26 + $0x10] sm:$0xf]  ;;  %v257_v1 = vld [vmem:[%s10778_s26 + $0x14] sm:$0xf]  ;;  %v258_v2 = vld [vmem:[%s10778_s26 + $0x18] sm:$0xf] }
  0x14   : > { %v259_v3 = vld [vmem:[%s10778_s26 + $0x1c] sm:$0xf]  ;;  %v260_v4 = vld [vmem:[%s10778_s26 + $0x20] sm:$0xf]  ;;  %v10785_v5 = vcombine.low %v257_v1, %v258_v2  ;;  %v9697_v6 = vcombine.low %v256_v0, %v257_v1  ;;  %v255_v7 = vld [vmem:[%s10778_s26 + $0xc] sm:$0xf] }
  0x15   : > { %v10788_v9 = vcombine.low %v255_v7, %v256_v0  ;;  %v10791_v10 = vld [vmem:[%s10778_s26 + $0x4] sm:$0xff]   ;;  %v10794_v13 = vcombine.low %v259_v3, %v260_v4  ;;  %v10796_v15 = vcombine.low %v258_v2, %v259_v3  ;;  %v263_v60 = vld [vmem:[%s10778_s26 + $0x2c] sm:$0xf]  ;;  %s10727_s17 = smov 64   ;;  %s10728_s20 = smov 96  }
  0x16   : > { %v1000_v8 = vrot.slane %v9697_v6, 6  ;;  %v618_v11 = vrot.slane %v10785_v5, 1  ;;  %v770_v12 = vshrl.u32 %v9697_v6, 16  ;;  %v773_v14 = vshll.u32 %v9697_v6, 16  ;;  %v261_v26 = vld [vmem:[%s10778_s26 + $0x24] sm:$0xf] }
  0x17   : > { %v615_v16 = vrot.slane %v10791_v10, 1  ;;  %v616_v17 = vrot.slane %v10788_v9, 1  ;;  %v406_v20 = vshrl.u32 %v10791_v10, 16  ;;  %v408_v21 = vshll.u32 %v10791_v10, 16  ;;  %v262_v59 = vld [vmem:[%s10778_s26 + $0x28] sm:$0xf] }
  0x18   : > { %1041 = vrot.lane.b32.xlu0 %v1000_v8, %s10715_s27  ;;  %v772_v18 = vrot.slane %v770_v12, 5  ;;  %v775_v19 = vrot.slane %v773_v14, 6  ;;  %v413_v22 = vshll.u32 %v10788_v9, 16  ;;  %v620_v28 = vrot.slane %v10794_v13, 1 }
  0x19   : > { %v617_v23 = vsel %vm16412_vm0, %v615_v16, %v616_v17  ;;  %v619_v24 = vsel %vm16412_vm0, %v616_v17, %v618_v11  ;;  %v410_v25 = vrot.slane %v408_v21, 1  ;;  %v778_v29 = vshrl.u32 %v10796_v15, 16  ;;  %v264_v21 = vld [vmem:[%s10778_s26 + $0x30] sm:$0xf] }
  0x1a   : > { %656 = vrot.lane.b32.xlu1 %v617_v23, %s10716_s28  ;;  %v776_v27 = vor.u32 %v775_v19, %v772_v18  ;;  %v781_v30 = vshll.u32 %v10796_v15, 16  ;;  %v415_v32 = vrot.slane %v413_v22, 1  ;;  %v417_v33 = vshrl.u32 %v10788_v9, 16 }
  0x1b   : > { %v411_v31 = vor.u32 %v410_v25, %v406_v20  ;;  %v421_v34 = vshll.u32 %v10785_v5, 16  ;;  %v10814_v35 = vcombine.low %v260_v4, %v261_v26  ;;  %v621_v36 = vsel %vm16412_vm0, %v618_v11, %v620_v28  ;;  %v265_v25 = vld [vmem:[%s10778_s26 + $0x34] sm:$0xf] }
  0x1c   : > { %705 = vrot.lane.b32.xlu0 %v619_v24, %s10717_s29  ;;  %v1001_v37 = vrot.slane %v10796_v15, 6  ;;  %v780_v38 = vrot.slane %v778_v29, 5  ;;  %v783_v39 = vrot.slane %v781_v30, 6  ;;  %v419_v41 = vor.u32 %v417_v33, %v415_v32 }
  0x1d   : > { %v416_v40 = vsel %vm16417_vm1, %v411_v31, %v415_v32  ;;  %v423_v42 = vrot.slane %v421_v34, 1  ;;  %v787_v45 = vshrl.u32 %v10814_v35, 16  ;;  %v790_v46 = vshll.u32 %v10814_v35, 16 }
  0x1e   : > { %658 = vrot.lane.b32.xlu1 %v619_v24, %s10716_s28  ;;  %v1002_v43 = vsel %vm16418_vm2, %v1000_v8, %v1001_v37  ;;  %v784_v44 = vor.u32 %v783_v39, %v780_v38  ;;  %v1003_v48 = vrot.slane %v10814_v35, 6  ;;  %v1136_v49 = vrot.slane %v778_v29, 6 }
  0x1f   : > { %v424_v47 = vsel %vm16417_vm1, %v419_v41, %v423_v42  ;;  %v1137_v51 = vrot.slane %v781_v30, 7  ;;  %v1139_v52 = vrot.slane %v787_v45, 6  ;;  %v1140_v53 = vrot.slane %v790_v46, 7 }
  0x20   : > { %957 = vrot.lane.b32.xlu0 %v776_v27, %s10718_s30  ;;  %v785_v50 = vsel %vm16411_vm3, %v776_v27, %v784_v44  ;;  %v1004_v54 = vsel %vm16418_vm2, %v1001_v37, %v1003_v48  ;;  %v425_v57 = vshrl.u32 %v10785_v5, 16  ;;  %v429_v58 = vshll.u32 %v10794_v13, 16 }
  0x21   : > { %v1138_v55 = vor.u32 %v1137_v51, %v1136_v49  ;;  %v1141_v56 = vor.u32 %v1140_v53, %v1139_v52  ;;  %v1272_v62 = vrot.slane %v10796_v15, 7  ;;  %v1273_v63 = vrot.slane %v10814_v35, 7 }
  0x22   : > { %707 = vrot.lane.b32.xlu1 %v621_v36, %s10717_s29  ;;  %v427_v0 = vor.u32 %v425_v57, %v423_v42  ;;  %v431_v1 = vrot.slane %v429_v58, 1  ;;  %v10845_v2 = vcombine.low %v261_v26, %v262_v59  ;;  %v10847_v3 = vcombine.low %v262_v59, %v263_v60 }
  0x23   : > { %v1142_v61 = vsel %vm16415_vm4, %v1138_v55, %v1141_v56  ;;  %v1274_v4 = vsel %vm16416_vm5, %v1272_v62, %v1273_v63  ;;  %v789_v6 = vrot.slane %v787_v45, 5  ;;  %v792_v7 = vrot.slane %v790_v46, 6  ;;  %v266_v46 = vld [vmem:[%s10778_s26 + $0x38] sm:$0xf] }
  0x24   : > { %572 = vrot.lane.b32.xlu0 %v416_v40, %s10719_s7  ;;  %v432_v8 = vsel %vm16417_vm1, %v427_v0, %v431_v1  ;;  %v622_v11 = vrot.slane %v10845_v2, 1  ;;  %v796_v12 = vshrl.u32 %v10847_v3, 16  ;;  %v799_v14 = vshll.u32 %v10847_v3, 16  ;;  %v10599_v40 = vld [vmem:[%s16405_s1] sm:$0xff]  }
  0x25   : > { %v793_v15 = vor.u32 %v792_v7, %v789_v6  ;;  %v1005_v20 = vrot.slane %v10847_v3, 6  ;;  %v433_v23 = vshrl.u32 %v10794_v13, 16  ;;  %v437_v24 = vshll.u32 %v10845_v2, 16 }
  0x26   : > { %1043 = vrot.lane.b32.xlu1 %v1002_v43, %s10715_s27  ;;  %v623_v16 = vsel %vm16412_vm0, %v620_v28, %v622_v11  ;;  %v1143_v17 = vrot.slane %v796_v12, 6  ;;  %v1144_v18 = vrot.slane %v799_v14, 7  ;;  %v10870_v26 = vcombine.low %v263_v60, %v264_v21 }
  0x27   : > { %v794_v19 = vsel %vm16411_vm3, %v784_v44, %v793_v15  ;;  %v1006_v27 = vsel %vm16418_vm2, %v1003_v48, %v1005_v20  ;;  %v1275_v28 = vrot.slane %v10847_v3, 7  ;;  %v435_v30 = vor.u32 %v433_v23, %v431_v1 }
  0x28   : > { %574 = vrot.lane.b32.xlu0 %v424_v47, %s10719_s7  ;;  %v1145_v22 = vor.u32 %v1144_v18, %v1143_v17  ;;  %v439_v31 = vrot.slane %v437_v24, 1  ;;  %v10876_v32 = vcombine.low %v264_v21, %v265_v25  ;;  %v624_v33 = vrot.slane %v10870_v26, 1  ;;  %v10600_v47 = vld [vmem:[%s16405_s1 + $0x8] sm:$0xff]   ;;  %v268_v17 = vld [vmem:[%s10778_s26 + $0x40] sm:$0xf] }
  0x29   : > { %v1276_v34 = vsel %vm16416_vm5, %v1273_v63, %v1275_v28  ;;  %v798_v35 = vrot.slane %v796_v12, 5  ;;  %v16419_v45 = vmov 0.0   ;;  %v441_v52 = vshrl.u32 %v10845_v2, 16  ;;  %v269_v21 = vld [vmem:[%s10778_s26 + $0x44] sm:$0xf] }
  0x2a   : > { %959 = vrot.lane.b32.xlu1 %v785_v50, %s10718_s30  ;;  %v1146_v29 = vsel %vm16415_vm4, %v1141_v56, %v1145_v22  ;;  %v805_v38 = vshrl.u32 %v10876_v32, 16  ;;  %v808_v39 = vshll.u32 %v10876_v32, 16  ;;  %v625_v42 = vsel %vm16412_vm0, %v622_v11, %v624_v33  ;;  %10241 = vmatprep.subr.bf16.mxu0 %v16419_v45  ;;  %v10602_v50 = vld [vmem:[%s16405_s1 + $0x10] ss:$0 sps:$4 sm:$0x33]  }
  0x2b   : > { %10242 = vmatpush3.bf16.msra.mxu0 %v10599_v40  ;;  %v1007_v49 = vrot.slane %v10876_v32, 6  ;;  %v445_v53 = vshll.u32 %v10870_v26, 16  ;;  %v1277_v57 = vrot.slane %v10876_v32, 7  ;;  %v1960_v58 = vsel %vm16418_vm2, %v10602_v50, 0  ;;  %10247 = vmatprep.mubr.msk.bf16.mxu0 %vm10724_vm6, %v16419_v45 }
  0x2c   : > { %1093 = vrot.lane.b32.xlu0 %v1001_v37, %s10720_s8  ;;  %v440_v37 = vsel %vm16417_vm1, %v435_v30, %v439_v31  ;;  %v1147_v43 = vrot.slane %v805_v38, 6  ;;  %v1148_v44 = vrot.slane %v808_v39, 7  ;;  %10243 = vmatprep.subr.bf16.mxu0 %v16419_v45  ;;  %v443_v60 = vor.u32 %v441_v52, %v439_v31 }
  0x2d   : > { %v1008_v56 = vsel %vm16418_vm2, %v1005_v20, %v1007_v49  ;;  %v1278_v0 = vsel %vm16416_vm5, %v1275_v28, %v1277_v57  ;;  %v807_v1 = vrot.slane %v805_v38, 5  ;;  %v810_v3 = vrot.slane %v808_v39, 6 }
  0x2e   : > { %1095 = vrot.lane.b32.xlu1 %v1004_v54, %s10720_s8  ;;  %v1149_v51 = vor.u32 %v1148_v44, %v1147_v43 }
  0x2f   : > { %10244 = vmatpush3.bf16.msra.mxu0 %v10600_v47  ;;  %v270_v47 = vld [vmem:[%s10778_s26 + $0x48] sm:$0xf] }
  0x30   : > { %1229 = vrot.lane.b32.xlu0 %v1138_v55, %s10721_s9  ;;  %v10908_v55 = vcombine.low %v265_v25, %v266_v46  ;;  %10245 = vmatprep.subr.bf16.mxu0 %v16419_v45  ;;  %v1150_v59 = vsel %vm16415_vm4, %v1145_v22, %v1149_v51 }
  0x32   : > { %1231 = vrot.lane.b32.xlu1 %v1142_v61, %s10721_s9  ;;  %v447_v61 = vrot.slane %v445_v53, 1  ;;  %v626_v63 = vrot.slane %v10908_v55, 1  ;;  %v453_v20 = vshll.u32 %v10908_v55, 16  ;;  %v457_v43 = vshrl.u32 %v10908_v55, 16 }
  0x33   : > { %10246 = vmatpush3.bf16.msra.mxu0 %v1960_v58 }
  0x34   : > { %1313 = vrot.lane.b32.xlu0 %v1272_v62, %s10722_s10  ;;  %v627_v11 = vsel %vm16412_vm0, %v624_v33, %v626_v63  ;;  %v455_v28 = vrot.slane %v453_v20, 1 }
  0x36   : > { %1315 = vrot.lane.b32.xlu1 %v1274_v4, %s10722_s10  ;;  %v448_v4 = vsel %vm16417_vm1, %v443_v60, %v447_v61 }
  0x38   : > { %576 = vrot.lane.b32.xlu0 %v432_v8, %s10719_s7  ;;  %v811_v8 = vor.u32 %v810_v3, %v807_v1 }
  0x3a   : > { %660 = vrot.lane.b32.xlu1 %v621_v36, %s10716_s28  ;;  %v801_v36 = vrot.slane %v799_v14, 6 }
  0x3c   : > { %709 = vrot.lane.b32.xlu0 %v623_v16, %s10717_s29  ;;  %v802_v41 = vor.u32 %v801_v36, %v798_v35 }
  0x3e   : > { %961 = vrot.lane.b32.xlu1 %v794_v19, %s10718_s30  ;;  %v803_v48 = vsel %vm16411_vm3, %v793_v15, %v802_v41  ;;  %v812_v15 = vsel %vm16411_vm3, %v802_v41, %v811_v8  ;;  %v449_v19 = vshrl.u32 %v10870_v26, 16 }
  0x40   : > { %1045 = vrot.lane.b32.xlu0 %v1004_v54, %s10715_s27  ;;  %v267_v54 = vld [vmem:[%s10778_s26 + $0x3c] sm:$0xf] }
  0x41   : > { %v10916_v62 = vcombine.low %v266_v46, %v267_v54  ;;  %v10942_v24 = vcombine.low %v267_v54, %v268_v17  ;;  %v10970_v54 = vcombine.low %v269_v21, %v270_v47 }
  0x42   : > { %1097 = vrot.lane.b32.xlu1 %v1006_v27, %s10720_s8 }
  0x43   : > { %v814_v6 = vshrl.u32 %v10916_v62, 16  ;;  %v817_v7 = vshll.u32 %v10916_v62, 16  ;;  %v1279_v23 = vrot.slane %v10916_v62, 7  ;;  %v461_v46 = vshll.u32 %v10942_v24, 16 }
  0x44   : > { %1233 = vrot.lane.b32.xlu0 %v1146_v29, %s10721_s9  ;;  %v10945_v29 = vcombine.low %v268_v17, %v269_v21 }
  0x45   : > { %v1151_v12 = vrot.slane %v814_v6, 6  ;;  %v1152_v14 = vrot.slane %v817_v7, 7  ;;  %v1280_v30 = vsel %vm16416_vm5, %v1277_v57, %v1279_v23  ;;  %v816_v31 = vrot.slane %v814_v6, 5 }
  0x46   : > { %1317 = vrot.lane.b32.xlu1 %v1276_v34, %s10722_s10  ;;  %v819_v32 = vrot.slane %v817_v7, 6  ;;  %v628_v34 = vrot.slane %v10942_v24, 1  ;;  %v823_v35 = vshrl.u32 %v10945_v29, 16  ;;  %v826_v36 = vshll.u32 %v10945_v29, 16 }
  0x47   : > { %v1153_v18 = vor.u32 %v1152_v14, %v1151_v12  ;;  %v1281_v50 = vrot.slane %v10945_v29, 7  ;;  %v463_v53 = vrot.slane %v461_v46, 1  ;;  %v469_v12 = vshll.u32 %v10970_v54, 16  ;;  %v272_v14 = vld [vmem:[%s10778_s26 + $0x50] sm:$0xf] }
  0x48   : > { %578 = vrot.lane.b32.xlu0 %v440_v37, %s10719_s7  ;;  %v820_v37 = vor.u32 %v819_v32, %v816_v31  ;;  %v629_v38 = vsel %vm16412_vm0, %v626_v63, %v628_v34  ;;  %v1155_v39 = vrot.slane %v823_v35, 6  ;;  %v1156_v40 = vrot.slane %v826_v36, 7  ;;  %v275_v46 = vld [vmem:[%s10778_s26 + $0x5c] sm:$0xf] }
  0x49   : > { %v1154_v25 = vsel %vm16415_vm4, %v1149_v51, %v1153_v18  ;;  %v459_v51 = vor.u32 %v457_v43, %v455_v28  ;;  %v1282_v57 = vsel %vm16416_vm5, %v1279_v23, %v1281_v50  ;;  %v825_v58 = vrot.slane %v823_v35, 5 }
  0x4a   : > { %662 = vrot.lane.b32.xlu1 %v623_v16, %s10716_s28  ;;  %v1009_v16 = vrot.slane %v10916_v62, 6  ;;  %v821_v41 = vsel %vm16411_vm3, %v811_v8, %v820_v37  ;;  %v1157_v44 = vor.u32 %v1156_v40, %v1155_v39  ;;  %v471_v21 = vrot.slane %v469_v12, 1 }
  0x4b   : > { %v464_v60 = vsel %vm16417_vm1, %v459_v51, %v463_v53  ;;  %v473_v39 = vshrl.u32 %v10970_v54, 16 }
  0x4c   : > { %711 = vrot.lane.b32.xlu0 %v625_v42, %s10717_s29  ;;  %v1010_v22 = vsel %vm16418_vm2, %v1007_v49, %v1009_v16  ;;  %v1158_v52 = vsel %vm16415_vm4, %v1153_v18, %v1157_v44 }
  0x4e   : > { %963 = vrot.lane.b32.xlu1 %v803_v48, %s10718_s30  ;;  %v271_v48 = vld [vmem:[%s10778_s26 + $0x4c] sm:$0xf] }
  0x4f   : > { %v10996_v18 = vcombine.low %v271_v48, %v272_v14 }
  0x50   : > { %1047 = vrot.lane.b32.xlu0 %v1006_v27, %s10715_s27  ;;  %v451_v27 = vor.u32 %v449_v19, %v447_v61  ;;  %v630_v61 = vrot.slane %v10970_v54, 1 }
  0x52   : > { %1099 = vrot.lane.b32.xlu1 %v1008_v56, %s10720_s8  ;;  %v456_v33 = vsel %vm16417_vm1, %v451_v27, %v455_v28  ;;  %v631_v1 = vsel %vm16412_vm0, %v628_v34, %v630_v61 }
  0x54   : > { %1235 = vrot.lane.b32.xlu0 %v1150_v59, %s10721_s9  ;;  %v828_v59 = vrot.slane %v826_v36, 6 }
  0x56   : > { %1319 = vrot.lane.b32.xlu1 %v1278_v0, %s10722_s10  ;;  %v829_v0 = vor.u32 %v828_v59, %v825_v58 }
  0x58   : > { %580 = vrot.lane.b32.xlu0 %v448_v4, %s10719_s7  ;;  %v830_v6 = vsel %vm16411_vm3, %v820_v37, %v829_v0 }
  0x5a   : > { %664 = vrot.lane.b32.xlu1 %v625_v42, %s10716_s28  ;;  %v1011_v42 = vrot.slane %v10945_v29, 6  ;;  %v632_v29 = vrot.slane %v10996_v18, 1 }
  0x5c   : > { %713 = vrot.lane.b32.xlu0 %v627_v11, %s10717_s29  ;;  %v1012_v49 = vsel %vm16418_vm2, %v1009_v16, %v1011_v42 }
  0x5e   : > { %965 = vrot.lane.b32.xlu1 %v812_v15, %s10718_s30  ;;  %v273_v15 = vld [vmem:[%s10778_s26 + $0x54] sm:$0xf] }
  0x60   : > { %1049 = vrot.lane.b32.xlu0 %v1008_v56, %s10715_s27  ;;  %v10972_v56 = vcombine.low %v270_v47, %v271_v48 }
  0x62   : > { %1101 = vrot.lane.b32.xlu1 %v1010_v22, %s10720_s8  ;;  %v832_v62 = vshrl.u32 %v10972_v56, 16  ;;  %v835_v63 = vshll.u32 %v10972_v56, 16  ;;  %v1013_v7 = vrot.slane %v10972_v56, 6  ;;  %v1283_v17 = vrot.slane %v10972_v56, 7 }
  0x64   : > { %1237 = vrot.lane.b32.xlu0 %v1154_v25, %s10721_s9  ;;  %v1159_v3 = vrot.slane %v832_v62, 6  ;;  %v1160_v4 = vrot.slane %v835_v63, 7  ;;  %v1014_v16 = vsel %vm16418_vm2, %v1011_v42, %v1013_v7  ;;  %v1284_v23 = vsel %vm16416_vm5, %v1281_v50, %v1283_v17 }
  0x65   : > { %v834_v25 = vrot.slane %v832_v62, 5  ;;  %v837_v27 = vrot.slane %v835_v63, 6  ;;  %v477_v42 = vshll.u32 %v10996_v18, 16 }
  0x66   : > { %1321 = vrot.lane.b32.xlu1 %v1280_v30, %s10722_s10  ;;  %v1161_v8 = vor.u32 %v1160_v4, %v1159_v3 }
  0x67   : > { %v838_v32 = vor.u32 %v837_v27, %v834_v25  ;;  %v276_v27 = vld [vmem:[%s10778_s26 + $0x60] sm:$0xf] }
  0x68   : > { %582 = vrot.lane.b32.xlu0 %v456_v33, %s10719_s7  ;;  %v1162_v19 = vsel %vm16415_vm4, %v1157_v44, %v1161_v8  ;;  %v633_v33 = vsel %vm16412_vm0, %v630_v61, %v632_v29  ;;  %v274_v44 = vld [vmem:[%s10778_s26 + $0x58] sm:$0xf] }
  0x69   : > { %v839_v37 = vsel %vm16411_vm3, %v829_v0, %v838_v32  ;;  %v11033_v56 = vcombine.low %v274_v44, %v275_v46 }
  0x6a   : > { %666 = vrot.lane.b32.xlu1 %v627_v11, %s10716_s28  ;;  %v465_v11 = vshrl.u32 %v10942_v24, 16 }
  0x6b   : > { %v850_v0 = vshrl.u32 %v11033_v56, 16 }
  0x6c   : > { %715 = vrot.lane.b32.xlu0 %v629_v38, %s10717_s29  ;;  %v467_v20 = vor.u32 %v465_v11, %v463_v53  ;;  %v11031_v53 = vcombine.low %v273_v15, %v274_v44 }
  0x6d   : > { %v1167_v11 = vrot.slane %v850_v0, 6 }
  0x6e   : > { %967 = vrot.lane.b32.xlu1 %v821_v41, %s10718_s30  ;;  %v472_v28 = vsel %vm16417_vm1, %v467_v20, %v471_v21  ;;  %v634_v63 = vrot.slane %v11031_v53, 1  ;;  %v481_v20 = vshrl.u32 %v10996_v18, 16 }
  0x70   : > { %1051 = vrot.lane.b32.xlu0 %v1010_v22, %s10715_s27  ;;  %v10999_v22 = vcombine.low %v272_v14, %v273_v15 }
  0x72   : > { %1103 = vrot.lane.b32.xlu1 %v1012_v49, %s10720_s8  ;;  %v841_v30 = vshrl.u32 %v10999_v22, 16  ;;  %v844_v31 = vshll.u32 %v10999_v22, 16  ;;  %v1285_v48 = vrot.slane %v10999_v22, 7 }
  0x74   : > { %1239 = vrot.lane.b32.xlu0 %v1158_v52, %s10721_s9  ;;  %v1163_v34 = vrot.slane %v841_v30, 6  ;;  %v1164_v35 = vrot.slane %v844_v31, 7  ;;  %v479_v52 = vrot.slane %v477_v42, 1  ;;  %v1286_v58 = vsel %vm16416_vm5, %v1283_v17, %v1285_v48 }
  0x75   : > { %v843_v59 = vrot.slane %v841_v30, 5 }
  0x76   : > { %1323 = vrot.lane.b32.xlu1 %v1282_v57, %s10722_s10  ;;  %v11018_v41 = vor.u32 %v1164_v35, %v1163_v34  ;;  %v11087_v35 = vcombine.low %v275_v46, %v276_v27  ;;  %v852_v46 = vrot.slane %v850_v0, 5 }
  0x78   : > { %584 = vrot.lane.b32.xlu0 %v464_v60, %s10719_s7  ;;  %v1166_v51 = vsel %vm16415_vm4, %v1161_v8, %v11018_v41  ;;  %v846_v60 = vrot.slane %v844_v31, 6  ;;  %v11053_v8 = vsel %vm16412_vm0, %v632_v29, %v634_v63  ;;  %v11072_v29 = vld [vmem:[%s10778_s26 + $0x64] sm:$0xf]  ;;  %v1287_v31 = vrot.slane %v11033_v56, 7 }
  0x79   : > { %v11094_v42 = vcombine.low %v276_v27, %v11072_v29  ;;  %v493_v27 = vshll.u32 %v11087_v35, 16 }
  0x7a   : > { %668 = vrot.lane.b32.xlu1 %v629_v38, %s10716_s28  ;;  %v1015_v38 = vrot.slane %v10999_v22, 6  ;;  %v1288_v44 = vsel %vm16416_vm5, %v1285_v48, %v1287_v31 }
  0x7b   : > { %v859_v48 = vshrl.u32 %v11094_v42, 16 }
  0x7c   : > { %717 = vrot.lane.b32.xlu0 %v631_v1, %s10717_s29  ;;  %v1016_v47 = vsel %vm16418_vm2, %v1013_v7, %v1015_v38 }
  0x7e   : > { %969 = vrot.lane.b32.xlu1 %v830_v6, %s10718_s30  ;;  %v11048_v6 = vor.u32 %v846_v60, %v843_v59 }
  0x80   : > { %1053 = vrot.lane.b32.xlu0 %v1012_v49, %s10715_s27  ;;  %v475_v49 = vor.u32 %v473_v39, %v471_v21  ;;  %v485_v21 = vshll.u32 %v11031_v53, 16 }
  0x82   : > { %1105 = vrot.lane.b32.xlu1 %v1014_v16, %s10720_s8  ;;  %v480_v62 = vsel %vm16417_vm1, %v475_v49, %v479_v52  ;;  %v11085_v34 = vrot.slane %v485_v21, 1  ;;  %v636_v49 = vrot.slane %v11087_v35, 1  ;;  %v1019_v21 = vrot.slane %v11094_v42, 6 }
  0x84   : > { %1241 = vrot.lane.b32.xlu0 %v1162_v19, %s10721_s9  ;;  %v848_v19 = vsel %vm16411_vm3, %v838_v32, %v11048_v6 }
  0x86   : > { %1325 = vrot.lane.b32.xlu1 %v1284_v23, %s10722_s10 }
  0x88   : > { %586 = vrot.lane.b32.xlu0 %v472_v28, %s10719_s7 }
  0x8a   : > { %v11011_v36 = vpop.permute.xlu0 %1041  ;;  %670 = vrot.lane.b32.xlu1 %v631_v1, %s10716_s28  ;;  %v853_v1 = vshll.u32 %v11033_v56, 16 }
  0x8c   : > { %719 = vrot.lane.b32.xlu0 %v633_v33, %s10717_s29  ;;  %v657_v40 = vpop.permute.xlu1 %656  ;;  %v1168_v12 = vrot.slane %v853_v1, 7 }
  0x8e   : > { %v706_v43 = vpop.permute.xlu0 %705  ;;  %971 = vrot.lane.b32.xlu1 %v839_v37, %s10718_s30  ;;  %v11067_v25 = vor.u32 %v1168_v12, %v1167_v11 }
  0x90   : > { %1055 = vrot.lane.b32.xlu0 %v1014_v16, %s10715_s27  ;;  %v659_v50 = vpop.permute.xlu1 %658  ;;  %v1017_v16 = vrot.slane %v11033_v56, 6 }
  0x92   : > { %v958_v57 = vpop.permute.xlu0 %957  ;;  %1107 = vrot.lane.b32.xlu1 %v1016_v47, %s10720_s8  ;;  %v11083_v32 = vsel %vm16418_vm2, %v1015_v38, %v1017_v16 }
  0x94   : > { %1243 = vrot.lane.b32.xlu0 %v1166_v51, %s10721_s9  ;;  %v708_v61 = vpop.permute.xlu1 %707 }
  0x96   : > { %v573_v3 = vpop.permute.xlu0 %572  ;;  %1327 = vrot.lane.b32.xlu1 %v1286_v58, %s10722_s10 }
  0x97   : > { %v1357_v4 = vsel %vm1355_vm7, %v10791_v10, %v573_v3 }
  0x98   : > { %588 = vrot.lane.b32.xlu0 %v480_v62, %s10719_s7  ;;  %v1044_v7 = vpop.permute.xlu1 %1043  ;;  %v1400_v15 = vsel %vm1398_vm8, %v1357_v4, %v657_v40  ;;  %v1170_v40 = vsel %vm16415_vm4, %v11018_v41, %v11067_v25  ;;  %v11127_v4 = vsel %vm16412_vm0, %v634_v63, %v636_v49 }
  0x9a   : > { %v575_v14 = vpop.permute.xlu0 %574  ;;  %672 = vrot.lane.b32.xlu1 %v633_v33, %s10716_s28  ;;  %v483_v33 = vor.u32 %v481_v20, %v479_v52 }
  0x9b   : > { %v1359_v10 = vsel %vm1355_vm7, %v10788_v9, %v575_v14  ;;  %v1443_v9 = vsel %vm1441_vm9, %v1400_v15, %v706_v43 }
  0x9c   : > { %v1402_v17 = vsel %vm1398_vm8, %v1359_v10, %v659_v50  ;;  %721 = vrot.lane.b32.xlu0 %v11053_v8, %s10717_s29  ;;  %v960_v23 = vpop.permute.xlu1 %959  ;;  %v1486_v37 = vsel %vm1484_vm10, %v1443_v9, %v958_v57  ;;  %v855_v50 = vrot.slane %v853_v1, 6  ;;  %v862_v57 = vshll.u32 %v11094_v42, 16 }
  0x9d   : > { %v1445_v30 = vsel %vm1441_vm9, %v1402_v17, %v708_v61  ;;  %v1529_v41 = vsel %vm1527_vm11, %v1486_v37, %v11011_v36 }
  0x9e   : > { %v1094_v28 = vpop.permute.xlu0 %1093  ;;  %973 = vrot.lane.b32.xlu1 %v848_v19, %s10718_s30  ;;  %v1488_v43 = vsel %vm1484_vm10, %v1445_v30, %v960_v23  ;;  %v11119_v0 = vor.u32 %v855_v50, %v852_v46  ;;  %v1172_v11 = vrot.slane %v862_v57, 7  ;;  %v489_v23 = vshrl.u32 %v11031_v53, 16 }
  0x9f   : > { %v1572_v51 = vsel %vm1570_vm12, %v1529_v41, %v1094_v28  ;;  %v1531_v52 = vsel %vm1527_vm11, %v1488_v43, %v1044_v7  ;;  %v1171_v7 = vrot.slane %v859_v48, 6  ;;  %v495_v41 = vrot.slane %v493_v27, 1 }
  0xa0   : > { %1057 = vrot.lane.b32.xlu0 %v1016_v47, %s10715_s27  ;;  %v1096_v39 = vpop.permute.xlu1 %1095  ;;  %v488_v47 = vsel %vm16417_vm1, %v483_v33, %v11085_v34  ;;  %v857_v63 = vsel %vm16411_vm3, %v11048_v6, %v11119_v0  ;;  %vm1894_vm3 = vcmask 293888   ;;  %v491_v46 = vor.u32 %v489_v23, %v11085_v34 }
  0xa1   : > { %v1574_v60 = vsel %vm1570_vm12, %v1531_v52, %v1096_v39  ;;  %v11142_v33 = vor.u32 %v1172_v11, %v1171_v7  ;;  %v278_v39 = vld [vmem:[%s10778_s26 + $0x68] sm:$0xf] }
  0xa2   : > { %v1230_v38 = vpop.permute.xlu0 %1229  ;;  %1109 = vrot.lane.b32.xlu1 %v11083_v32, %s10720_s8 }
  0xa3   : > { %v1615_v58 = vsel %vm16413_vm13, %v1572_v51, %v1230_v38  ;;  %v1020_v38 = vsel %vm16418_vm2, %v1017_v16, %v1019_v21  ;;  %v1174_v51 = vsel %vm16415_vm4, %v11067_v25, %v11142_v33 }
  0xa4   : > { %1245 = vrot.lane.b32.xlu0 %v1170_v40, %s10721_s9  ;;  %v1232_v22 = vpop.permute.xlu1 %1231  ;;  %v11147_v40 = vld [vmem:[%s10778_s26 + $0x6c] sm:$0xf] }
  0xa5   : > { %v1617_v1 = vsel %vm16413_vm13, %v1574_v60, %v1232_v22  ;;  %v11171_v52 = vcombine.low %v278_v39, %v11147_v40 }
  0xa6   : > { %v1314_v36 = vpop.permute.xlu0 %1313  ;;  %1329 = vrot.lane.b32.xlu1 %v1288_v44, %s10722_s10  ;;  %v1289_v44 = vrot.slane %v11094_v42, 7 }
  0xa7   : > { %v1658_v59 = vsel %vm1656_vm14, %v1615_v58, %v1314_v36  ;;  %v864_v58 = vrot.slane %v862_v57, 6 }
  0xa8   : > { %v1712_v61 = vshrl.u32 %v1658_v59, 16  ;;  %v1715_v62 = vshll.u32 %v1658_v59, 16  ;;  %590 = vrot.lane.b32.xlu0 %v488_v47, %s10719_s7  ;;  %v1316_v3 = vpop.permute.xlu1 %1315  ;;  %v1290_v25 = vsel %vm16416_vm5, %v1287_v31, %v1289_v44  ;;  %v496_v59 = vsel %vm16417_vm1, %v491_v46, %v495_v41 }
  0xa9   : > { %v1660_v15 = vsel %vm1656_vm14, %v1617_v1, %v1316_v3 }
  0xaa   : > { %v1714_v12 = vrot.slane %v1712_v61, 2  ;;  %v1717_v14 = vrot.slane %v1715_v62, 3  ;;  %v577_v10 = vpop.permute.xlu0 %576  ;;  %v1719_v17 = vshrl.u32 %v1660_v15, 16  ;;  %v1722_v19 = vshll.u32 %v1660_v15, 16  ;;  %674 = vrot.lane.b32.xlu1 %v11053_v8, %s10716_s28 }
  0xab   : > { %v1361_v20 = vsel %vm1355_vm7, %v10785_v5, %v577_v10  ;;  %v868_v61 = vshrl.u32 %v11171_v52, 16  ;;  %v871_v62 = vshll.u32 %v11171_v52, 16 }
  0xac   : > { %723 = vrot.lane.b32.xlu0 %v11127_v4, %s10717_s29  ;;  %v1718_v9 = vor.u32 %v1717_v14, %v1714_v12  ;;  %v1721_v28 = vrot.slane %v1719_v17, 2  ;;  %v1724_v8 = vrot.slane %v1722_v19, 3  ;;  %v661_v30 = vpop.permute.xlu1 %660  ;;  %v1021_v19 = vrot.slane %v11171_v52, 6 }
  0xad   : > { %v1404_v5 = vsel %vm1398_vm8, %v1361_v20, %v661_v30  ;;  %v1175_v7 = vrot.slane %v868_v61, 6  ;;  %v1176_v11 = vrot.slane %v871_v62, 7  ;;  %v497_v20 = vshrl.u32 %v11087_v35, 16 }
  0xae   : > { %v710_v37 = vpop.permute.xlu0 %709  ;;  %v11149_v6 = vor.u32 %v1724_v8, %v1721_v28  ;;  %975 = vrot.lane.b32.xlu1 %v857_v63, %s10718_s30  ;;  %v280_v63 = vld [vmem:[%s10778_s26 + $0x70] sm:$0xf] }
  0xaf   : > { %v1447_v43 = vsel %vm1441_vm9, %v1404_v5, %v710_v37  ;;  %v11215_v28 = vor.u32 %v1176_v11, %v1175_v7  ;;  %v1022_v37 = vsel %vm16418_vm2, %v1019_v21, %v1021_v19 }
  0xb0   : > { %1059 = vrot.lane.b32.xlu0 %v11083_v32, %s10715_s27  ;;  %v962_v47 = vpop.permute.xlu1 %961  ;;  %v1726_v50 = vsel %vm1711_vm15, %v1718_v9, %v11149_v6  ;;  %v11168_v32 = vcombine.low %v11072_v29, %v278_v39  ;;  %v861_v29 = vrot.slane %v859_v48, 5  ;;  %v1291_v39 = vrot.slane %v11171_v52, 7 }
  0xb1   : > { %v1490_v16 = vsel %vm1484_vm10, %v1447_v43, %v962_v47  ;;  %10248 = vmatmul.mubr.msk.bf16.vlgmr.msra.gmra.mrb[0].mxu0 %vm1894_vm3, %v1726_v50  ;;  %v11234_v43 = vcombine.low %v11147_v40, %v280_v63 }
  0xb2   : > { %v1046_v34 = vpop.permute.xlu0 %1045  ;;  %1111 = vrot.lane.b32.xlu1 %v1020_v38, %s10720_s8  ;;  %10251 = vmatprep.mubr.msk.bf16.mxu0 %vm10724_vm6, %v16419_v45  ;;  %v638_v60 = vrot.slane %v11168_v32, 1  ;;  %v11193_v31 = vor.u32 %v864_v58, %v861_v29 }
  0xb3   : > { %v1533_v22 = vsel %vm1527_vm11, %v1490_v16, %v1046_v34  ;;  %v640_v29 = vrot.slane %v11234_v43, 1 }
  0xb4   : > { %1247 = vrot.lane.b32.xlu0 %v1174_v51, %s10721_s9  ;;  %v1098_v36 = vpop.permute.xlu1 %1097  ;;  %v11200_v57 = vsel %vm16412_vm0, %v636_v49, %v638_v60  ;;  %vm16521_vm0 = vsmask.f32 2304  ;;  %v499_v51 = vor.u32 %v497_v20, %v495_v41  ;;  %v873_v41 = vrot.slane %v871_v62, 6 }
  0xb5   : > { %v1576_v1 = vsel %vm1570_vm12, %v1533_v22, %v1098_v36  ;;  %v866_v49 = vsel %vm16521_vm0, %v11119_v0, %v11193_v31  ;;  %vm16522_vm0 = vcmask 1046528  }
  0xb6   : > { %v1234_v3 = vpop.permute.xlu0 %1233  ;;  %1331 = vrot.lane.b32.xlu1 %v1290_v25, %s10722_s10  ;;  %v11272_v62 = vsel %vm16522_vm0, %v638_v60, %v640_v29  ;;  %vm16523_vm0 = vsmask.f32 2304 }
  0xb7   : > { %v1619_v56 = vsel %vm16413_vm13, %v1576_v1, %v1234_v3 }
  0xb8   : > { %592 = vrot.lane.b32.xlu0 %v496_v59, %s10719_s7  ;;  %v1318_v48 = vpop.permute.xlu1 %1317 }
  0xb9   : > { %v1662_v12 = vsel %vm1656_vm14, %v1619_v56, %v1318_v48 }
  0xba   : > { %v579_v14 = vpop.permute.xlu0 %578  ;;  %v1727_v15 = vshrl.u32 %v1662_v12, 16  ;;  %v1730_v10 = vshll.u32 %v1662_v12, 16  ;;  %676 = vrot.lane.b32.xlu1 %v11127_v4, %s10716_s28  ;;  %v501_v4 = vshll.u32 %v11168_v32, 16 }
  0xbb   : > { %v1363_v17 = vsel %vm1355_vm7, %v10794_v13, %v579_v14  ;;  %v11219_v13 = vld [vmem:[%s10778_s26 + $0x74] sm:$0xf] }
  0xbc   : > { %725 = vrot.lane.b32.xlu0 %v11200_v57, %s10717_s29  ;;  %v1729_v23 = vrot.slane %v1727_v15, 2  ;;  %v1732_v27 = vrot.slane %v1730_v10, 3  ;;  %v663_v9 = vpop.permute.xlu1 %662  ;;  %v11237_v46 = vcombine.low %v280_v63, %v11219_v13  ;;  %v503_v16 = vrot.slane %v501_v4, 1 }
  0xbd   : > { %v1406_v8 = vsel %vm1398_vm8, %v1363_v17, %v663_v9  ;;  %v505_v10 = vshrl.u32 %v11168_v32, 16  ;;  %v509_v17 = vshll.u32 %v11234_v43, 16  ;;  %v11292_v9 = vld [vmem:[%s10778_s26 + $0x7c] sm:$0xf] }
  0xbe   : > { %v712_v30 = vpop.permute.xlu0 %711  ;;  %v11222_v5 = vor.u32 %v1732_v27, %v1729_v23  ;;  %977 = vrot.lane.b32.xlu1 %v866_v49, %s10718_s30  ;;  %v504_v25 = vsel %vm16417_vm1, %v499_v51, %v503_v16  ;;  %v877_v58 = vshrl.u32 %v11237_v46, 16  ;;  %v880_v36 = vshll.u32 %v11237_v46, 16  ;;  %v282_v27 = vld [vmem:[%s10778_s26 + $0x78] sm:$0xf] }
  0xbf   : > { %v1449_v0 = vsel %vm1441_vm9, %v1406_v8, %v712_v30  ;;  %v1023_v15 = vrot.slane %v11237_v46, 6  ;;  %v1293_v30 = vrot.slane %v11237_v46, 7 }
  0xc0   : > { %1061 = vrot.lane.b32.xlu0 %v1020_v38, %s10715_s27  ;;  %v964_v47 = vpop.permute.xlu1 %963  ;;  %v1734_v50 = vsel %vm1711_vm15, %v11149_v6, %v11222_v5  ;;  %v1178_v38 = vsel %vm16415_vm4, %v11142_v33, %v11215_v28  ;;  %v1292_v33 = vsel %vm16416_vm5, %v1289_v44, %v1291_v39  ;;  %v870_v6 = vrot.slane %v868_v61, 5 }
  0xc1   : > { %v1492_v21 = vsel %vm1484_vm10, %v1449_v0, %v964_v47  ;;  %10252 = vmatmul.mubr.msk.bf16.gmra.mrb[4].mxu0 %vm1894_vm3, %v1734_v50  ;;  %v1179_v3 = vrot.slane %v877_v58, 6  ;;  %v1180_v56 = vrot.slane %v880_v36, 7  ;;  %v1024_v8 = vsel %vm16418_vm2, %v1021_v19, %v1023_v15 }
  0xc2   : > { %v1048_v40 = vpop.permute.xlu0 %1047  ;;  %1113 = vrot.lane.b32.xlu1 %v1022_v37, %s10720_s8  ;;  %10255 = vmatprep.mubr.msk.bf16.mxu0 %vm10724_vm6, %v16419_v45  ;;  %v11265_v44 = vor.u32 %v873_v41, %v870_v6  ;;  %v507_v0 = vor.u32 %v505_v10, %v503_v16  ;;  %v511_v47 = vrot.slane %v509_v17, 1 }
  0xc3   : > { %v1535_v34 = vsel %vm1527_vm11, %v1492_v21, %v1048_v40  ;;  %v11315_v21 = vcombine.low %v282_v27, %v11292_v9 }
  0xc4   : > { %1249 = vrot.lane.b32.xlu0 %v1178_v38, %s10721_s9  ;;  %v1100_v22 = vpop.permute.xlu1 %1099  ;;  %v875_v60 = vsel %vm16523_vm0, %v11193_v31, %v11265_v44  ;;  %vm16524_vm0 = vcmask 1046528  }
  0xc5   : > { %v1578_v59 = vsel %vm1570_vm12, %v1535_v34, %v1100_v22  ;;  %v886_v41 = vshrl.u32 %v11315_v21, 16  ;;  %v889_v22 = vshll.u32 %v11315_v21, 16 }
  0xc6   : > { %v1236_v1 = vpop.permute.xlu0 %1235  ;;  %1333 = vrot.lane.b32.xlu1 %v1292_v33, %s10722_s10  ;;  %v512_v33 = vsel %vm16417_vm1, %v507_v0, %v511_v47 }
  0xc7   : > { %v1621_v42 = vsel %vm16413_vm13, %v1578_v59, %v1236_v1  ;;  %v1183_v1 = vrot.slane %v886_v41, 6 }
  0xc8   : > { %594 = vrot.lane.b32.xlu0 %v504_v25, %s10719_s7  ;;  %v1320_v61 = vpop.permute.xlu1 %1319 }
  0xc9   : > { %v1664_v48 = vsel %vm1656_vm14, %v1621_v42, %v1320_v61  ;;  %v1184_v42 = vrot.slane %v889_v22, 7 }
  0xca   : > { %v581_v7 = vpop.permute.xlu0 %580  ;;  %v1735_v11 = vshrl.u32 %v1664_v48, 16  ;;  %v1738_v12 = vshll.u32 %v1664_v48, 16  ;;  %678 = vrot.lane.b32.xlu1 %v11200_v57, %s10716_s28  ;;  %v11287_v57 = vor.u32 %v1180_v56, %v1179_v3 }
  0xcb   : > { %v1365_v14 = vsel %vm1355_vm7, %v10845_v2, %v581_v7  ;;  %v11358_v17 = vor.u32 %v1184_v42, %v1183_v1 }
  0xcc   : > { %727 = vrot.lane.b32.xlu0 %v11272_v62, %s10717_s29  ;;  %v1737_v49 = vrot.slane %v1735_v11, 2  ;;  %v1740_v20 = vrot.slane %v1738_v12, 3  ;;  %v665_v63 = vpop.permute.xlu1 %664  ;;  %v1182_v51 = vsel %vm16415_vm4, %v11215_v28, %v11287_v57  ;;  %v1294_v28 = vsel %vm16416_vm5, %v1291_v39, %v1293_v30 }
  0xcd   : > { %v1408_v2 = vsel %vm1398_vm8, %v1365_v14, %v665_v63  ;;  %v1025_v11 = vrot.slane %v11315_v21, 6  ;;  %v513_v12 = vshrl.u32 %v11234_v43, 16  ;;  %v284_v63 = vld [vmem:[%s10778_s26 + $0x80] sm:$0xf] }
  0xce   : > { %v714_v23 = vpop.permute.xlu0 %713  ;;  %v11294_v4 = vor.u32 %v1740_v20, %v1737_v49  ;;  %979 = vrot.lane.b32.xlu1 %v875_v60, %s10718_s30  ;;  %v11362_v49 = vld [vmem:[%s10778_s26 + $0x84] sm:$0xf] }
  0xcf   : > { %v1451_v31 = vsel %vm1441_vm9, %v1408_v2, %v714_v23  ;;  %v1295_v23 = vrot.slane %v11315_v21, 7  ;;  %v11378_v0 = vcombine.low %v284_v63, %v11362_v49 }
  0xd0   : > { %1063 = vrot.lane.b32.xlu0 %v1022_v37, %s10715_s27  ;;  %v966_v50 = vpop.permute.xlu1 %965  ;;  %v1742_v38 = vsel %vm1711_vm15, %v11222_v5, %v11294_v4  ;;  %v11312_v37 = vcombine.low %v11219_v13, %v282_v27  ;;  %v879_v13 = vrot.slane %v877_v58, 5  ;;  %v882_v5 = vrot.slane %v880_v36, 6 }
  0xd1   : > { %v1494_v19 = vsel %vm1484_vm10, %v1451_v31, %v966_v50  ;;  %10256 = vmatmul.mubr.msk.bf16.gmra.mrb[8].mxu0 %vm1894_vm3, %v1742_v38  ;;  %v1026_v27 = vsel %vm16418_vm2, %v1023_v15, %v1025_v11  ;;  %v515_v31 = vor.u32 %v513_v12, %v511_v47 }
  0xd2   : > { %v1050_v16 = vpop.permute.xlu0 %1049  ;;  %1115 = vrot.lane.b32.xlu1 %v1024_v8, %s10720_s8  ;;  %10259 = vmatprep.mubr.msk.bf16.mxu0 %vm10724_vm6, %v16419_v45  ;;  %v642_v6 = vrot.slane %v11312_v37, 1  ;;  %v11337_v39 = vor.u32 %v882_v5, %v879_v13 }
  0xd3   : > { %v1537_v40 = vsel %vm1527_vm11, %v1494_v19, %v1050_v16  ;;  %v11387_v19 = vcombine.low %v11292_v9, %v284_v63  ;;  %v891_v9 = vrot.slane %v889_v22, 6 }
  0xd4   : > { %1251 = vrot.lane.b32.xlu0 %v1182_v51, %s10721_s9  ;;  %v1102_v34 = vpop.permute.xlu1 %1101  ;;  %v11344_v36 = vsel %vm16524_vm0, %v640_v29, %v642_v6  ;;  %vm16525_vm0 = vsmask.f32 2304  ;;  %v1186_v51 = vsel %vm16415_vm4, %v11287_v57, %v11358_v17  ;;  %v888_v57 = vrot.slane %v886_v41, 5 }
  0xd5   : > { %v1580_v25 = vsel %vm1570_vm12, %v1537_v40, %v1102_v34  ;;  %v884_v29 = vsel %vm16525_vm0, %v11265_v44, %v11337_v39  ;;  %v895_v40 = vshrl.u32 %v11378_v0, 16  ;;  %v644_v34 = vrot.slane %v11387_v19, 1 }
  0xd6   : > { %v1238_v59 = vpop.permute.xlu0 %1237  ;;  %1335 = vrot.lane.b32.xlu1 %v1294_v28, %s10722_s10  ;;  %v898_v28 = vshll.u32 %v11378_v0, 16  ;;  %v11409_v41 = vor.u32 %v891_v9, %v888_v57  ;;  %vm16526_vm0 = vcmask 1046528  }
  0xd7   : > { %v1623_v52 = vsel %vm16413_vm13, %v1580_v25, %v1238_v59  ;;  %v1187_v22 = vrot.slane %v895_v40, 6 }
  0xd8   : > { %596 = vrot.lane.b32.xlu0 %v512_v33, %s10719_s7  ;;  %v1322_v58 = vpop.permute.xlu1 %1321  ;;  %v1188_v25 = vrot.slane %v898_v28, 7 }
  0xd9   : > { %v1666_v61 = vsel %vm1656_vm14, %v1623_v52, %v1322_v58  ;;  %v645_v52 = vsel %vm16526_vm0, %v642_v6, %v644_v34  ;;  %v1027_v6 = vrot.slane %v11378_v0, 6 }
  0xda   : > { %v583_v3 = vpop.permute.xlu0 %582  ;;  %v1743_v56 = vshrl.u32 %v1666_v61, 16  ;;  %v1746_v48 = vshll.u32 %v1666_v61, 16  ;;  %680 = vrot.lane.b32.xlu1 %v11272_v62, %s10716_s28  ;;  %v517_v62 = vshll.u32 %v11312_v37, 16 }
  0xdb   : > { %v1367_v7 = vsel %vm1355_vm7, %v10870_v26, %v583_v3  ;;  %v1028_v63 = vsel %vm16418_vm2, %v1025_v11, %v1027_v6 }
  0xdc   : > { %729 = vrot.lane.b32.xlu0 %v11344_v36, %s10717_s29  ;;  %v1745_v14 = vrot.slane %v1743_v56, 2  ;;  %v1748_v60 = vrot.slane %v1746_v48, 3  ;;  %v667_v10 = vpop.permute.xlu1 %666  ;;  %v11426_v48 = vor.u32 %v1188_v25, %v1187_v22 }
  0xdd   : > { %v1410_v26 = vsel %vm1398_vm8, %v1367_v7, %v667_v10 }
  0xde   : > { %v716_v20 = vpop.permute.xlu0 %715  ;;  %v11366_v2 = vor.u32 %v1748_v60, %v1745_v14  ;;  %981 = vrot.lane.b32.xlu1 %v884_v29, %s10718_s30  ;;  %v521_v14 = vshrl.u32 %v11312_v37, 16  ;;  %v11431_v60 = vld [vmem:[%s10778_s26 + $0x8c] sm:$0xf] }
  0xdf   : > { %v1453_v44 = vsel %vm1441_vm9, %v1410_v26, %v716_v20  ;;  %v1297_v20 = vrot.slane %v11378_v0, 7 }
  0xe0   : > { %1065 = vrot.lane.b32.xlu0 %v1024_v8, %s10715_s27  ;;  %v968_v50 = vpop.permute.xlu1 %967  ;;  %v1750_v38 = vsel %vm1711_vm15, %v11294_v4, %v11366_v2  ;;  %v519_v8 = vrot.slane %v517_v62, 1  ;;  %v1296_v4 = vsel %vm16416_vm5, %v1293_v30, %v1295_v23  ;;  %v286_v62 = vld [vmem:[%s10778_s26 + $0x88] sm:$0xf] }
  0xe1   : > { %v1496_v16 = vsel %vm1484_vm10, %v1453_v44, %v968_v50  ;;  %10260 = vmatmul.mubr.msk.bf16.gmra.mrb[12].mxu0 %vm1894_vm3, %v1750_v38  ;;  %v1190_v44 = vsel %vm16415_vm4, %v11358_v17, %v11426_v48 }
  0xe2   : > { %v1052_v15 = vpop.permute.xlu0 %1051  ;;  %1117 = vrot.lane.b32.xlu1 %v1026_v27, %s10720_s8  ;;  %10263 = vmatprep.mubr.msk.bf16.mxu0 %vm10724_vm6, %v16419_v45  ;;  %v520_v5 = vsel %vm16417_vm1, %v515_v31, %v519_v8  ;;  %v11450_v31 = vcombine.low %v286_v62, %v11431_v60 }
  0xe3   : > { %v1539_v47 = vsel %vm1527_vm11, %v1496_v16, %v1052_v15  ;;  %v11456_v16 = vcombine.low %v11362_v49, %v286_v62  ;;  %v897_v49 = vrot.slane %v895_v40, 5 }
  0xe4   : > { %1253 = vrot.lane.b32.xlu0 %v1186_v51, %s10721_s9  ;;  %v1104_v13 = vpop.permute.xlu1 %1103  ;;  %v523_v51 = vor.u32 %v521_v14, %v519_v8  ;;  %v900_v8 = vrot.slane %v898_v28, 6 }
  0xe5   : > { %v1582_v46 = vsel %vm1570_vm12, %v1539_v47, %v1104_v13  ;;  %v904_v47 = vshrl.u32 %v11450_v31, 16  ;;  %v646_v13 = vrot.slane %v11456_v16, 1 }
  0xe6   : > { %v1240_v33 = vpop.permute.xlu0 %1239  ;;  %1337 = vrot.lane.b32.xlu1 %v1296_v4, %s10722_s10  ;;  %v907_v4 = vshll.u32 %v11450_v31, 16  ;;  %v11478_v40 = vor.u32 %v900_v8, %v897_v49 }
  0xe7   : > { %v1625_v30 = vsel %vm16413_vm13, %v1582_v46, %v1240_v33  ;;  %vm16527_vm13 = vsmask.f32 2304  ;;  %v1191_v28 = vrot.slane %v904_v47, 6 }
  0xe8   : > { %598 = vrot.lane.b32.xlu0 %v520_v5, %s10719_s7  ;;  %v1324_v59 = vpop.permute.xlu1 %1323  ;;  %v893_v56 = vsel %vm16527_vm13, %v11337_v39, %v11409_v41  ;;  %vm16528_vm13 = vcmask 228352   ;;  %v1192_v46 = vrot.slane %v907_v4, 7 }
  0xe9   : > { %v1668_v58 = vsel %vm1656_vm14, %v1625_v30, %v1324_v59  ;;  %v11485_v30 = vsel %vm16526_vm0, %v644_v34, %v646_v13  ;;  %vm16530_vm0 = vcmask 228352  }
  0xea   : > { %v585_v1 = vpop.permute.xlu0 %584  ;;  %v1751_v42 = vshrl.u32 %v1668_v58, 16  ;;  %v1754_v61 = vshll.u32 %v1668_v58, 16  ;;  %682 = vrot.lane.b32.xlu1 %v11344_v36, %s10716_s28  ;;  %v525_v36 = vshll.u32 %v11387_v19, 16 }
  0xeb   : > { %v1369_v3 = vsel %vm1355_vm7, %v10908_v55, %v585_v1 }
  0xec   : > { %731 = vrot.lane.b32.xlu0 %v645_v52, %s10717_s29  ;;  %v1753_v7 = vrot.slane %v1751_v42, 2  ;;  %v1756_v29 = vrot.slane %v1754_v61, 3  ;;  %v669_v12 = vpop.permute.xlu1 %668  ;;  %v11492_v42 = vld [vmem:[%s10778_s26 + $0x94] sm:$0xf]  ;;  %v1029_v61 = vrot.slane %v11450_v31, 6 }
  0xed   : > { %v1412_v55 = vsel %vm1398_vm8, %v1369_v3, %v669_v12  ;;  %v11500_v3 = vor.u32 %v1192_v46, %v1191_v28  ;;  %v288_v12 = vld [vmem:[%s10778_s26 + $0x90] sm:$0xf] }
  0xee   : > { %v718_v10 = vpop.permute.xlu0 %717  ;;  %v11435_v26 = vor.u32 %v1756_v29, %v1753_v7  ;;  %983 = vrot.lane.b32.xlu1 %v893_v56, %s10718_s30  ;;  %v1030_v62 = vsel %vm16418_vm2, %v1027_v6, %v1029_v61 }
  0xef   : > { %v1455_v39 = vsel %vm1441_vm9, %v1412_v55, %v718_v10  ;;  %v11507_v55 = vcombine.low %v288_v12, %v11492_v42 }
  0xf0   : > { %1067 = vrot.lane.b32.xlu0 %v1026_v27, %s10715_s27  ;;  %v970_v50 = vpop.permute.xlu1 %969  ;;  %v1758_v38 = vsel %vm1711_vm15, %v11366_v2, %v11435_v26  ;;  %v527_v27 = vrot.slane %v525_v36, 1  ;;  %v1298_v2 = vsel %vm16416_vm5, %v1295_v23, %v1297_v20 }
  0xf1   : > { %v1498_v15 = vsel %vm1484_vm10, %v1455_v39, %v970_v50  ;;  %10264 = vmatmul.mubr.msk.bf16.gmra.mrb[16].mxu0 %vm1894_vm3, %v1758_v38  ;;  %v1194_v39 = vsel %vm16415_vm4, %v11426_v48, %v11500_v3  ;;  %v916_v48 = vshll.u32 %v11507_v55, 16 }
  0xf2   : > { %v1054_v11 = vpop.permute.xlu0 %1053  ;;  %1119 = vrot.lane.b32.xlu1 %v1028_v63, %s10720_s8  ;;  %10267 = vmatprep.mubr.msk.bf16.mxu0 %vm10724_vm6, %v16419_v45  ;;  %v528_v9 = vsel %vm16417_vm1, %v523_v51, %v527_v27 }
  0xf3   : > { %v1541_v17 = vsel %vm1527_vm11, %v1498_v15, %v1054_v11 }
  0xf4   : > { %1255 = vrot.lane.b32.xlu0 %v1190_v44, %s10721_s9  ;;  %v1106_v57 = vpop.permute.xlu1 %1105  ;;  %v1299_v44 = vrot.slane %v11450_v31, 7 }
  0xf5   : > { %v1584_v21 = vsel %vm1570_vm12, %v1541_v17, %v1106_v57  ;;  %v913_v17 = vshrl.u32 %v11507_v55, 16 }
  0xf6   : > { %v1242_v23 = vpop.permute.xlu0 %1241  ;;  %1339 = vrot.lane.b32.xlu1 %v1298_v2, %s10722_s10 }
  0xf7   : > { %v1627_v5 = vsel %vm16528_vm13, %v1584_v21, %v1242_v23  ;;  %vm16529_vm13 = vsmask.f32 2304  ;;  %v1195_v23 = vrot.slane %v913_v17, 6 }
  0xf8   : > { %600 = vrot.lane.b32.xlu0 %v528_v9, %s10719_s7  ;;  %v1326_v33 = vpop.permute.xlu1 %1325  ;;  %v902_v34 = vsel %vm16529_vm13, %v11409_v41, %v11478_v40  ;;  %vm16531_vm13 = vcmask 1046528  }
  0xf9   : > { %v1670_v22 = vsel %vm1656_vm14, %v1627_v5, %v1326_v33  ;;  %v1196_v5 = vrot.slane %v916_v48, 7  ;;  %v1031_v33 = vrot.slane %v11507_v55, 6 }
  0xfa   : > { %v587_v25 = vpop.permute.xlu0 %586  ;;  %v1759_v59 = vshrl.u32 %v1670_v22, 16  ;;  %v1762_v58 = vshll.u32 %v1670_v22, 16  ;;  %684 = vrot.lane.b32.xlu1 %v645_v52, %s10716_s28  ;;  %v529_v52 = vshrl.u32 %v11387_v19, 16 }
  0xfb   : > { %v1371_v1 = vsel %vm1355_vm7, %v10942_v24, %v587_v25  ;;  %v533_v24 = vshll.u32 %v11456_v16, 16  ;;  %v11564_v22 = vor.u32 %v1196_v5, %v1195_v23 }
  0xfc   : > { %733 = vrot.lane.b32.xlu0 %v11485_v30, %s10717_s29  ;;  %v1761_v56 = vrot.slane %v1759_v59, 2  ;;  %v1764_v7 = vrot.slane %v1762_v58, 3  ;;  %v671_v29 = vpop.permute.xlu1 %670  ;;  %v531_v51 = vor.u32 %v529_v52, %v527_v27  ;;  %v909_v27 = vrot.slane %v907_v4, 6  ;;  %v11578_v52 = vld [vmem:[%s10778_s26 + $0x9c] sm:$0xf] }
  0xfd   : > { %v1414_v14 = vsel %vm1398_vm8, %v1371_v1, %v671_v29  ;;  %v535_v15 = vrot.slane %v533_v24, 1 }
  0xfe   : > { %v720_v36 = vpop.permute.xlu0 %719  ;;  %v11509_v10 = vor.u32 %v1764_v7, %v1761_v56  ;;  %985 = vrot.lane.b32.xlu1 %v902_v34, %s10718_s30 }
  0xff   : > { %v1457_v41 = vsel %vm1441_vm9, %v1414_v14, %v720_v36  ;;  %v536_v8 = vsel %vm16417_vm1, %v531_v51, %v535_v15  ;;  %v290_v14 = vld [vmem:[%s10778_s26 + $0x98] sm:$0xf] }
 0x100   : > { %1069 = vrot.lane.b32.xlu0 %v1028_v63, %s10715_s27  ;;  %v972_v50 = vpop.permute.xlu1 %971  ;;  %v1766_v38 = vsel %vm1711_vm15, %v11435_v26, %v11509_v10  ;;  %v11527_v63 = vcombine.low %v11431_v60, %v288_v12  ;;  %v1300_v60 = vsel %vm16416_vm5, %v1297_v20, %v1299_v44  ;;  %v906_v26 = vrot.slane %v904_v47, 5 }
 0x101   : > { %v1500_v11 = vsel %vm1484_vm10, %v1457_v41, %v972_v50  ;;  %10268 = vmatmul.mubr.msk.bf16.gmra.mrb[20].mxu0 %vm1894_vm3, %v1766_v38  ;;  %v1301_v12 = vrot.slane %v11507_v55, 7  ;;  %v10725_v38 = vmov 0.0|0.0  }
 0x102   : > { %v1056_v6 = vpop.permute.xlu0 %1055  ;;  %1121 = vrot.lane.b32.xlu1 %v1030_v62, %s10720_s8  ;;  %10271 = vmatprep.mubr.msk.bf16.mxu0 %vm10724_vm6, %v16419_v45  ;;  %v648_v57 = vrot.slane %v11527_v63, 1  ;;  %v11553_v20 = vor.u32 %v909_v27, %v906_v26  ;;  %v541_v34 = vshll.u32 %v11527_v63, 16  ;;  %v11603_v51 = vcombine.low %v10725_v38, %v10725_v38 }
 0x103   : > { %v1543_v2 = vsel %vm1527_vm11, %v1500_v11, %v1056_v6  ;;  %v915_v26 = vrot.slane %v913_v17, 5  ;;  %v918_v27 = vrot.slane %v916_v48, 6 }
 0x104   : > { %1257 = vrot.lane.b32.xlu0 %v1194_v39, %s10721_s9  ;;  %v1108_v49 = vpop.permute.xlu1 %1107  ;;  %v11560_v4 = vsel %vm16531_vm13, %v646_v13, %v648_v57  ;;  %v537_v13 = vshrl.u32 %v11456_v16, 16  ;;  %v11598_v50 = vrot.slane %v541_v34, 1  ;;  %vm16414_vm13 = vcmask 257024  }
 0x105   : > { %v1586_v9 = vsel %vm1570_vm12, %v1543_v2, %v1108_v49  ;;  %v11609_v2 = vcombine.low %v11492_v42, %v290_v14  ;;  %4964 = vst.msk [vmem:[#allocation2 + $0x10] sm:$0xf] %vm16414_vm13, %v11603_v51  ;;  %5003 = vst.msk [vmem:[#allocation2 + $0xac] sm:$0xf] %vm16414_vm13, %v10725_v38  ;;  %v11652_v48 = vor.u32 %v918_v27, %v915_v26 }
 0x106   : > { %v1244_v21 = vpop.permute.xlu0 %1243  ;;  %1341 = vrot.lane.b32.xlu1 %v1300_v60, %s10722_s10  ;;  %v539_v39 = vor.u32 %v537_v13, %v535_v15  ;;  %v16421_v60 = vmov 0  }
 0x107   : > { %v1629_v0 = vsel %vm16530_vm0, %v1586_v9, %v1244_v21  ;;  %vm16532_vm0 = vsmask.f32 2304  ;;  %4789 = vst.msk [vmem:[#allocation2 + $0x4] sm:$0xf] %vm16414_vm13, %v16421_v60  ;;  %4790 = vst.msk [vmem:[#allocation2 + $0x8] sm:$0xf] %vm16414_vm13, %v16421_v60  ;;  %7070 = vmatprep.subr.bf16.mxu1 %v16421_v60 }
 0x108   : > { %602 = vrot.lane.b32.xlu0 %v536_v8, %s10719_s7  ;;  %v1328_v47 = vpop.permute.xlu1 %1327  ;;  %v911_v1 = vsel %vm16532_vm0, %v11478_v40, %v11553_v20  ;;  %v1198_v40 = vsel %vm16415_vm4, %v11500_v3, %v11564_v22  ;;  %v9772_v3 = vcombine.high %v10725_v38, %v10725_v38  ;;  %4791 = vst.msk [vmem:[#allocation2 + $0xc] sm:$0xf] %vm16414_vm13, %v16421_v60  ;;  %4794 = vst.msk [vmem:[#allocation2 + $0xb4] sm:$0xf] %vm16414_vm13, %v16421_v60  ;;  %vm16533_vm0 = vcmask 228352  }
 0x109   : > { %v1672_v28 = vsel %vm1656_vm14, %v1629_v0, %v1328_v47  ;;  %4795 = vst.msk [vmem:[#allocation2 + $0xb8] sm:$0xf] %vm16414_vm13, %v16421_v60  ;;  %v544_v31 = vsel %vm16417_vm1, %v539_v39, %v11598_v50 }
 0x10a   : > { %v589_v46 = vpop.permute.xlu0 %588  ;;  %v1767_v25 = vshrl.u32 %v1672_v28, 16  ;;  %v1770_v59 = vshll.u32 %v1672_v28, 16  ;;  %686 = vrot.lane.b32.xlu1 %v11485_v30, %s10716_s28  ;;  %4965 = vst.msk [vmem:[#allocation2 + $0x14] sm:$0xf] %vm16414_vm13, %v9772_v3  ;;  %vm16534_vm13 = vcmask 1046528  }
 0x10b   : > { %v1373_v58 = vsel %vm1355_vm7, %v10970_v54, %v589_v46  ;;  %v11586_v54 = vsel %vm16418_vm2, %v1029_v61, %v1031_v33  ;;  %v11601_v61 = vcombine.low %v290_v14, %v11578_v52  ;;  %v292_v14 = vld [vmem:[%s10778_s26 + $0xa0] sm:$0xf] }
 0x10c   : > { %735 = vrot.lane.b32.xlu0 %v11560_v4, %s10717_s29  ;;  %v1769_v56 = vrot.slane %v1767_v25, 2  ;;  %v1772_v7 = vrot.slane %v1770_v59, 3  ;;  %v673_v29 = vpop.permute.xlu1 %672 }
 0x10d   : > { %v1416_v30 = vsel %vm1398_vm8, %v1373_v58, %v673_v29  ;;  %v922_v49 = vshrl.u32 %v11601_v61, 16  ;;  %v925_v8 = vshll.u32 %v11601_v61, 16  ;;  %v1303_v39 = vrot.slane %v11601_v61, 7 }
 0x10e   : > { %v722_v24 = vpop.permute.xlu0 %721  ;;  %v11593_v36 = vor.u32 %v1772_v7, %v1769_v56  ;;  %987 = vrot.lane.b32.xlu1 %v911_v1, %s10718_s30 }
 0x10f   : > { %v1459_v41 = vsel %vm1441_vm9, %v1416_v30, %v722_v24  ;;  %v1199_v5 = vrot.slane %v922_v49, 6  ;;  %v1200_v0 = vrot.slane %v925_v8, 7  ;;  %v545_v30 = vshrl.u32 %v11527_v63, 16  ;;  %v11674_v24 = vld [vmem:[%s10778_s26 + $0xa4] sm:$0xf] }
 0x110   : > { %1071 = vrot.lane.b32.xlu0 %v1030_v62, %s10715_s27  ;;  %v974_v11 = vpop.permute.xlu1 %973  ;;  %v1774_v6 = vsel %vm1711_vm15, %v11509_v10, %v11593_v36  ;;  %v1302_v10 = vsel %vm16416_vm5, %v1299_v44, %v1301_v12  ;;  %v650_v44 = vrot.slane %v11609_v2, 1 }
 0x111   : > { %v1502_v62 = vsel %vm1484_vm10, %v1459_v41, %v974_v11  ;;  %10272 = vmatmul.mubr.msk.bf16.gmra.mrb[24].mxu0 %vm1894_vm3, %v1774_v6  ;;  %v11669_v34 = vor.u32 %v1200_v0, %v1199_v5  ;;  %v11694_v11 = vcombine.low %v292_v14, %v11674_v24 }
 0x112   : > { %v1058_v15 = vpop.permute.xlu0 %1057  ;;  %1123 = vrot.lane.b32.xlu1 %v11586_v54, %s10720_s8  ;;  %10275 = vmatprep.mubr.msk.bf16.mxu0 %vm10724_vm6, %v16419_v45  ;;  %v651_v28 = vsel %vm16534_vm13, %v648_v57, %v650_v44  ;;  %v1033_v57 = vrot.slane %v11601_v61, 6  ;;  %vm16536_vm13 = vcmask 228352  }
 0x113   : > { %v1545_v42 = vsel %vm1527_vm11, %v1502_v62, %v1058_v15  ;;  %v1202_v3 = vsel %vm16415_vm4, %v11564_v22, %v11669_v34  ;;  %v931_v26 = vshrl.u32 %v11694_v11, 16  ;;  %v934_v27 = vshll.u32 %v11694_v11, 16 }
 0x114   : > { %1259 = vrot.lane.b32.xlu0 %v1198_v40, %s10721_s9  ;;  %v1110_v9 = vpop.permute.xlu1 %1109  ;;  %v1034_v38 = vsel %vm16418_vm2, %v1031_v33, %v1033_v57 }
 0x115   : > { %v1588_v21 = vsel %vm1570_vm12, %v1545_v42, %v1110_v9  ;;  %v11701_v42 = vcombine.low %v11578_v52, %v292_v14  ;;  %v924_v52 = vrot.slane %v922_v49, 5 }
 0x116   : > { %v1246_v23 = vpop.permute.xlu0 %1245  ;;  %1343 = vrot.lane.b32.xlu1 %v1302_v10, %s10722_s10 }
 0x117   : > { %v1631_v17 = vsel %vm16533_vm0, %v1588_v21, %v1246_v23  ;;  %vm16535_vm0 = vsmask.f32 2304  ;;  %v652_v21 = vrot.slane %v11701_v42, 1 }
 0x118   : > { %604 = vrot.lane.b32.xlu0 %v544_v31, %s10719_s7  ;;  %v1330_v47 = vpop.permute.xlu1 %1329  ;;  %v920_v1 = vsel %vm16535_vm0, %v11553_v20, %v11652_v48  ;;  %vm16537_vm0 = vcmask 1046528  }
 0x119   : > { %v1674_v46 = vsel %vm1656_vm14, %v1631_v17, %v1330_v47  ;;  %v1204_v17 = vrot.slane %v934_v27, 7  ;;  %v653_v0 = vsel %vm16537_vm0, %v650_v44, %v652_v21  ;;  %v1035_v44 = vrot.slane %v11694_v11, 6 }
 0x11a   : > { %v591_v25 = vpop.permute.xlu0 %590  ;;  %v1775_v59 = vshrl.u32 %v1674_v46, 16  ;;  %v1778_v58 = vshll.u32 %v1674_v46, 16  ;;  %688 = vrot.lane.b32.xlu1 %v11560_v4, %s10716_s28  ;;  %v549_v4 = vshll.u32 %v11609_v2, 16  ;;  %vm16539_vm0 = vcmask 228352  }
 0x11b   : > { %v1375_v13 = vsel %vm1355_vm7, %v10996_v18, %v591_v25 }
 0x11c   : > { %737 = vrot.lane.b32.xlu0 %v651_v28, %s10717_s29  ;;  %v1777_v56 = vrot.slane %v1775_v59, 2  ;;  %v1780_v7 = vrot.slane %v1778_v58, 3  ;;  %v675_v29 = vpop.permute.xlu1 %674  ;;  %v551_v15 = vrot.slane %v549_v4, 1  ;;  %v11744_v4 = vld [vmem:[%s10778_s26 + $0xac] sm:$0xf] }
 0x11d   : > { %v1418_v18 = vsel %vm1398_vm8, %v1375_v13, %v675_v29 }
 0x11e   : > { %v724_v40 = vpop.permute.xlu0 %723  ;;  %v11678_v41 = vor.u32 %v1780_v7, %v1777_v56  ;;  %989 = vrot.lane.b32.xlu1 %v920_v1, %s10718_s30 }
 0x11f   : > { %v1461_v20 = vsel %vm1441_vm9, %v1418_v18, %v724_v40  ;;  %v294_v40 = vld [vmem:[%s10778_s26 + $0xa8] sm:$0xf] }
 0x120   : > { %1073 = vrot.lane.b32.xlu0 %v11586_v54, %s10715_s27  ;;  %v976_v6 = vpop.permute.xlu1 %975  ;;  %v1782_v62 = vsel %vm1711_vm15, %v11593_v36, %v11678_v41  ;;  %v547_v54 = vor.u32 %v545_v30, %v11598_v50  ;;  %v1304_v36 = vsel %vm16416_vm5, %v1301_v12, %v1303_v39  ;;  %v927_v50 = vrot.slane %v925_v8, 6 }
 0x121   : > { %v1504_v33 = vsel %vm1484_vm10, %v1461_v20, %v976_v6  ;;  %10276 = vmatmul.mubr.msk.bf16.gmra.mrb[28].mxu0 %vm1894_vm3, %v1782_v62  ;;  %v1203_v8 = vrot.slane %v931_v26, 6  ;;  %v553_v30 = vshrl.u32 %v11609_v2, 16  ;;  %v1305_v20 = vrot.slane %v11694_v11, 7 }
 0x122   : > { %v1060_v10 = vpop.permute.xlu0 %1059  ;;  %1125 = vrot.lane.b32.xlu1 %v1034_v38, %s10720_s8  ;;  %10279 = vmatprep.mubr.msk.bf16.mxu0 %vm10724_vm6, %v16419_v45  ;;  %v552_v31 = vsel %vm16417_vm1, %v547_v54, %v551_v15  ;;  %v11723_v49 = vor.u32 %v927_v50, %v924_v52  ;;  %v11763_v62 = vcombine.low %v294_v40, %v11744_v4 }
 0x123   : > { %v1547_v22 = vsel %vm1527_vm11, %v1504_v33, %v1060_v10  ;;  %v11739_v1 = vor.u32 %v1204_v17, %v1203_v8  ;;  %v555_v10 = vor.u32 %v553_v30, %v551_v15  ;;  %v936_v15 = vrot.slane %v934_v27, 6 }
 0x124   : > { %1261 = vrot.lane.b32.xlu0 %v1202_v3, %s10721_s9  ;;  %v1112_v9 = vpop.permute.xlu1 %1111  ;;  %v1036_v3 = vsel %vm16418_vm2, %v1033_v57, %v1035_v44  ;;  %v940_v52 = vshrl.u32 %v11763_v62, 16  ;;  %v943_v50 = vshll.u32 %v11763_v62, 16 }
 0x125   : > { %v1590_v55 = vsel %vm1570_vm12, %v1547_v22, %v1112_v9  ;;  %v1206_v6 = vsel %vm16415_vm4, %v11669_v34, %v11739_v1  ;;  %v11769_v22 = vcombine.low %v11674_v24, %v294_v40  ;;  %v933_v24 = vrot.slane %v931_v26, 5 }
 0x126   : > { %v1248_v23 = vpop.permute.xlu0 %1247  ;;  %1345 = vrot.lane.b32.xlu1 %v1304_v36, %s10722_s10  ;;  %v1207_v27 = vrot.slane %v940_v52, 6 }
 0x127   : > { %v1633_v12 = vsel %vm16536_vm13, %v1590_v55, %v1248_v23  ;;  %vm16538_vm13 = vsmask.f32 2304  ;;  %v11787_v55 = vrot.slane %v11769_v22, 1  ;;  %v11793_v26 = vor.u32 %v936_v15, %v933_v24 }
 0x128   : > { %606 = vrot.lane.b32.xlu0 %v552_v31, %s10719_s7  ;;  %v1332_v5 = vpop.permute.xlu1 %1331  ;;  %v929_v13 = vsel %vm16538_vm13, %v11652_v48, %v11723_v49  ;;  %vm16540_vm13 = vcmask 1046528  }
 0x129   : > { %v1676_v47 = vsel %vm1656_vm14, %v1633_v12, %v1332_v5  ;;  %v1208_v12 = vrot.slane %v943_v50, 7  ;;  %v655_v17 = vsel %vm16540_vm13, %v652_v21, %v11787_v55  ;;  %v11808_v21 = vrot.slane %v11763_v62, 6 }
 0x12a   : > { %v593_v46 = vpop.permute.xlu0 %592  ;;  %v1783_v25 = vshrl.u32 %v1676_v47, 16  ;;  %v1786_v59 = vshll.u32 %v1676_v47, 16  ;;  %690 = vrot.lane.b32.xlu1 %v651_v28, %s10716_s28  ;;  %v557_v28 = vshll.u32 %v11701_v42, 16  ;;  %vm16542_vm13 = vcmask 228352  }
 0x12b   : > { %v1377_v58 = vsel %vm1355_vm7, %v11031_v53, %v593_v46 }
 0x12c   : > { %739 = vrot.lane.b32.xlu0 %v653_v0, %s10717_s29  ;;  %v1785_v56 = vrot.slane %v1783_v25, 2  ;;  %v1788_v7 = vrot.slane %v1786_v59, 3  ;;  %v677_v29 = vpop.permute.xlu1 %676 }
 0x12d   : > { %v1420_v53 = vsel %vm1398_vm8, %v1377_v58, %v677_v29 }
 0x12e   : > { %v726_v18 = vpop.permute.xlu0 %725  ;;  %v11748_v14 = vor.u32 %v1788_v7, %v1785_v56  ;;  %991 = vrot.lane.b32.xlu1 %v929_v13, %s10718_s30  ;;  %v11810_v13 = vor.u32 %v1208_v12, %v1207_v27  ;;  %v561_v56 = vshrl.u32 %v11701_v42, 16 }
 0x12f   : > { %v1463_v48 = vsel %vm1441_vm9, %v1420_v53, %v726_v18  ;;  %v296_v53 = vld [vmem:[%s10778_s26 + $0xb0] sm:$0xf]  ;;  %v297_v18 = vld [vmem:[%s10778_s26 + $0xb4] sm:$0xf] }
 0x130   : > { %1075 = vrot.lane.b32.xlu0 %v1034_v38, %s10715_s27  ;;  %v978_v54 = vpop.permute.xlu1 %977  ;;  %v1790_v33 = vsel %vm1711_vm15, %v11678_v41, %v11748_v14  ;;  %v559_v38 = vrot.slane %v557_v28, 1  ;;  %v1306_v41 = vsel %vm16416_vm5, %v1303_v39, %v1305_v20 }
 0x131   : > { %v1506_v36 = vsel %vm1484_vm10, %v1463_v48, %v978_v54  ;;  %10280 = vmatmul.mubr.msk.bf16.gmra.mrb[32].mxu0 %vm1894_vm3, %v1790_v33  ;;  %v1038_v48 = vsel %vm16418_vm2, %v1035_v44, %v11808_v21  ;;  %v1307_v54 = vrot.slane %v11763_v62, 7 }
 0x132   : > { %v1062_v57 = vpop.permute.xlu0 %1061  ;;  %1127 = vrot.lane.b32.xlu1 %v1036_v3, %s10720_s8  ;;  %10283 = vmatprep.mubr.msk.bf16.mxu0 %vm10724_vm6, %v16419_v45  ;;  %v560_v31 = vsel %vm16417_vm1, %v555_v10, %v559_v38  ;;  %v563_v33 = vor.u32 %v561_v56, %v559_v38  ;;  %v945_v38 = vrot.slane %v943_v50, 6 }
 0x133   : > { %v1549_v34 = vsel %vm1527_vm11, %v1506_v36, %v1062_v57 }
 0x134   : > { %1263 = vrot.lane.b32.xlu0 %v1206_v6, %s10721_s9  ;;  %v1114_v9 = vpop.permute.xlu1 %1113  ;;  %v1210_v6 = vsel %vm16415_vm4, %v11739_v1, %v11810_v13 }
 0x135   : > { %v1592_v61 = vsel %vm1570_vm12, %v1549_v34, %v1114_v9  ;;  %v11836_v34 = vcombine.low %v296_v53, %v297_v18 }
 0x136   : > { %v1250_v39 = vpop.permute.xlu0 %1249  ;;  %1347 = vrot.lane.b32.xlu1 %v1306_v41, %s10722_s10 }
 0x137   : > { %v1635_v23 = vsel %vm16539_vm0, %v1592_v61, %v1250_v39  ;;  %vm16541_vm0 = vsmask.f32 2304  ;;  %v1215_v61 = vshll.u32 %v11836_v34, 16  ;;  %v1089_v56 = vrot.slane %v11836_v34, 6 }
 0x138   : > { %608 = vrot.lane.b32.xlu0 %v560_v31, %s10719_s7  ;;  %v1334_v8 = vpop.permute.xlu1 %1333  ;;  %v938_v58 = vsel %vm16541_vm0, %v11723_v49, %v11793_v26  ;;  %v1212_v31 = vshrl.u32 %v11836_v34, 16  ;;  %vm16543_vm0 = vcmask 1046528  }
 0x139   : > { %v1678_v5 = vsel %vm1656_vm14, %v1635_v23, %v1334_v8  ;;  %v1217_v12 = vrot.slane %v1215_v61, 7  ;;  %v1090_v18 = vsel %vm16418_vm2, %v11808_v21, %v1089_v56 }
 0x13a   : > { %v595_v47 = vpop.permute.xlu0 %594  ;;  %v1791_v46 = vshrl.u32 %v1678_v5, 16  ;;  %v1794_v25 = vshll.u32 %v1678_v5, 16  ;;  %692 = vrot.lane.b32.xlu1 %v653_v0, %s10716_s28  ;;  %v565_v0 = vshll.u32 %v11769_v22, 16  ;;  %v1214_v27 = vrot.slane %v1212_v31, 6 }
 0x13b   : > { %v1379_v59 = vsel %vm1355_vm7, %v11087_v35, %v595_v47 }
 0x13c   : > { %741 = vrot.lane.b32.xlu0 %v655_v17, %s10717_s29  ;;  %v1793_v7 = vrot.slane %v1791_v46, 2  ;;  %v1796_v29 = vrot.slane %v1794_v25, 3  ;;  %v679_v30 = vpop.permute.xlu1 %678  ;;  %v11833_v57 = vrot.slane %v565_v0, 1  ;;  %v11874_v0 = vor.u32 %v1217_v12, %v1214_v27  ;;  %v5007_v27 = vld [vmem:[#allocation2 + $0xc] sm:$0xf] }
 0x13d   : > { %v1422_v35 = vsel %vm1398_vm8, %v1379_v59, %v679_v30  ;;  %v9717_v59 = vcombine.low %v296_v53, %v296_v53  ;;  %v5008_v12 = vld [vmem:[#allocation2 + $0x10] sm:$0xf] }
 0x13e   : > { %v728_v28 = vpop.permute.xlu0 %727  ;;  %v11817_v40 = vor.u32 %v1796_v29, %v1793_v7  ;;  %993 = vrot.lane.b32.xlu1 %v938_v58, %s10718_s30  ;;  %v568_v15 = vsel %vm16417_vm1, %v563_v33, %v11833_v57  ;;  %v11889_v33 = vld [vmem:[%s10778_s26 + $0xb8] ss:$0 sps:$4 sm:$0xff]  }
 0x13f   : > { %v1465_v49 = vsel %vm1441_vm9, %v1422_v35, %v728_v28 }
 0x140   : > { %1077 = vrot.lane.b32.xlu0 %v1036_v3, %s10715_s27  ;;  %v980_v10 = vpop.permute.xlu1 %979  ;;  %v1798_v36 = vsel %vm1711_vm15, %v11748_v14, %v11817_v40  ;;  %v9696_v3 = vcombine.low %v11744_v4, %v296_v53  ;;  %v1308_v4 = vsel %vm16416_vm5, %v1305_v20, %v1307_v54  ;;  %v942_v14 = vrot.slane %v940_v52, 5 }
 0x141   : > { %v1508_v44 = vsel %vm1484_vm10, %v1465_v49, %v980_v10  ;;  %10284 = vmatmul.mubr.msk.bf16.gmra.mrb[36].mxu0 %vm1894_vm3, %v1798_v36  ;;  %v1309_v53 = vrot.slane %v11836_v34, 7  ;;  %v949_v49 = vshrl.u32 %v9717_v59, 16 }
 0x142   : > { %v1064_v41 = vpop.permute.xlu0 %1063  ;;  %1129 = vrot.lane.b32.xlu1 %v1038_v48, %s10720_s8  ;;  %10287 = vmatprep.mubr.msk.bf16.mxu0 %vm10724_vm6, %v16419_v45  ;;  %v11852_v9 = vrot.slane %v9696_v3, 1  ;;  %v11860_v20 = vor.u32 %v945_v38, %v942_v14  ;;  %v1219_v3 = vsel %vm16415_vm4, %v11810_v13, %v11874_v0  ;;  %v1221_v14 = vshrl.u32 %v11889_v33, 16 }
 0x143   : > { %v1551_v1 = vsel %vm1527_vm11, %v1508_v44, %v1064_v41  ;;  %v951_v13 = vrot.slane %v949_v49, 5  ;;  %v1224_v38 = vshll.u32 %v11889_v33, 16 }
 0x144   : > { %1265 = vrot.lane.b32.xlu0 %v1210_v6, %s10721_s9  ;;  %v1116_v24 = vpop.permute.xlu1 %1115  ;;  %v704_v50 = vsel %vm16543_vm0, %v11787_v55, %v11852_v9  ;;  %v952_v6 = vshll.u32 %v9717_v59, 16  ;;  %vm16545_vm0 = vcmask 228352   ;;  %v1223_v61 = vrot.slane %v1221_v14, 6 }
 0x145   : > { %v1594_v39 = vsel %vm1570_vm12, %v1551_v1, %v1116_v24  ;;  %v1310_v1 = vsel %vm16416_vm5, %v1307_v54, %v1309_v53 }
 0x146   : > { %v1252_v23 = vpop.permute.xlu0 %1251  ;;  %1349 = vrot.lane.b32.xlu1 %v1308_v4, %s10722_s10  ;;  %v954_v4 = vrot.slane %v952_v6, 6 }
 0x147   : > { %v1637_v11 = vsel %vm16542_vm13, %v1594_v39, %v1252_v23  ;;  %vm16544_vm13 = vsmask.f32 2304  ;;  %v1226_v39 = vrot.slane %v1224_v38, 7 }
 0x148   : > { %610 = vrot.lane.b32.xlu0 %v568_v15, %s10719_s7  ;;  %v1336_v52 = vpop.permute.xlu1 %1335  ;;  %v947_v58 = vsel %vm16544_vm13, %v11793_v26, %v11860_v20  ;;  %v569_v26 = vshrl.u32 %v11769_v22, 16  ;;  %v955_v54 = vor.u32 %v954_v4, %v951_v13 }
 0x149   : > { %v1680_v8 = vsel %vm1656_vm14, %v1637_v11, %v1336_v52  ;;  %v11916_v11 = vld [vmem:[#allocation2 + $0x4] sm:$0xff]  }
 0x14a   : > { %v597_v5 = vpop.permute.xlu0 %596  ;;  %v1799_v47 = vshrl.u32 %v1680_v8, 16  ;;  %v1802_v46 = vshll.u32 %v1680_v8, 16  ;;  %694 = vrot.lane.b32.xlu1 %v655_v17, %s10716_s28  ;;  %v5365_v38 = vrot.slane %v11916_v11, 1 }
 0x14b   : > { %v1381_v25 = vsel %vm1355_vm7, %v11168_v32, %v597_v5 }
 0x14c   : > { %743 = vrot.lane.b32.xlu0 %v704_v50, %s10717_s29  ;;  %v1801_v7 = vrot.slane %v1799_v47, 2  ;;  %v1804_v29 = vrot.slane %v1802_v46, 3  ;;  %v681_v30 = vpop.permute.xlu1 %680  ;;  %v956_v46 = vsel %vm16544_vm13, %v11860_v20, %v955_v54  ;;  %vm16546_vm13 = vcmask 1046528  }
 0x14d   : > { %v1424_v17 = vsel %vm1398_vm8, %v1381_v25, %v681_v30 }
 0x14e   : > { %v730_v35 = vpop.permute.xlu0 %729  ;;  %v11877_v28 = vor.u32 %v1804_v29, %v1801_v7  ;;  %995 = vrot.lane.b32.xlu1 %v947_v58, %s10718_s30  ;;  %v1227_v58 = vor.u32 %v1226_v39, %v1223_v61 }
 0x14f   : > { %v1467_v32 = vsel %vm1441_vm9, %v1424_v17, %v730_v35  ;;  %v11930_v17 = vld [vmem:[#allocation2 + $0x14] sm:$0xf] }
 0x150   : > { %1079 = vrot.lane.b32.xlu0 %v1038_v48, %s10715_s27  ;;  %v982_v10 = vpop.permute.xlu1 %981  ;;  %v1806_v36 = vsel %vm1711_vm15, %v11817_v40, %v11877_v28  ;;  %v571_v40 = vor.u32 %v569_v26, %v11833_v57  ;;  %v1039_v57 = vrot.slane %v9717_v59, 6  ;;  %v1091_v59 = vrot.slane %v11889_v33, 6 }
 0x151   : > { %v1510_v48 = vsel %vm1484_vm10, %v1467_v32, %v982_v10  ;;  %10288 = vmatmul.mubr.msk.bf16.gmra.mrb[40].mxu0 %vm1894_vm3, %v1806_v36  ;;  %v1228_v26 = vsel %vm16415_vm4, %v11874_v0, %v1227_v58  ;;  %v11946_v49 = vcombine.low %v5008_v12, %v11930_v17  ;;  %v5157_v36 = vshrl.u32 %v11916_v11, 16 }
 0x152   : > { %v1066_v44 = vpop.permute.xlu0 %1065  ;;  %1131 = vrot.lane.b32.xlu1 %v1090_v18, %s10720_s8  ;;  %10291 = vmatprep.mubr.msk.bf16.mxu0 %vm10724_vm6, %v16419_v45  ;;  %v1040_v25 = vsel %vm16418_vm2, %v11808_v21, %v1039_v57  ;;  %v1092_v20 = vsel %vm16418_vm2, %v1089_v56, %v1091_v59  ;;  %v1311_v18 = vrot.slane %v11889_v33, 7  ;;  %vm16547_vm2 = vcmask 228352  }
 0x153   : > { %v1553_v41 = vsel %vm1527_vm11, %v1510_v48, %v1066_v44  ;;  %v5706_v33 = vrot.slane %v11946_v49, 6 }
 0x154   : > { %1267 = vrot.lane.b32.xlu0 %v1219_v3, %s10721_s9  ;;  %v1118_v24 = vpop.permute.xlu1 %1117 }
 0x155   : > { %v1596_v15 = vsel %vm1570_vm12, %v1553_v41, %v1118_v24 }
 0x156   : > { %v1254_v31 = vpop.permute.xlu0 %1253  ;;  %1351 = vrot.lane.b32.xlu1 %v1310_v1, %s10722_s10 }
 0x157   : > { %v1639_v62 = vsel %vm16545_vm0, %v1596_v15, %v1254_v31 }
 0x158   : > { %612 = vrot.lane.b32.xlu0 %v571_v40, %s10719_s7  ;;  %v1338_v23 = vpop.permute.xlu1 %1337 }
 0x159   : > { %v1682_v52 = vsel %vm1656_vm14, %v1639_v62, %v1338_v23 }
 0x15a   : > { %v599_v50 = vpop.permute.xlu0 %598  ;;  %v1807_v8 = vshrl.u32 %v1682_v52, 16  ;;  %v1810_v5 = vshll.u32 %v1682_v52, 16  ;;  %696 = vrot.lane.b32.xlu1 %v11787_v55, %s10716_s28  ;;  %v11932_v55 = vcombine.low %v5007_v27, %v5008_v12 }
 0x15b   : > { %v1383_v47 = vsel %vm1355_vm7, %v11234_v43, %v599_v50  ;;  %v5159_v43 = vshll.u32 %v11916_v11, 16 }
 0x15c   : > { %745 = vrot.lane.b32.xlu0 %v11852_v9, %s10717_s29  ;;  %v1809_v7 = vrot.slane %v1807_v8, 2  ;;  %v1812_v29 = vrot.slane %v1810_v5, 3  ;;  %v683_v30 = vpop.permute.xlu1 %682  ;;  %v5164_v48 = vshll.u32 %v11932_v55, 16  ;;  %v5366_v24 = vrot.slane %v11932_v55, 1 }
 0x15d   : > { %v1426_v9 = vsel %vm1398_vm8, %v1383_v47, %v683_v30  ;;  %v5161_v3 = vrot.slane %v5159_v43, 1 }
 0x15e   : > { %v732_v35 = vpop.permute.xlu0 %731  ;;  %v1813_v32 = vor.u32 %v1812_v29, %v1809_v7  ;;  %997 = vrot.lane.b32.xlu1 %v956_v46, %s10718_s30  ;;  %v11963_v40 = vrot.slane %v5164_v48, 1  ;;  %v5367_v52 = vsel %vm16546_vm13, %v5365_v38, %v5366_v24  ;;  %v2203_v29 = vlaneseq }
 0x15f   : > { %v1469_v21 = vsel %vm1441_vm9, %v1426_v9, %v732_v35  ;;  %v5162_v1 = vor.u32 %v5161_v3, %v5157_v36 }
 0x160   : > { %1081 = vrot.lane.b32.xlu0 %v1040_v25, %s10715_s27  ;;  %v984_v6 = vpop.permute.xlu1 %983  ;;  %v1814_v10 = vsel %vm1711_vm15, %v11877_v28, %v1813_v32  ;;  %v1312_v28 = vsel %vm16416_vm5, %v1309_v53, %v1311_v18 }
 0x161   : > { %v1512_v44 = vsel %vm1484_vm10, %v1469_v21, %v984_v6  ;;  %10292 = vmatmul.mubr.msk.bf16.gmra.mrb[44].mxu0 %vm1894_vm3, %v1814_v10  ;;  %v5167_v53 = vsel %vm16417_vm1, %v5162_v1, %v11963_v40 }
 0x162   : > { %v1068_v56 = vpop.permute.xlu0 %1067  ;;  %1133 = vrot.lane.b32.xlu1 %v1092_v20, %s10720_s8  ;;  %10295 = vmatprep.mubr.msk.bf16.mxu0 %vm10724_vm6, %v16419_v45  ;;  %v11996_v20 = vshrl.u32 %v2203_v29, 7  ;;  %v10639_v29 = vld [vmem:[%s16407_s3 + $0x18] sm:$0xff]  }
 0x163   : > { %v1555_v0 = vsel %vm1527_vm11, %v1512_v44, %v1068_v56 }
 0x164   : > { %1269 = vrot.lane.b32.xlu0 %v1228_v26, %s10721_s9  ;;  %v1120_v41 = vpop.permute.xlu1 %1119  ;;  %v2206_v44 = vadd.s32 16, %v11996_v20 }
 0x165   : > { %v1598_v13 = vsel %vm1570_vm12, %v1555_v0, %v1120_v41 }
 0x166   : > { %v1256_v4 = vpop.permute.xlu0 %1255  ;;  %1353 = vrot.lane.b32.xlu1 %v1312_v28, %s10722_s10  ;;  %vm2247_vm13 = vcmp.ge.s32.totalorder %v2206_v44, 18 }
 0x167   : > { %v1641_v14 = vsel %vm16545_vm0, %v1598_v13, %v1256_v4 }
 0x168   : > { %5747 = vrot.lane.b32.xlu0 %v5706_v33, %s10722_s10  ;;  %v1340_v34 = vpop.permute.xlu1 %1339 }
 0x169   : > { %v1684_v15 = vsel %vm1656_vm14, %v1641_v14, %v1340_v34 }
 0x16a   : > { %v601_v31 = vpop.permute.xlu0 %600  ;;  %v1815_v62 = vshrl.u32 %v1684_v15, 16  ;;  %v1818_v54 = vshll.u32 %v1684_v15, 16 }
 0x16b   : > { %v1385_v57 = vsel %vm1355_vm7, %v11312_v37, %v601_v31  ;;  %v10635_v31 = vld [vmem:[%s16407_s3] sm:$0xff]  }
 0x16c   : > { %5323 = vrot.lane.b32.xlu0 %v5167_v53, %s10722_s10  ;;  %v1817_v61 = vrot.slane %v1815_v62, 2  ;;  %v1820_v39 = vrot.slane %v1818_v54, 3  ;;  %v685_v23 = vpop.permute.xlu1 %684  ;;  %v2288_v53 = vsel %vm2247_vm13, 1, %v16421_v60  ;;  %7071 = vmatpush1.bf16.msra.mxu1 %v10635_v31 }
 0x16d   : > { %v1428_v11 = vsel %vm1398_vm8, %v1385_v57, %v685_v23  ;;  %v4297_v57 = vmul.u32 18, %v2288_v53  ;;  %7072 = vmatprep.subr.bf16.mxu1 %v16421_v60 }
 0x16e   : > { %v734_v50 = vpop.permute.xlu0 %733  ;;  %v1821_v27 = vor.u32 %v1820_v39, %v1817_v61 }
 0x16f   : > { %v1471_v12 = vsel %vm1441_vm9, %v1428_v11, %v734_v50  ;;  %v12019_v50 = vadd.s32 32, %v11996_v20 }
 0x170   : > { %5406 = vrot.lane.b32.xlu0 %v5367_v52, %s10727_s17  ;;  %v986_v8 = vpop.permute.xlu1 %985  ;;  %v1822_v37 = vsel %vm1711_vm15, %v1813_v32, %v1821_v27 }
 0x171   : > { %v1514_v5 = vsel %vm1484_vm10, %v1471_v12, %v986_v8  ;;  %10296 = vmatmul.mubr.msk.bf16.gmra.mrb[48].mxu0 %vm1894_vm3, %v1822_v37 }
 0x172   : > { %v1070_v47 = vpop.permute.xlu0 %1069  ;;  %10299 = vmatprep.mubr.msk.bf16.mxu0 %vm10724_vm6, %v16419_v45 }
 0x173   : > { %v1557_v46 = vsel %vm1527_vm11, %v1514_v5, %v1070_v47  ;;  %v4338_v5 = vsub.s32 %v2206_v44, %v4297_v57  ;;  %v10640_v44 = vld [vmem:[%s16407_s3 + $0x20] sm:$0xff]  }
 0x174   : > { %v1122_v25 = vpop.permute.xlu1 %1121 }
 0x175   : > { %v1600_v59 = vsel %vm1570_vm12, %v1557_v46, %v1122_v25  ;;  %vm4502_vm4 = vcmp.ge.s32.totalorder %v4338_v5, 1  ;;  %vm4584_vm1 = vcmp.le.s32.totalorder %v4338_v5, 16 }
 0x176   : > { %v1258_v58 = vpop.permute.xlu0 %1257  ;;  %vm4543_vm5 = vmand %vm2247_vm13, %vm4502_vm4 }
 0x177   : > { %v1643_v7 = vsel %vm16545_vm0, %v1600_v59, %v1258_v58  ;;  %v10638_v59 = vld [vmem:[%s16407_s3 + $0x10] sm:$0xff]  }
 0x178   : > { %v1342_v30 = vpop.permute.xlu1 %1341 }
 0x179   : > { %v1686_v43 = vsel %vm1656_vm14, %v1643_v7, %v1342_v30 }
 0x17a   : > { %v603_v9 = vpop.permute.xlu0 %602  ;;  %v1823_v35 = vshrl.u32 %v1686_v43, 16  ;;  %v1826_v32 = vshll.u32 %v1686_v43, 16 }
 0x17b   : > { %v1387_v21 = vsel %vm1355_vm7, %v11387_v19, %v603_v9 }
 0x17c   : > { %v1825_v26 = vrot.slane %v1823_v35, 2  ;;  %v1828_v18 = vrot.slane %v1826_v32, 3  ;;  %v687_v6 = vpop.permute.xlu1 %686  ;;  %v12046_v32 = vld [vmem:[%s16406_s2] ss:$0 sm:$0xff] }
 0x17d   : > { %v1430_v10 = vsel %vm1398_vm8, %v1387_v21, %v687_v6 }
 0x17e   : > { %v736_v36 = vpop.permute.xlu0 %735  ;;  %v1829_v3 = vor.u32 %v1828_v18, %v1825_v26 }
 0x17f   : > { %v1473_v48 = vsel %vm1441_vm9, %v1430_v10, %v736_v36 }
 0x180   : > { %v988_v56 = vpop.permute.xlu1 %987  ;;  %v1830_v0 = vsel %vm1711_vm15, %v1821_v27, %v1829_v3  ;;  %v10636_v27 = vld [vmem:[%s16407_s3 + $0x8] sm:$0xff]  }
 0x181   : > { %v1516_v28 = vsel %vm1484_vm10, %v1473_v48, %v988_v56  ;;  %10300 = vmatmul.mubr.msk.bf16.gmra.mrb[52].mxu0 %vm1894_vm3, %v1830_v0  ;;  %7073 = vmatpush1.bf16.msra.mxu1 %v10636_v27  ;;  %v10643_v27 = vld [vmem:[%s16407_s3 + $0x30] sm:$0xff]  }
 0x182   : > { %v1072_v19 = vpop.permute.xlu0 %1071  ;;  %10303 = vmatprep.mubr.msk.bf16.mxu0 %vm10724_vm6, %v16419_v45  ;;  %7074 = vmatprep.subr.bf16.mxu1 %v16421_v60 }
 0x183   : > { %v1559_v41 = vsel %vm1527_vm11, %v1516_v28, %v1072_v19 }
 0x184   : > { %v1124_v1 = vpop.permute.xlu1 %1123  ;;  %v1996_v13 = vpop.f32.mrb[0].mxu0 }
 0x185   : > { %v1602_v4 = vsel %vm1570_vm12, %v1559_v41, %v1124_v1  ;;  %v10249_v14 = vpop.f32.mrb[1].mxu0  ;;  %7075 = vmatpush1.bf16.msra.mxu1 %v10638_v59  ;;  %v12060_v41 = vadd.s32 48, %v11996_v20 }
 0x186   : > { %v1260_v34 = vpop.permute.xlu0 %1259  ;;  %v1999_v38 = vpop.f32.mrb[2].mxu0  ;;  %7076 = vmatprep.subr.bf16.mxu1 %v16421_v60 }
 0x187   : > { %v1645_v15 = vsel %vm16545_vm0, %v1602_v4, %v1260_v34  ;;  %v10250_v62 = vpop.f32.mrb[3].mxu0  ;;  %vm2331_vm0 = vcmp.ge.s32.totalorder %v12019_v50, 36 }
 0x188   : > { %v1344_v54 = vpop.permute.xlu1 %1343  ;;  %v2372_v9 = vsel %vm2331_vm0, 1, %v16421_v60  ;;  %vm4625_vm0 = vmand %vm4543_vm5, %vm4584_vm1  ;;  %vm2456_vm1 = vcmp.ge.s32.totalorder %v12060_v41, 54 }
 0x189   : > { %v1688_v61 = vsel %vm1656_vm14, %v1645_v15, %v1344_v54  ;;  %v2413_v18 = vadd.s32 1, %v2372_v9  ;;  %7077 = vmatpush1.bf16.msra.mxu1 %v10639_v29  ;;  %v10641_v54 = vld [vmem:[%s16407_s3 + $0x28] sm:$0xff]  }
 0x18a   : > { %v605_v39 = vpop.permute.xlu0 %604  ;;  %v1831_v23 = vshrl.u32 %v1688_v61, 16  ;;  %v1834_v52 = vshll.u32 %v1688_v61, 16  ;;  %7078 = vmatprep.subr.bf16.mxu1 %v16421_v60 }
 0x18b   : > { %v1389_v11 = vsel %vm1355_vm7, %v11456_v16, %v605_v39  ;;  %v4299_v13 = vmul.u32 18, %v2413_v18  ;;  %vm4381_vm5 = vcmp.ge.s32.totalorder %v2413_v18, 1  ;;  %vm4422_vm13 = vcmp.le.s32.totalorder %v2413_v18, 16 }
 0x18c   : > { %v1833_v12 = vrot.slane %v1831_v23, 2  ;;  %v1836_v8 = vrot.slane %v1834_v52, 3  ;;  %v689_v37 = vpop.permute.xlu1 %688 }
 0x18d   : > { %v1432_v47 = vsel %vm1398_vm8, %v1389_v11, %v689_v37  ;;  %7079 = vmatpush1.bf16.msra.mxu1 %v10640_v44  ;;  %v4340_v52 = vsub.s32 %v12019_v50, %v4299_v13  ;;  %v2497_v50 = vsel %vm2456_vm1, 1, %v16421_v60 }
 0x18e   : > { %v738_v46 = vpop.permute.xlu0 %737  ;;  %v12026_v25 = vor.u32 %v1836_v8, %v1833_v12  ;;  %7080 = vmatprep.subr.bf16.mxu1 %v16421_v60 }
 0x18f   : > { %v1475_v16 = vsel %vm1441_vm9, %v1432_v47, %v738_v46  ;;  %v5519_v47 = vshrl.u32 %v11946_v49, 16  ;;  %v5522_v46 = vshll.u32 %v11946_v49, 16 }
 0x190   : > { %v990_v58 = vpop.permute.xlu1 %989  ;;  %v1838_v7 = vsel %vm1711_vm15, %v1829_v3, %v12026_v25 }
 0x191   : > { %v1518_v30 = vsel %vm1484_vm10, %v1475_v16, %v990_v58  ;;  %10304 = vmatmul.mubr.msk.bf16.gmra.mrb[56].mxu0 %vm1894_vm3, %v1838_v7  ;;  %7081 = vmatpush1.bf16.msra.mxu1 %v10641_v54  ;;  %v12091_v58 = vadd.s32 2, %v2497_v50  ;;  %v5524_v18 = vrot.slane %v5522_v46, 6 }
 0x192   : > { %v1074_v43 = vpop.permute.xlu0 %1073  ;;  %10307 = vmatprep.mubr.msk.bf16.mxu0 %vm10724_vm6, %v16419_v45  ;;  %7082 = vmatprep.subr.bf16.mxu1 %v16421_v60 }
 0x193   : > { %v1561_v35 = vsel %vm1527_vm11, %v1518_v30, %v1074_v43  ;;  %v5168_v30 = vshrl.u32 %v11932_v55, 16 }
 0x194   : > { %v1126_v21 = vpop.permute.xlu1 %1125  ;;  %v2004_v26 = vpop.f32.mrb[4].mxu0 }
 0x195   : > { %v1604_v6 = vsel %vm1570_vm12, %v1561_v35, %v1126_v21  ;;  %v2005_v10 = vadd.f32 %v12046_v32, %v2004_v26  ;;  %v10253_v36 = vpop.f32.mrb[5].mxu0  ;;  %7083 = vmatpush1.bf16.msra.mxu1 %v10643_v27  ;;  %v5521_v26 = vrot.slane %v5519_v47, 5 }
 0x196   : > { %v1262_v3 = vpop.permute.xlu0 %1261  ;;  %v2007_v48 = vpop.f32.mrb[6].mxu0  ;;  %7084 = vmatprep.subr.bf16.mxu1 %v16421_v60 }
 0x197   : > { %v1647_v56 = vsel %vm16547_vm2, %v1604_v6, %v1262_v3  ;;  %v2164_v0 = vmax.f32 %v2005_v10, 0.0  ;;  %v2008_v28 = vadd.f32 %v12046_v32, %v2007_v48  ;;  %v10254_v19 = vpop.f32.mrb[7].mxu0  ;;  %vm16548_vm2 = vcmask 257024   ;;  %v10644_v6 = vld [vmem:[%s16407_s3 + $0x38] sm:$0xff]  }
 0x198   : > { %v1346_v1 = vpop.permute.xlu1 %1345  ;;  %vm16549_vm4 = vmmov %vm16548_vm2  ;;  %v12139_v54 = vor.u32 %v5524_v18, %v5521_v26  ;;  %v10648_v18 = vld [vmem:[%s16407_s3 + $0x50] sm:$0xff]  }
 0x199   : > { %v4748_v4 = vsel %vm4625_vm0, %v2164_v0, 0.0  ;;  %v2165_v14 = vmax.f32 %v2008_v28, 0.0  ;;  %v1690_v34 = vsel %vm1656_vm14, %v1647_v56, %v1346_v1  ;;  %vm4463_vm0 = vmand %vm4381_vm5, %vm4422_vm13  ;;  %vm16554_vm13 = vcmask 228352   ;;  %7085 = vmatpush1.bf16.msra.mxu1 %v10644_v6 }
 0x19a   : > { %v607_v53 = vpop.permute.xlu0 %606  ;;  %v9932_v38 = vpack.c.bf16 %v4748_v4, %v4748_v4  ;;  %v1839_v15 = vshrl.u32 %v1690_v34, 16  ;;  %v1842_v31 = vshll.u32 %v1690_v34, 16  ;;  %7086 = vmatprep.subr.bf16.mxu1 %v16421_v60 }
 0x19b   : > { %v1391_v62 = vsel %vm1355_vm7, %v11527_v63, %v607_v53  ;;  %v9933_v57 = vpack.c.bf16 %v2165_v14, %v2165_v14 }
 0x19c   : > { %4966 = vst.msk [vmem:[#allocation2 + $0x18] sm:$0xf] %vm16548_vm2, %v9932_v38  ;;  %v1841_v61 = vrot.slane %v1839_v15, 2  ;;  %v1844_v39 = vrot.slane %v1842_v31, 3  ;;  %v691_v23 = vpop.permute.xlu1 %690  ;;  %vm4504_vm2 = vcmp.ge.s32.totalorder %v4340_v52, 1  ;;  %v5170_v31 = vor.u32 %v5168_v30, %v11963_v40 }
 0x19d   : > { %4967 = vst.msk [vmem:[#allocation2 + $0x1c] sm:$0xf] %vm16549_vm4, %v9933_v57  ;;  %v1434_v11 = vsel %vm1398_vm8, %v1391_v62, %v691_v23  ;;  %vm12097_vm1 = vmand %vm4463_vm0, %vm4504_vm2  ;;  %vm4586_vm4 = vcmp.le.s32.totalorder %v4340_v52, 16  ;;  %vm16555_vm0 = vcmask 1046528   ;;  %v10645_v57 = vld [vmem:[%s16407_s3 + $0x40] sm:$0xff]   ;;  %vm16556_vm2 = vcmask 257024  }
 0x19e   : > { %v740_v63 = vpop.permute.xlu0 %739  ;;  %v12078_v12 = vor.u32 %v1844_v39, %v1841_v61  ;;  %vm12119_vm5 = vmand %vm12097_vm1, %vm4586_vm4  ;;  %7087 = vmatpush1.bf16.msra.mxu1 %v10645_v57  ;;  %vm16557_vm1 = vcmask 1041408  }
 0x19f   : > { %v1477_v8 = vsel %vm1441_vm9, %v1434_v11, %v740_v63  ;;  %7088 = vmatprep.subr.bf16.mxu1 %v16421_v60  ;;  %vm16558_vm4 = vmmov %vm16556_vm2 }
 0x1a0   : > { %v992_v37 = vpop.permute.xlu1 %991  ;;  %v1846_v5 = vsel %vm1711_vm15, %v12026_v25, %v12078_v12 }
 0x1a1   : > { %v1520_v16 = vsel %vm1484_vm10, %v1477_v8, %v992_v37  ;;  %10308 = vmatmul.mubr.msk.bf16.gmra.mrb[60].mxu0 %vm1894_vm3, %v1846_v5 }
 0x1a2   : > { %v1076_v59 = vpop.permute.xlu0 %1075  ;;  %10311 = vmatprep.mubr.msk.bf16.mxu0 %vm10724_vm6, %v16419_v45 }
 0x1a3   : > { %v1563_v7 = vsel %vm1527_vm11, %v1520_v16, %v1076_v59  ;;  %v5010_v25 = vld [vmem:[#allocation2 + $0x18] sm:$0xf] }
 0x1a4   : > { %v12103_v43 = vcombine.low %v11930_v17, %v5010_v25  ;;  %v1128_v9 = vpop.permute.xlu1 %1127  ;;  %v2012_v35 = vpop.f32.mrb[8].mxu0  ;;  %v12105_v21 = vld [vmem:[#allocation2 + $0x1c] sm:$0xf]  ;;  %v4301_v17 = vmul.u32 18, %v12091_v58 }
 0x1a5   : > { %v1606_v10 = vsel %vm1570_vm12, %v1563_v7, %v1128_v9  ;;  %v2013_v36 = vadd.f32 %v12046_v32, %v2012_v35  ;;  %v10257_v3 = vpop.f32.mrb[9].mxu0  ;;  %v12113_v56 = vcombine.low %v5010_v25, %v12105_v21 }
 0x1a6   : > { %v1264_v48 = vpop.permute.xlu0 %1263  ;;  %v2015_v0 = vpop.f32.mrb[10].mxu0  ;;  %v5368_v19 = vrot.slane %v12103_v43, 1  ;;  %v5172_v1 = vshll.u32 %v12103_v43, 16 }
 0x1a7   : > { %v1649_v28 = vsel %vm16554_vm13, %v1606_v10, %v1264_v48  ;;  %v2166_v13 = vmax.f32 %v2013_v36, 0.0  ;;  %v2016_v4 = vadd.f32 %v12046_v32, %v2015_v0  ;;  %v10258_v14 = vpop.f32.mrb[11].mxu0  ;;  %v12128_v34 = vrot.slane %v12113_v56, 6  ;;  %v10649_v48 = vld [vmem:[%s16407_s3 + $0x58] sm:$0xff]  }
 0x1a8   : > { %v5527_v53 = vshrl.u32 %v12113_v56, 16  ;;  %v1348_v38 = vpop.permute.xlu1 %1347  ;;  %v5369_v15 = vsel %vm16555_vm0, %v5366_v24, %v5368_v19  ;;  %v5530_v62 = vshll.u32 %v12113_v56, 16  ;;  %v12151_v24 = vsub.s32 %v12060_v41, %v4301_v17 }
 0x1a9   : > { %v4750_v61 = vsel %vm12119_vm5, %v2166_v13, 0.0  ;;  %v2167_v39 = vmax.f32 %v2016_v4, 0.0  ;;  %v1692_v23 = vsel %vm1656_vm14, %v1649_v28, %v1348_v38  ;;  %5408 = vrot.lane.b32.xlu1 %v5369_v15, %s10727_s17  ;;  %5799 = vrot.lane.b32.xlu0 %v12128_v34, %s10727_s17  ;;  %v12155_v50 = vrot.slane %v5172_v1, 1 }
 0x1aa   : > { %v609_v40 = vpop.permute.xlu0 %608  ;;  %v9934_v52 = vpack.c.bf16 %v4750_v61, %v4750_v61  ;;  %v1847_v11 = vshrl.u32 %v1692_v23, 16  ;;  %v1850_v63 = vshll.u32 %v1692_v23, 16  ;;  %v5841_v37 = vrot.slane %v5527_v53, 6 }
 0x1ab   : > { %v1393_v27 = vsel %vm1355_vm7, %v11609_v2, %v609_v40  ;;  %v9935_v8 = vpack.c.bf16 %v2167_v39, %v2167_v39  ;;  %v5842_v5 = vrot.slane %v5530_v62, 7  ;;  %v5708_v16 = vsel %vm16557_vm1, %v5706_v33, %v12128_v34  ;;  %v10646_v2 = vld [vmem:[%s16407_s3 + $0x48] sm:$0xff]  }
 0x1ac   : > { %4968 = vst.msk [vmem:[#allocation2 + $0x20] sm:$0xf] %vm16556_vm2, %v9934_v52  ;;  %v1849_v47 = vrot.slane %v1847_v11, 2  ;;  %v1852_v46 = vrot.slane %v1850_v63, 3  ;;  %v693_v41 = vpop.permute.xlu1 %692  ;;  %v5529_v59 = vrot.slane %v5527_v53, 5  ;;  %vm4383_vm5 = vcmp.ge.s32.totalorder %v12091_v58, 1  ;;  %7089 = vmatpush1.bf16.msra.mxu1 %v10646_v2 }
 0x1ad   : > { %4969 = vst.msk [vmem:[#allocation2 + $0x24] sm:$0xf] %vm16558_vm4, %v9935_v8  ;;  %v1436_v7 = vsel %vm1398_vm8, %v1393_v27, %v693_v41  ;;  %5749 = vrot.lane.b32.xlu1 %v5708_v16, %s10722_s10  ;;  %5455 = vrot.lane.b32.xlu0 %v5369_v15, %s10728_s20  ;;  %vm4424_vm13 = vcmp.le.s32.totalorder %v12091_v58, 16  ;;  %v5532_v49 = vrot.slane %v5530_v62, 6  ;;  %v12175_v30 = vor.u32 %v5842_v5, %v5841_v37  ;;  %v10650_v37 = vld [vmem:[%s16407_s3 + $0x60] sm:$0xff]  }
 0x1ae   : > { %v742_v25 = vpop.permute.xlu0 %741  ;;  %v12172_v33 = vor.u32 %v1852_v46, %v1849_v47  ;;  %7090 = vmatprep.subr.bf16.mxu1 %v16421_v60  ;;  %vm16559_vm0 = vsmask.f32 7424  ;;  %vm4465_vm2 = vmand %vm4383_vm5, %vm4424_vm13  ;;  %vm4506_vm1 = vcmp.ge.s32.totalorder %v12151_v24, 1  ;;  %v12194_v36 = vadd.s32 88, %v11996_v20 }
 0x1af   : > { %v1479_v29 = vsel %vm1441_vm9, %v1436_v7, %v742_v25  ;;  %v12177_v9 = vor.u32 %v5532_v49, %v5529_v59  ;;  %v5175_v26 = vsel %vm16559_vm0, %v5170_v31, %v12155_v50  ;;  %vm16560_vm4 = vsmask.f32 2304  ;;  %vm12206_vm5 = vmand %vm4465_vm2, %vm4506_vm1 }
 0x1b0   : > { %v994_v35 = vpop.permute.xlu1 %993  ;;  %v1854_v58 = vsel %vm1711_vm15, %v12078_v12, %v12172_v33  ;;  %7091 = vmatpush1.bf16.msra.mxu1 %v10648_v18  ;;  %vm4588_vm13 = vcmp.le.s32.totalorder %v12151_v24, 16  ;;  %vm2707_vm0 = vcmp.ge.s32.totalorder %v12194_v36, 90  ;;  %vm16565_vm1 = vcmask 228352  }
 0x1b1   : > { %v1522_v6 = vsel %vm1484_vm10, %v1479_v29, %v994_v35  ;;  %5325 = vrot.lane.b32.xlu1 %v5175_v26, %s10722_s10  ;;  %5934 = vrot.lane.b32.xlu0 %v12175_v30, %s10728_s20  ;;  %v12199_v12 = vsel %vm16560_vm4, %v12139_v54, %v12177_v9  ;;  %vm12227_vm2 = vmand %vm12206_vm5, %vm4588_vm13  ;;  %v2212_v24 = vadd.s32 64, %v11996_v20  ;;  %vm16566_vm4 = vcmask 1046528  }
 0x1b2   : > { %v1078_v10 = vpop.permute.xlu0 %1077  ;;  %10312 = vmatmul.mubr.msk.bf16.gmra.mrb[64].mxu0 %vm1894_vm3, %v1854_v58  ;;  %7092 = vmatprep.subr.bf16.mxu1 %v16421_v60  ;;  %v2748_v8 = vsel %vm2707_vm0, 1, %v16421_v60  ;;  %vm16567_vm5 = vcmask 1041408   ;;  %v2213_v49 = vadd.s32 72, %v11996_v20  ;;  %vm16568_vm13 = vcmask 257024  }
 0x1b3   : > { %v1565_v3 = vsel %vm1527_vm11, %v1522_v6, %v1078_v10  ;;  %v5012_v44 = vld [vmem:[#allocation2 + $0x20] sm:$0xf]  ;;  %10315 = vmatprep.mubr.msk.bf16.mxu0 %vm10724_vm6, %v16419_v45  ;;  %v12262_v29 = vadd.s32 4, %v2748_v8  ;;  %vm16569_vm0 = vmmov %vm16568_vm13  ;;  %v5976_v17 = vrot.slane %v12113_v56, 7  ;;  %v10653_v56 = vld [vmem:[%s16407_s3 + $0x70] sm:$0xff]  }
 0x1b4   : > { %v1130_v0 = vpop.permute.xlu1 %1129  ;;  %v2020_v28 = vpop.f32.mrb[12].mxu0  ;;  %v12215_v1 = vcombine.low %v12105_v21, %v5012_v44  ;;  %v12217_v13 = vld [vmem:[#allocation2 + $0x24] sm:$0xf]  ;;  %7093 = vmatpush1.bf16.msra.mxu1 %v10649_v48 }
 0x1b5   : > { %v1608_v4 = vsel %vm1570_vm12, %v1565_v3, %v1130_v0  ;;  %v2021_v14 = vadd.f32 %v12046_v32, %v2020_v28  ;;  %v10261_v53 = vpop.f32.mrb[13].mxu0  ;;  %v12222_v15 = vcombine.low %v5012_v44, %v12217_v13  ;;  %7094 = vmatprep.subr.bf16.mxu1 %v16421_v60  ;;  %v12273_v3 = vadd.s32 4294967242, %v2212_v24 }
 0x1b6   : > { %v1266_v38 = vpop.permute.xlu0 %1265  ;;  %v2023_v21 = vpop.f32.mrb[14].mxu0  ;;  %v5370_v57 = vrot.slane %v12215_v1, 1  ;;  %v5180_v58 = vshll.u32 %v12215_v1, 16  ;;  %v12280_v53 = vadd.s32 4294967224, %v2213_v49 }
 0x1b7   : > { %v1651_v62 = vsel %vm16565_vm1, %v1608_v4, %v1266_v38  ;;  %v2168_v61 = vmax.f32 %v2021_v14, 0.0  ;;  %v2024_v39 = vadd.f32 %v12046_v32, %v2023_v21  ;;  %v10262_v23 = vpop.f32.mrb[15].mxu0  ;;  %v5709_v40 = vrot.slane %v12222_v15, 6 }
 0x1b8   : > { %v1350_v52 = vpop.permute.xlu1 %1349  ;;  %v5371_v11 = vsel %vm16566_vm4, %v5368_v19, %v5370_v57  ;;  %v5536_v63 = vshrl.u32 %v12222_v15, 16  ;;  %v5539_v27 = vshll.u32 %v12222_v15, 16  ;;  %7095 = vmatpush1.bf16.msra.mxu1 %v10650_v37  ;;  %v5176_v14 = vshrl.u32 %v12103_v43, 16 }
 0x1b9   : > { %v4752_v5 = vsel %vm12227_vm2, %v2168_v61, 0.0  ;;  %v2169_v47 = vmax.f32 %v2024_v39, 0.0  ;;  %v1694_v46 = vsel %vm1656_vm14, %v1651_v62, %v1350_v52  ;;  %5457 = vrot.lane.b32.xlu1 %v5371_v11, %s10728_s20  ;;  %v5710_v19 = vsel %vm16567_vm5, %v12128_v34, %v5709_v40  ;;  %7096 = vmatprep.subr.bf16.mxu1 %v16421_v60 }
 0x1ba   : > { %v611_v41 = vpop.permute.xlu0 %610  ;;  %v9936_v16 = vpack.c.bf16 %v4752_v5, %v4752_v5  ;;  %v1855_v59 = vshrl.u32 %v1694_v46, 16  ;;  %v1858_v2 = vshll.u32 %v1694_v46, 16  ;;  %5751 = vrot.lane.b32.xlu0 %v5710_v19, %s10722_s10  ;;  %v5538_v18 = vrot.slane %v5536_v63, 5 }
 0x1bb   : > { %v1395_v7 = vsel %vm1355_vm7, %v11701_v42, %v611_v41  ;;  %v9937_v25 = vpack.c.bf16 %v2169_v47, %v2169_v47  ;;  %v10651_v42 = vld [vmem:[%s16407_s3 + $0x68] sm:$0xff]   ;;  %v5541_v48 = vrot.slane %v5539_v27, 6  ;;  %v5844_v28 = vrot.slane %v5536_v63, 6 }
 0x1bc   : > { %4970 = vst.msk [vmem:[#allocation2 + $0x28] sm:$0xf] %vm16568_vm13, %v9936_v16  ;;  %v1857_v34 = vrot.slane %v1855_v59, 2  ;;  %v1860_v35 = vrot.slane %v1858_v2, 3  ;;  %v695_v26 = vpop.permute.xlu1 %694  ;;  %v5845_v4 = vrot.slane %v5539_v27, 7  ;;  %7097 = vmatpush1.bf16.msra.mxu1 %v10651_v42  ;;  %v4306_v38 = vmul.u32 18, %v12262_v29 }
 0x1bd   : > { %4971 = vst.msk [vmem:[#allocation2 + $0x2c] sm:$0xf] %vm16569_vm0, %v9937_v25  ;;  %v1438_v6 = vsel %vm1398_vm8, %v1395_v7, %v695_v26  ;;  %5410 = vrot.lane.b32.xlu1 %v5371_v11, %s10727_s17  ;;  %v12283_v31 = vor.u32 %v5541_v48, %v5538_v18  ;;  %7098 = vmatprep.subr.bf16.mxu1 %v16421_v60  ;;  %v12292_v61 = vrot.slane %v5180_v58, 1  ;;  %v12295_v39 = vadd.s32 104, %v11996_v20  ;;  %v10654_v59 = vld [vmem:[%s16407_s3 + $0x78] sm:$0xff]  }
 0x1be   : > { %v744_v10 = vpop.permute.xlu0 %743  ;;  %v12276_v44 = vor.u32 %v1860_v35, %v1857_v34  ;;  %v5977_v23 = vrot.slane %v12222_v15, 7  ;;  %v5178_v11 = vor.u32 %v5176_v14, %v12155_v50  ;;  %vm16570_vm2 = vsmask.f32 2304 }
 0x1bf   : > { %v1481_v0 = vsel %vm1441_vm9, %v1438_v6, %v744_v10  ;;  %v6366_v63 = vshrl.u32 %v5976_v17, 16  ;;  %v12308_v8 = vor.u32 %v5845_v4, %v5844_v28  ;;  %vm16571_vm1 = vcmask 1040384  }
 0x1c0   : > { %v996_v21 = vpop.permute.xlu1 %995  ;;  %v1862_v62 = vsel %vm1711_vm15, %v12172_v33, %v12276_v44  ;;  %v12305_v33 = vsel %vm16570_vm2, %v12177_v9, %v12283_v31  ;;  %7099 = vmatpush1.bf16.msra.mxu1 %v10653_v56  ;;  %v12315_v37 = vsel %vm16571_vm1, %v5976_v17, %v5977_v23  ;;  %v6369_v50 = vshll.u32 %v5976_v17, 16 }
 0x1c1   : > { %v1524_v24 = vsel %vm1484_vm10, %v1481_v0, %v996_v21  ;;  %5801 = vrot.lane.b32.xlu1 %v5710_v19, %s10727_s17  ;;  %10316 = vmatmul.mubr.msk.bf16.gmra.mrb[68].mxu0 %vm1894_vm3, %v1862_v62  ;;  %vm4590_vm4 = vcmp.le.s32.totalorder %v12273_v3, 16  ;;  %vm4509_vm5 = vcmp.ge.s32.totalorder %v12280_v53, 1  ;;  %vm16572_vm13 = vsmask.f32 7424 }
 0x1c2   : > { %v1080_v52 = vpop.permute.xlu0 %1079  ;;  %10319 = vmatprep.mubr.msk.bf16.mxu0 %vm10724_vm6, %v16419_v45  ;;  %7100 = vmatprep.subr.bf16.mxu1 %v16421_v60  ;;  %v5183_v46 = vsel %vm16572_vm13, %v5178_v11, %v12292_v61  ;;  %v12328_v16 = vsub.s32 %v12194_v36, %v4306_v38  ;;  %v6374_v2 = vshrl.u32 %v12315_v37, 16  ;;  %vm2832_vm0 = vcmp.ge.s32.totalorder %v12295_v39, 108 }
 0x1c3   : > { %v1567_v27 = vsel %vm1527_vm11, %v1524_v24, %v1080_v52  ;;  %v5014_v9 = vld [vmem:[#allocation2 + $0x28] sm:$0xf]  ;;  %vm16573_vm2 = vcmask 228352   ;;  %vm16574_vm1 = vsmask.f32 1280  ;;  %v12345_v58 = vrot.slane %v6366_v63, 2 }
 0x1c4   : > { %v1132_v5 = vpop.permute.xlu1 %1131  ;;  %v2028_v47 = vpop.f32.mrb[16].mxu0  ;;  %v12322_v19 = vld [vmem:[#allocation2 + $0x2c] sm:$0xf]  ;;  %v12325_v41 = vcombine.low %v12217_v13, %v5014_v9  ;;  %v5847_v26 = vsel %vm16574_vm1, %v12175_v30, %v12308_v8  ;;  %7101 = vmatpush1.bf16.msra.mxu1 %v10654_v59  ;;  %v12347_v18 = vrot.slane %v6369_v50, 3  ;;  %vm4388_vm13 = vcmp.ge.s32.totalorder %v12262_v29, 1 }
 0x1c5   : > { %v1610_v7 = vsel %vm1570_vm12, %v1567_v27, %v1132_v5  ;;  %v2029_v25 = vadd.f32 %v12046_v32, %v2028_v47  ;;  %5327 = vrot.lane.b32.xlu1 %v5183_v46, %s10722_s10  ;;  %v10265_v49 = vpop.f32.mrb[17].mxu0  ;;  %v12338_v13 = vcombine.low %v5014_v9, %v12322_v19  ;;  %10331 = vmatprep.subr.bf16.mxu1 %v16419_v45  ;;  %v6376_v4 = vrot.slane %v6374_v2, 2 }
 0x1c6   : > { %v1268_v34 = vpop.permute.xlu0 %1267  ;;  %v2031_v36 = vpop.f32.mrb[18].mxu0  ;;  %v5372_v30 = vrot.slane %v12325_v41, 1  ;;  %v6377_v14 = vshll.u32 %v12315_v37, 16  ;;  %v5188_v9 = vshll.u32 %v12325_v41, 16  ;;  %vm16577_vm1 = vcmask 1046528  }
 0x1c7   : > { %v1653_v35 = vsel %vm16573_vm2, %v1610_v7, %v1268_v34  ;;  %v2170_v42 = vmax.f32 %v2029_v25, 0.0  ;;  %v2032_v6 = vadd.f32 %v12046_v32, %v2031_v36  ;;  %v10266_v10 = vpop.f32.mrb[19].mxu0  ;;  %v5711_v48 = vrot.slane %v12338_v13, 6 }
 0x1c8   : > { %v5545_v17 = vshrl.u32 %v12338_v13, 16  ;;  %v1352_v0 = vpop.permute.xlu1 %1351  ;;  %v5548_v28 = vshll.u32 %v12338_v13, 16  ;;  %vm16575_vm2 = vcmask 1041408   ;;  %v5373_v59 = vsel %vm16577_vm1, %v5370_v57, %v5372_v30 }
 0x1c9   : > { %v4754_v38 = vsel %vm4590_vm4, %v2170_v42, 0.0  ;;  %v2171_v56 = vmax.f32 %v2032_v6, 0.0  ;;  %v1696_v21 = vsel %vm1656_vm14, %v1653_v35, %v1352_v0  ;;  %5936 = vrot.lane.b32.xlu1 %v5847_v26, %s10728_s20  ;;  %v5712_v62 = vsel %vm16575_vm2, %v5709_v40, %v5711_v48 }
 0x1ca   : > { %v613_v24 = vpop.permute.xlu0 %612  ;;  %v9938_v52 = vpack.c.bf16 %v4754_v38, %v4754_v38  ;;  %v1863_v11 = vshrl.u32 %v1696_v21, 16  ;;  %v1866_v63 = vshll.u32 %v1696_v21, 16  ;;  %5803 = vrot.lane.b32.xlu0 %v5712_v62, %s10727_s17  ;;  %v5848_v37 = vrot.slane %v5545_v17, 6 }
 0x1cb   : > { %v1397_v3 = vsel %vm1355_vm7, %v11769_v22, %v613_v24  ;;  %v4755_v27 = vsel %vm4509_vm5, %v2171_v56, 0.0  ;;  %v5849_v50 = vrot.slane %v5548_v28, 7  ;;  %vm16576_vm4 = vcmask 257024  }
 0x1cc   : > { %4972 = vst.msk [vmem:[#allocation2 + $0x30] sm:$0xf] %vm16576_vm4, %v9938_v52  ;;  %v9939_v5 = vpack.c.bf16 %v4755_v27, %v4755_v27  ;;  %v1865_v40 = vrot.slane %v1863_v11, 2  ;;  %v1868_v47 = vrot.slane %v1866_v63, 3  ;;  %v697_v46 = vpop.permute.xlu1 %696  ;;  %v5547_v7 = vrot.slane %v5545_v17, 5  ;;  %vm16578_vm7 = vmmov %vm16576_vm4 }
 0x1cd   : > { %v1440_v22 = vsel %vm1398_vm8, %v1397_v3, %v697_v46  ;;  %5459 = vrot.lane.b32.xlu1 %v5373_v59, %s10728_s20  ;;  %v12380_v2 = vor.u32 %v5849_v50, %v5848_v37  ;;  %v5550_v25 = vrot.slane %v5548_v28, 6  ;;  %vm4429_vm5 = vcmp.le.s32.totalorder %v12262_v29, 16 }
 0x1ce   : > { %v746_v53 = vpop.permute.xlu0 %745  ;;  %4973 = vst.msk [vmem:[#allocation2 + $0x34] sm:$0xf] %vm16578_vm7, %v9939_v5  ;;  %v12383_v49 = vor.u32 %v1868_v47, %v1865_v40  ;;  %5753 = vrot.lane.b32.xlu0 %v5712_v62, %s10722_s10  ;;  %v2873_v57 = vsel %vm2832_vm0, 1, %v16421_v60  ;;  %v5184_v36 = vshrl.u32 %v12215_v1, 16  ;;  %v6372_v26 = vor.u32 %v12347_v18, %v12345_v58 }
 0x1cf   : > { %v1483_v34 = vsel %vm1441_vm9, %v1440_v22, %v746_v53  ;;  %v12392_v35 = vor.u32 %v5550_v25, %v5547_v7  ;;  %v6379_v42 = vrot.slane %v6377_v14, 3  ;;  %vm16579_vm8 = vsmask.f32 1280 }
 0x1d0   : > { %v998_v6 = vpop.permute.xlu1 %997  ;;  %v1870_v10 = vsel %vm1711_vm15, %v12276_v44, %v12383_v49  ;;  %v5851_v17 = vsel %vm16579_vm8, %v12308_v8, %v12380_v2  ;;  %v12402_v0 = vrot.slane %v5188_v9, 1  ;;  %v5979_v28 = vrot.slane %v12338_v13, 7 }
 0x1d1   : > { %v1526_v38 = vsel %vm1484_vm10, %v1483_v34, %v998_v6  ;;  %5412 = vrot.lane.b32.xlu1 %v5373_v59, %s10727_s17  ;;  %10320 = vmatmul.mubr.msk.bf16.gmra.mrb[72].mxu0 %vm1894_vm3, %v1870_v10  ;;  %v12408_v18 = vadd.s32 5, %v2873_v57  ;;  %vm16580_vm9 = vsmask.f32 2304  ;;  %v12415_v14 = vor.u32 %v6379_v42, %v6376_v4  ;;  %vm12424_vm10 = vmand %vm4388_vm13, %vm4429_vm5 }
 0x1d2   : > { %v1082_v58 = vpop.permute.xlu0 %1081  ;;  %v12413_v44 = vsel %vm16580_vm9, %v12283_v31, %v12392_v35  ;;  %5938 = vrot.lane.b32.xlu0 %v5851_v17, %s10728_s20  ;;  %v5186_v56 = vor.u32 %v5184_v36, %v12292_v61  ;;  %vm4511_vm0 = vcmp.ge.s32.totalorder %v12328_v16, 1  ;;  %10323 = vmatprep.mubr.msk.bf16.mxu0 %vm10724_vm6, %v16419_v45  ;;  %vm16585_vm13 = vsmask.f32 7424 }
 0x1d3   : > { %v1569_v8 = vsel %vm1527_vm11, %v1526_v38, %v1082_v58  ;;  %vm16583_vm11 = vcmask 1040384   ;;  %v5016_v61 = vld [vmem:[#allocation2 + $0x30] sm:$0xf]  ;;  %v12438_v4 = vsel %vm1711_vm15, %v6372_v26, %v12415_v14  ;;  %vm12450_vm2 = vmand %vm12424_vm10, %vm4511_vm0  ;;  %vm4593_vm4 = vcmp.le.s32.totalorder %v12328_v16, 16 }
 0x1d4   : > { %v5980_v31 = vsel %vm16583_vm11, %v5977_v23, %v5979_v28  ;;  %16584 = vst [vmem:[#allocation3_spill] sm:$0xff] %v12438_v4  ;;  %v1134_v62 = vpop.permute.xlu1 %1133  ;;  %v2036_v24 = vpop.f32.mrb[20].mxu0  ;;  %v5191_v52 = vsel %vm16585_vm13, %v5186_v56, %v12402_v0  ;;  %v12443_v11 = vcombine.low %v12322_v19, %v5016_v61  ;;  %v4308_v19 = vmul.u32 18, %v12408_v18  ;;  %vm12469_vm1 = vmand %vm12450_vm2, %vm4593_vm4 }
 0x1d5   : > { %v6399_v29 = vshrl.u32 %v5980_v31, 16  ;;  %v1612_v63 = vsel %vm1570_vm12, %v1569_v8, %v1134_v62  ;;  %v2037_v15 = vadd.f32 %v12046_v32, %v2036_v24  ;;  %5329 = vrot.lane.b32.xlu1 %v5191_v52, %s10722_s10  ;;  %v10269_v23 = vpop.f32.mrb[21].mxu0  ;;  %v12455_v37 = vld [vmem:[#allocation2 + $0x34] sm:$0xf]  ;;  %vm16588_vm12 = vcmask 228352  }
 0x1d6   : > { %v1270_v27 = vpop.permute.xlu0 %1269  ;;  %v2039_v50 = vpop.f32.mrb[22].mxu0  ;;  %v5374_v5 = vrot.slane %v12443_v11, 1  ;;  %v12461_v40 = vcombine.low %v5016_v61, %v12455_v37  ;;  %v6402_v47 = vshll.u32 %v5980_v31, 16  ;;  %v12465_v16 = vadd.s32 120, %v11996_v20 }
 0x1d7   : > { %v1655_v9 = vsel %vm16588_vm12, %v1612_v63, %v1270_v27  ;;  %v2172_v46 = vmax.f32 %v2037_v15, 0.0  ;;  %v2040_v59 = vadd.f32 %v12046_v32, %v2039_v50  ;;  %v10270_v22 = vpop.f32.mrb[23].mxu0  ;;  %v6401_v53 = vrot.slane %v6399_v29, 2 }
 0x1d8   : > { %v1354_v25 = vpop.permute.xlu1 %1353  ;;  %vm16591_vm7 = vcmask 1046528   ;;  %v5713_v57 = vrot.slane %v12461_v40, 6  ;;  %v5196_v36 = vshll.u32 %v12443_v11, 16  ;;  %v5554_v26 = vshrl.u32 %v12461_v40, 16 }
 0x1d9   : > { %v5375_v34 = vsel %vm16591_vm7, %v5372_v30, %v5374_v5  ;;  %v9940_v42 = vpack.c.bf16 %v2172_v46, %v2172_v46  ;;  %v2173_v6 = vmax.f32 %v2040_v59, 0.0  ;;  %v1698_v10 = vsel %vm1656_vm14, %v1655_v9, %v1354_v25 }
 0x1da   : > { %5461 = vrot.lane.b32.xlu1 %v5375_v34, %s10728_s20  ;;  %v5557_v17 = vshll.u32 %v12461_v40, 16  ;;  %v1871_v38 = vshrl.u32 %v1698_v10, 16  ;;  %v1874_v58 = vshll.u32 %v1698_v10, 16  ;;  %vm16592_vm5 = vcmask 1041408  }
 0x1db   : > { %v5714_v30 = vsel %vm16592_vm5, %v5711_v48, %v5713_v57  ;;  %v6404_v8 = vrot.slane %v6402_v47, 3  ;;  %vm16593_vm8 = vcmask 257024   ;;  %v4757_v56 = vsel %vm12469_vm1, %v2173_v6, 0.0 }
 0x1dc   : > { %4974 = vst.msk [vmem:[#allocation2 + $0x38] sm:$0xf] %vm16593_vm8, %v9940_v42  ;;  %5805 = vrot.lane.b32.xlu0 %v5714_v30, %s10727_s17  ;;  %v5192_v21 = vshrl.u32 %v12325_v41, 16  ;;  %v5852_v31 = vrot.slane %v5554_v26, 6  ;;  %v5853_v61 = vrot.slane %v5557_v17, 7  ;;  %v9941_v29 = vpack.c.bf16 %v4757_v56, %v4757_v56  ;;  %vm16594_vm10 = vmmov %vm16593_vm8 }
 0x1dd   : > { %v1873_v62 = vrot.slane %v1871_v38, 2  ;;  %v1876_v24 = vrot.slane %v1874_v58, 3  ;;  %v12494_v52 = vrot.slane %v5196_v36, 1  ;;  %v4349_v48 = vsub.s32 %v12295_v39, %v4308_v19 }
 0x1de   : > { %5414 = vrot.lane.b32.xlu1 %v5375_v34, %s10727_s17  ;;  %vm4390_vm9 = vcmp.ge.s32.totalorder %v12408_v18, 1  ;;  %v5556_v63 = vrot.slane %v5554_v26, 5  ;;  %v5559_v15 = vrot.slane %v5557_v17, 6  ;;  %4975 = vst.msk [vmem:[#allocation2 + $0x3c] sm:$0xf] %vm16594_vm10, %v9941_v29  ;;  %v5194_v3 = vor.u32 %v5192_v21, %v12402_v0 }
 0x1df   : > { %v1877_v23 = vor.u32 %v1876_v24, %v1873_v62  ;;  %v12501_v27 = vor.u32 %v5853_v61, %v5852_v31  ;;  %v6405_v50 = vor.u32 %v6404_v8, %v6401_v53  ;;  %vm4431_vm0 = vcmp.le.s32.totalorder %v12408_v18, 16 }
 0x1e0   : > { %5755 = vrot.lane.b32.xlu0 %v5714_v30, %s10722_s10  ;;  %vm2957_vm11 = vcmp.ge.s32.totalorder %v12465_v16, 126  ;;  %v12506_v9 = vor.u32 %v5559_v15, %v5556_v63  ;;  %v5981_v39 = vrot.slane %v12461_v40, 7  ;;  %v5199_v19 = vsel %vm16585_vm13, %v5194_v3, %v12494_v52  ;;  %vm4472_vm7 = vmand %vm4390_vm9, %vm4431_vm0 }
 0x1e1   : > { %v1878_v47 = vsel %vm1711_vm15, %v12383_v49, %v1877_v23  ;;  %v12515_v0 = vsel %vm1711_vm15, %v12415_v14, %v6405_v50  ;;  %vm4513_vm2 = vcmp.ge.s32.totalorder %v4349_v48, 1  ;;  %vm16596_vm4 = vsmask.f32 2304 }
 0x1e2   : > { %16595 = vst [vmem:[#allocation4_spill] sm:$0xff] %v12515_v0  ;;  %5331 = vrot.lane.b32.xlu1 %v5199_v19, %s10722_s10  ;;  %10324 = vmatmul.mubr.msk.bf16.gmra.mrb[76].mxu0 %vm1894_vm3, %v1878_v47  ;;  %v12522_v46 = vsel %vm16596_vm4, %v12392_v35, %v12506_v9  ;;  %vm16597_vm12 = vcmask 1040384   ;;  %vm16598_vm1 = vsmask.f32 1280  ;;  %v2998_v35 = vsel %vm2957_vm11, 1, %v16421_v60  ;;  %vm4554_vm5 = vmand %vm4472_vm7, %vm4513_vm2 }
 0x1e3   : > { %v5982_v49 = vsel %vm16597_vm12, %v5979_v28, %v5981_v39  ;;  %v5855_v14 = vsel %vm16598_vm1, %v12380_v2, %v12501_v27  ;;  %v5018_v59 = vld [vmem:[#allocation2 + $0x38] sm:$0xf]  ;;  %10327 = vmatprep.mubr.msk.bf16.mxu0 %vm10724_vm6, %v16419_v45  ;;  %vm4595_vm8 = vcmp.le.s32.totalorder %v4349_v48, 16  ;;  %v3039_v26 = vadd.s32 6, %v2998_v35  ;;  %vm16604_vm4 = vmmov %vm16597_vm12 }
 0x1e4   : > { %v6424_v22 = vshrl.u32 %v5982_v49, 16  ;;  %v6427_v53 = vshll.u32 %v5982_v49, 16  ;;  %5940 = vrot.lane.b32.xlu0 %v5855_v14, %s10728_s20  ;;  %v12539_v13 = vcombine.low %v12455_v37, %v5018_v59  ;;  %v2044_v28 = vpop.f32.mrb[24].mxu0  ;;  %vm16599_vm9 = vcmask 1046528   ;;  %vm4636_vm10 = vmand %vm4554_vm5, %vm4595_vm8 }
 0x1e5   : > { %v2045_v2 = vadd.f32 %v12046_v32, %v2044_v28  ;;  %v10273_v18 = vpop.f32.mrb[25].mxu0  ;;  %v5019_v36 = vld [vmem:[#allocation2 + $0x3c] sm:$0xf]  ;;  %v5200_v29 = vshrl.u32 %v12443_v11, 16  ;;  %v4310_v62 = vmul.u32 18, %v3039_v26  ;;  %vm16600_vm0 = vcmask 1041408  }
 0x1e6   : > { %v6426_v7 = vrot.slane %v6424_v22, 2  ;;  %v6429_v25 = vrot.slane %v6427_v53, 3  ;;  %v5376_v34 = vrot.slane %v12539_v13, 1  ;;  %v2047_v42 = vpop.f32.mrb[26].mxu0  ;;  %v12544_v6 = vcombine.low %v5018_v59, %v5019_v36 }
 0x1e7   : > { %v5204_v10 = vshll.u32 %v12539_v13, 16  ;;  %v2174_v37 = vmax.f32 %v2045_v2, 0.0  ;;  %v2048_v17 = vadd.f32 %v12046_v32, %v2047_v42  ;;  %v10274_v38 = vpop.f32.mrb[27].mxu0  ;;  %vm16601_vm11 = vcmask 257024  }
 0x1e8   : > { %v5377_v58 = vsel %vm16599_vm9, %v5374_v5, %v5376_v34  ;;  %v6430_v30 = vor.u32 %v6429_v25, %v6426_v7  ;;  %v5715_v8 = vrot.slane %v12544_v6, 6  ;;  %v5563_v56 = vshrl.u32 %v12544_v6, 16 }
 0x1e9   : > { %5463 = vrot.lane.b32.xlu1 %v5377_v58, %s10728_s20  ;;  %v5566_v21 = vshll.u32 %v12544_v6, 16  ;;  %v9942_v31 = vpack.c.bf16 %v2174_v37, %v2174_v37  ;;  %v2175_v61 = vmax.f32 %v2048_v17, 0.0  ;;  %v12566_v3 = vrot.slane %v5204_v10, 1 }
 0x1ea   : > { %10328 = vmatmul.mubr.msk.bf16.gmra.mrb[80].mxu0 %vm1894_vm3, %v1877_v23  ;;  %v5716_v5 = vsel %vm16600_vm0, %v5713_v57, %v5715_v8  ;;  %v5856_v24 = vrot.slane %v5563_v56, 6  ;;  %v5565_v63 = vrot.slane %v5563_v56, 5  ;;  %v12569_v19 = vsel %vm1711_vm15, %v6405_v50, %v6430_v30  ;;  %vm16603_vm3 = vmmov %vm16601_vm11 }
 0x1eb   : > { %v5857_v48 = vrot.slane %v5566_v21, 7  ;;  %4976 = vst.msk [vmem:[#allocation2 + $0x40] sm:$0xf] %vm16601_vm11, %v9942_v31  ;;  %v4759_v15 = vsel %vm4636_vm10, %v2175_v61, 0.0  ;;  %5807 = vrot.lane.b32.xlu0 %v5716_v5, %s10727_s17  ;;  %v5568_v23 = vrot.slane %v5566_v21, 6  ;;  %16602 = vst [vmem:[#allocation5_spill] sm:$0xff] %v12569_v19  ;;  %v5202_v57 = vor.u32 %v5200_v29, %v12494_v52 }
 0x1ec   : > { %v9943_v47 = vpack.c.bf16 %v4759_v15, %v4759_v15  ;;  %v5983_v49 = vrot.slane %v12544_v6, 7  ;;  %v4351_v14 = vsub.s32 %v12465_v16, %v4310_v62  ;;  %vm4392_vm13 = vcmp.ge.s32.totalorder %v3039_v26, 1 }
 0x1ed   : > { %5416 = vrot.lane.b32.xlu1 %v5377_v58, %s10727_s17  ;;  %v12575_v59 = vor.u32 %v5568_v23, %v5565_v63  ;;  %v12578_v35 = vor.u32 %v5857_v48, %v5856_v24  ;;  %vm4433_vm2 = vcmp.le.s32.totalorder %v3039_v26, 16  ;;  %vm16605_vm12 = vsmask.f32 7424 }
 0x1ee   : > { %4977 = vst.msk [vmem:[#allocation2 + $0x44] sm:$0xf] %vm16603_vm3, %v9943_v47  ;;  %v5984_v50 = vsel %vm16604_vm4, %v5981_v39, %v5983_v49  ;;  %v5207_v52 = vsel %vm16605_vm12, %v5202_v57, %v12566_v3  ;;  %vm16606_vm1 = vsmask.f32 2304  ;;  %vm16607_vm7 = vsmask.f32 1280  ;;  %vm4474_vm5 = vmand %vm4392_vm13, %vm4433_vm2 }
 0x1ef   : > { %5757 = vrot.lane.b32.xlu0 %v5716_v5, %s10722_s10  ;;  %v12591_v16 = vsel %vm16606_vm1, %v12506_v9, %v12575_v59  ;;  %v6449_v22 = vshrl.u32 %v5984_v50, 16  ;;  %v6452_v53 = vshll.u32 %v5984_v50, 16  ;;  %v5859_v40 = vsel %vm16607_vm7, %v12501_v27, %v12578_v35 }
 0x1f0   : > { %vm4515_vm8 = vcmp.ge.s32.totalorder %v4351_v14, 1  ;;  %vm4597_vm10 = vcmp.le.s32.totalorder %v4351_v14, 16  ;;  %vm16609_vm0 = vcmask 1046528   ;;  %v5208_v62 = vshrl.u32 %v12539_v13, 16 }
 0x1f1   : > { %5333 = vrot.lane.b32.xlu1 %v5207_v52, %s10722_s10  ;;  %v6451_v28 = vrot.slane %v6449_v22, 2  ;;  %v6454_v7 = vrot.slane %v6452_v53, 3  ;;  %vm4556_vm9 = vmand %vm4474_vm5, %vm4515_vm8  ;;  %vm16610_vm3 = vcmask 1041408   ;;  %vm16611_vm13 = vcmask 257024  }
 0x1f2   : > { %v5020_v39 = vld [vmem:[#allocation2 + $0x40] sm:$0xf]  ;;  %vm4638_vm11 = vmand %vm4556_vm9, %vm4597_vm10  ;;  %v5210_v14 = vor.u32 %v5208_v62, %v12566_v3 }
 0x1f3   : > { %5942 = vrot.lane.b32.xlu0 %v5859_v40, %s10728_s20  ;;  %v12598_v25 = vcombine.low %v5019_v36, %v5020_v39  ;;  %v12600_v2 = vor.u32 %v6454_v7, %v6451_v28  ;;  %vm16612_vm2 = vmmov %vm16611_vm13  ;;  %v2221_v7 = vadd.s32 136, %v11996_v20 }
 0x1f4   : > { %v2052_v9 = vpop.f32.mrb[28].mxu0  ;;  %vm16614_vm8 = vmmov %vm16609_vm0 }
 0x1f5   : > { %v2053_v18 = vadd.f32 %v12046_v32, %v2052_v9  ;;  %v10277_v26 = vpop.f32.mrb[29].mxu0  ;;  %v5378_v42 = vrot.slane %v12598_v25, 1  ;;  %v5021_v10 = vld [vmem:[#allocation2 + $0x44] sm:$0xf]  ;;  %v12608_v17 = vsel %vm1711_vm15, %v6430_v30, %v12600_v2  ;;  %v5212_v21 = vshll.u32 %v12598_v25, 16  ;;  %vm16615_vm10 = vmmov %vm16610_vm3 }
 0x1f6   : > { %v2055_v37 = vpop.f32.mrb[30].mxu0  ;;  %v12604_v27 = vcombine.low %v5020_v39, %v5021_v10  ;;  %16608 = vst [vmem:[#allocation6_spill] sm:$0xff] %v12608_v17  ;;  %v12658_v9 = vadd.s32 160, %v11996_v20 }
 0x1f7   : > { %v2176_v36 = vmax.f32 %v2053_v18, 0.0  ;;  %v2056_v38 = vadd.f32 %v12046_v32, %v2055_v37  ;;  %v10278_v58 = vpop.f32.mrb[31].mxu0  ;;  %v5379_v56 = vsel %vm16609_vm0, %v5376_v34, %v5378_v42  ;;  %v12629_v15 = vrot.slane %v5212_v21, 1  ;;  %vm16616_vm0 = vmmov %vm16612_vm2 }
 0x1f8   : > { %5465 = vrot.lane.b32.xlu1 %v5379_v56, %s10728_s20  ;;  %v5717_v31 = vrot.slane %v12604_v27, 6  ;;  %v5572_v30 = vshrl.u32 %v12604_v27, 16  ;;  %v5575_v61 = vshll.u32 %v12604_v27, 16  ;;  %v5985_v47 = vrot.slane %v12604_v27, 7 }
 0x1f9   : > { %v9944_v29 = vpack.c.bf16 %v2176_v36, %v2176_v36  ;;  %v2177_v32 = vmax.f32 %v2056_v38, 0.0  ;;  %v5215_v22 = vsel %vm16605_vm12, %v5210_v14, %v12629_v15  ;;  %v9754_v37 = vadd.s32 4294967170, %v2221_v7  ;;  %v12668_v36 = vld [vmem:[%s16406_s2] ss:$0 sm:$0xff] }
 0x1fa   : > { %v5718_v34 = vsel %vm16610_vm3, %v5715_v8, %v5717_v31  ;;  %v5860_v5 = vrot.slane %v5572_v30, 6  ;;  %v5861_v24 = vrot.slane %v5575_v61, 7  ;;  %v5574_v48 = vrot.slane %v5572_v30, 5  ;;  %vm16618_vm3 = vmmov %vm16604_vm4 }
 0x1fb   : > { %4978 = vst.msk [vmem:[#allocation2 + $0x48] sm:$0xf] %vm16611_vm13, %v9944_v29  ;;  %v4761_v63 = vsel %vm4638_vm11, %v2177_v32, 0.0  ;;  %5809 = vrot.lane.b32.xlu0 %v5718_v34, %s10727_s17  ;;  %v5577_v23 = vrot.slane %v5575_v61, 6  ;;  %v5986_v52 = vsel %vm16604_vm4, %v5983_v49, %v5985_v47  ;;  %vm3208_vm5 = vcmp.ge.s32.totalorder %v12658_v9, 162  ;;  %vm16617_vm11 = vmmov %vm16616_vm0 }
 0x1fc   : > { %v9945_v57 = vpack.c.bf16 %v4761_v63, %v4761_v63  ;;  %5418 = vrot.lane.b32.xlu1 %v5379_v56, %s10727_s17  ;;  %v12637_v8 = vor.u32 %v5861_v24, %v5860_v5  ;;  %v6474_v53 = vshrl.u32 %v5986_v52, 16  ;;  %v6477_v28 = vshll.u32 %v5986_v52, 16  ;;  %vm16619_vm13 = vmmov %vm16605_vm12 }
 0x1fd   : > { %v12634_v50 = vor.u32 %v5577_v23, %v5574_v48  ;;  %vm4599_vm9 = vcmp.le.s32.totalorder %v9754_v37, 16  ;;  %v5216_v23 = vshrl.u32 %v12598_v25, 16  ;;  %vm16621_vm4 = vmmov %vm16607_vm7 }
 0x1fe   : > { %4979 = vst.msk [vmem:[#allocation2 + $0x4c] sm:$0xf] %vm16612_vm2, %v9945_v57  ;;  %v6476_v40 = vrot.slane %v6474_v53, 2  ;;  %v6479_v6 = vrot.slane %v6477_v28, 3  ;;  %v5863_v49 = vsel %vm16607_vm7, %v12578_v35, %v12637_v8  ;;  %v3249_v57 = vsel %vm3208_vm5, 1, %v16421_v60  ;;  %vm16620_vm2 = vmmov %vm16606_vm1 }
 0x1ff   : > { %5759 = vrot.lane.b32.xlu0 %v5718_v34, %s10722_s10  ;;  %v12650_v3 = vsel %vm16606_vm1, %v12575_v59, %v12634_v50  ;;  %vm16624_vm5 = vmmov %vm16614_vm8 }
 0x200   : > { %5335 = vrot.lane.b32.xlu1 %v5215_v22, %s10722_s10  ;;  %v12663_v18 = vor.u32 %v6479_v6, %v6476_v40 }
 0x202   : > { %v5022_v39 = vld [vmem:[#allocation2 + $0x48] sm:$0xf] }
 0x203   : > { %5944 = vrot.lane.b32.xlu0 %v5863_v49, %s10728_s20  ;;  %v12661_v59 = vcombine.low %v5021_v10, %v5022_v39  ;;  %v12678_v10 = vsel %vm1711_vm15, %v12600_v2, %v12663_v18  ;;  %v12704_v49 = vpop.permute.xlu0 %5747 }
 0x204   : > { %v2060_v26 = vpop.f32.mrb[32].mxu0  ;;  %16613 = vst [vmem:[#allocation7_spill] sm:$0xff] %v12678_v10 }
 0x205   : > { %v2061_v38 = vadd.f32 %v12668_v36, %v2060_v26  ;;  %v10281_v35 = vpop.f32.mrb[33].mxu0  ;;  %v5380_v58 = vrot.slane %v12661_v59, 1  ;;  %v5023_v56 = vld [vmem:[#allocation2 + $0x4c] sm:$0xf]  ;;  %v5220_v34 = vshll.u32 %v12661_v59, 16  ;;  %v12708_v26 = vadd.s32 8, %v3249_v57 }
 0x206   : > { %v2063_v21 = vpop.f32.mrb[34].mxu0  ;;  %v12672_v30 = vcombine.low %v5022_v39, %v5023_v56  ;;  %v2222_v39 = vadd.s32 144, %v11996_v20 }
 0x207   : > { %v2178_v61 = vmax.f32 %v2061_v38, 0.0  ;;  %v2064_v29 = vadd.f32 %v12668_v36, %v2063_v21  ;;  %v10282_v32 = vpop.f32.mrb[35].mxu0  ;;  %v5381_v62 = vsel %vm16614_vm8, %v5378_v42, %v5380_v58  ;;  %v12700_v28 = vrot.slane %v5220_v34, 1  ;;  %vm16625_vm8 = vmmov %vm16615_vm10 }
 0x208   : > { %5467 = vrot.lane.b32.xlu1 %v5381_v62, %s10728_s20  ;;  %v5719_v5 = vrot.slane %v12672_v30, 6  ;;  %v5581_v2 = vshrl.u32 %v12672_v30, 16  ;;  %v5584_v24 = vshll.u32 %v12672_v30, 16  ;;  %v5987_v40 = vrot.slane %v12672_v30, 7 }
 0x209   : > { %v9946_v48 = vpack.c.bf16 %v2178_v61, %v2178_v61  ;;  %v2179_v63 = vmax.f32 %v2064_v29, 0.0  ;;  %v9755_v32 = vadd.s32 4294967152, %v2222_v39  ;;  %vm4397_vm1 = vcmp.ge.s32.totalorder %v12708_v26, 1 }
 0x20a   : > { %v5720_v42 = vsel %vm16615_vm10, %v5717_v31, %v5719_v5  ;;  %v5864_v14 = vrot.slane %v5581_v2, 6  ;;  %v5865_v52 = vrot.slane %v5584_v24, 7  ;;  %v5583_v22 = vrot.slane %v5581_v2, 5  ;;  %v12733_v2 = vpop.permute.xlu0 %5323 }
 0x20b   : > { %4980 = vst.msk [vmem:[#allocation2 + $0x50] sm:$0xf] %vm16616_vm0, %v9946_v48  ;;  %v4763_v53 = vsel %vm4599_vm9, %v2179_v63, 0.0  ;;  %5811 = vrot.lane.b32.xlu0 %v5720_v42, %s10727_s17  ;;  %v5586_v7 = vrot.slane %v5584_v24, 6  ;;  %v5218_v31 = vor.u32 %v5216_v23, %v12629_v15  ;;  %v5988_v35 = vsel %vm16618_vm3, %v5985_v47, %v5987_v40  ;;  %vm16626_vm9 = vmmov %vm16616_vm0 }
 0x20c   : > { %v9947_v6 = vpack.c.bf16 %v4763_v53, %v4763_v53  ;;  %5420 = vrot.lane.b32.xlu1 %v5381_v62, %s10727_s17  ;;  %v12713_v38 = vor.u32 %v5865_v52, %v5864_v14  ;;  %v6499_v61 = vshrl.u32 %v5988_v35, 16  ;;  %v6502_v29 = vshll.u32 %v5988_v35, 16  ;;  %vm16627_vm0 = vmmov %vm16618_vm3 }
 0x20d   : > { %v12710_v37 = vor.u32 %v5586_v7, %v5583_v22  ;;  %v5223_v15 = vsel %vm16619_vm13, %v5218_v31, %v12700_v28  ;;  %v4315_v62 = vmul.u32 18, %v12708_v26  ;;  %v12736_v48 = vadd.s32 176, %v11996_v20  ;;  %vm16629_vm3 = vmmov %vm16619_vm13 }
 0x20e   : > { %4981 = vst.msk [vmem:[#allocation2 + $0x54] sm:$0xf] %vm16617_vm11, %v9947_v6  ;;  %v6501_v27 = vrot.slane %v6499_v61, 2  ;;  %v6504_v34 = vrot.slane %v6502_v29, 3  ;;  %v5867_v47 = vsel %vm16621_vm4, %v12637_v8, %v12713_v38  ;;  %vm4518_vm12 = vcmp.ge.s32.totalorder %v9755_v32, 1  ;;  %v5407_v35 = vpop.permute.xlu0 %5406  ;;  %vm16628_vm11 = vmmov %vm16626_vm9 }
 0x20f   : > { %5761 = vrot.lane.b32.xlu0 %v5720_v42, %s10722_s10  ;;  %v12726_v21 = vsel %vm16620_vm2, %v12634_v50, %v12710_v37  ;;  %v12748_v52 = vsub.s32 %v12658_v9, %v4315_v62  ;;  %vm3333_vm7 = vcmp.ge.s32.totalorder %v12736_v48, 180  ;;  %vm4438_vm10 = vcmp.le.s32.totalorder %v12708_v26, 16  ;;  %vm16630_vm13 = vmmov %vm16620_vm2 }
 0x210   : > { %5337 = vrot.lane.b32.xlu1 %v5223_v15, %s10722_s10  ;;  %v12741_v63 = vor.u32 %v6504_v34, %v6501_v27  ;;  %v5224_v34 = vshrl.u32 %v12661_v59, 16  ;;  %vm4479_vm2 = vmand %vm4397_vm1, %vm4438_vm10 }
 0x211   : > { %vm4520_vm4 = vcmp.ge.s32.totalorder %v12748_v52, 1 }
 0x212   : > { %v5024_v24 = vld [vmem:[#allocation2 + $0x50] sm:$0xf]  ;;  %vm4561_vm1 = vmand %vm4479_vm2, %vm4520_vm4 }
 0x213   : > { %5946 = vrot.lane.b32.xlu0 %v5867_v47, %s10728_s20  ;;  %v12739_v50 = vcombine.low %v5023_v56, %v5024_v24  ;;  %v12758_v56 = vsel %vm1711_vm15, %v12663_v18, %v12741_v63 }
 0x214   : > { %v2068_v23 = vpop.f32.mrb[36].mxu0  ;;  %16623 = vst [vmem:[#allocation9_spill] sm:$0xff] %v12758_v56 }
 0x215   : > { %16622 = vst [vmem:[#allocation8_spill] sm:$0xff] %v12739_v50  ;;  %v2069_v57 = vadd.f32 %v12668_v36, %v2068_v23  ;;  %v10285_v42 = vpop.f32.mrb[37].mxu0  ;;  %v5382_v14 = vrot.slane %v12739_v50, 1  ;;  %v12745_v8 = vld [vmem:[#allocation2 + $0x54] sm:$0xf]  ;;  %v5228_v39 = vshll.u32 %v12739_v50, 16 }
 0x216   : > { %v2071_v22 = vpop.f32.mrb[38].mxu0  ;;  %v12751_v53 = vcombine.low %v5024_v24, %v12745_v8 }
 0x217   : > { %v2180_v7 = vmax.f32 %v2069_v57, 0.0  ;;  %v2072_v6 = vadd.f32 %v12668_v36, %v2071_v22  ;;  %v10286_v31 = vpop.f32.mrb[39].mxu0  ;;  %v5383_v9 = vsel %vm16624_vm5, %v5380_v58, %v5382_v14  ;;  %v3374_v58 = vsel %vm3333_vm7, 1, %v16421_v60 }
 0x218   : > { %5469 = vrot.lane.b32.xlu1 %v5383_v9, %s10728_s20  ;;  %v5721_v15 = vrot.slane %v12751_v53, 6  ;;  %v5590_v18 = vshrl.u32 %v12751_v53, 16  ;;  %v5593_v61 = vshll.u32 %v12751_v53, 16  ;;  %v16424_v29 = vrot.slane %v12751_v53, 7 }
 0x219   : > { %v4764_v62 = vsel %vm4518_vm12, %v2180_v7, 0.0  ;;  %v2181_v27 = vmax.f32 %v2072_v6, 0.0  ;;  %v12785_v32 = vrot.slane %v5228_v39, 1  ;;  %v12790_v31 = vadd.s32 9, %v3374_v58 }
 0x21a   : > { %v9948_v47 = vpack.c.bf16 %v4764_v62, %v4764_v62  ;;  %v5722_v24 = vsel %vm16625_vm8, %v5719_v5, %v5721_v15  ;;  %v5868_v23 = vrot.slane %v5590_v18, 6  ;;  %v5869_v57 = vrot.slane %v5593_v61, 7 }
 0x21b   : > { %v9949_v42 = vpack.c.bf16 %v2181_v27, %v2181_v27  ;;  %v12782_v22 = vpop.permute.xlu1 %5408  ;;  %5813 = vrot.lane.b32.xlu0 %v5722_v24, %s10727_s17  ;;  %v5592_v7 = vrot.slane %v5590_v18, 5  ;;  %v5595_v6 = vrot.slane %v5593_v61, 6  ;;  %v12793_v5 = vadd.s32 192, %v11996_v20  ;;  %v5800_v27 = vpop.permute.xlu0 %5799 }
 0x21c   : > { %4982 = vst.msk [vmem:[#allocation2 + $0x58] sm:$0xf] %vm16626_vm9, %v9948_v47  ;;  %5422 = vrot.lane.b32.xlu1 %v5383_v9, %s10727_s17  ;;  %v5990_v39 = vsel %vm16627_vm0, %v5987_v40, %v16424_v29  ;;  %v5226_v18 = vor.u32 %v5224_v34, %v12700_v28  ;;  %v12804_v58 = vor.u32 %v5869_v57, %v5868_v23  ;;  %v10703_v28 = vld [vmem:[#allocation2 + $0x4] sm:$0xff]   ;;  %vm16631_vm7 = vsmask.f32 1280 }
 0x21d   : > { %4983 = vst.msk [vmem:[#allocation2 + $0x5c] sm:$0xf] %vm16628_vm11, %v9949_v42  ;;  %v12802_v61 = vor.u32 %v5595_v6, %v5592_v7  ;;  %v6524_v9 = vshrl.u32 %v5990_v39, 16  ;;  %v6527_v62 = vshll.u32 %v5990_v39, 16  ;;  %vm3458_vm12 = vcmp.ge.s32.totalorder %v12793_v5, 198 }
 0x21e   : > { %v5231_v47 = vsel %vm16629_vm3, %v5226_v18, %v12785_v32  ;;  %v6018_v34 = vsel %vm1656_vm14, %v10703_v28, %v12733_v2  ;;  %v5871_v57 = vsel %vm16631_vm7, %v12713_v38, %v12804_v58  ;;  %vm6059_vm5 = vcmask 523264  }
 0x21f   : > { %5763 = vrot.lane.b32.xlu0 %v5722_v24, %s10722_s10  ;;  %v12812_v30 = vsel %vm16630_vm13, %v12710_v37, %v12802_v61  ;;  %v6526_v40 = vrot.slane %v6524_v9, 2  ;;  %v6529_v42 = vrot.slane %v6527_v62, 3  ;;  %v12823_v24 = vpop.permute.xlu1 %5749  ;;  %v4317_v37 = vmul.u32 18, %v12790_v31  ;;  %v5456_v39 = vpop.permute.xlu0 %5455 }
 0x220   : > { %5339 = vrot.lane.b32.xlu1 %v5231_v47, %s10722_s10  ;;  %vm4602_vm8 = vcmp.le.s32.totalorder %v12748_v52, 16  ;;  %v3499_v7 = vsel %vm3458_vm12, 1, %v16421_v60  ;;  %v6061_v6 = vsel %vm6059_vm5, %v6018_v34, %v5407_v35  ;;  %vm6102_vm9 = vcmask 785408  }
 0x221   : > { %v12826_v23 = vor.u32 %v6529_v42, %v6526_v40  ;;  %v12847_v47 = vsub.s32 %v12736_v48, %v4317_v37  ;;  %vm12849_vm10 = vmand %vm4561_vm1, %vm4602_vm8  ;;  %vm4399_vm0 = vcmp.ge.s32.totalorder %v12790_v31, 1  ;;  %v6147_v28 = vsel %vm1656_vm14, %v12139_v54, %v12704_v49 }
 0x222   : > { %v6104_v48 = vsel %vm6102_vm9, %v6061_v6, %v5456_v39  ;;  %vm16635_vm11 = vcmask 1046528   ;;  %v5232_v6 = vshrl.u32 %v12739_v50, 16  ;;  %vm16636_vm3 = vcmask 1041408  }
 0x223   : > { %5948 = vrot.lane.b32.xlu0 %v5871_v57, %s10728_s20  ;;  %v5026_v26 = vld [vmem:[#allocation2 + $0x58] sm:$0xf]  ;;  %v12837_v2 = vsel %vm1711_vm15, %v12741_v63, %v12826_v23  ;;  %v5326_v34 = vpop.permute.xlu1 %5325  ;;  %v6335_v40 = vshrl.u32 %v6104_v48, 16  ;;  %vm16637_vm13 = vcmask 257024   ;;  %vm4440_vm4 = vcmp.le.s32.totalorder %v12790_v31, 16 }
 0x224   : > { %16632 = vst [vmem:[#allocation10_spill] sm:$0xff] %v12837_v2  ;;  %v2076_v18 = vpop.f32.mrb[40].mxu0  ;;  %v12841_v38 = vcombine.low %v12745_v8, %v5026_v26  ;;  %v12843_v9 = vld [vmem:[#allocation2 + $0x5c] sm:$0xf]  ;;  %v12858_v8 = vadd.s32 10, %v3499_v7  ;;  %v6338_v2 = vshll.u32 %v6104_v48, 16  ;;  %vm16638_vm2 = vmmov %vm16637_vm13 }
 0x225   : > { %v2077_v52 = vadd.f32 %v12668_v36, %v2076_v18  ;;  %v10289_v62 = vpop.f32.mrb[41].mxu0  ;;  %v12855_v42 = vcombine.low %v5026_v26, %v12843_v9  ;;  %vm4522_vm12 = vcmp.ge.s32.totalorder %v12847_v47, 1  ;;  %vm16639_vm7 = vsmask.f32 7424  ;;  %vm4481_vm1 = vmand %vm4399_vm0, %vm4440_vm4 }
 0x226   : > { %v2079_v63 = vpop.f32.mrb[42].mxu0  ;;  %v16423_v35 = vrot.slane %v12841_v38, 1  ;;  %v5236_v62 = vshll.u32 %v12841_v38, 16  ;;  %vm16640_vm8 = vsmask.f32 2304  ;;  %v16649_v10 = vrot.slane %v12841_v38, 1 }
 0x227   : > { %v2182_v37 = vmax.f32 %v2077_v52, 0.0  ;;  %v2080_v57 = vadd.f32 %v12668_v36, %v2079_v63  ;;  %v10290_v18 = vpop.f32.mrb[43].mxu0  ;;  %v16426_v7 = vrot.slane %v12855_v42, 6  ;;  %v5599_v45 = vshrl.u32 %v12855_v42, 16  ;;  %v5935_v63 = vpop.permute.xlu0 %5934 }
 0x228   : > { %v5385_v26 = vsel %vm16635_vm11, %v5382_v14, %v16423_v35  ;;  %v5602_v39 = vshll.u32 %v12855_v42, 16  ;;  %v6209_v52 = vsel %vm6059_vm5, %v6147_v28, %v5800_v27  ;;  %v12888_v27 = vrot.slane %v5236_v62, 1 }
 0x229   : > { %v4766_v54 = vsel %vm12849_vm10, %v2182_v37, 0.0  ;;  %v2183_v49 = vmax.f32 %v2080_v57, 0.0  ;;  %5471 = vrot.lane.b32.xlu1 %v5385_v26, %s10728_s20  ;;  %v5724_v18 = vsel %vm16636_vm3, %v5721_v15, %v16426_v7  ;;  %v5872_v60 = vrot.slane %v5599_v45, 6  ;;  %vm12940_vm3 = vmand %vm4481_vm1, %vm4522_vm12 }
 0x22a   : > { %v9950_v14 = vpack.c.bf16 %v4766_v54, %v4766_v54  ;;  %v6020_v37 = vsel %vm1656_vm14, %v11932_v55, %v5326_v34  ;;  %5815 = vrot.lane.b32.xlu0 %v5724_v18, %s10727_s17  ;;  %v5873_v29 = vrot.slane %v5602_v39, 7  ;;  %v5601_v28 = vrot.slane %v5599_v45, 5 }
 0x22b   : > { %v9951_v57 = vpack.c.bf16 %v2183_v49, %v2183_v49  ;;  %v5458_v35 = vpop.permute.xlu1 %5457  ;;  %v5604_v54 = vrot.slane %v5602_v39, 6  ;;  %v12891_v56 = vsel %vm6102_vm9, %v6209_v52, %v5935_v63  ;;  %v5234_v55 = vor.u32 %v5232_v6, %v12785_v32 }
 0x22c   : > { %4984 = vst.msk [vmem:[#allocation2 + $0x60] sm:$0xf] %vm16637_vm13, %v9950_v14  ;;  %v4319_v15 = vmul.u32 18, %v12858_v8  ;;  %v6063_v48 = vsel %vm6059_vm5, %v6020_v37, %v12782_v22  ;;  %v12900_v34 = vor.u32 %v5873_v29, %v5872_v60  ;;  %v16425_v62 = vrot.slane %v12855_v42, 7  ;;  %v5752_v7 = vpop.permute.xlu0 %5751 }
 0x22d   : > { %4985 = vst.msk [vmem:[#allocation2 + $0x64] sm:$0xf] %vm16638_vm2, %v9951_v57  ;;  %5424 = vrot.lane.b32.xlu1 %v5385_v26, %s10727_s17  ;;  %v12902_v45 = vor.u32 %v5604_v54, %v5601_v28  ;;  %v12905_v49 = vrot.slane %v6335_v40, 2  ;;  %v6106_v39 = vsel %vm6102_vm9, %v6063_v48, %v5458_v35  ;;  %v12912_v26 = vrot.slane %v6338_v2, 3 }
 0x22e   : > { %5765 = vrot.lane.b32.xlu0 %v5724_v18, %s10722_s10  ;;  %v5239_v60 = vsel %vm16639_vm7, %v5234_v55, %v12888_v27  ;;  %v16642_v22 = vrot.slane %v12751_v53, 7  ;;  %vm16643_vm10 = vcmask 1040384   ;;  %v6350_v2 = vshrl.u32 %v12891_v56, 16 }
 0x22f   : > { %v12909_v32 = vpop.permute.xlu1 %5410  ;;  %v12921_v29 = vsel %vm16640_vm8, %v12802_v61, %v12902_v45  ;;  %vm4604_vm11 = vcmp.le.s32.totalorder %v12847_v47, 16  ;;  %v12932_v31 = vsub.s32 %v12793_v5, %v4319_v15  ;;  %v6342_v6 = vshrl.u32 %v6106_v39, 16 }
 0x230   : > { %16641 = vst [vmem:[#allocation11_spill] sm:$0xff] %v12921_v29  ;;  %v5992_v35 = vsel %vm16643_vm10, %v16642_v22, %v16425_v62  ;;  %vm16644_vm0 = vsmask.f32 1280  ;;  %v12945_v5 = vadd.s32 208, %v11996_v20  ;;  %v12948_v40 = vadd.s32 216, %v11996_v20  ;;  %vm12979_vm4 = vmand %vm12940_vm3, %vm4604_vm11 }
 0x231   : > { %5341 = vrot.lane.b32.xlu1 %v5239_v60, %s10722_s10  ;;  %v5875_v61 = vsel %vm16644_vm0, %v12804_v58, %v12900_v34  ;;  %v6549_v52 = vshrl.u32 %v5992_v35, 16  ;;  %v6552_v63 = vshll.u32 %v5992_v35, 16  ;;  %v12951_v58 = vadd.s32 232, %v11996_v20 }
 0x232   : > { %5950 = vrot.lane.b32.xlu0 %v5875_v61, %s10728_s20  ;;  %v12954_v37 = vadd.s32 248, %v11996_v20  ;;  %v6150_v57 = vsel %vm1656_vm14, %v12199_v12, %v12823_v24  ;;  %v6345_v54 = vshll.u32 %v6106_v39, 16  ;;  %v12966_v60 = vrot.slane %v6350_v2, 2 }
 0x233   : > { %v5802_v53 = vpop.permute.xlu1 %5801  ;;  %v5028_v18 = vld [vmem:[#allocation2 + $0x60] sm:$0xf]  ;;  %v6353_v22 = vshll.u32 %v12891_v56, 16  ;;  %vm4401_vm13 = vcmp.ge.s32.totalorder %v12858_v8, 1  ;;  %vm4442_vm2 = vcmp.le.s32.totalorder %v12858_v8, 16  ;;  %v6344_v12 = vrot.slane %v6342_v6, 2 }
 0x234   : > { %v2084_v55 = vpop.f32.mrb[44].mxu0  ;;  %v12962_v15 = vcombine.low %v12843_v9, %v5028_v18  ;;  %v12964_v48 = vld [vmem:[#allocation2 + $0x64] sm:$0xf]  ;;  %v6551_v39 = vrot.slane %v6549_v52, 2  ;;  %v6554_v2 = vrot.slane %v6552_v63, 3  ;;  %vm3709_vm12 = vcmp.ge.s32.totalorder %v12951_v58, 234 }
 0x235   : > { %v2085_v35 = vadd.f32 %v12668_v36, %v2084_v55  ;;  %v10293_v61 = vpop.f32.mrb[45].mxu0  ;;  %v12971_v62 = vcombine.low %v5028_v18, %v12964_v48  ;;  %v6347_v14 = vrot.slane %v6345_v54, 3  ;;  %vm16650_vm7 = vcmask 1046528  }
 0x236   : > { %v2087_v56 = vpop.f32.mrb[46].mxu0  ;;  %v16427_v9 = vrot.slane %v12962_v15, 1  ;;  %v5244_v63 = vshll.u32 %v12962_v15, 16  ;;  %vm4524_vm1 = vcmp.ge.s32.totalorder %v12932_v31, 1  ;;  %v16652_v17 = vrot.slane %v12855_v42, 6 }
 0x237   : > { %v2184_v18 = vmax.f32 %v2085_v35, 0.0  ;;  %v2088_v55 = vadd.f32 %v12668_v36, %v2087_v56  ;;  %v5328_v61 = vpop.permute.xlu1 %5327  ;;  %v10294_v28 = vpop.f32.mrb[47].mxu0  ;;  %v5608_v47 = vshrl.u32 %v12971_v62, 16  ;;  %v5611_v35 = vshll.u32 %v12971_v62, 16 }
 0x238   : > { %v5387_v52 = vsel %vm16650_vm7, %v16649_v10, %v16427_v9  ;;  %v6211_v28 = vsel %vm6059_vm5, %v6150_v57, %v5802_v53  ;;  %v16651_v54 = vrot.slane %v12971_v62, 6  ;;  %vm16653_vm8 = vcmask 1041408   ;;  %vm13045_vm7 = vmand %vm4401_vm13, %vm4442_vm2 }
 0x239   : > { %v4768_v56 = vsel %vm12979_vm4, %v2184_v18, 0.0  ;;  %v2185_v6 = vmax.f32 %v2088_v55, 0.0  ;;  %5473 = vrot.lane.b32.xlu1 %v5387_v52, %s10728_s20  ;;  %v5876_v19 = vrot.slane %v5608_v47, 6  ;;  %v5877_v0 = vrot.slane %v5611_v35, 7 }
 0x23a   : > { %v5726_v10 = vsel %vm16653_vm8, %v16652_v17, %v16651_v54  ;;  %v9952_v9 = vpack.c.bf16 %v4768_v56, %v4768_v56  ;;  %v13006_v4 = vor.u32 %v6554_v2, %v6551_v39  ;;  %v6022_v57 = vsel %vm1656_vm14, %v12103_v43, %v5328_v61 }
 0x23b   : > { %5817 = vrot.lane.b32.xlu0 %v5726_v10, %s10727_s17  ;;  %v9953_v53 = vpack.c.bf16 %v2185_v6, %v2185_v6  ;;  %v5937_v24 = vpop.permute.xlu1 %5936  ;;  %vm4606_vm10 = vcmp.le.s32.totalorder %v12932_v31, 16  ;;  %v5610_v18 = vrot.slane %v5608_v47, 5  ;;  %v5613_v55 = vrot.slane %v5611_v35, 6 }
 0x23c   : > { %v6355_v29 = vrot.slane %v6353_v22, 3  ;;  %vm16654_vm11 = vcmask 257024   ;;  %v6253_v17 = vsel %vm6102_vm9, %v6211_v28, %v5937_v24  ;;  %v5804_v56 = vpop.permute.xlu0 %5803  ;;  %v5240_v54 = vshrl.u32 %v12841_v38, 16 }
 0x23d   : > { %4986 = vst.msk [vmem:[#allocation2 + $0x68] sm:$0xf] %vm16654_vm11, %v9952_v9  ;;  %v5246_v50 = vrot.slane %v5244_v63, 1  ;;  %vm16655_vm0 = vmmov %vm16654_vm11  ;;  %v6357_v39 = vshrl.u32 %v6253_v17, 16  ;;  %v6360_v2 = vshll.u32 %v6253_v17, 16  ;;  %5426 = vrot.lane.b32.xlu1 %v5387_v52, %s10727_s17  ;;  %v13016_v43 = vor.u32 %v5877_v0, %v5876_v19 }
 0x23e   : > { %4987 = vst.msk [vmem:[#allocation2 + $0x6c] sm:$0xf] %vm16655_vm0, %v9953_v53  ;;  %v13018_v61 = vor.u32 %v5613_v55, %v5610_v18  ;;  %v13020_v6 = vor.u32 %v6347_v14, %v6344_v12  ;;  %v6065_v22 = vsel %vm6059_vm5, %v6022_v57, %v12909_v32  ;;  %v5242_v9 = vor.u32 %v5240_v54, %v12888_v27  ;;  %vm13077_vm0 = vmand %vm13045_vm7, %vm4524_vm1 }
 0x23f   : > { %5767 = vrot.lane.b32.xlu0 %v5726_v10, %s10722_s10  ;;  %v13029_v47 = vsel %vm1711_vm15, %v12826_v23, %v13006_v4  ;;  %v6359_v63 = vrot.slane %v6357_v39, 2  ;;  %v6362_v52 = vrot.slane %v6360_v2, 3  ;;  %v5460_v0 = vpop.permute.xlu1 %5459  ;;  %vm16656_vm3 = vsmask.f32 2304  ;;  %vm13108_vm1 = vmand %vm13077_vm0, %vm4606_vm10 }
 0x240   : > { %v13034_v19 = vsel %vm16656_vm3, %v12902_v45, %v13018_v61  ;;  %v5993_v12 = vrot.slane %v12971_v62, 7  ;;  %v6108_v14 = vsel %vm6102_vm9, %v6065_v22, %v5460_v0  ;;  %v13038_v32 = vpop.permute.xlu0 %5753  ;;  %vm16657_vm4 = vsmask.f32 7424 }
 0x241   : > { %v5247_v27 = vsel %vm16657_vm4, %v5242_v9, %v5246_v50  ;;  %v6356_v35 = vor.u32 %v6355_v29, %v12966_v60  ;;  %vm4792_vm8 = vcmask 257026   ;;  %v6382_v45 = vshrl.u32 %v6108_v14, 16 }
 0x242   : > { %v6385_v28 = vshll.u32 %v6108_v14, 16  ;;  %5343 = vrot.lane.b32.xlu1 %v5247_v27, %s10722_s10  ;;  %vm16660_vm11 = vsmask.f32 1280  ;;  %v13054_v53 = vor.u32 %v6362_v52, %v6359_v63  ;;  %v16661_v57 = vmov 0  }
 0x243   : > { %v5879_v10 = vsel %vm16660_vm11, %v12900_v34, %v13016_v43  ;;  %4793 = vst.msk [vmem:[#allocation2 + $0xb0] sm:$0xc] %vm4792_vm8, %v16661_v57  ;;  %v5248_v8 = vshrl.u32 %v12962_v15, 16  ;;  %v13062_v29 = vsel %vm3709_vm12, 1, %v16661_v57  ;;  %vm4797_vm13 = vcmask 254976   ;;  %v5413_v18 = vpop.permute.xlu1 %5412 }
 0x244   : > { %5952 = vrot.lane.b32.xlu0 %v5879_v10, %s10728_s20  ;;  %v16662_v60 = vrot.slane %v12855_v42, 7  ;;  %vm16663_vm2 = vcmask 1040384   ;;  %v6153_v24 = vsel %vm1656_vm14, %v12305_v33, %v5752_v7  ;;  %v6364_v17 = vsel %vm1711_vm15, %v6356_v35, %v13054_v53  ;;  %v5030_v39 = vld [vmem:[#allocation2 + $0x68] sm:$0xf]  ;;  %5004 = vst.msk [vmem:[#allocation2 + $0xb0] sm:$0x3] %vm4797_vm13, %v11603_v51  ;;  %v5939_v9 = vpop.permute.xlu0 %5938 }
 0x245   : > { %v16666_v42 = vor.u32 %v12912_v26, %v12905_v49  ;;  %v13089_v33 = vadd.s32 264, %v11996_v20  ;;  %v6213_v7 = vsel %vm6059_vm5, %v6153_v24, %v5804_v56  ;;  %v6384_v2 = vrot.slane %v6382_v45, 2  ;;  %v2092_v22 = vpop.f32.mrb[48].mxu0  ;;  %7102 = vmatprep.mubr.bf16.mxu1 %v6364_v17  ;;  %v13096_v52 = vld [vmem:[#allocation2 + $0x6c] sm:$0xf] }
 0x246   : > { %v13069_v34 = vsel %vm16663_vm2, %v16662_v60, %v5993_v12  ;;  %v13094_v63 = vcombine.low %v12964_v48, %v5030_v39  ;;  %v5250_v49 = vor.u32 %v5248_v8, %v5246_v50  ;;  %v6387_v26 = vrot.slane %v6385_v28, 3  ;;  %v10297_v27 = vpop.f32.mrb[49].mxu0 }
 0x247   : > { %v6349_v54 = vsel %vm1711_vm15, %v16666_v42, %v13020_v6  ;;  %v2093_v0 = vadd.f32 %v12668_v36, %v2092_v22  ;;  %v6255_v14 = vsel %vm6102_vm9, %v6213_v7, %v5939_v9  ;;  %v13101_v51 = vcombine.low %v5030_v39, %v13096_v52  ;;  %v2095_v23 = vpop.f32.mrb[50].mxu0  ;;  %v5330_v8 = vpop.permute.xlu1 %5329 }
 0x248   : > { %7103 = vmatmul.mubr.bf16.vlgmr.msra.gmra.mrb[0].mxu1 %v6349_v54  ;;  %vm3834_vm12 = vcmp.ge.s32.totalorder %v12954_v37, 252  ;;  %v6390_v50 = vshrl.u32 %v6255_v14, 16  ;;  %v6393_v56 = vshll.u32 %v6255_v14, 16  ;;  %v5388_v35 = vrot.slane %v13094_v63, 1  ;;  %v10298_v60 = vpop.f32.mrb[51].mxu0 }
 0x249   : > { %v5252_v45 = vshll.u32 %v13094_v63, 16  ;;  %v2186_v28 = vmax.f32 %v2093_v0, 0.0  ;;  %v2096_v10 = vadd.f32 %v12668_v36, %v2095_v23  ;;  %v5727_v31 = vrot.slane %v13101_v51, 6 }
 0x24a   : > { %v6574_v24 = vshrl.u32 %v13069_v34, 16  ;;  %v6392_v55 = vrot.slane %v6390_v50, 2  ;;  %v6395_v17 = vrot.slane %v6393_v56, 3  ;;  %v6024_v42 = vsel %vm1656_vm14, %v12215_v1, %v5330_v8 }
 0x24b   : > { %v16669_v54 = vrot.slane %v12962_v15, 1  ;;  %vm16670_vm10 = vcmask 1046528   ;;  %v13124_v7 = vor.u32 %v6387_v26, %v6384_v2  ;;  %v4770_v22 = vsel %vm13108_vm1, %v2186_v28, 0.0  ;;  %v10664_v26 = vld [vmem:[%s16407_s3 + $0x80] sm:$0xff]  }
 0x24c   : > { %v2187_v9 = vmax.f32 %v2096_v10, 0.0  ;;  %v16671_v0 = vrot.slane %v12971_v62, 6  ;;  %vm16672_vm3 = vcmask 1041408   ;;  %v9954_v14 = vpack.c.bf16 %v4770_v22, %v4770_v22  ;;  %v5462_v23 = vpop.permute.xlu1 %5461  ;;  %10332 = vmatpush3.bf16.msra.mxu1 %v10664_v26  ;;  %vm16679_vm1 = vmmov %vm16670_vm10 }
 0x24d   : > { %v5389_v39 = vsel %vm16670_vm10, %v16669_v54, %v5388_v35  ;;  %v13134_v27 = vor.u32 %v6395_v17, %v6392_v55  ;;  %v5254_v50 = vrot.slane %v5252_v45, 1  ;;  %v5617_v2 = vshrl.u32 %v13101_v51, 16  ;;  %vm16680_vm10 = vmmov %vm16672_vm3 }
 0x24e   : > { %5475 = vrot.lane.b32.xlu1 %v5389_v39, %s10728_s20  ;;  %v5728_v1 = vsel %vm16672_vm3, %v16671_v0, %v5727_v31  ;;  %v9955_v48 = vpack.c.bf16 %v2187_v9, %v2187_v9  ;;  %v6067_v56 = vsel %vm6059_vm5, %v6024_v42, %v5413_v18  ;;  %v5620_v28 = vshll.u32 %v13101_v51, 16 }
 0x24f   : > { %5819 = vrot.lane.b32.xlu0 %v5728_v1, %s10727_s17  ;;  %v6577_v10 = vshll.u32 %v13069_v34, 16  ;;  %vm16673_vm4 = vcmask 257024   ;;  %v6110_v8 = vsel %vm6102_vm9, %v6067_v56, %v5462_v23  ;;  %vm16674_vm7 = vsmask.f32 7424  ;;  %v5806_v34 = vpop.permute.xlu0 %5805 }
 0x250   : > { %4988 = vst.msk [vmem:[#allocation2 + $0x70] sm:$0xf] %vm16673_vm4, %v9954_v14  ;;  %v5255_v45 = vsel %vm16674_vm7, %v5250_v49, %v5254_v50  ;;  %v6397_v60 = vsel %vm1711_vm15, %v13054_v53, %v13134_v27  ;;  %v5880_v55 = vrot.slane %v5617_v2, 6  ;;  %vm16675_vm8 = vmmov %vm16673_vm4  ;;  %v6407_v18 = vshrl.u32 %v6110_v8, 16  ;;  %v5415_v0 = vpop.permute.xlu1 %5414 }
 0x251   : > { %4989 = vst.msk [vmem:[#allocation2 + $0x74] sm:$0xf] %vm16675_vm8, %v9955_v48  ;;  %v6410_v17 = vshll.u32 %v6110_v8, 16  ;;  %7110 = vmatprep.mubr.bf16.mxu1 %v6397_v60  ;;  %v6389_v42 = vsel %vm1711_vm15, %v13020_v6, %v13124_v7  ;;  %v5881_v54 = vrot.slane %v5620_v28, 7  ;;  %v9760_v53 = vadd.s32 4294967098, %v12945_v5  ;;  %vm16681_vm3 = vmmov %vm16674_vm7 }
 0x252   : > { %5345 = vrot.lane.b32.xlu1 %v5255_v45, %s10722_s10  ;;  %7111 = vmatmul.mubr.bf16.gmra.mrb[4].mxu1 %v6389_v42  ;;  %v13158_v49 = vadd.s32 4294967080, %v12948_v40  ;;  %v5619_v22 = vrot.slane %v5617_v2, 5  ;;  %v5622_v9 = vrot.slane %v5620_v28, 6  ;;  %v13163_v26 = vadd.s32 12, %v13062_v29  ;;  %vm16682_vm7 = vmmov %vm16673_vm4 }
 0x253   : > { %5769 = vrot.lane.b32.xlu0 %v5728_v1, %s10722_s10  ;;  %v13160_v14 = vor.u32 %v5881_v54, %v5880_v55  ;;  %v16676_v48 = vmov 0.0   ;;  %v6409_v6 = vrot.slane %v6407_v18, 2  ;;  %v3875_v1 = vsel %vm3834_vm12, 1, %v16661_v57  ;;  %v13173_v2 = vpop.permute.xlu0 %5755 }
 0x254   : > { %10333 = vmatprep.subr.bf16.mxu1 %v16676_v48  ;;  %vm3959_vm11 = vcmp.ge.s32.totalorder %v13089_v33, 270  ;;  %v13170_v5 = vor.u32 %v5622_v9, %v5619_v22  ;;  %v6412_v40 = vrot.slane %v6410_v17, 3  ;;  %vm16677_vm13 = vsmask.f32 1280  ;;  %v5332_v45 = vpop.permute.xlu1 %5331  ;;  %v2100_v18 = vpop.f32.mrb[52].mxu0 }
 0x255   : > { %v5883_v29 = vsel %vm16677_vm13, %v13016_v43, %v13160_v14  ;;  %v6576_v56 = vrot.slane %v6574_v24, 2  ;;  %v6579_v23 = vrot.slane %v6577_v10, 3  ;;  %vm4608_vm2 = vcmp.le.s32.totalorder %v9760_v53, 16  ;;  %v10301_v22 = vpop.f32.mrb[53].mxu0 }
 0x256   : > { %5428 = vrot.lane.b32.xlu1 %v5389_v39, %s10727_s17  ;;  %vm4527_vm0 = vcmp.ge.s32.totalorder %v13158_v49, 1  ;;  %v5256_v28 = vshrl.u32 %v13094_v63, 16  ;;  %vm16678_vm12 = vsmask.f32 2304  ;;  %v6156_v39 = vsel %vm1656_vm14, %v12413_v44, %v13038_v32 }
 0x257   : > { %5954 = vrot.lane.b32.xlu0 %v5883_v29, %s10728_s20  ;;  %v13184_v8 = vsel %vm16678_vm12, %v13018_v61, %v13170_v5  ;;  %v5032_v43 = vld [vmem:[#allocation2 + $0x70] sm:$0xf]  ;;  %v4324_v24 = vmul.u32 18, %v13163_v26  ;;  %v13190_v10 = vadd.s32 13, %v3875_v1  ;;  %v4000_v60 = vsel %vm3959_vm11, 1, %v16661_v57  ;;  %v5941_v9 = vpop.permute.xlu0 %5940  ;;  %v2103_v29 = vpop.f32.mrb[54].mxu0 }
 0x258   : > { %v6215_v55 = vsel %vm6059_vm5, %v6156_v39, %v5806_v34  ;;  %v6026_v61 = vsel %vm1656_vm14, %v12325_v41, %v5332_v45  ;;  %v13199_v17 = vcombine.low %v13096_v52, %v5032_v43  ;;  %v13201_v44 = vld [vmem:[#allocation2 + $0x74] sm:$0xf]  ;;  %v5258_v32 = vor.u32 %v5256_v28, %v5254_v50 }
 0x259   : > { %v13203_v42 = vor.u32 %v6412_v40, %v6409_v6  ;;  %v2101_v54 = vadd.f32 %v12668_v36, %v2100_v18  ;;  %v13207_v1 = vcombine.low %v5032_v43, %v13201_v44  ;;  %v13209_v34 = vor.u32 %v6579_v23, %v6576_v56  ;;  %v10302_v18 = vpop.f32.mrb[55].mxu0 }
 0x25a   : > { %v6257_v41 = vsel %vm6102_vm9, %v6215_v55, %v5941_v9  ;;  %v5390_v52 = vrot.slane %v13199_v17, 1  ;;  %v6069_v39 = vsel %vm6059_vm5, %v6026_v61, %v5415_v0  ;;  %v5260_v50 = vshll.u32 %v13199_v17, 16 }
 0x25b   : > { %v2188_v6 = vmax.f32 %v2101_v54, 0.0  ;;  %v6415_v40 = vshrl.u32 %v6257_v41, 16  ;;  %v6418_v28 = vshll.u32 %v6257_v41, 16  ;;  %v2104_v45 = vadd.f32 %v12668_v36, %v2103_v29  ;;  %v5464_v41 = vpop.permute.xlu1 %5463 }
 0x25c   : > { %v5391_v56 = vsel %vm16679_vm1, %v5388_v35, %v5390_v52  ;;  %v5729_v23 = vrot.slane %v13207_v1, 6  ;;  %v13222_v43 = vrot.slane %v5260_v50, 1  ;;  %v5626_v0 = vshrl.u32 %v13207_v1, 16 }
 0x25d   : > { %v4772_v55 = vsel %vm4608_vm2, %v2188_v6, 0.0  ;;  %v6417_v61 = vrot.slane %v6415_v40, 2  ;;  %v6420_v54 = vrot.slane %v6418_v28, 3  ;;  %v2189_v22 = vmax.f32 %v2104_v45, 0.0  ;;  %5477 = vrot.lane.b32.xlu1 %v5391_v56, %s10728_s20 }
 0x25e   : > { %v9956_v9 = vpack.c.bf16 %v4772_v55, %v4772_v55  ;;  %v5730_v35 = vsel %vm16680_vm10, %v5727_v31, %v5729_v23  ;;  %v5263_v29 = vsel %vm16681_vm3, %v5258_v32, %v13222_v43  ;;  %v5629_v50 = vshll.u32 %v13207_v1, 16  ;;  %v5808_v32 = vpop.permute.xlu0 %5807 }
 0x25f   : > { %v13235_v53 = vor.u32 %v6420_v54, %v6417_v61  ;;  %v4773_v6 = vsel %vm4527_vm0, %v2189_v22, 0.0  ;;  %v6112_v40 = vsel %vm6102_vm9, %v6069_v39, %v5464_v41  ;;  %5821 = vrot.lane.b32.xlu0 %v5730_v35, %s10727_s17  ;;  %v5884_v28 = vrot.slane %v5626_v0, 6  ;;  %v5417_v22 = vpop.permute.xlu1 %5416  ;;  %vm16683_vm0 = vmmov %vm16678_vm12 }
 0x260   : > { %4990 = vst.msk [vmem:[#allocation2 + $0x78] sm:$0xf] %vm16673_vm4, %v9956_v9  ;;  %v9957_v45 = vpack.c.bf16 %v4773_v6, %v4773_v6  ;;  %v6432_v18 = vshrl.u32 %v6112_v40, 16  ;;  %v6435_v31 = vshll.u32 %v6112_v40, 16  ;;  %v5885_v55 = vrot.slane %v5629_v50, 7 }
 0x261   : > { %5347 = vrot.lane.b32.xlu1 %v5263_v29, %s10722_s10  ;;  %v6422_v61 = vsel %vm1711_vm15, %v13134_v27, %v13235_v53  ;;  %v4365_v49 = vsub.s32 %v12951_v58, %v4324_v24  ;;  %v5628_v54 = vrot.slane %v5626_v0, 5  ;;  %v5631_v39 = vrot.slane %v5629_v50, 6 }
 0x262   : > { %4991 = vst.msk [vmem:[#allocation2 + $0x7c] sm:$0xf] %vm16682_vm7, %v9957_v45  ;;  %7118 = vmatprep.mubr.bf16.mxu1 %v6422_v61  ;;  %v6414_v9 = vsel %vm1711_vm15, %v13124_v7, %v13203_v42  ;;  %v13251_v41 = vor.u32 %v5885_v55, %v5884_v28  ;;  %vm4406_vm8 = vcmp.ge.s32.totalorder %v13163_v26, 1  ;;  %vm4447_vm11 = vcmp.le.s32.totalorder %v13163_v26, 16 }
 0x263   : > { %5771 = vrot.lane.b32.xlu0 %v5730_v35, %s10722_s10  ;;  %7119 = vmatmul.mubr.bf16.gmra.mrb[8].mxu1 %v6414_v9  ;;  %v4326_v58 = vmul.u32 18, %v13190_v10  ;;  %v13257_v27 = vadd.s32 14, %v4000_v60  ;;  %v13259_v24 = vor.u32 %v5631_v39, %v5628_v54  ;;  %v13264_v0 = vsel %vm1711_vm15, %v13006_v4, %v13209_v34  ;;  %v13269_v35 = vpop.permute.xlu0 %5757  ;;  %v5334_v40 = vpop.permute.xlu1 %5333  ;;  %vm13283_vm1 = vmand %vm4406_vm8, %vm4447_vm11 }
 0x264   : > { %v6434_v7 = vrot.slane %v6432_v18, 2  ;;  %v6437_v29 = vrot.slane %v6435_v31, 3  ;;  %v5995_v50 = vrot.slane %v13101_v51, 7  ;;  %v16431_v6 = vrot.slane %v13207_v1, 7  ;;  %v2108_v55 = vpop.f32.mrb[56].mxu0 }
 0x265   : > { %5430 = vrot.lane.b32.xlu1 %v5391_v56, %s10727_s17  ;;  %vm4529_vm13 = vcmp.ge.s32.totalorder %v4365_v49, 1  ;;  %vm4611_vm2 = vcmp.le.s32.totalorder %v4365_v49, 16  ;;  %v13274_v60 = vsel %vm16683_vm0, %v13170_v5, %v13259_v24  ;;  %vm16684_vm12 = vsmask.f32 1280 }
 0x266   : > { %v5887_v4 = vsel %vm16684_vm12, %v13160_v14, %v13251_v41  ;;  %v5264_v56 = vshrl.u32 %v13199_v17, 16  ;;  %vm16687_vm10 = vcmask 1040384   ;;  %v6159_v14 = vsel %vm1656_vm14, %v12522_v46, %v13173_v2  ;;  %v10305_v2 = vpop.f32.mrb[57].mxu0  ;;  %vm13319_vm4 = vmand %vm13283_vm1, %vm4529_vm13 }
 0x267   : > { %v13291_v5 = vsel %vm16687_vm10, %v5993_v12, %v5995_v50  ;;  %vm16688_vm3 = vmmov %vm16687_vm10  ;;  %v6028_v26 = vsel %vm1656_vm14, %v12443_v11, %v5334_v40  ;;  %5956 = vrot.lane.b32.xlu0 %v5887_v4, %s10728_s20  ;;  %v5034_v45 = vld [vmem:[#allocation2 + $0x78] sm:$0xf]  ;;  %v13305_v62 = vsub.s32 %v12954_v37, %v4326_v58  ;;  %v4328_v12 = vmul.u32 18, %v13257_v27  ;;  %v5943_v54 = vpop.permute.xlu0 %5942  ;;  %v2111_v58 = vpop.f32.mrb[58].mxu0  ;;  %v5049_v2 = vld [vmem:[#allocation2 + $0xb4] sm:$0xf] }
 0x268   : > { %v13296_v28 = vsel %vm16688_vm3, %v5995_v50, %v16431_v6  ;;  %v13308_v18 = vor.u32 %v6437_v29, %v6434_v7  ;;  %v6217_v31 = vsel %vm6059_vm5, %v6159_v14, %v5808_v32  ;;  %v13312_v61 = vcombine.low %v13201_v44, %v5034_v45  ;;  %vm13340_vm11 = vmand %vm13319_vm4, %vm4611_vm2 }
 0x269   : > { %v5266_v46 = vor.u32 %v5264_v56, %v13222_v43  ;;  %v2109_v11 = vadd.f32 %v12668_v36, %v2108_v55  ;;  %v6071_v39 = vsel %vm6059_vm5, %v6028_v26, %v5417_v22  ;;  %v13324_v32 = vld [vmem:[#allocation2 + $0x7c] sm:$0xf]  ;;  %v6599_v44 = vshrl.u32 %v13291_v5, 16  ;;  %v10306_v56 = vpop.f32.mrb[59].mxu0 }
 0x26a   : > { %v6602_v9 = vshll.u32 %v13291_v5, 16  ;;  %v6259_v43 = vsel %vm6102_vm9, %v6217_v31, %v5943_v54  ;;  %v16430_v7 = vrot.slane %v13312_v61, 1  ;;  %v13331_v29 = vcombine.low %v5034_v45, %v13324_v32  ;;  %v5466_v54 = vpop.permute.xlu1 %5465 }
 0x26b   : > { %v5268_v50 = vshll.u32 %v13312_v61, 16  ;;  %v2190_v40 = vmax.f32 %v2109_v11, 0.0  ;;  %v6440_v4 = vshrl.u32 %v6259_v43, 16  ;;  %v6443_v51 = vshll.u32 %v6259_v43, 16 }
 0x26c   : > { %v2112_v22 = vadd.f32 %v12668_v36, %v2111_v58  ;;  %vm4408_vm7 = vcmp.ge.s32.totalorder %v13190_v10, 1  ;;  %vm4449_vm8 = vcmp.le.s32.totalorder %v13190_v10, 16  ;;  %vm16693_vm13 = vcmask 1046528   ;;  %v13361_v58 = vld [vmem:[#allocation2 + $0xb0] sm:$0xf] }
 0x26d   : > { %v5393_v14 = vsel %vm16693_vm13, %v5390_v52, %v16430_v7  ;;  %v16429_v36 = vrot.slane %v13331_v29, 6  ;;  %v5270_v26 = vrot.slane %v5268_v50, 1  ;;  %v5635_v45 = vshrl.u32 %v13331_v29, 16  ;;  %v5810_v6 = vpop.permute.xlu0 %5809 }
 0x26e   : > { %v9958_v31 = vpack.c.bf16 %v2190_v40, %v2190_v40  ;;  %v6442_v55 = vrot.slane %v6440_v4, 2  ;;  %v6445_v49 = vrot.slane %v6443_v51, 3  ;;  %v2191_v11 = vmax.f32 %v2112_v22, 0.0  ;;  %5479 = vrot.lane.b32.xlu1 %v5393_v14, %s10728_s20 }
 0x26f   : > { %vm16694_vm2 = vcmask 1041408   ;;  %v5638_v52 = vshll.u32 %v13331_v29, 16  ;;  %v5888_v43 = vrot.slane %v5635_v45, 6  ;;  %vm4531_vm0 = vcmp.ge.s32.totalorder %v13305_v62, 1 }
 0x270   : > { %v13357_v37 = vsel %vm16694_vm2, %v5729_v23, %v16429_v36  ;;  %v6624_v50 = vshrl.u32 %v13296_v28, 16  ;;  %vm16695_vm12 = vcmask 257024   ;;  %v13365_v40 = vor.u32 %v6445_v49, %v6442_v55 }
 0x271   : > { %4992 = vst.msk [vmem:[#allocation2 + $0x80] sm:$0xf] %vm16695_vm12, %v9958_v31  ;;  %v4775_v4 = vsel %vm13340_vm11, %v2191_v11, 0.0  ;;  %v6114_v51 = vsel %vm6102_vm9, %v6071_v39, %v5466_v54  ;;  %5823 = vrot.lane.b32.xlu0 %v13357_v37, %s10727_s17  ;;  %vm16696_vm1 = vsmask.f32 7424  ;;  %v5889_v7 = vrot.slane %v5638_v52, 7  ;;  %vm16697_vm3 = vmmov %vm16695_vm12 }
 0x272   : > { %v5271_v23 = vsel %vm16696_vm1, %v5266_v46, %v5270_v26  ;;  %v9959_v22 = vpack.c.bf16 %v4775_v4, %v4775_v4  ;;  %v6457_v56 = vshrl.u32 %v6114_v51, 16  ;;  %v6460_v36 = vshll.u32 %v6114_v51, 16  ;;  %v5419_v46 = vpop.permute.xlu1 %5418  ;;  %vm13412_vm11 = vmand %vm4408_vm7, %vm4449_vm8 }
 0x273   : > { %5349 = vrot.lane.b32.xlu1 %v5271_v23, %s10722_s10  ;;  %v6447_v31 = vsel %vm1711_vm15, %v13235_v53, %v13365_v40  ;;  %vm4613_vm10 = vcmp.le.s32.totalorder %v13305_v62, 16  ;;  %v13379_v39 = vcombine.low %v13361_v58, %v5049_v2  ;;  %v5637_v5 = vrot.slane %v5635_v45, 5  ;;  %v10668_v2 = vld [vmem:[#allocation2 + $0xb8] ss:$0 sps:$4 sm:$0xff]   ;;  %vm4572_vm2 = vmand %vm13412_vm11, %vm4531_vm0 }
 0x274   : > { %4993 = vst.msk [vmem:[#allocation2 + $0x84] sm:$0xf] %vm16697_vm3, %v9959_v22  ;;  %7126 = vmatprep.mubr.bf16.mxu1 %v6447_v31  ;;  %v13382_v55 = vor.u32 %v5889_v7, %v5888_v43  ;;  %v6439_v49 = vsel %vm1711_vm15, %v13203_v42, %v13308_v18  ;;  %v5272_v11 = vshrl.u32 %v13312_v61, 16  ;;  %v13391_v53 = vsub.s32 %v13089_v33, %v4328_v12  ;;  %v13399_v33 = vpop.permute.xlu0 %5759  ;;  %vm13475_vm0 = vmand %vm4572_vm2, %vm4613_vm10 }
 0x275   : > { %v6459_v54 = vrot.slane %v6457_v56, 2  ;;  %7127 = vmatmul.mubr.bf16.gmra.mrb[12].mxu1 %v6439_v49  ;;  %v5640_v45 = vrot.slane %v5638_v52, 6  ;;  %v6601_v4 = vrot.slane %v6599_v44, 2  ;;  %v6604_v51 = vrot.slane %v6602_v9, 3  ;;  %vm16711_vm10 = vmmov %vm16697_vm3 }
 0x276   : > { %v6462_v23 = vrot.slane %v6460_v36, 3  ;;  %vm16698_vm4 = vsmask.f32 1280  ;;  %v6626_v43 = vrot.slane %v6624_v50, 2  ;;  %v6627_v42 = vshll.u32 %v13296_v28, 16  ;;  %v5336_v36 = vpop.permute.xlu1 %5335  ;;  %vm16713_vm11 = vmmov %vm16711_vm10 }
 0x277   : > { %v5891_v7 = vsel %vm16698_vm4, %v13251_v41, %v13382_v55  ;;  %5432 = vrot.lane.b32.xlu1 %v5393_v14, %s10727_s17  ;;  %v13401_v12 = vor.u32 %v5640_v45, %v5637_v5  ;;  %v6605_v22 = vor.u32 %v6604_v51, %v6601_v4  ;;  %v5999_v44 = vrot.slane %v13331_v29, 7 }
 0x278   : > { %5958 = vrot.lane.b32.xlu0 %v5891_v7, %s10728_s20  ;;  %v16432_v9 = vrot.slane %v13379_v39, 7  ;;  %v6162_v41 = vsel %vm1656_vm14, %v12591_v16, %v13269_v35  ;;  %v5036_v14 = vld [vmem:[#allocation2 + $0x80] sm:$0xf]  ;;  %v5274_v52 = vor.u32 %v5272_v11, %v5270_v26  ;;  %v6629_v50 = vrot.slane %v6627_v42, 3  ;;  %v2116_v26 = vpop.f32.mrb[60].mxu0 }
 0x279   : > { %v6015_v56 = vrot.slane %v10668_v2, 7  ;;  %v6030_v31 = vsel %vm1656_vm14, %v12539_v13, %v5336_v36  ;;  %v13419_v5 = vcombine.low %v13324_v32, %v5036_v14  ;;  %vm16701_vm13 = vsmask.f32 2304  ;;  %v5945_v2 = vpop.permute.xlu0 %5944 }
 0x27a   : > { %v13424_v16 = vsel %vm16701_vm13, %v13259_v24, %v13401_v12  ;;  %v13428_v10 = vsel %vm1711_vm15, %v13209_v34, %v6605_v22  ;;  %v6219_v35 = vsel %vm6059_vm5, %v6162_v41, %v5810_v6  ;;  %v13431_v49 = vor.u32 %v6629_v50, %v6626_v43  ;;  %v13452_v34 = vld [vmem:[%s16406_s2] ss:$0 sm:$0xff]  ;;  %v10309_v6 = vpop.f32.mrb[61].mxu0 }
 0x27b   : > { %v16702_v13 = vrot.slane %v13207_v1, 7  ;;  %vm16703_vm7 = vcmask 1040384   ;;  %v13445_v11 = vor.u32 %v6462_v23, %v6459_v54  ;;  %v2117_v1 = vadd.f32 %v13452_v34, %v2116_v26  ;;  %v13460_v45 = vld [vmem:[#allocation2 + $0x84] sm:$0xf]  ;;  %v2119_v51 = vpop.f32.mrb[62].mxu0  ;;  %v5468_v6 = vpop.permute.xlu1 %5467 }
 0x27c   : > { %vm16704_vm8 = vmmov %vm16703_vm7  ;;  %5773 = vrot.lane.b32.xlu0 %v13357_v37, %s10722_s10  ;;  %v16434_v54 = vrot.slane %v13419_v5, 1  ;;  %v5276_v37 = vshll.u32 %v13419_v5, 16  ;;  %v6261_v4 = vsel %vm6102_vm9, %v6219_v35, %v5945_v2  ;;  %v6073_v23 = vsel %vm6059_vm5, %v6030_v31, %v5419_v46  ;;  %v10310_v50 = vpop.f32.mrb[63].mxu0 }
 0x27d   : > { %v13438_v32 = vsel %vm16703_vm7, %v16702_v13, %v5999_v44  ;;  %v13443_v24 = vsel %vm16704_vm8, %v16432_v9, %v6015_v56  ;;  %v13466_v7 = vcombine.low %v5036_v14, %v13460_v45  ;;  %v13470_v43 = vsel %vm1711_vm15, %v6605_v22, %v13431_v49 }
 0x27e   : > { %v2192_v42 = vmax.f32 %v2117_v1, 0.0  ;;  %v6465_v41 = vshrl.u32 %v6261_v4, 16  ;;  %v6468_v36 = vshll.u32 %v6261_v4, 16  ;;  %v2120_v28 = vadd.f32 %v13452_v34, %v2119_v51 }
 0x27f   : > { %v16707_v46 = vrot.slane %v13312_v61, 1  ;;  %vm16708_vm12 = vcmask 1046528   ;;  %v16433_v22 = vrot.slane %v13466_v7, 6  ;;  %v13485_v31 = vrot.slane %v5276_v37, 1 }
 0x280   : > { %v5644_v35 = vshrl.u32 %v13466_v7, 16  ;;  %v9960_v26 = vpack.c.bf16 %v2192_v42, %v2192_v42  ;;  %v6467_v13 = vrot.slane %v6465_v41, 2  ;;  %v6470_v1 = vrot.slane %v6468_v36, 3 }
 0x281   : > { %v5395_v14 = vsel %vm16708_vm12, %v16707_v46, %v16434_v54  ;;  %v2193_v62 = vmax.f32 %v2120_v28, 0.0  ;;  %v16709_v2 = vrot.slane %v13331_v29, 6  ;;  %vm16710_vm1 = vcmask 1041408   ;;  %v5812_v54 = vpop.permute.xlu0 %5811 }
 0x282   : > { %5481 = vrot.lane.b32.xlu1 %v5395_v14, %s10728_s20  ;;  %v5647_v51 = vshll.u32 %v13466_v7, 16  ;;  %v5892_v50 = vrot.slane %v5644_v35, 6  ;;  %v6649_v37 = vshrl.u32 %v13438_v32, 16  ;;  %4994 = vst.msk [vmem:[#allocation2 + $0x88] sm:$0xf] %vm16711_vm10, %v9960_v26  ;;  %v13497_v42 = vor.u32 %v6470_v1, %v6467_v13  ;;  %v5421_v13 = vpop.permute.xlu1 %5420 }
 0x283   : > { %v5734_v4 = vsel %vm16710_vm1, %v16709_v2, %v16433_v22  ;;  %v4777_v41 = vsel %vm13475_vm0, %v2193_v62, 0.0  ;;  %v6116_v36 = vsel %vm6102_vm9, %v6073_v23, %v5468_v6  ;;  %vm16712_vm3 = vsmask.f32 7424 }
 0x284   : > { %5825 = vrot.lane.b32.xlu0 %v5734_v4, %s10727_s17  ;;  %v5279_v28 = vsel %vm16712_vm3, %v5274_v52, %v13485_v31  ;;  %v9961_v46 = vpack.c.bf16 %v4777_v41, %v4777_v41  ;;  %v6482_v2 = vshrl.u32 %v6116_v36, 16  ;;  %v6485_v9 = vshll.u32 %v6116_v36, 16 }
 0x285   : > { %v5893_v22 = vrot.slane %v5647_v51, 7  ;;  %v6472_v26 = vsel %vm1711_vm15, %v13365_v40, %v13497_v42  ;;  %vm4410_vm4 = vcmp.ge.s32.totalorder %v13257_v27, 1  ;;  %v5646_v56 = vrot.slane %v5644_v35, 5 }
 0x286   : > { %5351 = vrot.lane.b32.xlu1 %v5279_v28, %s10722_s10  ;;  %v5649_v23 = vrot.slane %v5647_v51, 6  ;;  %4995 = vst.msk [vmem:[#allocation2 + $0x8c] sm:$0xf] %vm16713_vm11, %v9961_v46  ;;  %7134 = vmatprep.mubr.bf16.mxu1 %v6472_v26  ;;  %v6464_v1 = vsel %vm1711_vm15, %v13308_v18, %v13445_v11  ;;  %vm4451_vm13 = vcmp.le.s32.totalorder %v13257_v27, 16  ;;  %vm4533_vm7 = vcmp.ge.s32.totalorder %v13391_v53, 1  ;;  %v13528_v18 = vpop.permute.xlu0 %5761 }
 0x287   : > { %v13511_v52 = vor.u32 %v5893_v22, %v5892_v50  ;;  %7135 = vmatmul.mubr.bf16.gmra.mrb[16].mxu1 %v6464_v1  ;;  %v6651_v62 = vrot.slane %v6649_v37, 2  ;;  %v6652_v35 = vshll.u32 %v13438_v32, 16  ;;  %v6001_v6 = vrot.slane %v13466_v7, 7  ;;  %v5338_v37 = vpop.permute.xlu1 %5337  ;;  %vm13556_vm1 = vmand %vm4410_vm4, %vm4451_vm13 }
 0x288   : > { %v13518_v40 = vor.u32 %v5649_v23, %v5646_v56  ;;  %v6484_v51 = vrot.slane %v6482_v2, 2  ;;  %v6487_v41 = vrot.slane %v6485_v9, 3  ;;  %vm16714_vm8 = vsmask.f32 1280  ;;  %vm13583_vm3 = vmand %vm13556_vm1, %vm4533_vm7 }
 0x289   : > { %v5895_v22 = vsel %vm16714_vm8, %v13382_v55, %v13511_v52  ;;  %vm4615_vm2 = vcmp.le.s32.totalorder %v13391_v53, 16  ;;  %v13531_v50 = vadd.s32 304, %v11996_v20  ;;  %vm16715_vm0 = vsmask.f32 2304  ;;  %v5038_v36 = vld [vmem:[#allocation2 + $0x88] sm:$0xf] }
 0x28a   : > { %5960 = vrot.lane.b32.xlu0 %v5895_v22, %s10728_s20  ;;  %5434 = vrot.lane.b32.xlu1 %v5395_v14, %s10727_s17  ;;  %v13536_v32 = vsel %vm16715_vm0, %v13401_v12, %v13518_v40  ;;  %v6654_v9 = vrot.slane %v6652_v35, 3  ;;  %vm16716_vm12 = vcmask 1040384   ;;  %v5280_v14 = vshrl.u32 %v13419_v5, 16  ;;  %v5947_v35 = vpop.permute.xlu0 %5946  ;;  %vm4656_vm11 = vmand %vm13583_vm3, %vm4615_vm2 }
 0x28b   : > { %v6002_v55 = vsel %vm16716_vm12, %v5999_v44, %v6001_v6  ;;  %v13545_v28 = vadd.s32 280, %v11996_v20  ;;  %v6165_v12 = vsel %vm1656_vm14, %v12650_v3, %v13399_v33  ;;  %v6032_v26 = vsel %vm1656_vm14, %v12598_v25, %v5338_v37  ;;  %v2124_v25 = vpop.f32.mrb[64].mxu0 }
 0x28c   : > { %v6674_v46 = vshrl.u32 %v6002_v55, 16  ;;  %v6677_v2 = vshll.u32 %v6002_v55, 16  ;;  %v13561_v44 = vcombine.low %v13460_v45, %v5038_v36  ;;  %v6655_v56 = vor.u32 %v6654_v9, %v6651_v62  ;;  %v10313_v62 = vpop.f32.mrb[65].mxu0 }
 0x28d   : > { %v13563_v23 = vor.u32 %v6487_v41, %v6484_v51  ;;  %v6221_v1 = vsel %vm6059_vm5, %v6165_v12, %v5812_v54  ;;  %v5282_v3 = vor.u32 %v5280_v14, %v13485_v31  ;;  %v13569_v22 = vld [vmem:[#allocation2 + $0x8c] sm:$0xf]  ;;  %vm4210_vm10 = vcmp.ge.s32.totalorder %v13531_v50, 306  ;;  %v2127_v14 = vpop.f32.mrb[66].mxu0 }
 0x28e   : > { %v6676_v33 = vrot.slane %v6674_v46, 2  ;;  %5775 = vrot.lane.b32.xlu0 %v5734_v4, %s10722_s10  ;;  %v16435_v27 = vrot.slane %v13561_v44, 1  ;;  %v5284_v55 = vshll.u32 %v13561_v44, 16  ;;  %v13575_v45 = vsel %vm1711_vm15, %v13431_v49, %v6655_v56 }
 0x28f   : > { %16719 = vst [vmem:[#allocation12_spill] sm:$0xff] %v13575_v45  ;;  %v6679_v54 = vrot.slane %v6677_v2, 3  ;;  %v2125_v31 = vadd.f32 %v13452_v34, %v2124_v25  ;;  %v6263_v4 = vsel %vm6102_vm9, %v6221_v1, %v5947_v35  ;;  %v6075_v41 = vsel %vm6059_vm5, %v6032_v26, %v5421_v13  ;;  %v10314_v25 = vpop.f32.mrb[67].mxu0 }
 0x290   : > { %v13589_v9 = vcombine.low %v5038_v36, %v13569_v22  ;;  %v6490_v49 = vshrl.u32 %v6263_v4, 16  ;;  %v6493_v37 = vshll.u32 %v6263_v4, 16  ;;  %v16722_v46 = vrot.slane %v13419_v5, 1 }
 0x291   : > { %vm16723_vm4 = vcmask 1046528   ;;  %v13596_v12 = vrot.slane %v5284_v55, 1  ;;  %v2194_v29 = vmax.f32 %v2125_v31, 0.0  ;;  %v2128_v1 = vadd.f32 %v13452_v34, %v2127_v14  ;;  %v5470_v14 = vpop.permute.xlu1 %5469 }
 0x292   : > { %v5397_v2 = vsel %vm16723_vm4, %v16722_v46, %v16435_v27  ;;  %v16436_v13 = vrot.slane %v13589_v9, 6  ;;  %v5653_v36 = vshrl.u32 %v13589_v9, 16  ;;  %v6492_v26 = vrot.slane %v6490_v49, 2 }
 0x293   : > { %5483 = vrot.lane.b32.xlu1 %v5397_v2, %s10728_s20  ;;  %v6495_v35 = vrot.slane %v6493_v37, 3  ;;  %v5656_v55 = vshll.u32 %v13589_v9, 16  ;;  %v13607_v62 = vor.u32 %v6679_v54, %v6676_v33  ;;  %v9962_v31 = vpack.c.bf16 %v2194_v29, %v2194_v29 }
 0x294   : > { %v2195_v4 = vmax.f32 %v2128_v1, 0.0  ;;  %v16724_v46 = vrot.slane %v13466_v7, 6  ;;  %vm16725_vm13 = vcmask 1041408   ;;  %v5896_v49 = vrot.slane %v5653_v36, 6  ;;  %v2132_v7 = vpop.f32.mrb[68].mxu0 }
 0x295   : > { %v13614_v37 = vor.u32 %v6495_v35, %v6492_v26  ;;  %v6118_v53 = vsel %vm6102_vm9, %v6075_v41, %v5470_v14  ;;  %vm16726_vm7 = vsmask.f32 7424  ;;  %v5897_v54 = vrot.slane %v5656_v55, 7  ;;  %v5423_v14 = vpop.permute.xlu1 %5422 }
 0x296   : > { %v5736_v25 = vsel %vm16725_vm13, %v16724_v46, %v16436_v13  ;;  %v5287_v33 = vsel %vm16726_vm7, %v5282_v3, %v13596_v12  ;;  %vm16727_vm8 = vcmask 257024   ;;  %v4779_v51 = vsel %vm4656_vm11, %v2195_v4, 0.0  ;;  %v5814_v13 = vpop.permute.xlu0 %5813  ;;  %vm16736_vm11 = vmmov %vm16726_vm7 }
 0x297   : > { %5827 = vrot.lane.b32.xlu0 %v5736_v25, %s10727_s17  ;;  %4996 = vst.msk [vmem:[#allocation2 + $0x90] sm:$0xf] %vm16727_vm8, %v9962_v31  ;;  %v6507_v29 = vshrl.u32 %v6118_v53, 16  ;;  %v6510_v1 = vshll.u32 %v6118_v53, 16  ;;  %5353 = vrot.lane.b32.xlu1 %v5287_v33, %s10722_s10  ;;  %v5655_v27 = vrot.slane %v5653_v36, 5  ;;  %v9963_v46 = vpack.c.bf16 %v4779_v51, %v4779_v51  ;;  %vm16729_vm2 = vmmov %vm16727_vm8 }
 0x298   : > { %v6497_v41 = vsel %vm1711_vm15, %v13497_v42, %v13614_v37  ;;  %v13625_v26 = vor.u32 %v5897_v54, %v5896_v49  ;;  %v5658_v35 = vrot.slane %v5656_v55, 6  ;;  %v6489_v3 = vsel %vm1711_vm15, %v13445_v11, %v13563_v23  ;;  %vm16739_vm7 = vmmov %vm16729_vm2 }
 0x299   : > { %7142 = vmatprep.mubr.bf16.mxu1 %v6497_v41  ;;  %v13632_v31 = vsel %vm1711_vm15, %v6655_v56, %v13607_v62  ;;  %4997 = vst.msk [vmem:[#allocation2 + $0x94] sm:$0xf] %vm16729_vm2, %v9963_v46  ;;  %vm16730_vm0 = vsmask.f32 1280  ;;  %v9766_v42 = vadd.s32 4294967026, %v13545_v28  ;;  %v6003_v4 = vrot.slane %v13589_v9, 7  ;;  %v5340_v33 = vpop.permute.xlu1 %5339 }
 0x29a   : > { %16728 = vst [vmem:[#allocation13_spill] sm:$0xff] %v13632_v31  ;;  %v5899_v36 = vsel %vm16730_vm0, %v13511_v52, %v13625_v26  ;;  %7143 = vmatmul.mubr.bf16.gmra.mrb[20].mxu1 %v6489_v3  ;;  %v13639_v55 = vor.u32 %v5658_v35, %v5655_v27  ;;  %v4251_v11 = vsel %vm4210_vm10, 1, %v16661_v57  ;;  %v6509_v56 = vrot.slane %v6507_v29, 2  ;;  %v13647_v53 = vpop.permute.xlu0 %5763  ;;  %v10317_v3 = vpop.f32.mrb[69].mxu0  ;;  %vm16734_vm10 = vmmov %vm16723_vm4 }
 0x29b   : > { %5962 = vrot.lane.b32.xlu0 %v5899_v36, %s10728_s20  ;;  %5436 = vrot.lane.b32.xlu1 %v5397_v2, %s10727_s17  ;;  %v6512_v49 = vrot.slane %v6510_v1, 3  ;;  %vm16731_vm12 = vsmask.f32 2304  ;;  %vm16732_vm1 = vcmask 1040384   ;;  %vm4617_vm3 = vcmp.le.s32.totalorder %v9766_v42, 16  ;;  %vm16735_vm4 = vmmov %vm16729_vm2 }
 0x29c   : > { %v13652_v52 = vsel %vm16731_vm12, %v13518_v40, %v13639_v55  ;;  %v6004_v28 = vsel %vm16732_vm1, %v6001_v6, %v6003_v4  ;;  %v5288_v54 = vshrl.u32 %v13561_v44, 16  ;;  %v13661_v51 = vadd.s32 288, %v11996_v20  ;;  %vm16740_vm8 = vmmov %vm16732_vm1 }
 0x29d   : > { %v6699_v27 = vshrl.u32 %v6004_v28, 16  ;;  %v6702_v2 = vshll.u32 %v6004_v28, 16  ;;  %v13663_v29 = vadd.s32 16, %v4251_v11  ;;  %v6168_v40 = vsel %vm1656_vm14, %v12726_v21, %v13528_v18  ;;  %vm16741_vm2 = vmmov %vm16730_vm0 }
 0x29e   : > { %v5040_v57 = vld [vmem:[#allocation2 + $0x90] sm:$0xf]  ;;  %v13672_v41 = vor.u32 %v6512_v49, %v6509_v56  ;;  %v6223_v35 = vsel %vm6059_vm5, %v6168_v40, %v5814_v13  ;;  %v2133_v20 = vadd.f32 %v13452_v34, %v2132_v7  ;;  %v5949_v36 = vpop.permute.xlu0 %5948  ;;  %v5290_v11 = vor.u32 %v5288_v54, %v13596_v12  ;;  %vm16742_vm0 = vmmov %vm16731_vm12 }
 0x29f   : > { %5777 = vrot.lane.b32.xlu0 %v5736_v25, %s10722_s10  ;;  %v13670_v6 = vcombine.low %v13569_v22, %v5040_v57  ;;  %v6701_v1 = vrot.slane %v6699_v27, 2  ;;  %v6704_v46 = vrot.slane %v6702_v2, 3  ;;  %v6034_v21 = vsel %vm1656_vm14, %v12661_v59, %v5340_v33  ;;  %v2135_v25 = vpop.f32.mrb[70].mxu0 }
 0x2a0   : > { %v6265_v18 = vsel %vm6102_vm9, %v6223_v35, %v5949_v36  ;;  %v13681_v28 = vld [vmem:[#allocation2 + $0x94] sm:$0xf]  ;;  %v2196_v49 = vmax.f32 %v2133_v20, 0.0  ;;  %v2136_v2 = vadd.f32 %v13452_v34, %v2135_v25  ;;  %v10318_v40 = vpop.f32.mrb[71].mxu0  ;;  %v16733_v12 = vrot.slane %v13561_v44, 1 }
 0x2a1   : > { %v16439_v22 = vrot.slane %v13670_v6, 1  ;;  %v5292_v56 = vshll.u32 %v13670_v6, 16  ;;  %v6515_v13 = vshrl.u32 %v6265_v18, 16  ;;  %v6518_v27 = vshll.u32 %v6265_v18, 16 }
 0x2a2   : > { %v13691_v33 = vcombine.low %v5040_v57, %v13681_v28  ;;  %v13695_v7 = vor.u32 %v6704_v46, %v6701_v1  ;;  %v9964_v35 = vpack.c.bf16 %v2196_v49, %v2196_v49  ;;  %v2197_v36 = vmax.f32 %v2136_v2, 0.0  ;;  %v5472_v46 = vpop.permute.xlu1 %5471 }
 0x2a3   : > { %v5399_v59 = vsel %vm16734_vm10, %v16733_v12, %v16439_v22  ;;  %v13693_v54 = vrot.slane %v5292_v56, 1  ;;  %v6517_v20 = vrot.slane %v6515_v13, 2  ;;  %v6520_v3 = vrot.slane %v6518_v27, 3 }
 0x2a4   : > { %5485 = vrot.lane.b32.xlu1 %v5399_v59, %s10728_s20  ;;  %v6077_v18 = vsel %vm6059_vm5, %v6034_v21, %v5423_v14  ;;  %v16437_v25 = vrot.slane %v13691_v33, 6  ;;  %v5662_v40 = vshrl.u32 %v13691_v33, 16  ;;  %v5665_v12 = vshll.u32 %v13691_v33, 16  ;;  %4998 = vst.msk [vmem:[#allocation2 + $0x98] sm:$0xf] %vm16735_vm4, %v9964_v35  ;;  %vm16746_vm4 = vmmov %vm16725_vm13 }
 0x2a5   : > { %v13703_v57 = vor.u32 %v6520_v3, %v6517_v20  ;;  %v4781_v1 = vsel %vm4617_vm3, %v2197_v36, 0.0  ;;  %v5295_v56 = vsel %vm16736_vm11, %v5290_v11, %v13693_v54  ;;  %v13711_v14 = vsel %vm1711_vm15, %v13607_v62, %v13695_v7  ;;  %v5816_v11 = vpop.permute.xlu0 %5815 }
 0x2a6   : > { %16737 = vst [vmem:[#allocation14_spill] sm:$0xff] %v13711_v14  ;;  %v9965_v21 = vpack.c.bf16 %v4781_v1, %v4781_v1  ;;  %v6120_v49 = vsel %vm6102_vm9, %v6077_v18, %v5472_v46  ;;  %v16738_v13 = vrot.slane %v13589_v9, 6  ;;  %v5900_v42 = vrot.slane %v5662_v40, 6  ;;  %v5425_v46 = vpop.permute.xlu1 %5424 }
 0x2a7   : > { %v6532_v2 = vshrl.u32 %v6120_v49, 16  ;;  %v6535_v35 = vshll.u32 %v6120_v49, 16  ;;  %v6522_v62 = vsel %vm1711_vm15, %v13614_v37, %v13703_v57  ;;  %v5901_v20 = vrot.slane %v5665_v12, 7 }
 0x2a8   : > { %v5738_v27 = vsel %vm16725_vm13, %v16738_v13, %v16437_v25  ;;  %5355 = vrot.lane.b32.xlu1 %v5295_v56, %s10722_s10  ;;  %4999 = vst.msk [vmem:[#allocation2 + $0x9c] sm:$0xf] %vm16739_vm7, %v9965_v21  ;;  %7150 = vmatprep.mubr.bf16.mxu1 %v6522_v62  ;;  %v6514_v3 = vsel %vm1711_vm15, %v13563_v23, %v13672_v41  ;;  %v5664_v36 = vrot.slane %v5662_v40, 5  ;;  %v5667_v18 = vrot.slane %v5665_v12, 6  ;;  %vm16747_vm13 = vmmov %vm16739_vm7 }
 0x2a9   : > { %5829 = vrot.lane.b32.xlu0 %v5738_v27, %s10727_s17  ;;  %v16438_v1 = vrot.slane %v13691_v33, 7  ;;  %v13729_v49 = vor.u32 %v5901_v20, %v5900_v42  ;;  %7151 = vmatmul.mubr.bf16.gmra.mrb[24].mxu1 %v6514_v3  ;;  %v9767_v56 = vadd.s32 4294967008, %v13661_v51  ;;  %v4333_v37 = vmul.u32 18, %v13663_v29  ;;  %v13744_v12 = vpop.permute.xlu0 %5765  ;;  %v10669_v51 = vld [vmem:[%s16407_s3 + $0x88] sm:$0xff]  }
 0x2aa   : > { %v6534_v13 = vrot.slane %v6532_v2, 2  ;;  %v6537_v25 = vrot.slane %v6535_v35, 3  ;;  %v13733_v21 = vor.u32 %v5667_v18, %v5664_v36  ;;  %v5296_v9 = vshrl.u32 %v13670_v6, 16  ;;  %v5342_v35 = vpop.permute.xlu1 %5341  ;;  %10334 = vmatpush3.bf16.msra.mxu1 %v10669_v51 }
 0x2ab   : > { %v6006_v23 = vsel %vm16740_vm8, %v6003_v4, %v16438_v1  ;;  %v5903_v40 = vsel %vm16741_vm2, %v13625_v26, %v13729_v49  ;;  %v5042_v2 = vld [vmem:[#allocation2 + $0x98] sm:$0xf]  ;;  %vm4536_vm12 = vcmp.ge.s32.totalorder %v9767_v56, 1  ;;  %v13763_v20 = vsub.s32 %v13531_v50, %v4333_v37 }
 0x2ac   : > { %5438 = vrot.lane.b32.xlu1 %v5399_v59, %s10727_s17  ;;  %v6724_v42 = vshrl.u32 %v6006_v23, 16  ;;  %v13754_v4 = vsel %vm16742_vm0, %v13639_v55, %v13733_v21  ;;  %v6727_v26 = vshll.u32 %v6006_v23, 16  ;;  %v6171_v59 = vsel %vm1656_vm14, %v12812_v30, %v13647_v53  ;;  %v16743_v55 = vld [vmem:[#allocation8_spill] sm:$0xff]  ;;  %v2140_v23 = vpop.f32.mrb[72].mxu0 }
 0x2ad   : > { %5964 = vrot.lane.b32.xlu0 %v5903_v40, %s10728_s20  ;;  %v13760_v62 = vcombine.low %v13681_v28, %v5042_v2  ;;  %v13765_v3 = vor.u32 %v6537_v25, %v6534_v13  ;;  %v6225_v36 = vsel %vm6059_vm5, %v6171_v59, %v5816_v11  ;;  %v6036_v18 = vsel %vm1656_vm14, %v16743_v55, %v5342_v35  ;;  %v5951_v53 = vpop.permute.xlu0 %5950  ;;  %v10321_v1 = vpop.f32.mrb[73].mxu0 }
 0x2ae   : > { %v5298_v40 = vor.u32 %v5296_v9, %v13693_v54  ;;  %v2141_v30 = vadd.f32 %v13452_v34, %v2140_v23  ;;  %vm4415_vm1 = vcmp.ge.s32.totalorder %v13663_v29, 1  ;;  %vm4456_vm3 = vcmp.le.s32.totalorder %v13663_v29, 16  ;;  %v2143_v54 = vpop.f32.mrb[74].mxu0 }
 0x2af   : > { %v16441_v28 = vrot.slane %v13760_v62, 1  ;;  %v13773_v22 = vld [vmem:[#allocation2 + $0x9c] sm:$0xf]  ;;  %v5300_v50 = vshll.u32 %v13760_v62, 16  ;;  %v6726_v25 = vrot.slane %v6724_v42, 2  ;;  %v6267_v11 = vsel %vm6102_vm9, %v6225_v36, %v5951_v53  ;;  %v10322_v55 = vpop.f32.mrb[75].mxu0  ;;  %vm4497_vm0 = vmand %vm4415_vm1, %vm4456_vm3 }
 0x2b0   : > { %v6079_v37 = vsel %vm6059_vm5, %v6036_v18, %v5425_v46  ;;  %v13782_v1 = vcombine.low %v5042_v2, %v13773_v22  ;;  %v6729_v13 = vrot.slane %v6727_v26, 3  ;;  %v2198_v51 = vmax.f32 %v2141_v30, 0.0 }
 0x2b1   : > { %5779 = vrot.lane.b32.xlu0 %v5738_v27, %s10722_s10  ;;  %v6540_v9 = vshrl.u32 %v6267_v11, 16  ;;  %v6543_v59 = vshll.u32 %v6267_v11, 16  ;;  %v2144_v35 = vadd.f32 %v13452_v34, %v2143_v54  ;;  %v16744_v42 = vrot.slane %v13670_v6, 1 }
 0x2b2   : > { %v16440_v36 = vrot.slane %v13782_v1, 6  ;;  %v13791_v23 = vrot.slane %v5300_v50, 1  ;;  %v5671_v46 = vshrl.u32 %v13782_v1, 16  ;;  %v4782_v2 = vsel %vm4536_vm12, %v2198_v51, 0.0  ;;  %v5474_v51 = vpop.permute.xlu1 %5473 }
 0x2b3   : > { %v5401_v27 = vsel %vm16734_vm10, %v16744_v42, %v16441_v28  ;;  %v6542_v26 = vrot.slane %v6540_v9, 2  ;;  %v6545_v18 = vrot.slane %v6543_v59, 3  ;;  %v2199_v30 = vmax.f32 %v2144_v35, 0.0 }
 0x2b4   : > { %5487 = vrot.lane.b32.xlu1 %v5401_v27, %s10728_s20  ;;  %v9966_v53 = vpack.c.bf16 %v4782_v2, %v4782_v2  ;;  %v16745_v11 = vrot.slane %v13691_v33, 6  ;;  %v5674_v55 = vshll.u32 %v13782_v1, 16  ;;  %v13802_v50 = vor.u32 %v6729_v13, %v6726_v25  ;;  %v5818_v2 = vpop.permute.xlu0 %5817 }
 0x2b5   : > { %v13804_v42 = vor.u32 %v6545_v18, %v6542_v26  ;;  %v9967_v56 = vpack.c.bf16 %v2199_v30, %v2199_v30  ;;  %v5303_v9 = vsel %vm16736_vm11, %v5298_v40, %v13791_v23  ;;  %v5904_v59 = vrot.slane %v5671_v46, 6 }
 0x2b6   : > { %v5740_v54 = vsel %vm16746_vm4, %v16745_v11, %v16440_v36  ;;  %5000 = vst.msk [vmem:[#allocation2 + $0xa0] sm:$0xf] %vm16747_vm13, %v9966_v53  ;;  %v6122_v35 = vsel %vm6102_vm9, %v6079_v37, %v5474_v51  ;;  %v5905_v11 = vrot.slane %v5674_v55, 7  ;;  %v5673_v36 = vrot.slane %v5671_v46, 5 }
 0x2b7   : > { %5831 = vrot.lane.b32.xlu0 %v5740_v54, %s10727_s17  ;;  %v5676_v28 = vrot.slane %v5674_v55, 6  ;;  %5001 = vst.msk [vmem:[#allocation2 + $0xa4] sm:$0xf] %vm16739_vm7, %v9967_v56  ;;  %v6557_v25 = vshrl.u32 %v6122_v35, 16  ;;  %v6560_v13 = vshll.u32 %v6122_v35, 16  ;;  %v6547_v26 = vsel %vm1711_vm15, %v13703_v57, %v13804_v42  ;;  %v13829_v55 = vpop.permute.xlu1 %5426 }
 0x2b8   : > { %5357 = vrot.lane.b32.xlu1 %v5303_v9, %s10722_s10  ;;  %v6539_v40 = vsel %vm1711_vm15, %v13672_v41, %v13765_v3  ;;  %7158 = vmatprep.mubr.bf16.mxu1 %v6547_v26  ;;  %v13819_v37 = vor.u32 %v5905_v11, %v5904_v59  ;;  %v13826_v46 = vsel %vm1711_vm15, %v13695_v7, %v13802_v50  ;;  %v16442_v30 = vrot.slane %v13782_v1, 7  ;;  %v13841_v7 = vld [vmem:[#allocation2 + $0xac] sm:$0xf]  ;;  %v16752_v9 = vld [vmem:[#allocation11_spill] sm:$0xff] }
 0x2b9   : > { %v13821_v18 = vor.u32 %v5676_v28, %v5673_v36  ;;  %16748 = vst [vmem:[#allocation8_spill] sm:$0xff] %v13826_v46  ;;  %v6559_v53 = vrot.slane %v6557_v25, 2  ;;  %7159 = vmatmul.mubr.bf16.gmra.mrb[28].mxu1 %v6539_v40  ;;  %vm4538_vm8 = vcmp.ge.s32.totalorder %v13763_v20, 1  ;;  %v6562_v57 = vrot.slane %v6560_v13, 3  ;;  %v13835_v28 = vpop.permute.xlu0 %5767 }
 0x2ba   : > { %v5907_v41 = vsel %vm16741_vm2, %v13729_v49, %v13819_v37  ;;  %vm16749_vm12 = vsmask.f32 2304  ;;  %v16750_v56 = vrot.slane %v13691_v33, 7  ;;  %vm16751_vm10 = vcmask 1040384   ;;  %vm13861_vm1 = vmand %vm4497_vm0, %vm4538_vm8 }
 0x2bb   : > { %v13846_v36 = vsel %vm16749_vm12, %v13733_v21, %v13821_v18  ;;  %5966 = vrot.lane.b32.xlu0 %v5907_v41, %s10728_s20  ;;  %v6174_v59 = vsel %vm1656_vm14, %v16752_v9, %v13744_v12  ;;  %v5344_v21 = vpop.permute.xlu1 %5343  ;;  %vm4620_vm3 = vcmp.le.s32.totalorder %v13763_v20, 16  ;;  %v13869_v13 = vor.u32 %v6562_v57, %v6559_v53  ;;  %v2148_v12 = vpop.f32.mrb[76].mxu0  ;;  %vm16762_vm0 = vmmov %vm16751_vm10 }
 0x2bc   : > { %v6008_v49 = vsel %vm16751_vm10, %v16750_v56, %v16442_v30  ;;  %5440 = vrot.lane.b32.xlu1 %v5401_v27, %s10727_s17  ;;  %v6227_v35 = vsel %vm6059_vm5, %v6174_v59, %v5818_v2  ;;  %v5304_v27 = vshrl.u32 %v13760_v62, 16  ;;  %v2149_v9 = vadd.f32 %v13452_v34, %v2148_v12  ;;  %v10325_v53 = vpop.f32.mrb[77].mxu0  ;;  %vm4661_vm4 = vmand %vm13861_vm1, %vm4620_vm3 }
 0x2bd   : > { %v6749_v51 = vshrl.u32 %v6008_v49, 16  ;;  %v6752_v29 = vshll.u32 %v6008_v49, 16  ;;  %v5044_v33 = vld [vmem:[#allocation2 + $0xa0] sm:$0xf]  ;;  %v5953_v26 = vpop.permute.xlu0 %5952  ;;  %v6038_v49 = vsel %vm1656_vm14, %v12841_v38, %v5344_v21  ;;  %v16755_v11 = vrot.slane %v13760_v62, 1 }
 0x2be   : > { %v13872_v2 = vcombine.low %v13773_v22, %v5044_v33  ;;  %v13874_v40 = vld [vmem:[#allocation2 + $0xa4] sm:$0xf]  ;;  %v6269_v59 = vsel %vm6102_vm9, %v6227_v35, %v5953_v26  ;;  %v2200_v21 = vmax.f32 %v2149_v9, 0.0  ;;  %vm16756_vm11 = vcmask 1046528  }
 0x2bf   : > { %v6751_v41 = vrot.slane %v6749_v51, 2  ;;  %v6754_v56 = vrot.slane %v6752_v29, 3  ;;  %5781 = vrot.lane.b32.xlu0 %v5740_v54, %s10722_s10  ;;  %v13882_v57 = vcombine.low %v5044_v33, %v13874_v40  ;;  %v6565_v22 = vshrl.u32 %v6269_v59, 16  ;;  %v2151_v29 = vpop.f32.mrb[78].mxu0  ;;  %vm16766_vm10 = vmmov %vm16756_vm11 }
 0x2c0   : > { %v6568_v51 = vshll.u32 %v6269_v59, 16  ;;  %v16443_v38 = vrot.slane %v13872_v2, 1  ;;  %v5308_v54 = vshll.u32 %v13872_v2, 16  ;;  %v10326_v34 = vpop.f32.mrb[79].mxu0  ;;  %v4784_v29 = vsel %vm4661_vm4, %v2200_v21, 0.0  ;;  %v5476_v21 = vpop.permute.xlu1 %5475  ;;  %vm16769_vm4 = vmmov %vm16741_vm2 }
 0x2c1   : > { %v5741_v35 = vrot.slane %v13882_v57, 6  ;;  %v5680_v12 = vshrl.u32 %v13882_v57, 16  ;;  %v5683_v33 = vshll.u32 %v13882_v57, 16  ;;  %v6567_v26 = vrot.slane %v6565_v22, 2 }
 0x2c2   : > { %v6570_v20 = vrot.slane %v6568_v51, 3  ;;  %v5403_v59 = vsel %vm16756_vm11, %v16755_v11, %v16443_v38  ;;  %v13898_v53 = vrot.slane %v5308_v54, 1  ;;  %v16757_v9 = vrot.slane %v13782_v1, 6  ;;  %vm16771_vm11 = vmmov %vm16762_vm0 }
 0x2c3   : > { %5489 = vrot.lane.b32.xlu1 %v5403_v59, %s10728_s20  ;;  %vm16758_vm13 = vcmask 1041408   ;;  %v5908_v25 = vrot.slane %v5680_v12, 6  ;;  %v5909_v22 = vrot.slane %v5683_v33, 7  ;;  %v9968_v51 = vpack.c.bf16 %v4784_v29, %v4784_v29  ;;  %v5820_v29 = vpop.permute.xlu0 %5819 }
 0x2c4   : > { %v5742_v34 = vsel %vm16758_vm13, %v16757_v9, %v5741_v35  ;;  %v13906_v30 = vor.u32 %v6570_v20, %v6567_v26  ;;  %v5306_v11 = vor.u32 %v5304_v27, %v13791_v23  ;;  %v13912_v54 = vcombine.low %v13361_v58, %v13361_v58  ;;  %v2156_v20 = vpop.f32.mrb[80].mxu0  ;;  %vm16767_vm1 = vmmov %vm16758_vm13 }
 0x2c5   : > { %5833 = vrot.lane.b32.xlu0 %v5742_v34, %s10727_s17  ;;  %v13914_v38 = vor.u32 %v5909_v22, %v5908_v25  ;;  %v5682_v46 = vrot.slane %v5680_v12, 5  ;;  %v5685_v14 = vrot.slane %v5683_v33, 6  ;;  %v6755_v31 = vor.u32 %v6754_v56, %v6751_v41  ;;  %5002 = vst.msk [vmem:[#allocation2 + $0xa8] sm:$0xf] %vm16739_vm7, %v9968_v51  ;;  %v10329_v41 = vpop.f32.mrb[81].mxu0  ;;  %v5346_v20 = vpop.permute.xlu1 %5345  ;;  %vm16772_vm13 = vmmov %vm16749_vm12 }
 0x2c6   : > { %v6081_v26 = vsel %vm6059_vm5, %v6038_v49, %v13829_v55  ;;  %vm16759_vm8 = vsmask.f32 7424  ;;  %v6572_v27 = vsel %vm1711_vm15, %v13804_v42, %v13906_v30  ;;  %v16444_v25 = vrot.slane %v13882_v57, 7  ;;  %v2159_v49 = vpop.f32.mrb[82].mxu0  ;;  %vm16773_vm7 = vmmov %vm16749_vm12 }
 0x2c7   : > { %v5311_v23 = vsel %vm16759_vm8, %v5306_v11, %v13898_v53  ;;  %v6124_v12 = vsel %vm6102_vm9, %v6081_v26, %v5476_v21  ;;  %7166 = vmatprep.mubr.bf16.mxu1 %v6572_v27  ;;  %v5911_v55 = vsel %vm16741_vm2, %v13819_v37, %v13914_v38  ;;  %v6564_v56 = vsel %vm1711_vm15, %v13765_v3, %v13869_v13  ;;  %v10330_v22 = vpop.f32.mrb[83].mxu0  ;;  %v13946_v21 = vpop.permute.xlu0 %5769  ;;  %vm16768_vm3 = vmmov %vm16759_vm8 }
 0x2c8   : > { %5359 = vrot.lane.b32.xlu1 %v5311_v23, %s10722_s10  ;;  %7167 = vmatmul.mubr.bf16.gmra.mrb[32].mxu1 %v6564_v56  ;;  %v13934_v42 = vor.u32 %v5685_v14, %v5682_v46  ;;  %v13938_v33 = vsel %vm1711_vm15, %v13802_v50, %v6755_v31  ;;  %v16761_v9 = vrot.slane %v13782_v1, 7  ;;  %v5698_v51 = vshrl.u32 %v13912_v54, 16  ;;  %vm16775_vm8 = vmmov %vm16762_vm0 }
 0x2c9   : > { %5968 = vrot.lane.b32.xlu0 %v5911_v55, %s10728_s20  ;;  %16760 = vst [vmem:[#allocation11_spill] sm:$0xff] %v13938_v33  ;;  %v5701_v50 = vshll.u32 %v13912_v54, 16  ;;  %v6582_v46 = vshrl.u32 %v6124_v12, 16  ;;  %v6585_v26 = vshll.u32 %v6124_v12, 16  ;;  %v16763_v27 = vcombine.low %v13841_v7, %v13361_v58  ;;  %vm16776_vm2 = vmmov %vm16766_vm10 }
 0x2ca   : > { %v6010_v37 = vsel %vm16762_vm0, %v16761_v9, %v16444_v25  ;;  %v13951_v14 = vsel %vm16749_vm12, %v13821_v18, %v13934_v42  ;;  %v6177_v18 = vsel %vm1656_vm14, %v13034_v19, %v13835_v28  ;;  %v5917_v56 = vshrl.u32 %v13379_v39, 16  ;;  %vm16777_vm0 = vmmov %vm16767_vm1 }
 0x2cb   : > { %v6774_v3 = vshrl.u32 %v6010_v37, 16  ;;  %v6777_v11 = vshll.u32 %v6010_v37, 16  ;;  %v13959_v41 = vrot.slane %v16763_v27, 1  ;;  %v13965_v12 = vrot.slane %v5698_v51, 5  ;;  %v5955_v9 = vpop.permute.xlu0 %5954  ;;  %vm16778_vm12 = vmmov %vm16769_vm4 }
 0x2cc   : > { %5442 = vrot.lane.b32.xlu1 %v5403_v59, %s10727_s17  ;;  %v5046_v55 = vld [vmem:[#allocation2 + $0xa8] sm:$0xf]  ;;  %v6229_v59 = vsel %vm6059_vm5, %v6177_v18, %v5820_v29  ;;  %v5703_v37 = vrot.slane %v5701_v50, 6  ;;  %v6584_v22 = vrot.slane %v6582_v46, 2 }
 0x2cd   : > { %v6776_v1 = vrot.slane %v6774_v3, 2  ;;  %v6779_v23 = vrot.slane %v6777_v11, 3  ;;  %5783 = vrot.lane.b32.xlu0 %v5742_v34, %s10722_s10  ;;  %v13971_v34 = vcombine.low %v13874_v40, %v5046_v55  ;;  %v9853_v58 = vcombine.low %v5046_v55, %v13841_v7  ;;  %v5429_v40 = vpop.permute.xlu1 %5428 }
 0x2ce   : > { %v6587_v3 = vrot.slane %v6585_v26, 3  ;;  %v6271_v19 = vsel %vm6102_vm9, %v6229_v59, %v5955_v9 }
 0x2cf   : > { %v13967_v49 = vor.u32 %v6779_v23, %v6776_v1  ;;  %v6590_v51 = vshrl.u32 %v6271_v19, 16  ;;  %v6593_v11 = vshll.u32 %v6271_v19, 16  ;;  %v13980_v1 = vrot.slane %v13971_v34, 1 }
 0x2d0   : > { %v13982_v29 = vrot.slane %v9853_v58, 6  ;;  %v5312_v23 = vshrl.u32 %v13872_v2, 16  ;;  %v5316_v7 = vshll.u32 %v13971_v34, 16  ;;  %v5689_v50 = vshrl.u32 %v9853_v58, 16 }
 0x2d1   : > { %v13977_v28 = vsel %vm1711_vm15, %v6755_v31, %v13967_v49  ;;  %v5692_v46 = vshll.u32 %v9853_v58, 16  ;;  %v6592_v26 = vrot.slane %v6590_v51, 2  ;;  %v6595_v27 = vrot.slane %v6593_v11, 3  ;;  %v5478_v33 = vpop.permute.xlu1 %5477 }
 0x2d2   : > { %16764 = vst [vmem:[#allocation15_spill] sm:$0xff] %v13977_v28  ;;  %v16765_v31 = vrot.slane %v13872_v2, 1  ;;  %v5744_v55 = vsel %vm16767_vm1, %v5741_v35, %v13982_v29  ;;  %v13994_v59 = vor.u32 %v6587_v3, %v6584_v22  ;;  %v13998_v9 = vrot.slane %v5316_v7, 1  ;;  %vm16780_vm1 = vmmov %vm16777_vm0 }
 0x2d3   : > { %5835 = vrot.lane.b32.xlu0 %v5744_v55, %s10727_s17  ;;  %v5912_v19 = vrot.slane %v5689_v50, 6  ;;  %v5913_v51 = vrot.slane %v5692_v46, 7  ;;  %v14000_v11 = vor.u32 %v6595_v27, %v6592_v26  ;;  %v5314_v25 = vor.u32 %v5312_v23, %v13898_v53 }
 0x2d4   : > { %v5405_v18 = vsel %vm16766_vm10, %v16765_v31, %v13980_v1  ;;  %v5920_v31 = vshll.u32 %v13379_v39, 16  ;;  %v5691_v28 = vrot.slane %v5689_v50, 5  ;;  %v5694_v35 = vrot.slane %v5692_v46, 6  ;;  %v5822_v50 = vpop.permute.xlu0 %5821  ;;  %vm16779_vm10 = vmmov %vm16777_vm0 }
 0x2d5   : > { %5491 = vrot.lane.b32.xlu1 %v5405_v18, %s10728_s20  ;;  %v14004_v45 = vor.u32 %v5913_v51, %v5912_v19  ;;  %v5704_v22 = vor.u32 %v5703_v37, %v13965_v12  ;;  %v6849_v3 = vshrl.u32 %v13443_v24, 16  ;;  %v5319_v7 = vsel %vm16768_vm3, %v5314_v25, %v13998_v9  ;;  %vm16781_vm3 = vmmov %vm16769_vm4 }
 0x2d6   : > { %v6597_v26 = vsel %vm1711_vm15, %v13906_v30, %v14000_v11  ;;  %v6011_v27 = vrot.slane %v9853_v58, 7  ;;  %v6852_v53 = vshll.u32 %v13443_v24, 16  ;;  %v6040_v23 = vsel %vm1656_vm14, %v12962_v15, %v5346_v20 }
 0x2d7   : > { %v5915_v12 = vsel %vm16769_vm4, %v13914_v38, %v14004_v45  ;;  %7174 = vmatprep.mubr.bf16.mxu1 %v6597_v26  ;;  %v6589_v25 = vsel %vm1711_vm15, %v13869_v13, %v13994_v59  ;;  %v5919_v37 = vrot.slane %v5917_v56, 6  ;;  %v6083_v30 = vsel %vm6059_vm5, %v6040_v23, %v5429_v40 }
 0x2d8   : > { %5970 = vrot.lane.b32.xlu0 %v5915_v12, %s10728_s20  ;;  %7175 = vmatmul.mubr.bf16.gmra.mrb[36].mxu1 %v6589_v25  ;;  %v5922_v24 = vrot.slane %v5920_v31, 7  ;;  %v5695_v15 = vor.u32 %v5694_v35, %v5691_v28  ;;  %v16770_v20 = vrot.slane %v13882_v57, 7  ;;  %v6126_v46 = vsel %vm6102_vm9, %v6083_v30, %v5478_v33  ;;  %v5348_v57 = vpop.permute.xlu1 %5347  ;;  %v14039_v35 = vpop.permute.xlu0 %5771  ;;  %v10705_v25 = vld [vmem:[#allocation2 + $0xb8] ss:$0 sps:$4 sm:$0xff]  }
 0x2d9   : > { %5361 = vrot.lane.b32.xlu1 %v5319_v7, %s10722_s10  ;;  %v6851_v51 = vrot.slane %v6849_v3, 2  ;;  %v16774_v40 = vrot.slane %v13379_v39, 7  ;;  %v6854_v31 = vrot.slane %v6852_v53, 3  ;;  %v5795_v33 = vrot.slane %v13379_v39, 6 }
 0x2da   : > { %v6012_v58 = vsel %vm16771_vm11, %v16770_v20, %v6011_v27  ;;  %v14031_v13 = vsel %vm16772_vm13, %v13934_v42, %v5695_v15  ;;  %v14034_v56 = vsel %vm16773_vm7, %v5695_v15, %v5704_v22  ;;  %v6607_v42 = vshrl.u32 %v6126_v46, 16  ;;  %vm16798_vm7 = vmmov %vm16776_vm2 }
 0x2db   : > { %v6799_v38 = vshrl.u32 %v6012_v58, 16  ;;  %v6802_v19 = vshll.u32 %v6012_v58, 16  ;;  %v6014_v28 = vsel %vm16775_vm8, %v6011_v27, %v16774_v40  ;;  %v6610_v23 = vshll.u32 %v6126_v46, 16 }
 0x2dc   : > { %v6824_v26 = vshrl.u32 %v6014_v28, 16  ;;  %5785 = vrot.lane.b32.xlu0 %v5744_v55, %s10722_s10  ;;  %v6827_v22 = vshll.u32 %v6014_v28, 16  ;;  %v5923_v12 = vor.u32 %v5922_v24, %v5919_v37  ;;  %v5926_v30 = vshrl.u32 %v10705_v25, 16  ;;  %v5957_v55 = vpop.permute.xlu0 %5956 }
 0x2dd   : > { %5444 = vrot.lane.b32.xlu1 %v5405_v18, %s10727_s17  ;;  %v6801_v3 = vrot.slane %v6799_v38, 2  ;;  %v6804_v7 = vrot.slane %v6802_v19, 3  ;;  %v6180_v15 = vsel %vm1656_vm14, %v13184_v8, %v13946_v21  ;;  %v5454_v39 = vsel %vm16776_vm2, %v13980_v1, %v13959_v41 }
 0x2de   : > { %v6826_v53 = vrot.slane %v6824_v26, 2  ;;  %v6829_v18 = vrot.slane %v6827_v22, 3  ;;  %v14050_v20 = vor.u32 %v6854_v31, %v6851_v51  ;;  %v6231_v58 = vsel %vm6059_vm5, %v6180_v15, %v5822_v50  ;;  %v5431_v50 = vpop.permute.xlu1 %5430 }
 0x2df   : > { %v6805_v27 = vor.u32 %v6804_v7, %v6801_v3  ;;  %v5796_v37 = vsel %vm16777_vm0, %v13982_v29, %v5795_v33  ;;  %v5320_v24 = vshrl.u32 %v13971_v34, 16  ;;  %v6609_v21 = vrot.slane %v6607_v42, 2 }
 0x2e0   : > { %v6612_v46 = vrot.slane %v6610_v23, 3  ;;  %v6273_v38 = vsel %vm6102_vm9, %v6231_v58, %v5957_v55  ;;  %5837 = vrot.lane.b32.xlu0 %v5796_v37, %s10727_s17  ;;  %v6830_v19 = vor.u32 %v6829_v18, %v6826_v53  ;;  %v5929_v31 = vshll.u32 %v10705_v25, 16 }
 0x2e1   : > { %5493 = vrot.lane.b32.xlu1 %v5454_v39, %s10728_s20  ;;  %v14059_v8 = vsel %vm1711_vm15, %v13967_v49, %v6805_v27  ;;  %v6615_v51 = vshrl.u32 %v6273_v38, 16  ;;  %v6618_v40 = vshll.u32 %v6273_v38, 16  ;;  %v5322_v28 = vor.u32 %v5320_v24, %v13998_v9 }
 0x2e2   : > { %v14065_v3 = vsel %vm1711_vm15, %v6805_v27, %v6830_v19  ;;  %v14069_v49 = vsel %vm1711_vm15, %v6830_v19, %v14050_v20  ;;  %v5924_v42 = vsel %vm16778_vm12, %v14004_v45, %v5923_v12  ;;  %v5745_v23 = vrot.slane %v13912_v54, 6  ;;  %v5480_v15 = vpop.permute.xlu1 %5479 }
 0x2e3   : > { %v6617_v7 = vrot.slane %v6615_v51, 2  ;;  %v6620_v26 = vrot.slane %v6618_v40, 3  ;;  %v6613_v22 = vor.u32 %v6612_v46, %v6609_v21  ;;  %v5797_v9 = vrot.slane %v10705_v25, 6  ;;  %v5824_v25 = vpop.permute.xlu0 %5823 }
 0x2e4   : > { %5972 = vrot.lane.b32.xlu0 %v5924_v42, %s10728_s20  ;;  %v6042_v27 = vsel %vm1656_vm14, %v13094_v63, %v5348_v57  ;;  %v5928_v39 = vrot.slane %v5926_v30, 6  ;;  %v5931_v18 = vrot.slane %v5929_v31, 7  ;;  %v5746_v45 = vsel %vm16779_vm10, %v13982_v29, %v5745_v23 }
 0x2e5   : > { %5363 = vrot.lane.b32.xlu1 %v5322_v28, %s10722_s10  ;;  %v6621_v53 = vor.u32 %v6620_v26, %v6617_v7  ;;  %v6085_v58 = vsel %vm6059_vm5, %v6042_v27, %v5431_v50  ;;  %v6614_v63 = vsel %vm1711_vm15, %v13994_v59, %v6613_v22  ;;  %v5798_v57 = vsel %vm16780_vm1, %v5795_v33, %v5797_v9 }
 0x2e6   : > { %v6128_v55 = vsel %vm6102_vm9, %v6085_v58, %v5480_v15  ;;  %v5932_v30 = vor.u32 %v5931_v18, %v5928_v39  ;;  %v6183_v29 = vsel %vm1656_vm14, %v13274_v60, %v14039_v35  ;;  %vm16796_vm4 = vsmask.f32 7424 }
 0x2e7   : > { %v6622_v54 = vsel %vm1711_vm15, %v14000_v11, %v6621_v53  ;;  %v6632_v37 = vshrl.u32 %v6128_v55, 16  ;;  %v6635_v24 = vshll.u32 %v6128_v55, 16  ;;  %v6233_v11 = vsel %vm6059_vm5, %v6183_v29, %v5824_v25  ;;  %vm16799_vm8 = vmmov %vm16796_vm4 }
 0x2e8   : > { %5787 = vrot.lane.b32.xlu0 %v5746_v45, %s10722_s10  ;;  %7182 = vmatprep.mubr.bf16.mxu1 %v6622_v54  ;;  %v5933_v59 = vsel %vm16781_vm3, %v5923_v12, %v5932_v30  ;;  %vm7774_vm11 = vsmask.f32 6400  ;;  %vm7920_vm13 = vcmask 1045504   ;;  %vm8129_vm0 = vcmask 1044480   ;;  %vm16803_vm12 = vmmov %vm16796_vm4 }
 0x2e9   : > { %5446 = vrot.lane.b32.xlu1 %v13980_v1, %s10727_s17  ;;  %7183 = vmatmul.mubr.bf16.gmra.mrb[40].mxu1 %v6614_v63  ;;  %v5350_v1 = vpop.permute.xlu1 %5349  ;;  %v6634_v46 = vrot.slane %v6632_v37, 2  ;;  %v6637_v33 = vrot.slane %v6635_v24, 3  ;;  %vm8339_vm10 = vcmask 1043456   ;;  %vm8195_vm1 = vsmask.f32 4352  ;;  %vm16807_vm3 = vmmov %vm16776_vm2 }
 0x2ea   : > { %v5959_v21 = vpop.permute.xlu0 %5958  ;;  %v6044_v31 = vsel %vm1656_vm14, %v13199_v17, %v5350_v1 }
 0x2eb   : > { %v6275_v38 = vsel %vm6102_vm9, %v6233_v11, %v5959_v21  ;;  %v6638_v28 = vor.u32 %v6637_v33, %v6634_v46 }
 0x2ec   : > { %5839 = vrot.lane.b32.xlu0 %v5798_v57, %s10727_s17  ;;  %v6640_v19 = vshrl.u32 %v6275_v38, 16  ;;  %v6643_v50 = vshll.u32 %v6275_v38, 16 }
 0x2ed   : > { %5495 = vrot.lane.b32.xlu1 %v13959_v41, %s10728_s20  ;;  %v5433_v40 = vpop.permute.xlu1 %5432  ;;  %v6639_v42 = vsel %vm1711_vm15, %v6613_v22, %v6638_v28 }
 0x2ee   : > { %v6642_v41 = vrot.slane %v6640_v19, 2  ;;  %v6645_v51 = vrot.slane %v6643_v50, 3  ;;  %v5774_v35 = vpop.permute.xlu0 %5773  ;;  %v6087_v26 = vsel %vm6059_vm5, %v6044_v31, %v5433_v40 }
 0x2ef   : > { %v6186_v18 = vsel %vm1656_vm14, %v13424_v16, %v5774_v35 }
 0x2f0   : > { %5974 = vrot.lane.b32.xlu0 %v5933_v59, %s10728_s20  ;;  %v6646_v60 = vor.u32 %v6645_v51, %v6642_v41 }
 0x2f2   : > { %v6647_v12 = vsel %vm1711_vm15, %v6621_v53, %v6646_v60 }
 0x2f3   : > { %7190 = vmatprep.mubr.bf16.mxu1 %v6647_v12 }
 0x2f4   : > { %v5482_v7 = vpop.permute.xlu1 %5481  ;;  %7191 = vmatmul.mubr.bf16.gmra.mrb[44].mxu1 %v6639_v42 }
 0x2f5   : > { %v6130_v23 = vsel %vm6102_vm9, %v6087_v26, %v5482_v7 }
 0x2f6   : > { %v5826_v9 = vpop.permute.xlu0 %5825  ;;  %v6657_v27 = vshrl.u32 %v6130_v23, 16  ;;  %v6660_v15 = vshll.u32 %v6130_v23, 16 }
 0x2f7   : > { %v6235_v17 = vsel %vm6059_vm5, %v6186_v18, %v5826_v9 }
 0x2f8   : > { %v5352_v39 = vpop.permute.xlu1 %5351  ;;  %v6659_v55 = vrot.slane %v6657_v27, 2  ;;  %v6662_v53 = vrot.slane %v6660_v15, 3 }
 0x2f9   : > { %v6046_v1 = vsel %vm1656_vm14, %v13312_v61, %v5352_v39 }
 0x2fa   : > { %v6663_v30 = vor.u32 %v6662_v53, %v6659_v55 }
 0x2fc   : > { %v5961_v58 = vpop.permute.xlu0 %5960  ;;  %v5435_v22 = vpop.permute.xlu1 %5434  ;;  %v6664_v59 = vsel %vm1711_vm15, %v6638_v28, %v6663_v30 }
 0x2fd   : > { %v6277_v45 = vsel %vm6102_vm9, %v6235_v17, %v5961_v58  ;;  %v6089_v16 = vsel %vm6059_vm5, %v6046_v1, %v5435_v22 }
 0x2fe   : > { %v6665_v54 = vshrl.u32 %v6277_v45, 16  ;;  %v6668_v25 = vshll.u32 %v6277_v45, 16 }
 0x300   : > { %v6667_v63 = vrot.slane %v6665_v54, 2  ;;  %v6670_v57 = vrot.slane %v6668_v25, 3  ;;  %v5776_v24 = vpop.permute.xlu0 %5775 }
 0x301   : > { %v6189_v19 = vsel %vm1656_vm14, %v13536_v32, %v5776_v24 }
 0x302   : > { %v6671_v37 = vor.u32 %v6670_v57, %v6667_v63 }
 0x304   : > { %v6672_v11 = vsel %vm1711_vm15, %v6646_v60, %v6671_v37 }
 0x305   : > { %v5484_v29 = vpop.permute.xlu1 %5483  ;;  %7198 = vmatprep.mubr.bf16.mxu1 %v6672_v11 }
 0x306   : > { %v6132_v21 = vsel %vm6102_vm9, %v6089_v16, %v5484_v29  ;;  %7199 = vmatmul.mubr.bf16.gmra.mrb[48].mxu1 %v6664_v59 }
 0x307   : > { %v6682_v33 = vshrl.u32 %v6132_v21, 16  ;;  %v6685_v38 = vshll.u32 %v6132_v21, 16 }
 0x309   : > { %v5828_v46 = vpop.permute.xlu0 %5827  ;;  %v5354_v50 = vpop.permute.xlu1 %5353  ;;  %v6684_v51 = vrot.slane %v6682_v33, 2  ;;  %v6687_v40 = vrot.slane %v6685_v38, 3 }
 0x30a   : > { %v6237_v61 = vsel %vm6059_vm5, %v6189_v19, %v5828_v46  ;;  %v6048_v15 = vsel %vm1656_vm14, %v13419_v5, %v5354_v50 }
 0x30b   : > { %v6688_v28 = vor.u32 %v6687_v40, %v6684_v51 }
 0x30d   : > { %v5963_v41 = vpop.permute.xlu0 %5962  ;;  %v5437_v26 = vpop.permute.xlu1 %5436  ;;  %v6689_v32 = vsel %vm1711_vm15, %v6663_v30, %v6688_v28 }
 0x30e   : > { %v6279_v60 = vsel %vm6102_vm9, %v6237_v61, %v5963_v41  ;;  %v6091_v39 = vsel %vm6059_vm5, %v6048_v15, %v5437_v26 }
 0x30f   : > { %v6690_v35 = vshrl.u32 %v6279_v60, 16  ;;  %v6693_v31 = vshll.u32 %v6279_v60, 16 }
 0x311   : > { %v6692_v7 = vrot.slane %v6690_v35, 2  ;;  %v6695_v12 = vrot.slane %v6693_v31, 3  ;;  %v5778_v9 = vpop.permute.xlu0 %5777 }
 0x312   : > { %v6192_v45 = vsel %vm1656_vm14, %v13652_v52, %v5778_v9 }
 0x313   : > { %v6696_v42 = vor.u32 %v6695_v12, %v6692_v7 }
 0x315   : > { %v6697_v23 = vsel %vm1711_vm15, %v6671_v37, %v6696_v42 }
 0x316   : > { %v5486_v27 = vpop.permute.xlu1 %5485  ;;  %7206 = vmatprep.mubr.bf16.mxu1 %v6697_v23 }
 0x317   : > { %7207 = vmatmul.mubr.bf16.gmra.mrb[52].mxu1 %v6689_v32  ;;  %v6134_v18 = vsel %vm6102_vm9, %v6091_v39, %v5486_v27 }
 0x318   : > { %v6707_v58 = vshrl.u32 %v6134_v18, 16  ;;  %v6710_v55 = vshll.u32 %v6134_v18, 16 }
 0x31a   : > { %v5356_v53 = vpop.permute.xlu1 %5355  ;;  %v6709_v22 = vrot.slane %v6707_v58, 2  ;;  %v6712_v63 = vrot.slane %v6710_v55, 3 }
 0x31b   : > { %v5830_v17 = vpop.permute.xlu0 %5829  ;;  %v6050_v21 = vsel %vm1656_vm14, %v13561_v44, %v5356_v53 }
 0x31c   : > { %v6239_v54 = vsel %vm6059_vm5, %v6192_v45, %v5830_v17  ;;  %v6713_v29 = vor.u32 %v6712_v63, %v6709_v22 }
 0x31e   : > { %v5439_v37 = vpop.permute.xlu1 %5438  ;;  %v6714_v38 = vsel %vm1711_vm15, %v6688_v28, %v6713_v29 }
 0x31f   : > { %v5965_v25 = vpop.permute.xlu0 %5964  ;;  %v6093_v52 = vsel %vm6059_vm5, %v6050_v21, %v5439_v37 }
 0x320   : > { %v6281_v57 = vsel %vm6102_vm9, %v6239_v54, %v5965_v25 }
 0x321   : > { %v6715_v5 = vshrl.u32 %v6281_v57, 16  ;;  %v6718_v30 = vshll.u32 %v6281_v57, 16 }
 0x323   : > { %v6717_v24 = vrot.slane %v6715_v5, 2  ;;  %v6720_v1 = vrot.slane %v6718_v30, 3  ;;  %v5780_v16 = vpop.permute.xlu0 %5779 }
 0x324   : > { %v6195_v51 = vsel %vm1656_vm14, %v13754_v4, %v5780_v16 }
 0x325   : > { %v6721_v11 = vor.u32 %v6720_v1, %v6717_v24 }
 0x326   : > { %v5488_v59 = vpop.permute.xlu1 %5487 }
 0x327   : > { %v6722_v46 = vsel %vm1711_vm15, %v6696_v42, %v6721_v11  ;;  %v6136_v33 = vsel %vm6102_vm9, %v6093_v52, %v5488_v59 }
 0x328   : > { %7214 = vmatprep.mubr.bf16.mxu1 %v6722_v46  ;;  %v6732_v50 = vshrl.u32 %v6136_v33, 16  ;;  %v6735_v61 = vshll.u32 %v6136_v33, 16 }
 0x329   : > { %v5832_v19 = vpop.permute.xlu0 %5831  ;;  %7215 = vmatmul.mubr.bf16.gmra.mrb[56].mxu1 %v6714_v38 }
 0x32a   : > { %v5358_v41 = vpop.permute.xlu1 %5357  ;;  %v6241_v44 = vsel %vm6059_vm5, %v6195_v51, %v5832_v19  ;;  %v6734_v60 = vrot.slane %v6732_v50, 2  ;;  %v6737_v35 = vrot.slane %v6735_v61, 3 }
 0x32b   : > { %v6052_v32 = vsel %vm1656_vm14, %v13670_v6, %v5358_v41 }
 0x32c   : > { %v6738_v23 = vor.u32 %v6737_v35, %v6734_v60 }
 0x32d   : > { %v5967_v40 = vpop.permute.xlu0 %5966 }
 0x32e   : > { %v6283_v31 = vsel %vm6102_vm9, %v6241_v44, %v5967_v40  ;;  %v5441_v28 = vpop.permute.xlu1 %5440  ;;  %v6739_v17 = vsel %vm1711_vm15, %v6713_v29, %v6738_v23 }
 0x32f   : > { %v6740_v7 = vshrl.u32 %v6283_v31, 16  ;;  %v6743_v12 = vshll.u32 %v6283_v31, 16  ;;  %v6095_v4 = vsel %vm6059_vm5, %v6052_v32, %v5441_v28 }
 0x331   : > { %v6742_v26 = vrot.slane %v6740_v7, 2  ;;  %v6745_v42 = vrot.slane %v6743_v12, 3  ;;  %v5782_v9 = vpop.permute.xlu0 %5781 }
 0x332   : > { %v6198_v45 = vsel %vm1656_vm14, %v13846_v36, %v5782_v9 }
 0x333   : > { %v6746_v27 = vor.u32 %v6745_v42, %v6742_v26 }
 0x335   : > { %v6747_v15 = vsel %vm1711_vm15, %v6721_v11, %v6746_v27  ;;  %v5490_v39 = vpop.permute.xlu1 %5489 }
 0x336   : > { %7222 = vmatprep.mubr.bf16.mxu1 %v6747_v15  ;;  %v6138_v18 = vsel %vm6102_vm9, %v6095_v4, %v5490_v39 }
 0x337   : > { %v5834_v58 = vpop.permute.xlu0 %5833  ;;  %v6757_v55 = vshrl.u32 %v6138_v18, 16  ;;  %v6760_v53 = vshll.u32 %v6138_v18, 16  ;;  %7223 = vmatmul.mubr.bf16.gmra.mrb[60].mxu1 %v6739_v17 }
 0x338   : > { %v6243_v54 = vsel %vm6059_vm5, %v6198_v45, %v5834_v58 }
 0x339   : > { %v6759_v25 = vrot.slane %v6757_v55, 2  ;;  %v6762_v22 = vrot.slane %v6760_v53, 3 }
 0x33a   : > { %v5360_v63 = vpop.permute.xlu1 %5359 }
 0x33b   : > { %v5969_v6 = vpop.permute.xlu0 %5968  ;;  %v6763_v1 = vor.u32 %v6762_v22, %v6759_v25  ;;  %v6054_v59 = vsel %vm1656_vm14, %v13760_v62, %v5360_v63 }
 0x33c   : > { %v6285_v57 = vsel %vm6102_vm9, %v6243_v54, %v5969_v6 }
 0x33d   : > { %v6765_v5 = vshrl.u32 %v6285_v57, 16  ;;  %v6768_v30 = vshll.u32 %v6285_v57, 16  ;;  %v6764_v36 = vsel %vm1711_vm15, %v6738_v23, %v6763_v1 }
 0x33e   : > { %v5443_v16 = vpop.permute.xlu1 %5442 }
 0x33f   : > { %v6767_v37 = vrot.slane %v6765_v5, 2  ;;  %v6770_v24 = vrot.slane %v6768_v30, 3  ;;  %v5784_v11 = vpop.permute.xlu0 %5783  ;;  %v6097_v52 = vsel %vm6059_vm5, %v6054_v59, %v5443_v16 }
 0x340   : > { %v6201_v61 = vsel %vm1656_vm14, %v13951_v14, %v5784_v11 }
 0x341   : > { %v6771_v29 = vor.u32 %v6770_v24, %v6767_v37 }
 0x343   : > { %v6772_v21 = vsel %vm1711_vm15, %v6746_v27, %v6771_v29 }
 0x344   : > { %7230 = vmatprep.mubr.bf16.mxu1 %v6772_v21 }
 0x345   : > { %7231 = vmatmul.mubr.bf16.gmra.mrb[64].mxu1 %v6764_v36  ;;  %v5836_v33 = vpop.permute.xlu0 %5835 }
 0x346   : > { %v6245_v51 = vsel %vm6059_vm5, %v6201_v61, %v5836_v33 }
 0x347   : > { %v5492_v46 = vpop.permute.xlu1 %5491 }
 0x348   : > { %v6140_v38 = vsel %vm6102_vm9, %v6097_v52, %v5492_v46 }
 0x349   : > { %v6782_v19 = vshrl.u32 %v6140_v38, 16  ;;  %v6785_v50 = vshll.u32 %v6140_v38, 16 }
 0x34a   : > { %v5971_v44 = vpop.permute.xlu0 %5970 }
 0x34b   : > { %v5362_v41 = vpop.permute.xlu1 %5361  ;;  %v6784_v40 = vrot.slane %v6782_v19, 2  ;;  %v6787_v60 = vrot.slane %v6785_v50, 3  ;;  %v6287_v62 = vsel %vm6102_vm9, %v6245_v51, %v5971_v44 }
 0x34c   : > { %v6790_v35 = vshrl.u32 %v6287_v62, 16  ;;  %v6793_v31 = vshll.u32 %v6287_v62, 16  ;;  %v6056_v23 = vsel %vm1656_vm14, %v13872_v2, %v5362_v41 }
 0x34d   : > { %v6788_v28 = vor.u32 %v6787_v60, %v6784_v40 }
 0x34e   : > { %v6792_v12 = vrot.slane %v6790_v35, 2  ;;  %v6795_v26 = vrot.slane %v6793_v31, 3  ;;  %v5786_v42 = vpop.permute.xlu0 %5785  ;;  %v16783_v31 = vld [vmem:[#allocation4_spill] sm:$0xff] }
 0x34f   : > { %v5445_v7 = vpop.permute.xlu1 %5444  ;;  %v6789_v17 = vsel %vm1711_vm15, %v6763_v1, %v6788_v28  ;;  %v6204_v58 = vsel %vm1656_vm14, %v14031_v13, %v5786_v42  ;;  %v16787_v42 = vld [vmem:[#allocation9_spill] sm:$0xff] }
 0x350   : > { %v6796_v9 = vor.u32 %v6795_v26, %v6792_v12  ;;  %v6099_v14 = vsel %vm6059_vm5, %v6056_v23, %v5445_v7  ;;  %v16784_v7 = vld [vmem:[#allocation5_spill] sm:$0xff]  ;;  %v16785_v12 = vld [vmem:[#allocation6_spill] sm:$0xff]  ;;  %v16786_v26 = vld [vmem:[#allocation7_spill] sm:$0xff] }
 0x351   : > { %v16793_v23 = vld [vmem:[#allocation11_spill] sm:$0xff] }
 0x352   : > { %v5838_v4 = vpop.permute.xlu0 %5837  ;;  %v6797_v15 = vsel %vm1711_vm15, %v6771_v29, %v6796_v9 }
 0x353   : > { %v5494_v27 = vpop.permute.xlu1 %5493  ;;  %7238 = vmatprep.mubr.bf16.mxu1 %v6797_v15  ;;  %v6247_v2 = vsel %vm6059_vm5, %v6204_v58, %v5838_v4 }
 0x354   : > { %v6142_v32 = vsel %vm6102_vm9, %v6099_v14, %v5494_v27  ;;  %7239 = vmatmul.mubr.bf16.gmra.mrb[68].mxu1 %v6789_v17 }
 0x355   : > { %v6807_v39 = vshrl.u32 %v6142_v32, 16  ;;  %v6810_v18 = vshll.u32 %v6142_v32, 16 }
 0x356   : > { %v5973_v53 = vpop.permute.xlu0 %5972 }
 0x357   : > { %v5364_v55 = vpop.permute.xlu1 %5363  ;;  %v6809_v45 = vrot.slane %v6807_v39, 2  ;;  %v6812_v54 = vrot.slane %v6810_v18, 3  ;;  %v6289_v6 = vsel %vm6102_vm9, %v6247_v2, %v5973_v53  ;;  %v10673_v18 = vld [vmem:[%s16409_s5 + $0x8] sm:$0xff]   ;;  %v10674_v2 = vld [vmem:[%s16409_s5 + $0x50] sm:$0xff]  }
 0x358   : > { %v6815_v25 = vshrl.u32 %v6289_v6, 16  ;;  %v6818_v22 = vshll.u32 %v6289_v6, 16  ;;  %v6058_v24 = vsel %vm1656_vm14, %v13971_v34, %v5364_v55 }
 0x359   : > { %v6813_v37 = vor.u32 %v6812_v54, %v6809_v45 }
 0x35a   : > { %v6817_v57 = vrot.slane %v6815_v25, 2  ;;  %v6820_v5 = vrot.slane %v6818_v22, 3  ;;  %v5788_v30 = vpop.permute.xlu0 %5787 }
 0x35b   : > { %v5447_v63 = vpop.permute.xlu1 %5446  ;;  %v6814_v52 = vsel %vm1711_vm15, %v6788_v28, %v6813_v37  ;;  %v6207_v46 = vsel %vm1656_vm14, %v14034_v56, %v5788_v30  ;;  %v16782_v56 = vld [vmem:[#allocation3_spill] sm:$0xff]  ;;  %v16788_v28 = vld [vmem:[#allocation10_spill] sm:$0xff] }
 0x35c   : > { %v6821_v1 = vor.u32 %v6820_v5, %v6817_v57  ;;  %v6101_v13 = vsel %vm6059_vm5, %v6058_v24, %v5447_v63  ;;  %v10675_v63 = vld [vmem:[%s16409_s5 + $0x10] sm:$0xff]   ;;  %v10676_v57 = vld [vmem:[%s16409_s5 + $0x58] sm:$0xff]  }
 0x35d   : > { %v10677_v24 = vld [vmem:[%s16409_s5 + $0x18] sm:$0xff]  }
 0x35e   : > { %v5840_v11 = vpop.permute.xlu0 %5839  ;;  %v6822_v21 = vsel %vm1711_vm15, %v6796_v9, %v6821_v1  ;;  %v16794_v9 = vld [vmem:[#allocation15_spill] sm:$0xff] }
 0x35f   : > { %v5496_v29 = vpop.permute.xlu1 %5495  ;;  %7246 = vmatprep.mubr.bf16.mxu1 %v6822_v21  ;;  %v6249_v34 = vsel %vm6059_vm5, %v6207_v46, %v5840_v11  ;;  %v10679_v21 = vld [vmem:[%s16409_s5 + $0x20] sm:$0xff]  }
 0x360   : > { %v6144_v16 = vsel %vm6102_vm9, %v6101_v13, %v5496_v29  ;;  %7247 = vmatmul.mubr.bf16.gmra.mrb[72].mxu1 %v6814_v52  ;;  %v10678_v13 = vld [vmem:[%s16409_s5 + $0x60] sm:$0xff]  }
 0x361   : > { %v6832_v36 = vshrl.u32 %v6144_v16, 16  ;;  %v6835_v59 = vshll.u32 %v6144_v16, 16 }
 0x362   : > { %v5975_v33 = vpop.permute.xlu0 %5974 }
 0x363   : > { %v6834_v38 = vrot.slane %v6832_v36, 2  ;;  %v6837_v19 = vrot.slane %v6835_v59, 3  ;;  %v6291_v50 = vsel %vm6102_vm9, %v6249_v34, %v5975_v33  ;;  %v10680_v34 = vld [vmem:[%s16409_s5 + $0x68] sm:$0xff]  }
 0x364   : > { %v6840_v61 = vshrl.u32 %v6291_v50, 16  ;;  %v6843_v41 = vshll.u32 %v6291_v50, 16 }
 0x365   : > { %v6838_v40 = vor.u32 %v6837_v19, %v6834_v38 }
 0x366   : > { %v6842_v51 = vrot.slane %v6840_v61, 2  ;;  %v6845_v44 = vrot.slane %v6843_v41, 3 }
 0x367   : > { %v6839_v35 = vsel %vm1711_vm15, %v6813_v37, %v6838_v40 }
 0x368   : > { %v6846_v60 = vor.u32 %v6845_v44, %v6842_v51 }
 0x36a   : > { %v6847_v62 = vsel %vm1711_vm15, %v6821_v1, %v6846_v60 }
 0x36b   : > { %7254 = vmatprep.mubr.bf16.mxu1 %v6847_v62  ;;  %v10681_v62 = vld [vmem:[%s16409_s5 + $0x28] sm:$0xff]  }
 0x36c   : > { %7255 = vmatmul.mubr.bf16.gmra.mrb[76].mxu1 %v6839_v35 }
 0x36d   : > { %7262 = vmatprep.mubr.bf16.mxu1 %v6846_v60 }
 0x374   : > { %7263 = vmatmul.mubr.bf16.gmra.mrb[80].mxu1 %v6838_v40 }
 0x375   : > { %10335 = vmatprep.mubr.msk.bf16.mxu1 %vm10724_vm6, %v16676_v48 }
 0x37c   : > { %10336 = vmatmul.mubr.msk.bf16.vlgmr.msra.gmra.mrb[0].mxu1 %vm1656_vm14, %v16782_v56 }
 0x37d   : > { %10339 = vmatprep.mubr.msk.bf16.mxu1 %vm10724_vm6, %v16676_v48 }
 0x384   : > { %10340 = vmatmul.mubr.msk.bf16.gmra.mrb[4].mxu1 %vm1656_vm14, %v16783_v31 }
 0x385   : > { %10343 = vmatprep.mubr.msk.bf16.mxu1 %vm10724_vm6, %v16676_v48 }
 0x38c   : > { %10344 = vmatmul.mubr.msk.bf16.gmra.mrb[8].mxu1 %vm1656_vm14, %v16784_v7 }
 0x38d   : > { %10347 = vmatprep.mubr.msk.bf16.mxu1 %vm10724_vm6, %v16676_v48 }
 0x394   : > { %10348 = vmatmul.mubr.msk.bf16.gmra.mrb[12].mxu1 %vm1656_vm14, %v16785_v12  ;;  %v10682_v12 = vld [vmem:[%s16409_s5 + $0x70] sm:$0xff]  }
 0x395   : > { %10351 = vmatprep.mubr.msk.bf16.mxu1 %vm10724_vm6, %v16676_v48 }
 0x39c   : > { %10352 = vmatmul.mubr.msk.bf16.gmra.mrb[16].mxu1 %vm1656_vm14, %v16786_v26 }
 0x39d   : > { %10355 = vmatprep.mubr.msk.bf16.mxu1 %vm10724_vm6, %v16676_v48 }
 0x3a4   : > { %10356 = vmatmul.mubr.msk.bf16.gmra.mrb[20].mxu1 %vm1656_vm14, %v16787_v42 }
 0x3a5   : > { %10359 = vmatprep.mubr.msk.bf16.mxu1 %vm10724_vm6, %v16676_v48 }
 0x3ac   : > { %10360 = vmatmul.mubr.msk.bf16.gmra.mrb[24].mxu1 %vm1656_vm14, %v16788_v28 }
 0x3ad   : > { %10363 = vmatprep.mubr.msk.bf16.mxu1 %vm10724_vm6, %v16676_v48 }
 0x3b4   : > { %10364 = vmatmul.mubr.msk.bf16.gmra.mrb[28].mxu1 %vm1656_vm14, %v13029_v47  ;;  %v16789_v47 = vld [vmem:[#allocation12_spill] sm:$0xff] }
 0x3b5   : > { %10367 = vmatprep.mubr.msk.bf16.mxu1 %vm10724_vm6, %v16676_v48 }
 0x3bc   : > { %10368 = vmatmul.mubr.msk.bf16.gmra.mrb[32].mxu1 %vm1656_vm14, %v13264_v0  ;;  %v16790_v0 = vld [vmem:[#allocation13_spill] sm:$0xff] }
 0x3bd   : > { %10371 = vmatprep.mubr.msk.bf16.mxu1 %vm10724_vm6, %v16676_v48 }
 0x3c4   : > { %10372 = vmatmul.mubr.msk.bf16.gmra.mrb[36].mxu1 %vm1656_vm14, %v13428_v10  ;;  %v16791_v10 = vld [vmem:[#allocation14_spill] sm:$0xff] }
 0x3c5   : > { %10375 = vmatprep.mubr.msk.bf16.mxu1 %vm10724_vm6, %v16676_v48 }
 0x3cc   : > { %10376 = vmatmul.mubr.msk.bf16.gmra.mrb[40].mxu1 %vm1656_vm14, %v13470_v43  ;;  %v16792_v43 = vld [vmem:[#allocation8_spill] sm:$0xff] }
 0x3cd   : > { %10379 = vmatprep.mubr.msk.bf16.mxu1 %vm10724_vm6, %v16676_v48 }
 0x3d4   : > { %10380 = vmatmul.mubr.msk.bf16.gmra.mrb[44].mxu1 %vm1656_vm14, %v16789_v47 }
 0x3d5   : > { %10383 = vmatprep.mubr.msk.bf16.mxu1 %vm10724_vm6, %v16676_v48 }
 0x3dc   : > { %10384 = vmatmul.mubr.msk.bf16.gmra.mrb[48].mxu1 %vm1656_vm14, %v16790_v0 }
 0x3dd   : > { %10387 = vmatprep.mubr.msk.bf16.mxu1 %vm10724_vm6, %v16676_v48 }
 0x3e4   : > { %10388 = vmatmul.mubr.msk.bf16.gmra.mrb[52].mxu1 %vm1656_vm14, %v16791_v10 }
 0x3e5   : > { %10391 = vmatprep.mubr.msk.bf16.mxu1 %vm10724_vm6, %v16676_v48 }
 0x3ec   : > { %10392 = vmatmul.mubr.msk.bf16.gmra.mrb[56].mxu1 %vm1656_vm14, %v16792_v43  ;;  %v10683_v43 = vld [vmem:[%s16409_s5 + $0x30] sm:$0xff]  }
 0x3ed   : > { %10395 = vmatprep.mubr.msk.bf16.mxu1 %vm10724_vm6, %v16676_v48 }
 0x3f4   : > { %10396 = vmatmul.mubr.msk.bf16.gmra.mrb[60].mxu1 %vm1656_vm14, %v16793_v23 }
 0x3f5   : > { %10399 = vmatprep.mubr.msk.bf16.mxu1 %vm10724_vm6, %v16676_v48 }
 0x3fc   : > { %10400 = vmatmul.mubr.msk.bf16.gmra.mrb[64].mxu1 %vm1656_vm14, %v16794_v9 }
 0x3fd   : > { %10403 = vmatprep.mubr.msk.bf16.mxu1 %vm10724_vm6, %v16676_v48 }
 0x404   : > { %10404 = vmatmul.mubr.msk.bf16.gmra.mrb[68].mxu1 %vm1656_vm14, %v14059_v8 }
 0x405   : > { %10407 = vmatprep.mubr.msk.bf16.mxu1 %vm10724_vm6, %v16676_v48 }
 0x40c   : > { %10408 = vmatmul.mubr.msk.bf16.gmra.mrb[72].mxu1 %vm1656_vm14, %v14065_v3  ;;  %v10670_v3 = vld [vmem:[%s16409_s5 + $0x40] sm:$0xff]  }
 0x40d   : > { %10411 = vmatprep.mubr.msk.bf16.mxu1 %vm10724_vm6, %v16676_v48  ;;  %10017 = vmatprep.subr.bf16.mxu0 %v10670_v3 }
 0x40e   : > { %10419 = vmatprep.subr.bf16.mxu1 %v10670_v3 }
 0x414   : > { %10412 = vmatmul.mubr.msk.bf16.gmra.mrb[76].mxu1 %vm1656_vm14, %v14069_v49  ;;  %v14272_v49 = vld [vmem:[%s16408_s4] ss:$0 sm:$0xff] }
 0x415   : > { %10415 = vmatprep.mubr.msk.bf16.mxu1 %vm10724_vm6, %v16676_v48  ;;  %v10671_v48 = vld [vmem:[%s16409_s5] sm:$0xff]   ;;  %vm16795_vm6 = vmmov %vm16776_vm2 }
 0x416   : > { %10018 = vmatpush3.bf16.msra.mxu0 %v10671_v48  ;;  %10427 = vmatpush3.bf16.msra.mxu1 %v10671_v48  ;;  %v10684_v48 = vld [vmem:[%s16409_s5 + $0x78] sm:$0xff]  }
 0x41c   : > { %10416 = vmatmul.mubr.msk.bf16.gmra.mrb[84].mxu1 %vm1656_vm14, %v14050_v20  ;;  %v10672_v20 = vld [vmem:[%s16409_s5 + $0x48] sm:$0xff]  }
 0x41d   : > { %10019 = vmatprep.subr.bf16.mxu0 %v10672_v20  ;;  %10420 = vmatprep.subr.bf16.mxu1 %v10672_v20 }
 0x41e   : > { %10020 = vmatpush3.bf16.msra.mxu0 %v10673_v18  ;;  %10428 = vmatpush3.bf16.msra.mxu1 %v10673_v18 }
 0x41f   : > { %10021 = vmatprep.subr.bf16.mxu0 %v10674_v2  ;;  %10421 = vmatprep.subr.bf16.mxu1 %v10674_v2 }
 0x422   : > { %10022 = vmatpush3.bf16.msra.mxu0 %v10675_v63  ;;  %10429 = vmatpush3.bf16.msra.mxu1 %v10675_v63 }
 0x423   : > { %10023 = vmatprep.subr.bf16.mxu0 %v10676_v57  ;;  %10422 = vmatprep.subr.bf16.mxu1 %v10676_v57 }
 0x426   : > { %10024 = vmatpush3.bf16.msra.mxu0 %v10677_v24  ;;  %10430 = vmatpush3.bf16.msra.mxu1 %v10677_v24 }
 0x427   : > { %10025 = vmatprep.subr.bf16.mxu0 %v10678_v13  ;;  %10423 = vmatprep.subr.bf16.mxu1 %v10678_v13 }
 0x42a   : > { %10026 = vmatpush3.bf16.msra.mxu0 %v10679_v21  ;;  %10431 = vmatpush3.bf16.msra.mxu1 %v10679_v21 }
 0x42b   : > { %10027 = vmatprep.subr.bf16.mxu0 %v10680_v34  ;;  %10424 = vmatprep.subr.bf16.mxu1 %v10680_v34 }
 0x42e   : > { %10028 = vmatpush3.bf16.msra.mxu0 %v10681_v62  ;;  %10432 = vmatpush3.bf16.msra.mxu1 %v10681_v62 }
 0x42f   : > { %10029 = vmatprep.subr.bf16.mxu0 %v10682_v12  ;;  %10425 = vmatprep.subr.bf16.mxu1 %v10682_v12 }
 0x432   : > { %10030 = vmatpush3.bf16.msra.mxu0 %v10683_v43  ;;  %10433 = vmatpush3.bf16.msra.mxu1 %v10683_v43 }
 0x433   : > { %10031 = vmatprep.subr.bf16.mxu0 %v10684_v48  ;;  %10426 = vmatprep.subr.bf16.mxu1 %v10684_v48 }
 0x447   : > { %v7264_v14 = vpop.f32.mrb[80].mxu1 }
 0x448   : > { %v7265_v8 = vpop.f32.mrb[81].mxu1 }
 0x449   : > { %v7266_v27 = vpop.f32.mrb[82].mxu1 }
 0x44a   : > { %v7267_v32 = vpop.f32.mrb[83].mxu1 }
 0x44f   : > { %v7303_v4 = vpop.f32.mrb[0].mxu1 }
 0x450   : > { %v10435_v15 = vadd.f32 %v14272_v49, %v7303_v4  ;;  %v10337_v39 = vpop.f32.mrb[1].mxu1 }
 0x451   : > { %v7306_v17 = vpop.f32.mrb[2].mxu1 }
 0x452   : > { %v10436_v58 = vadd.f32 %v14272_v49, %v7306_v17  ;;  %v10338_v55 = vpop.f32.mrb[3].mxu1  ;;  %v7468_v53 = vmax.f32 %v10435_v15, 0.0 }
 0x453   : > { %v10685_v55 = vld [vmem:[%s16409_s5 + $0x38] sm:$0xff]  }
 0x454   : > { %v7469_v45 = vmax.f32 %v10436_v58, 0.0  ;;  %10032 = vmatpush3.bf16.msra.mxu0 %v10685_v55  ;;  %10434 = vmatpush3.bf16.msra.mxu1 %v10685_v55 }
 0x456   : > { %v14288_v54 = vpack.c.bf16 %v7469_v45, %v7468_v53 }
 0x457   : > { %v7311_v6 = vpop.f32.mrb[4].mxu1 }
 0x458   : > { %v10437_v25 = vadd.f32 %v14272_v49, %v7311_v6  ;;  %v10341_v22 = vpop.f32.mrb[5].mxu1  ;;  %v7531_v1 = vshll.u32 %v14288_v54, 16  ;;  %v7709_v59 = vrot.slane %v14288_v54, 1  ;;  %v7529_v52 = vshrl.u32 %v14288_v54, 16 }
 0x459   : > { %v7314_v5 = vpop.f32.mrb[6].mxu1 }
 0x45a   : > { %v10438_v30 = vadd.f32 %v14272_v49, %v7314_v5  ;;  %v10342_v37 = vpop.f32.mrb[7].mxu1  ;;  %v7470_v29 = vmax.f32 %v10437_v25, 0.0  ;;  %v7533_v46 = vrot.slane %v7531_v1, 1  ;;  %v7775_v35 = vrot.slane %v7529_v52, 1 }
 0x45b   : > { %v7776_v56 = vrot.slane %v7531_v1, 2 }
 0x45c   : > { %v7471_v16 = vmax.f32 %v10438_v30, 0.0  ;;  %v7534_v28 = vor.u32 %v7533_v46, %v7529_v52 }
 0x45d   : > { %v7777_v9 = vor.u32 %v7776_v56, %v7775_v35 }
 0x45e   : > { %v14305_v11 = vpack.c.bf16 %v7471_v16, %v7470_v29 }
 0x45f   : > { %v7319_v36 = vpop.f32.mrb[8].mxu1 }
 0x460   : > { %v10439_v33 = vadd.f32 %v14272_v49, %v7319_v36  ;;  %v10345_v38 = vpop.f32.mrb[9].mxu1  ;;  %v7710_v19 = vrot.slane %v14305_v11, 1  ;;  %v14318_v50 = vshll.u32 %v14305_v11, 16  ;;  %v14321_v61 = vshrl.u32 %v14305_v11, 16 }
 0x461   : > { %v7322_v41 = vpop.f32.mrb[10].mxu1  ;;  %v7921_v27 = vrot.slane %v14305_v11, 2 }
 0x462   : > { %v10440_v51 = vadd.f32 %v14272_v49, %v7322_v41  ;;  %v10346_v44 = vpop.f32.mrb[11].mxu1  ;;  %v7711_v40 = vsel %vm16795_vm6, %v7709_v59, %v7710_v19  ;;  %v7538_v60 = vrot.slane %v14318_v50, 1  ;;  %v7778_v31 = vrot.slane %v14321_v61, 1 }
 0x463   : > { %7742 = vrot.lane.b32.xlu1 %v7711_v40, %s10727_s17  ;;  %v7779_v7 = vrot.slane %v14318_v50, 2  ;;  %v7472_v26 = vmax.f32 %v10439_v33, 0.0  ;;  %v7986_v57 = vrot.slane %v14321_v61, 2  ;;  %v7987_v5 = vrot.slane %v14318_v50, 3 }
 0x464   : > { %v7473_v42 = vmax.f32 %v10440_v51, 0.0  ;;  %v7539_v0 = vsel %vm16796_vm4, %v7534_v28, %v7538_v60  ;;  %v7542_v36 = vor.u32 %v14321_v61, %v7538_v60  ;;  %vm8405_vm6 = vsmask.f32 3328 }
 0x465   : > { %v7780_v10 = vor.u32 %v7779_v7, %v7778_v31  ;;  %v7988_v46 = vor.u32 %v7987_v5, %v7986_v57 }
 0x466   : > { %v14337_v47 = vpack.c.bf16 %v7473_v42, %v7472_v26 }
 0x467   : > { %7660 = vrot.lane.b32.xlu1 %v7539_v0, %s10722_s10  ;;  %v7327_v23 = vpop.f32.mrb[12].mxu1  ;;  %v7781_v18 = vsel %vm7774_vm11, %v7777_v9, %v7780_v10 }
 0x468   : > { %v10441_v14 = vadd.f32 %v14272_v49, %v7327_v23  ;;  %v10349_v8 = vpop.f32.mrb[13].mxu1  ;;  %v7922_v32 = vrot.slane %v14337_v47, 2  ;;  %v14350_v3 = vshll.u32 %v14337_v47, 16  ;;  %v14356_v4 = vshrl.u32 %v14337_v47, 16 }
 0x469   : > { %v7330_v20 = vpop.f32.mrb[14].mxu1  ;;  %v7712_v58 = vrot.slane %v14337_v47, 1 }
 0x46a   : > { %v10442_v15 = vadd.f32 %v14272_v49, %v7330_v20  ;;  %v10350_v39 = vpop.f32.mrb[15].mxu1  ;;  %v7923_v17 = vsel %vm7920_vm13, %v7921_v27, %v7922_v32  ;;  %v7782_v2 = vrot.slane %v14356_v4, 1  ;;  %v7783_v53 = vrot.slane %v14350_v3, 2 }
 0x46b   : > { %7844 = vrot.lane.b32.xlu1 %v7781_v18, %s10728_s20  ;;  %7954 = vrot.lane.b32.xlu0 %v7923_v17, %s10727_s17  ;;  %v7989_v45 = vrot.slane %v14356_v4, 2  ;;  %v7990_v6 = vrot.slane %v14350_v3, 3  ;;  %v7474_v25 = vmax.f32 %v10441_v14, 0.0  ;;  %v14378_v37 = vsel %vm16798_vm7, %v7710_v19, %v7712_v58  ;;  %vm16810_vm7 = vmmov %vm16776_vm2 }
 0x46c   : > { %v7475_v22 = vmax.f32 %v10442_v15, 0.0  ;;  %v7784_v63 = vor.u32 %v7783_v53, %v7782_v2  ;;  %v7546_v24 = vrot.slane %v14350_v3, 1 }
 0x46d   : > { %v7991_v29 = vor.u32 %v7990_v6, %v7989_v45 }
 0x46e   : > { %v14373_v30 = vpack.c.bf16 %v7475_v22, %v7474_v25  ;;  %v7785_v1 = vsel %vm7774_vm11, %v7780_v10, %v7784_v63  ;;  %v7547_v19 = vsel %vm16799_vm8, %v7542_v36, %v7546_v24  ;;  %v7550_v45 = vor.u32 %v14356_v4, %v7546_v24  ;;  %vm16814_vm8 = vmmov %vm16796_vm4 }
 0x46f   : > { %7744 = vrot.lane.b32.xlu1 %v14378_v37, %s10727_s17  ;;  %v7335_v13 = vpop.f32.mrb[16].mxu1  ;;  %7888 = vrot.lane.b32.xlu0 %v7785_v1, %s10722_s10  ;;  %v7992_v41 = vsel %vm1711_vm15, %v7988_v46, %v7991_v29 }
 0x470   : > { %16797 = vst [vmem:[#allocation3_spill] sm:$0xff] %v14373_v30  ;;  %v10443_v16 = vadd.f32 %v14272_v49, %v7335_v13  ;;  %v10353_v21 = vpop.f32.mrb[17].mxu1  ;;  %v14390_v59 = vshll.u32 %v14373_v30, 16  ;;  %v14393_v34 = vshrl.u32 %v14373_v30, 16  ;;  %v7924_v50 = vrot.slane %v14373_v30, 2 }
 0x471   : > { %v7338_v52 = vpop.f32.mrb[18].mxu1  ;;  %v7714_v62 = vrot.slane %v14373_v30, 1  ;;  %v8131_v23 = vrot.slane %v14373_v30, 3 }
 0x472   : > { %v10444_v33 = vadd.f32 %v14272_v49, %v7338_v52  ;;  %v10354_v38 = vpop.f32.mrb[19].mxu1  ;;  %v7786_v61 = vrot.slane %v14393_v34, 1  ;;  %v7787_v51 = vrot.slane %v14390_v59, 2  ;;  %v7476_v44 = vmax.f32 %v10443_v16, 0.0 }
 0x473   : > { %7662 = vrot.lane.b32.xlu1 %v7547_v19, %s10722_s10  ;;  %8053 = vrot.lane.b32.xlu0 %v7992_v41, %s10728_s20  ;;  %v14408_v35 = vsel %vm7920_vm13, %v7922_v32, %v7924_v50  ;;  %v7993_v7 = vrot.slane %v14393_v34, 2  ;;  %v7994_v12 = vrot.slane %v14390_v59, 3  ;;  %v14421_v43 = vsel %vm16776_vm2, %v7712_v58, %v7714_v62 }
 0x474   : > { %v7477_v40 = vmax.f32 %v10444_v33, 0.0  ;;  %16801 = vst [vmem:[#allocation5_spill] sm:$0xff] %v14408_v35  ;;  %v14410_v31 = vor.u32 %v7787_v51, %v7786_v61  ;;  %v8130_v32 = vrot.slane %v14337_v47, 3  ;;  %v7554_v15 = vrot.slane %v14390_v59, 1 }
 0x475   : > { %v14428_v14 = vor.u32 %v7994_v12, %v7993_v7  ;;  %v8340_v16 = vrot.slane %v14373_v30, 4  ;;  %v8199_v36 = vrot.slane %v14393_v34, 3  ;;  %v8200_v52 = vrot.slane %v14390_v59, 4 }
 0x476   : > { %v14403_v60 = vpack.c.bf16 %v7477_v40, %v7476_v44  ;;  %v7789_v9 = vsel %vm7774_vm11, %v7784_v63, %v14410_v31  ;;  %v8132_v20 = vsel %vm8129_vm0, %v8130_v32, %v8131_v23  ;;  %v7555_v63 = vsel %vm16803_vm12, %v7550_v45, %v7554_v15  ;;  %vm16822_vm12 = vmmov %vm16796_vm4 }
 0x477   : > { %7846 = vrot.lane.b32.xlu1 %v7785_v1, %s10728_s20  ;;  %v7343_v56 = vpop.f32.mrb[20].mxu1  ;;  %7956 = vrot.lane.b32.xlu0 %v14408_v35, %s10727_s17  ;;  %v7996_v39 = vsel %vm1711_vm15, %v7991_v29, %v14428_v14  ;;  %v8196_v51 = vrot.slane %v14356_v4, 3  ;;  %v8197_v44 = vrot.slane %v14350_v3, 4  ;;  %v8201_v12 = vor.u32 %v8200_v52, %v8199_v36 }
 0x478   : > { %16800 = vst [vmem:[#allocation4_spill] sm:$0xff] %v14403_v60  ;;  %v10445_v26 = vadd.f32 %v14272_v49, %v7343_v56  ;;  %v10357_v42 = vpop.f32.mrb[21].mxu1  ;;  %v7926_v17 = vrot.slane %v14403_v60, 2  ;;  %v14443_v58 = vshll.u32 %v14403_v60, 16  ;;  %v14446_v55 = vshrl.u32 %v14403_v60, 16 }
 0x479   : > { %v7346_v28 = vpop.f32.mrb[22].mxu1  ;;  %v8341_v5 = vrot.slane %v14403_v60, 4 }
 0x47a   : > { %v10446_v0 = vadd.f32 %v14272_v49, %v7346_v28  ;;  %v10358_v10 = vpop.f32.mrb[23].mxu1  ;;  %v7478_v8 = vmax.f32 %v10445_v26, 0.0  ;;  %v14459_v57 = vsel %vm7920_vm13, %v7924_v50, %v7926_v17  ;;  %v7790_v1 = vrot.slane %v14446_v55, 1 }
 0x47b   : > { %7746 = vrot.lane.b32.xlu1 %v14421_v43, %s10727_s17  ;;  %7890 = vrot.lane.b32.xlu0 %v7789_v9, %s10722_s10  ;;  %16804 = vst [vmem:[#allocation7_spill] sm:$0xff] %v14459_v57  ;;  %v7791_v24 = vrot.slane %v14443_v58, 2  ;;  %v8342_v46 = vsel %vm8339_vm10, %v8340_v16, %v8341_v5  ;;  %v7997_v19 = vrot.slane %v14446_v55, 2  ;;  %v7998_v41 = vrot.slane %v14443_v58, 3 }
 0x47c   : > { %v7479_v27 = vmax.f32 %v10446_v0, 0.0  ;;  %v8203_v28 = vrot.slane %v14446_v55, 3  ;;  %v8204_v4 = vrot.slane %v14443_v58, 4  ;;  %v8198_v10 = vor.u32 %v8197_v44, %v8196_v51 }
 0x47d   : > { %v14475_v38 = vor.u32 %v7791_v24, %v7790_v1  ;;  %v14488_v42 = vor.u32 %v7998_v41, %v7997_v19  ;;  %v8133_v1 = vrot.slane %v14403_v60, 3  ;;  %v7558_v44 = vor.u32 %v14393_v34, %v7554_v15 }
 0x47e   : > { %v14432_v48 = vpack.c.bf16 %v7479_v27, %v7478_v8  ;;  %v8202_v8 = vsel %vm8195_vm1, %v8198_v10, %v8201_v12  ;;  %v7716_v27 = vrot.slane %v14403_v60, 1 }
 0x47f   : > { %8163 = vrot.lane.b32.xlu1 %v8132_v20, %s10727_s17  ;;  %v7351_v18 = vpop.f32.mrb[24].mxu1  ;;  %8055 = vrot.lane.b32.xlu0 %v7996_v39, %s10728_s20  ;;  %v7793_v26 = vsel %vm7774_vm11, %v14410_v31, %v14475_v38  ;;  %v8000_v31 = vsel %vm1711_vm15, %v14428_v14, %v14488_v42  ;;  %v14501_v20 = vor.u32 %v8204_v4, %v8203_v28 }
 0x480   : > { %16802 = vst [vmem:[#allocation6_spill] sm:$0xff] %v14432_v48  ;;  %v10447_v2 = vadd.f32 %v14272_v49, %v7351_v18  ;;  %v10361_v53 = vpop.f32.mrb[25].mxu1  ;;  %v8410_v18 = vrot.slane %v14443_v58, 5  ;;  %v7928_v41 = vrot.slane %v14432_v48, 2 }
 0x481   : > { %v7354_v6 = vpop.f32.mrb[26].mxu1  ;;  %v8206_v24 = vsel %vm8195_vm1, %v8201_v12, %v14501_v20 }
 0x482   : > { %v10448_v25 = vadd.f32 %v14272_v49, %v7354_v6  ;;  %v10362_v22 = vpop.f32.mrb[27].mxu1  ;;  %v7480_v13 = vmax.f32 %v10447_v2, 0.0  ;;  %v8406_v6 = vrot.slane %v14393_v34, 4  ;;  %v14561_v28 = vsel %vm7920_vm13, %v7926_v17, %v7928_v41 }
 0x483   : > { %7664 = vrot.lane.b32.xlu1 %v7555_v63, %s10722_s10  ;;  %7958 = vrot.lane.b32.xlu0 %v14459_v57, %s10727_s17  ;;  %v14515_v63 = vsel %vm16807_vm3, %v7714_v62, %v7716_v27  ;;  %v14532_v62 = vsel %vm8129_vm0, %v8131_v23, %v8133_v1  ;;  %16809 = vst [vmem:[#allocation13_spill] sm:$0xff] %v14561_v28  ;;  %vm16832_vm3 = vmmov %vm16776_vm2 }
 0x484   : > { %v7481_v29 = vmax.f32 %v10448_v25, 0.0  ;;  %v8407_v25 = vrot.slane %v14390_v59, 5  ;;  %16808 = vst [vmem:[#allocation12_spill] sm:$0xff] %v14532_v62  ;;  %v8343_v59 = vrot.slane %v14432_v48, 4 }
 0x486   : > { %v14467_v21 = vpack.c.bf16 %v7481_v29, %v7480_v13  ;;  %v8408_v36 = vor.u32 %v8407_v25, %v8406_v6  ;;  %v8344_v17 = vsel %vm8339_vm10, %v8341_v5, %v8343_v59 }
 0x487   : > { %7848 = vrot.lane.b32.xlu1 %v7789_v9, %s10728_s20  ;;  %v7359_v33 = vpop.f32.mrb[28].mxu1  ;;  %8373 = vrot.lane.b32.xlu0 %v8342_v46, %s10727_s17  ;;  %v7562_v46 = vrot.slane %v14443_v58, 1 }
 0x488   : > { %16805 = vst [vmem:[#allocation9_spill] sm:$0xff] %v14467_v21  ;;  %v10449_v50 = vadd.f32 %v14272_v49, %v7359_v33  ;;  %v10365_v61 = vpop.f32.mrb[29].mxu1  ;;  %v16447_v58 = vrot.slane %v14467_v21, 4 }
 0x489   : > { %v7362_v40 = vpop.f32.mrb[30].mxu1  ;;  %v14544_v61 = vshrl.u32 %v14432_v48, 16  ;;  %v7563_v12 = vsel %vm16796_vm4, %v7558_v44, %v7562_v46 }
 0x48a   : > { %v10450_v56 = vadd.f32 %v14272_v49, %v7362_v40  ;;  %v10366_v7 = vpop.f32.mrb[31].mxu1  ;;  %v7482_v0 = vmax.f32 %v10449_v50, 0.0  ;;  %v14541_v50 = vshll.u32 %v14432_v48, 16 }
 0x48b   : > { %8097 = vrot.lane.b32.xlu1 %v7996_v39, %s10722_s10  ;;  %7892 = vrot.lane.b32.xlu0 %v7793_v26, %s10722_s10  ;;  %v8409_v39 = vrot.slane %v14446_v55, 4  ;;  %v7794_v34 = vrot.slane %v14544_v61, 1  ;;  %v8207_v25 = vrot.slane %v14544_v61, 3 }
 0x48c   : > { %v7483_v3 = vmax.f32 %v10450_v56, 0.0  ;;  %v7795_v15 = vrot.slane %v14541_v50, 2 }
 0x48d   : > { %v14522_v13 = vor.u32 %v8410_v18, %v8409_v39  ;;  %v8002_v39 = vrot.slane %v14541_v50, 3 }
 0x48e   : > { %v14493_v9 = vpack.c.bf16 %v7483_v3, %v7482_v0 }
 0x48f   : > { %8263 = vrot.lane.b32.xlu1 %v8202_v8, %s10728_s20  ;;  %v7367_v32 = vpop.f32.mrb[32].mxu1  ;;  %8057 = vrot.lane.b32.xlu0 %v8000_v31, %s10728_s20  ;;  %v8412_v33 = vsel %vm8405_vm6, %v8408_v36, %v14522_v13  ;;  %v14576_v8 = vor.u32 %v7795_v15, %v7794_v34  ;;  %v7718_v36 = vrot.slane %v14432_v48, 1 }
 0x490   : > { %16806 = vst [vmem:[#allocation10_spill] sm:$0xff] %v14493_v9  ;;  %v10451_v2 = vadd.f32 %v14272_v49, %v7367_v32  ;;  %v10369_v53 = vpop.f32.mrb[33].mxu1  ;;  %v8001_v32 = vrot.slane %v14544_v61, 2 }
 0x491   : > { %v7370_v45 = vpop.f32.mrb[34].mxu1  ;;  %v7797_v5 = vsel %vm7774_vm11, %v14475_v38, %v14576_v8 }
 0x492   : > { %v10452_v22 = vadd.f32 %v14272_v49, %v7370_v45  ;;  %v10370_v14 = vpop.f32.mrb[35].mxu1  ;;  %v7484_v29 = vmax.f32 %v10451_v2, 0.0  ;;  %v14587_v6 = vor.u32 %v8002_v39, %v8001_v32  ;;  %v7930_v32 = vrot.slane %v14467_v21, 2 }
 0x493   : > { %7748 = vrot.lane.b32.xlu1 %v14515_v63, %s10727_s17  ;;  %8307 = vrot.lane.b32.xlu0 %v8206_v24, %s10722_s10  ;;  %v14639_v39 = vshll.u32 %v14467_v21, 16 }
 0x494   : > { %v7485_v16 = vmax.f32 %v10452_v22, 0.0  ;;  %v8208_v22 = vrot.slane %v14541_v50, 4  ;;  %v8004_v38 = vsel %vm1711_vm15, %v14488_v42, %v14587_v6  ;;  %v14611_v42 = vsel %vm16810_vm7, %v7716_v27, %v7718_v36  ;;  %vm16844_vm7 = vmmov %vm16776_vm2 }
 0x495   : > { %16811 = vst [vmem:[#allocation14_spill] sm:$0xff] %v14611_v42 }
 0x496   : > { %v14525_v52 = vpack.c.bf16 %v7485_v16, %v7484_v29 }
 0x497   : > { %8165 = vrot.lane.b32.xlu1 %v14532_v62, %s10727_s17  ;;  %v7375_v19 = vpop.f32.mrb[36].mxu1  ;;  %8473 = vrot.lane.b32.xlu0 %v8412_v33, %s10728_s20  ;;  %v14599_v33 = vor.u32 %v8208_v22, %v8207_v25  ;;  %v14659_v22 = vsel %vm7920_vm13, %v7928_v41, %v7930_v32  ;;  %v8346_v41 = vsel %vm8339_vm10, %v8343_v59, %v16447_v58 }
 0x498   : > { %v10453_v23 = vadd.f32 %v14272_v49, %v7375_v19  ;;  %v10373_v51 = vpop.f32.mrb[37].mxu1  ;;  %v8413_v19 = vrot.slane %v14544_v61, 4  ;;  %16815 = vst [vmem:[#allocation15_spill] sm:$0xff] %v14659_v22 }
 0x499   : > { %v7378_v40 = vpop.f32.mrb[38].mxu1 }
 0x49a   : > { %v10454_v56 = vadd.f32 %v14272_v49, %v7378_v40  ;;  %v10374_v7 = vpop.f32.mrb[39].mxu1  ;;  %v7486_v4 = vmax.f32 %v10453_v23, 0.0  ;;  %v8414_v23 = vrot.slane %v14541_v50, 5 }
 0x49b   : > { %7666 = vrot.lane.b32.xlu1 %v7563_v12, %s10722_s10  ;;  %7960 = vrot.lane.b32.xlu0 %v14561_v28, %s10727_s17  ;;  %v8135_v7 = vrot.slane %v14432_v48, 3  ;;  %v8210_v12 = vsel %vm8195_vm1, %v14501_v20, %v14599_v33 }
 0x49c   : > { %v7487_v0 = vmax.f32 %v10454_v56, 0.0  ;;  %v14619_v34 = vor.u32 %v8414_v23, %v8413_v19  ;;  %v8006_v23 = vrot.slane %v14639_v39, 3 }
 0x49d   : > { %v14629_v27 = vsel %vm8129_vm0, %v8133_v1, %v8135_v7 }
 0x49e   : > { %v14568_v3 = vpack.c.bf16 %v7487_v0, %v7486_v4  ;;  %16813 = vst [vmem:[#allocation11_spill] sm:$0xff] %v14629_v27  ;;  %v8416_v20 = vsel %vm8405_vm6, %v14522_v13, %v14619_v34 }
 0x49f   : > { %7850 = vrot.lane.b32.xlu1 %v7793_v26, %s10728_s20  ;;  %v7383_v10 = vpop.f32.mrb[40].mxu1  ;;  %8375 = vrot.lane.b32.xlu0 %v8344_v17, %s10727_s17  ;;  %v7570_v17 = vrot.slane %v14541_v50, 1 }
 0x4a0   : > { %v10455_v18 = vadd.f32 %v14272_v49, %v7383_v10  ;;  %v10377_v2 = vpop.f32.mrb[41].mxu1 }
 0x4a1   : > { %v7386_v53 = vpop.f32.mrb[42].mxu1 }
 0x4a2   : > { %v10456_v26 = vadd.f32 %v14272_v49, %v7386_v53  ;;  %v10378_v45 = vpop.f32.mrb[43].mxu1  ;;  %v7488_v14 = vmax.f32 %v10455_v18, 0.0  ;;  %v14642_v18 = vshrl.u32 %v14467_v21, 16  ;;  %v7566_v53 = vor.u32 %v14446_v55, %v7562_v46 }
 0x4a3   : > { %8099 = vrot.lane.b32.xlu1 %v8000_v31, %s10722_s10  ;;  %7894 = vrot.lane.b32.xlu0 %v7797_v5, %s10722_s10  ;;  %v7799_v46 = vrot.slane %v14639_v39, 2 }
 0x4a4   : > { %v7489_v29 = vmax.f32 %v10456_v26, 0.0  ;;  %v7571_v25 = vsel %vm16814_vm8, %v7566_v53, %v7570_v17  ;;  %v7798_v55 = vrot.slane %v14642_v18, 1  ;;  %v8005_v19 = vrot.slane %v14642_v18, 2  ;;  %vm16853_vm8 = vmmov %vm16796_vm4 }
 0x4a5   : > { %v8417_v59 = vrot.slane %v14642_v18, 4 }
 0x4a6   : > { %v14592_v16 = vpack.c.bf16 %v7489_v29, %v7488_v14 }
 0x4a7   : > { %8265 = vrot.lane.b32.xlu1 %v8206_v24, %s10728_s20  ;;  %v7391_v31 = vpop.f32.mrb[44].mxu1  ;;  %8059 = vrot.lane.b32.xlu0 %v8004_v38, %s10728_s20 }
 0x4a8   : > { %v10457_v51 = vadd.f32 %v14272_v49, %v7391_v31  ;;  %v10381_v44 = vpop.f32.mrb[45].mxu1 }
 0x4a9   : > { %v7394_v40 = vpop.f32.mrb[46].mxu1  ;;  %v14676_v44 = vor.u32 %v7799_v46, %v7798_v55  ;;  %v7578_v46 = vrot.slane %v14639_v39, 1 }
 0x4aa   : > { %v10458_v56 = vadd.f32 %v14272_v49, %v7394_v40  ;;  %v10382_v24 = vpop.f32.mrb[47].mxu1  ;;  %v7490_v15 = vmax.f32 %v10457_v51, 0.0 }
 0x4ab   : > { %7750 = vrot.lane.b32.xlu1 %v14611_v42, %s10727_s17  ;;  %8309 = vrot.lane.b32.xlu0 %v8210_v12, %s10722_s10 }
 0x4ac   : > { %v7491_v4 = vmax.f32 %v10458_v56, 0.0 }
 0x4ae   : > { %v14622_v0 = vpack.c.bf16 %v7491_v4, %v7490_v15  ;;  %v8211_v15 = vrot.slane %v14642_v18, 3  ;;  %v8212_v4 = vrot.slane %v14639_v39, 4 }
 0x4af   : > { %8167 = vrot.lane.b32.xlu1 %v14629_v27, %s10727_s17  ;;  %v7399_v10 = vpop.f32.mrb[48].mxu1  ;;  %8475 = vrot.lane.b32.xlu0 %v8416_v20, %s10728_s20 }
 0x4b0   : > { %16812 = vst [vmem:[#allocation8_spill] sm:$0xff] %v14622_v0  ;;  %v10459_v1 = vadd.f32 %v14272_v49, %v7399_v10  ;;  %v10385_v2 = vpop.f32.mrb[49].mxu1  ;;  %v14683_v10 = vor.u32 %v8006_v23, %v8005_v19  ;;  %v14714_v19 = vshrl.u32 %v14493_v9, 16  ;;  %v14717_v23 = vshll.u32 %v14592_v16, 16 }
 0x4b1   : > { %v7402_v26 = vpop.f32.mrb[50].mxu1  ;;  %v14691_v2 = vsel %vm7774_vm11, %v14576_v8, %v14676_v44 }
 0x4b2   : > { %v10460_v13 = vadd.f32 %v14272_v49, %v7402_v26  ;;  %v10386_v45 = vpop.f32.mrb[51].mxu1  ;;  %v7492_v14 = vmax.f32 %v10459_v1, 0.0  ;;  %v8418_v1 = vrot.slane %v14639_v39, 5 }
 0x4b3   : > { %7668 = vrot.lane.b32.xlu1 %v7571_v25, %s10722_s10  ;;  %7962 = vrot.lane.b32.xlu0 %v14659_v22, %s10727_s17  ;;  %v16445_v45 = vrot.slane %v14467_v21, 3  ;;  %v14697_v25 = vor.u32 %v8212_v4, %v8211_v15  ;;  %v14749_v15 = vshll.u32 %v14622_v0, 16  ;;  %v14752_v4 = vshrl.u32 %v14622_v0, 16 }
 0x4b4   : > { %v7493_v29 = vmax.f32 %v10460_v13, 0.0  ;;  %v16446_v13 = vrot.slane %v14467_v21, 1  ;;  %v14706_v8 = vor.u32 %v8418_v1, %v8417_v59  ;;  %v8434_v1 = vrot.slane %v14717_v23, 5 }
 0x4b5   : > { %16820 = vst [vmem:[#allocation20_spill] sm:$0xff] %v14749_v15  ;;  %16821 = vst [vmem:[#allocation21_spill] sm:$0xff] %v14752_v4  ;;  %v16825_v22 = vrot.slane %v14467_v21, 4 }
 0x4b6   : > { %v14666_v31 = vpack.c.bf16 %v7493_v29, %v7492_v14  ;;  %v14711_v29 = vshll.u32 %v14493_v9, 16  ;;  %v8420_v50 = vsel %vm8405_vm6, %v14619_v34, %v14706_v8  ;;  %v8009_v34 = vrot.slane %v14714_v19, 2 }
 0x4b7   : > { %7852 = vrot.lane.b32.xlu1 %v7797_v5, %s10728_s20  ;;  %v7407_v51 = vpop.f32.mrb[52].mxu1  ;;  %8377 = vrot.lane.b32.xlu0 %v8346_v41, %s10727_s17  ;;  %v14720_v41 = vshrl.u32 %v14592_v16, 16 }
 0x4b8   : > { %16816 = vst [vmem:[#allocation16_spill] sm:$0xff] %v14666_v31  ;;  %v10461_v40 = vadd.f32 %v14272_v49, %v7407_v51  ;;  %v10389_v56 = vpop.f32.mrb[53].mxu1  ;;  %v14737_v51 = vsel %vm8129_vm0, %v8135_v7, %v16445_v45 }
 0x4b9   : > { %v7410_v24 = vpop.f32.mrb[54].mxu1  ;;  %16819 = vst [vmem:[#allocation19_spill] sm:$0xff] %v14737_v51  ;;  %v8433_v59 = vrot.slane %v14720_v41, 4 }
 0x4ba   : > { %v10462_v5 = vadd.f32 %v14272_v49, %v7410_v24  ;;  %v10390_v20 = vpop.f32.mrb[55].mxu1  ;;  %v7494_v53 = vmax.f32 %v10461_v40, 0.0  ;;  %v7574_v40 = vor.u32 %v14544_v61, %v7570_v17  ;;  %v14745_v24 = vsel %vm8195_vm1, %v14599_v33, %v14697_v25 }
 0x4bb   : > { %8101 = vrot.lane.b32.xlu1 %v8004_v38, %s10722_s10  ;;  %7896 = vrot.lane.b32.xlu0 %v14691_v2, %s10722_s10  ;;  %v14704_v38 = vsel %vm1711_vm15, %v14587_v6, %v14683_v10  ;;  %v8347_v33 = vrot.slane %v14493_v9, 4  ;;  %v7802_v17 = vrot.slane %v14714_v19, 1  ;;  %v7803_v20 = vrot.slane %v14711_v29, 2 }
 0x4bc   : > { %v7495_v26 = vmax.f32 %v10462_v5, 0.0  ;;  %v7579_v61 = vsel %vm16822_vm12, %v7574_v40, %v7578_v46  ;;  %v8216_v40 = vrot.slane %v14711_v29, 4  ;;  %v14791_v28 = vor.u32 %v8434_v1, %v8433_v59  ;;  %vm16882_vm12 = vmmov %vm16832_vm3 }
 0x4bd   : > { %v16830_v59 = vrot.slane %v14493_v9, 1  ;;  %v16831_v1 = vrot.slane %v14467_v21, 1 }
 0x4be   : > { %v14699_v55 = vpack.c.bf16 %v7495_v26, %v7494_v53  ;;  %16826 = vst [vmem:[#allocation24_spill] sm:$0xff] %v14791_v28 }
 0x4bf   : > { %8267 = vrot.lane.b32.xlu1 %v8210_v12, %s10728_s20  ;;  %v7415_v14 = vpop.f32.mrb[56].mxu1  ;;  %8061 = vrot.lane.b32.xlu0 %v14704_v38, %s10728_s20  ;;  %v14730_v12 = vsel %vm16776_vm2, %v7718_v36, %v16446_v13  ;;  %v16451_v36 = vrot.slane %v14493_v9, 2  ;;  %vm16863_vm2 = vmmov %vm16796_vm4 }
 0x4c0   : > { %16817 = vst [vmem:[#allocation17_spill] sm:$0xff] %v14699_v55  ;;  %v10463_v6 = vadd.f32 %v14272_v49, %v7415_v14  ;;  %v10393_v39 = vpop.f32.mrb[57].mxu1  ;;  %16818 = vst [vmem:[#allocation18_spill] sm:$0xff] %v14730_v12  ;;  %v8010_v14 = vrot.slane %v14711_v29, 3 }
 0x4c1   : > { %v7418_v56 = vpop.f32.mrb[58].mxu1  ;;  %v8215_v39 = vrot.slane %v14714_v19, 3 }
 0x4c2   : > { %v10464_v7 = vadd.f32 %v14272_v49, %v7418_v56  ;;  %v10394_v5 = vpop.f32.mrb[59].mxu1  ;;  %v7496_v53 = vmax.f32 %v10463_v6, 0.0  ;;  %v8437_v56 = vrot.slane %v14752_v4, 4  ;;  %v14781_v6 = vsel %vm7920_vm13, %v7930_v32, %v16451_v36 }
 0x4c3   : > { %7752 = vrot.lane.b32.xlu1 %v14730_v12, %s10727_s17  ;;  %8311 = vrot.lane.b32.xlu0 %v14745_v24, %s10722_s10  ;;  %v8438_v5 = vrot.slane %v14749_v15, 5  ;;  %16824 = vst [vmem:[#allocation23_spill] sm:$0xff] %v14781_v6  ;;  %v14797_v13 = vor.u32 %v8010_v14, %v8009_v34  ;;  %v14800_v35 = vor.u32 %v8216_v40, %v8215_v39  ;;  %v15011_v4 = vshll.u32 %v14568_v3, 16 }
 0x4c4   : > { %v7497_v26 = vmax.f32 %v10464_v7, 0.0  ;;  %v14795_v7 = vor.u32 %v7803_v20, %v7802_v17  ;;  %v16455_v17 = vrot.slane %v14525_v52, 2  ;;  %v14814_v20 = vshll.u32 %v14666_v31, 16 }
 0x4c5   : > { %v8439_v57 = vor.u32 %v8438_v5, %v8437_v56  ;;  %v14822_v34 = vsel %vm16832_vm3, %v16831_v1, %v16830_v59  ;;  %v16834_v56 = vrot.slane %v14493_v9, 3  ;;  %v16835_v5 = vrot.slane %v14467_v21, 3 }
 0x4c6   : > { %v14774_v45 = vpack.c.bf16 %v7497_v26, %v7496_v53  ;;  %v8348_v53 = vsel %vm8339_vm10, %v16825_v22, %v8347_v33  ;;  %v7582_v26 = vor.u32 %v14642_v18, %v7578_v46  ;;  %v8422_v22 = vrot.slane %v14711_v29, 5  ;;  %16829 = vst [vmem:[#allocation27_spill] sm:$0xff] %v14814_v20  ;;  %16833 = vst [vmem:[#allocation28_spill] sm:$0xff] %v14822_v34 }
 0x4c7   : > { %8169 = vrot.lane.b32.xlu1 %v14737_v51, %s10727_s17  ;;  %v7423_v58 = vpop.f32.mrb[60].mxu1  ;;  %8477 = vrot.lane.b32.xlu0 %v8420_v50, %s10728_s20  ;;  %v8421_v51 = vrot.slane %v14714_v19, 4  ;;  %v14804_v18 = vshrl.u32 %v14666_v31, 16  ;;  %v14808_v46 = vsel %vm8405_vm6, %v14791_v28, %v8439_v57  ;;  %v7586_v50 = vrot.slane %v14711_v29, 1 }
 0x4c8   : > { %16823 = vst [vmem:[#allocation22_spill] sm:$0xff] %v14774_v45  ;;  %v10465_v32 = vadd.f32 %v14272_v49, %v7423_v58  ;;  %v10397_v36 = vpop.f32.mrb[61].mxu1  ;;  %16828 = vst [vmem:[#allocation26_spill] sm:$0xff] %v14808_v46  ;;  %v14829_v29 = vshrl.u32 %v14525_v52, 16  ;;  %v14891_v21 = vshrl.u32 %v14699_v55, 16 }
 0x4c9   : > { %v7426_v27 = vpop.f32.mrb[62].mxu1  ;;  %16827 = vst [vmem:[#allocation25_spill] sm:$0xff] %v14804_v18  ;;  %v14855_v59 = vor.u32 %v8422_v22, %v8421_v51  ;;  %v14861_v14 = vsel %vm16796_vm4, %v7582_v26, %v7586_v50  ;;  %v16839_v51 = vrot.slane %v14525_v52, 4  ;;  %vm16897_vm4 = vmmov %vm16863_vm2 }
 0x4ca   : > { %v10466_v58 = vadd.f32 %v14272_v49, %v7426_v27  ;;  %v10398_v36 = vpop.f32.mrb[63].mxu1  ;;  %v14826_v27 = vshll.u32 %v14525_v52, 16  ;;  %v7498_v39 = vmax.f32 %v10465_v32, 0.0  ;;  %v14848_v32 = vsel %vm1711_vm15, %v14683_v10, %v14797_v13  ;;  %16841 = vst [vmem:[#allocation32_spill] sm:$0xff] %v14891_v21 }
 0x4cb   : > { %7670 = vrot.lane.b32.xlu1 %v7579_v61, %s10722_s10  ;;  %7964 = vrot.lane.b32.xlu0 %v14781_v6, %s10727_s17  ;;  %v14836_v61 = vsel %vm7774_vm11, %v14676_v44, %v14795_v7  ;;  %v14843_v36 = vsel %vm8129_vm0, %v16835_v5, %v16834_v56  ;;  %v8441_v44 = vrot.slane %v14804_v18, 4  ;;  %v16837_v56 = vrot.slane %v14493_v9, 2 }
 0x4cc   : > { %v7499_v40 = vmax.f32 %v10466_v58, 0.0  ;;  %16836 = vst [vmem:[#allocation29_spill] sm:$0xff] %v14843_v36  ;;  %v14853_v58 = vsel %vm8195_vm1, %v14697_v25, %v14800_v35  ;;  %v8442_v5 = vrot.slane %v14814_v20, 5  ;;  %v14876_v22 = vsel %vm8339_vm10, %v8347_v33, %v16839_v51 }
 0x4cd   : > { %v14868_v10 = vsel %vm7920_vm13, %v16837_v56, %v16455_v17  ;;  %v7806_v26 = vrot.slane %v14829_v29, 1  ;;  %v8013_v6 = vrot.slane %v14829_v29, 2  ;;  %v8219_v62 = vrot.slane %v14829_v29, 3 }
 0x4ce   : > { %v14858_v1 = vpack.c.bf16 %v7499_v40, %v7498_v39  ;;  %16838 = vst [vmem:[#allocation30_spill] sm:$0xff] %v14868_v10  ;;  %v7807_v39 = vrot.slane %v14826_v27, 2  ;;  %v8220_v33 = vrot.slane %v14826_v27, 4  ;;  %v14888_v51 = vshll.u32 %v14699_v55, 16 }
 0x4cf   : > { %7854 = vrot.lane.b32.xlu1 %v14691_v2, %s10728_s20  ;;  %v7431_v25 = vpop.f32.mrb[64].mxu1  ;;  %8379 = vrot.lane.b32.xlu0 %v8348_v53, %s10727_s17  ;;  %v8014_v2 = vrot.slane %v14826_v27, 3  ;;  %v8443_v40 = vor.u32 %v8442_v5, %v8441_v44  ;;  %v7590_v20 = vor.u32 %v14714_v19, %v7586_v50  ;;  %v16842_v55 = vrot.slane %v14525_v52, 1 }
 0x4d0   : > { %v10467_v56 = vadd.f32 %v14272_v49, %v7431_v25  ;;  %v10401_v17 = vpop.f32.mrb[65].mxu1  ;;  %16840 = vst [vmem:[#allocation31_spill] sm:$0xff] %v14888_v51  ;;  %v14903_v18 = vor.u32 %v7807_v39, %v7806_v26  ;;  %v16843_v44 = vrot.slane %v14493_v9, 1  ;;  %v8425_v5 = vrot.slane %v14829_v29, 4 }
 0x4d1   : > { %v7434_v46 = vpop.f32.mrb[66].mxu1  ;;  %v14897_v17 = vsel %vm8405_vm6, %v14706_v8, %v14855_v59  ;;  %v14914_v8 = vsel %vm8405_vm6, %v8439_v57, %v8443_v40  ;;  %v14921_v19 = vshll.u32 %v14774_v45, 16  ;;  %v14925_v26 = vor.u32 %v8220_v33, %v8219_v62 }
 0x4d2   : > { %v10468_v53 = vadd.f32 %v14272_v49, %v7434_v46  ;;  %v10402_v25 = vpop.f32.mrb[67].mxu1  ;;  %v14910_v46 = vsel %vm16844_vm7, %v16843_v44, %v16842_v55  ;;  %16845 = vst [vmem:[#allocation33_spill] sm:$0xff] %v14914_v8  ;;  %v14928_v55 = vshrl.u32 %v14774_v45, 16  ;;  %v8445_v57 = vrot.slane %v14891_v21, 4  ;;  %vm16909_vm7 = vmmov %vm16832_vm3 }
 0x4d3   : > { %8103 = vrot.lane.b32.xlu1 %v14704_v38, %s10722_s10  ;;  %v7500_v25 = vmax.f32 %v10467_v56, 0.0  ;;  %7898 = vrot.lane.b32.xlu0 %v14836_v61, %s10722_s10  ;;  %v14918_v38 = vor.u32 %v8014_v2, %v8013_v6  ;;  %16846 = vst [vmem:[#allocation34_spill] sm:$0xff] %v14921_v19  ;;  %v8446_v39 = vrot.slane %v14888_v51, 5  ;;  %v16848_v33 = vrot.slane %v14525_v52, 3 }
 0x4d4   : > { %v7501_v48 = vmax.f32 %v10468_v53, 0.0  ;;  %16847 = vst [vmem:[#allocation35_spill] sm:$0xff] %v14928_v55  ;;  %v8426_v53 = vrot.slane %v14826_v27, 5  ;;  %v16849_v44 = vrot.slane %v14493_v9, 3  ;;  %v14958_v9 = vsel %vm7774_vm11, %v14795_v7, %v14903_v18 }
 0x4d5   : > { %v14923_v50 = vpop.permute.xlu1 %7742  ;;  %v8447_v6 = vor.u32 %v8446_v39, %v8445_v57  ;;  %v14969_v39 = vsel %vm8195_vm1, %v14800_v35, %v14925_v26  ;;  %v8449_v7 = vrot.slane %v14928_v55, 4  ;;  %v16852_v35 = vrot.slane %v14826_v27, 1 }
 0x4d6   : > { %v14932_v56 = vpack.c.bf16 %v7501_v48, %v7500_v25  ;;  %v14944_v8 = vsel %vm8129_vm0, %v16849_v44, %v16848_v33  ;;  %v14947_v48 = vshll.u32 %v14858_v1, 16  ;;  %v14950_v25 = vshrl.u32 %v14858_v1, 16 }
 0x4d7   : > { %8269 = vrot.lane.b32.xlu1 %v14745_v24, %s10728_s20  ;;  %v7439_v62 = vpop.f32.mrb[68].mxu1  ;;  %16850 = vst [vmem:[#allocation36_spill] sm:$0xff] %v14944_v8  ;;  %8063 = vrot.lane.b32.xlu0 %v14848_v32, %s10728_s20  ;;  %v14963_v33 = vsel %vm1711_vm15, %v14797_v13, %v14918_v38  ;;  %v14979_v13 = vld [vmem:[%s16408_s4] ss:$0 sm:$0xff]  ;;  %v14982_v51 = vor.u32 %v8426_v53, %v8425_v5 }
 0x4d8   : > { %v10469_v24 = vadd.f32 %v14272_v49, %v7439_v62  ;;  %v10405_v2 = vpop.f32.mrb[69].mxu1  ;;  %v14972_v49 = vsel %vm8405_vm6, %v8443_v40, %v8447_v6  ;;  %v14987_v21 = vsel %vm16853_vm8, %v7590_v20, %v16852_v35  ;;  %v16854_v40 = vrot.slane %v14568_v3, 2  ;;  %vm16910_vm8 = vmmov %vm16863_vm2 }
 0x4d9   : > { %v7661_v45 = vpop.permute.xlu1 %7660  ;;  %v7442_v57 = vpop.f32.mrb[70].mxu1  ;;  %16851 = vst [vmem:[#allocation37_spill] sm:$0xff] %v14972_v49  ;;  %v8450_v2 = vrot.slane %v14921_v19, 5  ;;  %v16855_v49 = vrot.slane %v14525_v52, 2  ;;  %v7835_v5 = vrot.slane %v14947_v48, 2  ;;  %v8041_v53 = vrot.slane %v14950_v25, 2 }
 0x4da   : > { %v10470_v62 = vadd.f32 %v14979_v13, %v7442_v57  ;;  %v10406_v44 = vpop.f32.mrb[71].mxu1  ;;  %v7834_v57 = vrot.slane %v14950_v25, 1  ;;  %v7502_v60 = vmax.f32 %v10469_v24, 0.0  ;;  %v8042_v35 = vrot.slane %v14947_v48, 3 }
 0x4db   : > { %v14994_v31 = vsel %vm7920_vm13, %v16855_v49, %v16854_v40  ;;  %7754 = vrot.lane.b32.xlu1 %v14822_v34, %s10727_s17  ;;  %v8451_v44 = vor.u32 %v8450_v2, %v8449_v7  ;;  %8313 = vrot.lane.b32.xlu0 %v14853_v58, %s10722_s10  ;;  %v16857_v49 = vrot.slane %v14921_v19, 1  ;;  %v8247_v7 = vrot.slane %v14950_v25, 3 }
 0x4dc   : > { %16856 = vst [vmem:[#allocation38_spill] sm:$0xff] %v14994_v31  ;;  %v7503_v20 = vmax.f32 %v10470_v62, 0.0  ;;  %v15018_v2 = vshll.u32 %v14932_v56, 16  ;;  %v8453_v19 = vrot.slane %v14950_v25, 4  ;;  %v15038_v15 = vor.u32 %v7835_v5, %v7834_v57 }
 0x4dd   : > { %v15007_v40 = vor.u32 %v14928_v55, %v16857_v49  ;;  %v7845_v34 = vpop.permute.xlu1 %7844  ;;  %v7955_v12 = vpop.permute.xlu0 %7954  ;;  %v15014_v24 = vsel %vm8405_vm6, %v8447_v6, %v8451_v44  ;;  %v15025_v49 = vsel %vm8405_vm6, %v14855_v59, %v14982_v51  ;;  %v15040_v55 = vor.u32 %v8042_v35, %v8041_v53 }
 0x4de   : > { %16859 = vst [vmem:[#allocation40_spill] sm:$0xff] %v15014_v24  ;;  %v15020_v62 = vpack.c.bf16 %v7503_v20, %v7502_v60  ;;  %v8248_v24 = vrot.slane %v14947_v48, 4  ;;  %v8454_v60 = vrot.slane %v14947_v48, 5  ;;  %v16494_v0 = vrot.slane %v14947_v48, 1 }
 0x4df   : > { %16858 = vst [vmem:[#allocation39_spill] sm:$0xff] %v15007_v40  ;;  %v8506_v40 = vsel %vm1656_vm14, %v14288_v54, %v7661_v45  ;;  %8171 = vrot.lane.b32.xlu1 %v14843_v36, %s10727_s17  ;;  %v7447_v6 = vpop.f32.mrb[72].mxu1  ;;  %8479 = vrot.lane.b32.xlu0 %v14897_v17, %s10728_s20  ;;  %v7950_v54 = vrot.slane %v14932_v56, 2  ;;  %v15049_v42 = vshrl.u32 %v14932_v56, 16  ;;  %v16860_v35 = vrot.slane %v14858_v1, 2 }
 0x4e0   : > { %v10471_v59 = vadd.f32 %v14979_v13, %v7447_v6  ;;  %v10409_v20 = vpop.f32.mrb[73].mxu1  ;;  %v15044_v28 = vor.u32 %v8248_v24, %v8247_v7  ;;  %v15046_v30 = vor.u32 %v8454_v60, %v8453_v19  ;;  %v8538_v17 = vsel %vm6059_vm5, %v8506_v40, %v14923_v50 }
 0x4e1   : > { %v7745_v45 = vpop.permute.xlu1 %7744  ;;  %v7450_v36 = vpop.f32.mrb[74].mxu1  ;;  %v15057_v6 = vsel %vm7920_vm13, %v16860_v35, %v7950_v54  ;;  %v8046_v24 = vrot.slane %v15018_v2, 3  ;;  %v8570_v19 = vsel %vm6102_vm9, %v8538_v17, %v7845_v34  ;;  %v8045_v34 = vrot.slane %v15049_v42, 2 }
 0x4e2   : > { %v7889_v57 = vpop.permute.xlu0 %7888  ;;  %v10472_v5 = vadd.f32 %v14979_v13, %v7450_v36  ;;  %v10410_v53 = vpop.f32.mrb[75].mxu1  ;;  %16861 = vst [vmem:[#allocation41_spill] sm:$0xff] %v15057_v6  ;;  %v15067_v50 = vsel %vm8405_vm6, %v8451_v44, %v15046_v30  ;;  %v7504_v40 = vmax.f32 %v10471_v59, 0.0  ;;  %v7654_v44 = vor.u32 %v14950_v25, %v16494_v0 }
 0x4e3   : > { %v8619_v7 = vsel %vm1656_vm14, %v14378_v37, %v7889_v57  ;;  %7672 = vrot.lane.b32.xlu1 %v14861_v14, %s10722_s10  ;;  %16862 = vst [vmem:[#allocation42_spill] sm:$0xff] %v15067_v50  ;;  %7966 = vrot.lane.b32.xlu0 %v14868_v10, %s10727_s17  ;;  %v8251_v37 = vrot.slane %v15049_v42, 3  ;;  %v8252_v14 = vrot.slane %v15018_v2, 4  ;;  %v7658_v57 = vrot.slane %v15018_v2, 1 }
 0x4e4   : > { %v7505_v60 = vmax.f32 %v10472_v5, 0.0  ;;  %v8666_v35 = vsel %vm6059_vm5, %v8619_v7, %v7955_v12  ;;  %v8047_v36 = vor.u32 %v8046_v24, %v8045_v34  ;;  %v8457_v7 = vrot.slane %v15049_v42, 4 }
 0x4e5   : > { %v7663_v17 = vpop.permute.xlu1 %7662  ;;  %v8253_v25 = vor.u32 %v8252_v14, %v8251_v37  ;;  %v15090_v0 = vsel %vm16863_vm2, %v7654_v44, %v7658_v57 }
 0x4e6   : > { %v15080_v59 = vpack.c.bf16 %v7505_v60, %v7504_v40  ;;  %v8054_v5 = vpop.permute.xlu0 %8053  ;;  %v8508_v53 = vsel %vm1656_vm14, %v14305_v11, %v7663_v17  ;;  %16864 = vst [vmem:[#allocation43_spill] sm:$0xff] %v15090_v0  ;;  %v15097_v24 = vsel %vm1711_vm15, %v15040_v55, %v8047_v36 }
 0x4e7   : > { %v8698_v20 = vsel %vm6102_vm9, %v8666_v35, %v8054_v5  ;;  %7856 = vrot.lane.b32.xlu1 %v14836_v61, %s10728_s20  ;;  %v7455_v10 = vpop.f32.mrb[76].mxu1  ;;  %v8540_v6 = vsel %vm6059_vm5, %v8508_v53, %v7745_v45  ;;  %8381 = vrot.lane.b32.xlu0 %v14876_v22, %s10727_s17  ;;  %16865 = vst [vmem:[#allocation44_spill] sm:$0xff] %v15097_v24  ;;  %v16495_v61 = vrot.slane %v15020_v62, 2  ;;  %v8458_v22 = vrot.slane %v15018_v2, 5 }
 0x4e8   : > { %9289 = vmatprep.mubr.bf16.mxu0 %v8698_v20  ;;  %v10473_v11 = vadd.f32 %v14979_v13, %v7455_v10  ;;  %v10413_v12 = vpop.f32.mrb[77].mxu1  ;;  %v15103_v60 = vsel %vm8195_vm1, %v15044_v28, %v8253_v25  ;;  %v15107_v10 = vshrl.u32 %v15020_v62, 16  ;;  %v15110_v20 = vshll.u32 %v15020_v62, 16 }
 0x4e9   : > { %9290 = vmatmul.mubr.bf16.vlgmr.msra.gmra.mrb[84].mxu0 %v8570_v19  ;;  %v7847_v45 = vpop.permute.xlu1 %7846  ;;  %v7458_v40 = vpop.f32.mrb[78].mxu1  ;;  %16866 = vst [vmem:[#allocation45_spill] sm:$0xff] %v15103_v60  ;;  %v15117_v44 = vsel %vm7920_vm13, %v7950_v54, %v16495_v61  ;;  %v15121_v57 = vor.u32 %v8458_v22, %v8457_v7  ;;  %v7840_v35 = vrot.slane %v15049_v42, 1  ;;  %v8367_v42 = vrot.slane %v15020_v62, 4 }
 0x4ea   : > { %v7506_v34 = vmax.f32 %v10473_v11, 0.0  ;;  %v7957_v17 = vpop.permute.xlu0 %7956  ;;  %v10474_v37 = vadd.f32 %v14979_v13, %v7458_v40  ;;  %v10414_v14 = vpop.f32.mrb[79].mxu1  ;;  %v8573_v19 = vsel %vm6102_vm9, %v8540_v6, %v7847_v45  ;;  %16867 = vst [vmem:[#allocation46_spill] sm:$0xff] %v15117_v44  ;;  %v8255_v5 = vrot.slane %v15107_v10, 3 }
 0x4eb   : > { %8105 = vrot.lane.b32.xlu1 %v14848_v32, %s10722_s10  ;;  %v8256_v53 = vrot.slane %v15110_v20, 4  ;;  %7900 = vrot.lane.b32.xlu0 %v14958_v9, %s10722_s10  ;;  %v7841_v6 = vrot.slane %v15018_v2, 2  ;;  %v8049_v54 = vrot.slane %v15107_v10, 2  ;;  %v8050_v11 = vrot.slane %v15110_v20, 3 }
 0x4ec   : > { %v7507_v13 = vmax.f32 %v10474_v37, 0.0  ;;  %v15136_v32 = vsel %vm8405_vm6, %v15046_v30, %v15121_v57  ;;  %v8369_v45 = vrot.slane %v15080_v59, 4  ;;  %v16496_v14 = vrot.slane %v15020_v62, 3 }
 0x4ed   : > { %v15131_v12 = vpop.permute.xlu1 %7746  ;;  %16868 = vst [vmem:[#allocation47_spill] sm:$0xff] %v15136_v32  ;;  %v8257_v7 = vor.u32 %v8256_v53, %v8255_v5  ;;  %v15142_v2 = vor.u32 %v7841_v6, %v7840_v35  ;;  %v15144_v37 = vor.u32 %v8050_v11, %v8049_v54  ;;  %v16870_v5 = vrot.slane %v14932_v56, 4 }
 0x4ee   : > { %v15140_v40 = vpack.c.bf16 %v7507_v13, %v7506_v34  ;;  %v7891_v22 = vpop.permute.xlu0 %7890  ;;  %v15160_v53 = vsel %vm8339_vm10, %v8367_v42, %v8369_v45  ;;  %v7885_v24 = vrot.slane %v15110_v20, 2 }
 0x4ef   : > { %v8622_v61 = vsel %vm1656_vm14, %v14421_v43, %v7891_v22  ;;  %8271 = vrot.lane.b32.xlu1 %v14853_v58, %s10728_s20  ;;  %v15152_v30 = vsel %vm8195_vm1, %v8253_v25, %v8257_v7  ;;  %v15157_v34 = vsel %vm8339_vm10, %v16870_v5, %v8367_v42  ;;  %16872 = vst [vmem:[#allocation50_spill] sm:$0xff] %v15160_v53  ;;  %v7463_v35 = vpop.f32.mrb[84].mxu1  ;;  %v16876_v42 = vrot.slane %v14932_v56, 3 }
 0x4f0   : > { %16869 = vst [vmem:[#allocation48_spill] sm:$0xff] %v15152_v30  ;;  %16871 = vst [vmem:[#allocation49_spill] sm:$0xff] %v15157_v34  ;;  %v8299_v13 = vshrl.u32 %v15140_v40, 16  ;;  %v8302_v6 = vshll.u32 %v15140_v40, 16  ;;  %8065 = vrot.lane.b32.xlu0 %v14963_v33, %s10728_s20  ;;  %v8668_v43 = vsel %vm6059_vm5, %v8622_v61, %v7957_v17  ;;  %v15170_v58 = vsel %vm7774_vm11, %v15038_v15, %v15142_v2  ;;  %v10417_v25 = vpop.f32.mrb[85].mxu1 }
 0x4f1   : > { %16873 = vst [vmem:[#allocation51_spill] sm:$0xff] %v15170_v58  ;;  %v15172_v54 = vpop.permute.xlu1 %8163  ;;  %v15176_v11 = vsel %vm1711_vm15, %v8047_v36, %v15144_v37  ;;  %v15183_v22 = vsel %vm8129_vm0, %v16876_v42, %v16496_v14  ;;  %v8089_v61 = vshrl.u32 %v15080_v59, 16  ;;  %v8092_v17 = vshll.u32 %v15080_v59, 16  ;;  %v7465_v5 = vpop.f32.mrb[86].mxu1  ;;  %v10686_v25 = vld [vmem:[%s16409_s5 + $0xc0] sm:$0xff]  }
 0x4f2   : > { %16874 = vst [vmem:[#allocation52_spill] sm:$0xff] %v15172_v54  ;;  %16875 = vst [vmem:[#allocation53_spill] sm:$0xff] %v15176_v11  ;;  %v8056_v35 = vpop.permute.xlu0 %8055  ;;  %v10687_v36 = vld [vmem:[%s16409_s5 + $0x80] sm:$0xff]   ;;  %v8461_v54 = vrot.slane %v15107_v10, 4  ;;  %v8462_v34 = vrot.slane %v15110_v20, 5  ;;  %v8371_v42 = vrot.slane %v15140_v40, 4  ;;  %10129 = vmatprep.subr.bf16.mxu0 %v10686_v25 }
 0x4f3   : > { %16877 = vst [vmem:[#allocation54_spill] sm:$0xff] %v15183_v22  ;;  %v8301_v14 = vrot.slane %v8299_v13, 3  ;;  %v8701_v22 = vsel %vm6102_vm9, %v8668_v43, %v8056_v35  ;;  %7756 = vrot.lane.b32.xlu1 %v14910_v46, %s10727_s17  ;;  %v8259_v5 = vrot.slane %v8089_v61, 3  ;;  %v8260_v53 = vrot.slane %v8092_v17, 4  ;;  %v10418_v11 = vpop.f32.mrb[87].mxu1  ;;  %10130 = vmatpush3.bf16.msra.mxu0 %v10687_v36 }
 0x4f4   : > { %v8465_v58 = vrot.slane %v8089_v61, 4  ;;  %9297 = vmatprep.mubr.bf16.mxu0 %v8701_v22  ;;  %8315 = vrot.lane.b32.xlu0 %v14969_v39, %s10722_s10  ;;  %v8463_v32 = vor.u32 %v8462_v34, %v8461_v54  ;;  %v8466_v30 = vrot.slane %v8092_v17, 5  ;;  %v15202_v44 = vsel %vm8339_vm10, %v8369_v45, %v8371_v42 }
 0x4f5   : > { %v8304_v0 = vrot.slane %v8302_v6, 4  ;;  %9298 = vmatmul.mubr.bf16.gmra.mrb[88].mxu0 %v8573_v19  ;;  %v7665_v60 = vpop.permute.xlu1 %7664  ;;  %v8261_v43 = vor.u32 %v8260_v53, %v8259_v5  ;;  %v7882_v35 = vrot.slane %v15107_v10, 1  ;;  %v8469_v50 = vrot.slane %v8299_v13, 4 }
 0x4f6   : > { %v7959_v11 = vpop.permute.xlu0 %7958  ;;  %v15207_v22 = vshrl.u32 %v14568_v3, 16  ;;  %v8467_v34 = vor.u32 %v8466_v30, %v8465_v58  ;;  %v15211_v45 = vsel %vm8405_vm6, %v15121_v57, %v8463_v32  ;;  %v7811_v19 = vrot.slane %v15011_v4, 2 }
 0x4f7   : > { %v8305_v54 = vor.u32 %v8304_v0, %v8301_v14  ;;  %8173 = vrot.lane.b32.xlu1 %v14944_v8, %s10727_s17  ;;  %v15217_v10 = vsel %vm8195_vm1, %v8257_v7, %v8261_v43  ;;  %v7886_v20 = vor.u32 %v7885_v24, %v7882_v35  ;;  %v8470_v53 = vrot.slane %v8302_v6, 5 }
 0x4f8   : > { %8481 = vrot.lane.b32.xlu0 %v15025_v49, %s10728_s20  ;;  %v15222_v30 = vsel %vm8405_vm6, %v8463_v32, %v8467_v34  ;;  %v8161_v0 = vrot.slane %v15080_v59, 3  ;;  %v8091_v14 = vrot.slane %v8089_v61, 2  ;;  %v8094_v24 = vrot.slane %v8092_v17, 3 }
 0x4f9   : > { %v15225_v57 = vsel %vm8195_vm1, %v8261_v43, %v8305_v54  ;;  %v7849_v13 = vpop.permute.xlu1 %7848  ;;  %v15230_v58 = vsel %vm7774_vm11, %v15142_v2, %v7886_v20  ;;  %v8471_v7 = vor.u32 %v8470_v53, %v8469_v50  ;;  %v8296_v6 = vrot.slane %v15140_v40, 3 }
 0x4fa   : > { %16878 = vst [vmem:[#allocation55_spill] sm:$0xff] %v15230_v58  ;;  %v15233_v25 = vpop.permute.xlu0 %8373  ;;  %v16504_v49 = vrot.slane %v14932_v56, 1  ;;  %v16879_v32 = vrot.slane %v15020_v62, 3  ;;  %v7877_v61 = vrot.slane %v15020_v62, 1  ;;  %v8086_v42 = vrot.slane %v15080_v59, 2  ;;  %v16945_v58 = vld [vmem:[#allocation34_spill] sm:$0xff] }
 0x4fb   : > { %7674 = vrot.lane.b32.xlu1 %v14987_v21, %s10722_s10  ;;  %v7810_v50 = vrot.slane %v15207_v22, 1  ;;  %v15247_v40 = vsel %vm8405_vm6, %v8467_v34, %v8471_v7  ;;  %v8095_v2 = vor.u32 %v8094_v24, %v8091_v14  ;;  %v15250_v17 = vsel %vm8129_vm0, %v8161_v0, %v8296_v6 }
 0x4fc   : > { %v15239_v36 = vsel %vm8129_vm0, %v16879_v32, %v8161_v0  ;;  %16881 = vst [vmem:[#allocation57_spill] sm:$0xff] %v15250_v17  ;;  %7968 = vrot.lane.b32.xlu0 %v14994_v31, %s10727_s17  ;;  %v15257_v5 = vsel %vm16882_vm12, %v16504_v49, %v7877_v61  ;;  %v16884_v59 = vrot.slane %v15020_v62, 2  ;;  %v8017_v54 = vrot.slane %v15207_v22, 2  ;;  %vm16930_vm12 = vmmov %vm16832_vm3 }
 0x4fd   : > { %16880 = vst [vmem:[#allocation56_spill] sm:$0xff] %v15239_v36  ;;  %16883 = vst [vmem:[#allocation58_spill] sm:$0xff] %v15257_v5  ;;  %v15264_v43 = vpop.permute.xlu1 %8097  ;;  %v15268_v35 = vsel %vm1711_vm15, %v15144_v37, %v8095_v2  ;;  %v8018_v20 = vrot.slane %v15011_v4, 3  ;;  %v16888_v62 = vrot.slane %v14568_v3, 4  ;;  %v16889_v0 = vrot.slane %v14525_v52, 4 }
 0x4fe   : > { %v15262_v21 = vsel %vm7920_vm13, %v16884_v59, %v8086_v42  ;;  %16886 = vst [vmem:[#allocation60_spill] sm:$0xff] %v15264_v43  ;;  %16887 = vst [vmem:[#allocation61_spill] sm:$0xff] %v15268_v35  ;;  %v7893_v34 = vpop.permute.xlu0 %7892  ;;  %v15281_v7 = vor.u32 %v7811_v19, %v7810_v50  ;;  %v8510_v37 = vsel %vm1656_vm14, %v14337_v47, %v7665_v60  ;;  %v8223_v61 = vrot.slane %v15207_v22, 3 }
 0x4ff   : > { %16885 = vst [vmem:[#allocation59_spill] sm:$0xff] %v15262_v21  ;;  %v8625_v53 = vsel %vm1656_vm14, %v14515_v63, %v7893_v34  ;;  %7858 = vrot.lane.b32.xlu1 %v14958_v9, %s10728_s20  ;;  %v8352_v14 = vsel %vm8339_vm10, %v16889_v0, %v16888_v62  ;;  %v10688_v63 = vld [vmem:[%s16409_s5 + $0xc8] sm:$0xff]   ;;  %v15295_v19 = vor.u32 %v8018_v20, %v8017_v54  ;;  %v8224_v50 = vrot.slane %v15011_v4, 4 }
 0x500   : > { %8383 = vrot.lane.b32.xlu0 %v8352_v14, %s10727_s17  ;;  %v10689_v9 = vld [vmem:[%s16409_s5 + $0x88] sm:$0xff]   ;;  %v8670_v32 = vsel %vm6059_vm5, %v8625_v53, %v7959_v11  ;;  %10131 = vmatprep.subr.bf16.mxu0 %v10688_v63  ;;  %v7813_v60 = vsel %vm7774_vm11, %v14903_v18, %v15281_v7  ;;  %v8542_v42 = vsel %vm6059_vm5, %v8510_v37, %v15131_v12  ;;  %v8429_v34 = vrot.slane %v15207_v22, 4 }
 0x501   : > { %v15292_v24 = vpop.permute.xlu1 %8263  ;;  %10132 = vmatpush3.bf16.msra.mxu0 %v10689_v9  ;;  %v8576_v11 = vsel %vm6102_vm9, %v8542_v42, %v7849_v13  ;;  %v8020_v18 = vsel %vm1711_vm15, %v14918_v38, %v15295_v19  ;;  %v15317_v12 = vor.u32 %v8224_v50, %v8223_v61  ;;  %v8430_v54 = vrot.slane %v15011_v4, 5  ;;  %v10690_v61 = vld [vmem:[%s16409_s5 + $0xd0] sm:$0xff]  }
 0x502   : > { %16890 = vst [vmem:[#allocation62_spill] sm:$0xff] %v15292_v24  ;;  %v8058_v6 = vpop.permute.xlu0 %8057  ;;  %v16505_v38 = vrot.slane %v14568_v3, 3  ;;  %v16893_v63 = vrot.slane %v14525_v52, 3  ;;  %10133 = vmatprep.subr.bf16.mxu0 %v10690_v61  ;;  %v16901_v61 = vrot.slane %v14568_v3, 4  ;;  %v8022_v49 = vrot.slane %v14717_v23, 3  ;;  %v16939_v24 = vld [vmem:[#allocation28_spill] sm:$0xff] }
 0x503   : > { %v8704_v47 = vsel %vm6102_vm9, %v8670_v32, %v8058_v6  ;;  %8107 = vrot.lane.b32.xlu1 %v14963_v33, %s10722_s10  ;;  %v16507_v33 = vrot.slane %v14568_v3, 1  ;;  %v8226_v62 = vsel %vm8195_vm1, %v14925_v26, %v15317_v12  ;;  %v15339_v0 = vor.u32 %v8430_v54, %v8429_v34 }
 0x504   : > { %9305 = vmatprep.mubr.bf16.mxu0 %v8704_v47  ;;  %7902 = vrot.lane.b32.xlu0 %v7813_v60, %s10722_s10  ;;  %v15347_v9 = vsel %vm8129_vm0, %v16893_v63, %v16505_v38  ;;  %v7602_v6 = vrot.slane %v15011_v4, 1  ;;  %v16506_v32 = vrot.slane %v14592_v16, 2  ;;  %v10691_v47 = vld [vmem:[%s16409_s5 + $0x90] sm:$0xff]   ;;  %v16895_v4 = vrot.slane %v14826_v27, 1  ;;  %v16903_v38 = vld [vmem:[#allocation3_spill] sm:$0xff] }
 0x505   : > { %9306 = vmatmul.mubr.bf16.gmra.mrb[92].mxu0 %v8576_v11  ;;  %v7749_v2 = vpop.permute.xlu1 %7748  ;;  %16894 = vst [vmem:[#allocation64_spill] sm:$0xff] %v15347_v9  ;;  %v8432_v26 = vsel %vm8405_vm6, %v14982_v51, %v15339_v0  ;;  %v16508_v34 = vrot.slane %v14592_v16, 4  ;;  %v16898_v54 = vrot.slane %v14568_v3, 2  ;;  %v7814_v27 = vrot.slane %v14720_v41, 1 }
 0x506   : > { %v15309_v59 = vpop.permute.xlu0 %8307  ;;  %v7598_v42 = vor.u32 %v14829_v29, %v16895_v4  ;;  %10134 = vmatpush3.bf16.msra.mxu0 %v10691_v47  ;;  %v7815_v29 = vrot.slane %v14717_v23, 2  ;;  %v16902_v4 = vld [vmem:[#allocation14_spill] sm:$0xff]  ;;  %v7831_v43 = vrot.slane %v16945_v58, 2 }
 0x507   : > { %8273 = vrot.lane.b32.xlu1 %v14969_v39, %s10728_s20  ;;  %v16892_v39 = vrot.slane %v14525_v52, 1  ;;  %v8354_v47 = vsel %vm8339_vm10, %v16901_v61, %v16508_v34 }
 0x508   : > { %8067 = vrot.lane.b32.xlu0 %v8020_v18, %s10728_s20  ;;  %v7603_v51 = vsel %vm16897_vm4, %v7598_v42, %v7602_v6 }
 0x509   : > { %v15322_v13 = vpop.permute.xlu1 %8165  ;;  %v15331_v53 = vsel %vm16832_vm3, %v16892_v39, %v16507_v33  ;;  %v15376_v39 = vsel %vm7920_vm13, %v16898_v54, %v16506_v32  ;;  %v8021_v54 = vrot.slane %v14720_v41, 2 }
 0x50a   : > { %16891 = vst [vmem:[#allocation63_spill] sm:$0xff] %v15322_v13  ;;  %v15324_v20 = vpop.permute.xlu0 %8473  ;;  %16899 = vst [vmem:[#allocation66_spill] sm:$0xff] %v15376_v39  ;;  %v16933_v13 = vld [vmem:[#allocation32_spill] sm:$0xff] }
 0x50b   : > { %7758 = vrot.lane.b32.xlu1 %v15331_v53, %s10727_s17 }
 0x50c   : > { %8317 = vrot.lane.b32.xlu0 %v8226_v62, %s10722_s10 }
 0x50d   : > { %v7667_v14 = vpop.permute.xlu1 %7666 }
 0x50e   : > { %v7961_v37 = vpop.permute.xlu0 %7960  ;;  %v8512_v32 = vsel %vm1656_vm14, %v16903_v38, %v7667_v14  ;;  %v8023_v14 = vor.u32 %v8022_v49, %v8021_v54 }
 0x50f   : > { %8175 = vrot.lane.b32.xlu1 %v15347_v9, %s10727_s17  ;;  %v8544_v38 = vsel %vm6059_vm5, %v8512_v32, %v7749_v2 }
 0x510   : > { %8483 = vrot.lane.b32.xlu0 %v8432_v26, %s10728_s20  ;;  %v15424_v49 = vsel %vm1711_vm15, %v15295_v19, %v8023_v14 }
 0x511   : > { %v7851_v50 = vpop.permute.xlu1 %7850 }
 0x512   : > { %v15366_v11 = vpop.permute.xlu0 %8375 }
 0x513   : > { %16896 = vst [vmem:[#allocation65_spill] sm:$0xff] %v15366_v11  ;;  %7676 = vrot.lane.b32.xlu1 %v7603_v51, %s10722_s10  ;;  %v15392_v51 = vor.u32 %v7815_v29, %v7814_v27 }
 0x514   : > { %7970 = vrot.lane.b32.xlu0 %v15376_v39, %s10727_s17 }
 0x515   : > { %v15382_v63 = vpop.permute.xlu1 %8099  ;;  %v7817_v29 = vsel %vm7774_vm11, %v15281_v7, %v15392_v51  ;;  %v7728_v7 = vrot.slane %v14592_v16, 1 }
 0x516   : > { %16900 = vst [vmem:[#allocation67_spill] sm:$0xff] %v15382_v63  ;;  %v7895_v26 = vpop.permute.xlu0 %7894 }
 0x517   : > { %v8628_v42 = vsel %vm1656_vm14, %v16902_v4, %v7895_v26  ;;  %7860 = vrot.lane.b32.xlu1 %v7813_v60, %s10728_s20  ;;  %v8227_v26 = vrot.slane %v14720_v41, 3  ;;  %v8228_v60 = vrot.slane %v14717_v23, 4 }
 0x518   : > { %8385 = vrot.lane.b32.xlu0 %v8354_v47, %s10727_s17  ;;  %v8672_v61 = vsel %vm6059_vm5, %v8628_v42, %v7961_v37  ;;  %v8579_v37 = vsel %vm6102_vm9, %v8544_v38, %v7851_v50  ;;  %v10692_v47 = vld [vmem:[%s16409_s5 + $0xd8] sm:$0xff]   ;;  %v16908_v42 = vrot.slane %v14568_v3, 1  ;;  %v16911_v38 = vld [vmem:[#allocation24_spill] sm:$0xff] }
 0x519   : > { %v15399_v33 = vpop.permute.xlu1 %8265  ;;  %10135 = vmatprep.subr.bf16.mxu0 %v10692_v47  ;;  %v15426_v2 = vor.u32 %v8228_v60, %v8227_v26 }
 0x51a   : > { %16904 = vst [vmem:[#allocation14_spill] sm:$0xff] %v15399_v33  ;;  %v8060_v21 = vpop.permute.xlu0 %8059  ;;  %v15437_v54 = vsel %vm16909_vm7, %v16908_v42, %v7728_v7  ;;  %v16914_v42 = vld [vmem:[#allocation20_spill] sm:$0xff]  ;;  %vm16942_vm7 = vmmov %vm16863_vm2 }
 0x51b   : > { %v8707_v27 = vsel %vm6102_vm9, %v8672_v61, %v8060_v21  ;;  %8109 = vrot.lane.b32.xlu1 %v8020_v18, %s10722_s10  ;;  %v10693_v21 = vld [vmem:[%s16409_s5 + $0x98] sm:$0xff]   ;;  %v15445_v19 = vsel %vm8195_vm1, %v15317_v12, %v15426_v2  ;;  %v7606_v61 = vor.u32 %v15207_v22, %v7602_v6  ;;  %v7819_v34 = vrot.slane %v16914_v42, 2 }
 0x51c   : > { %9313 = vmatprep.mubr.bf16.mxu0 %v8707_v27  ;;  %7904 = vrot.lane.b32.xlu0 %v7817_v29, %s10722_s10  ;;  %v8026_v17 = vrot.slane %v16914_v42, 3 }
 0x51d   : > { %9314 = vmatmul.mubr.bf16.gmra.mrb[96].mxu0 %v8579_v37  ;;  %v7751_v18 = vpop.permute.xlu1 %7750  ;;  %v16912_v37 = vld [vmem:[#allocation8_spill] sm:$0xff] }
 0x51e   : > { %v15418_v4 = vpop.permute.xlu0 %8309  ;;  %10136 = vmatpush3.bf16.msra.mxu0 %v10693_v21  ;;  %v7940_v47 = vrot.slane %v16912_v37, 2  ;;  %v16913_v21 = vld [vmem:[#allocation21_spill] sm:$0xff]  ;;  %v7730_v6 = vrot.slane %v16912_v37, 1 }
 0x51f   : > { %16905 = vst [vmem:[#allocation3_spill] sm:$0xff] %v15418_v4  ;;  %8275 = vrot.lane.b32.xlu1 %v8226_v62, %s10728_s20  ;;  %v7610_v62 = vrot.slane %v14717_v23, 1  ;;  %v8436_v23 = vsel %vm8405_vm6, %v15339_v0, %v16911_v38  ;;  %v7818_v12 = vrot.slane %v16913_v21, 1  ;;  %v10694_v0 = vld [vmem:[%s16409_s5 + $0xe0] sm:$0xff]   ;;  %v16916_v38 = vrot.slane %v14592_v16, 2  ;;  %vm16919_vm6 = vmmov %vm16832_vm3 }
 0x520   : > { %8069 = vrot.lane.b32.xlu0 %v15424_v49, %s10728_s20  ;;  %10137 = vmatprep.subr.bf16.mxu0 %v10694_v0  ;;  %v15481_v8 = vsel %vm16919_vm6, %v7728_v7, %v7730_v6  ;;  %vm16931_vm3 = vmmov %vm16863_vm2 }
 0x521   : > { %v15430_v32 = vpop.permute.xlu1 %8167  ;;  %v7611_v27 = vsel %vm16910_vm8, %v7606_v61, %v7610_v62  ;;  %v8025_v61 = vrot.slane %v16913_v21, 2  ;;  %v7820_v39 = vor.u32 %v7819_v34, %v7818_v12  ;;  %v16921_v12 = vld [vmem:[#allocation4_spill] sm:$0xff]  ;;  %v7614_v7 = vor.u32 %v14720_v41, %v7610_v62  ;;  %v16925_v62 = vld [vmem:[#allocation27_spill] sm:$0xff]  ;;  %vm16938_vm4 = vmmov %vm16919_vm6 }
 0x522   : > { %16906 = vst [vmem:[#allocation68_spill] sm:$0xff] %v15430_v32  ;;  %v15432_v50 = vpop.permute.xlu0 %8475  ;;  %vm16947_vm8 = vmmov %vm16938_vm4 }
 0x523   : > { %16907 = vst [vmem:[#allocation69_spill] sm:$0xff] %v15432_v50  ;;  %7760 = vrot.lane.b32.xlu1 %v15437_v54, %s10727_s17  ;;  %v8027_v32 = vor.u32 %v8026_v17, %v8025_v61  ;;  %v7821_v34 = vsel %vm7774_vm11, %v15392_v51, %v7820_v39  ;;  %vm16949_vm6 = vmmov %vm16863_vm2 }
 0x524   : > { %8319 = vrot.lane.b32.xlu0 %v15445_v19, %s10722_s10 }
 0x525   : > { %v7669_v26 = vpop.permute.xlu1 %7668 }
 0x526   : > { %v7963_v60 = vpop.permute.xlu0 %7962  ;;  %v8514_v0 = vsel %vm1656_vm14, %v16921_v12, %v7669_v26  ;;  %v16924_v12 = vld [vmem:[#allocation25_spill] sm:$0xff] }
 0x527   : > { %7678 = vrot.lane.b32.xlu1 %v7611_v27, %s10722_s10  ;;  %v10695_v27 = vld [vmem:[%s16409_s5 + $0xa0] sm:$0xff]   ;;  %v8546_v26 = vsel %vm6059_vm5, %v8514_v0, %v7751_v18  ;;  %v7822_v41 = vrot.slane %v16924_v12, 1 }
 0x528   : > { %8485 = vrot.lane.b32.xlu0 %v8436_v23, %s10728_s20  ;;  %v15474_v23 = vsel %vm7920_vm13, %v16916_v38, %v7940_v47  ;;  %10138 = vmatpush3.bf16.msra.mxu0 %v10695_v27  ;;  %v16923_v38 = vld [vmem:[#allocation16_spill] sm:$0xff] }
 0x529   : > { %v7853_v5 = vpop.permute.xlu1 %7852  ;;  %16917 = vst [vmem:[#allocation8_spill] sm:$0xff] %v15474_v23 }
 0x52a   : > { %v15459_v22 = vpop.permute.xlu0 %8377 }
 0x52b   : > { %16915 = vst [vmem:[#allocation24_spill] sm:$0xff] %v15459_v22  ;;  %7862 = vrot.lane.b32.xlu1 %v7817_v29, %s10728_s20  ;;  %v7618_v29 = vrot.slane %v16914_v42, 1  ;;  %v16920_v22 = vld [vmem:[#allocation18_spill] sm:$0xff] }
 0x52c   : > { %7972 = vrot.lane.b32.xlu0 %v15474_v23, %s10727_s17  ;;  %v7942_v23 = vrot.slane %v16923_v38, 2 }
 0x52d   : > { %v15478_v31 = vpop.permute.xlu1 %8101 }
 0x52e   : > { %16918 = vst [vmem:[#allocation21_spill] sm:$0xff] %v15478_v31  ;;  %v7897_v9 = vpop.permute.xlu0 %7896  ;;  %v15517_v18 = vsel %vm7920_vm13, %v7940_v47, %v7942_v23 }
 0x52f   : > { %v8631_v33 = vsel %vm1656_vm14, %v16920_v22, %v7897_v9  ;;  %7762 = vrot.lane.b32.xlu1 %v15481_v8, %s10727_s17  ;;  %v15498_v9 = vsel %vm1711_vm15, %v8023_v14, %v8027_v32  ;;  %v7619_v22 = vsel %vm16863_vm2, %v7614_v7, %v7618_v29  ;;  %v7732_v7 = vrot.slane %v16923_v38, 1  ;;  %16927 = vst [vmem:[#allocation4_spill] sm:$0xff] %v15517_v18 }
 0x530   : > { %7906 = vrot.lane.b32.xlu0 %v7821_v34, %s10722_s10  ;;  %v8674_v61 = vsel %vm6059_vm5, %v8631_v33, %v7963_v60  ;;  %v8582_v33 = vsel %vm6102_vm9, %v8546_v26, %v7853_v5  ;;  %v10696_v5 = vld [vmem:[%s16409_s5 + $0xe8] sm:$0xff]  }
 0x531   : > { %v15494_v27 = vpop.permute.xlu1 %8267  ;;  %10139 = vmatprep.subr.bf16.mxu0 %v10696_v5  ;;  %v16932_v5 = vld [vmem:[#allocation17_spill] sm:$0xff] }
 0x532   : > { %16922 = vst [vmem:[#allocation20_spill] sm:$0xff] %v15494_v27  ;;  %v8062_v17 = vpop.permute.xlu0 %8061  ;;  %v7823_v27 = vrot.slane %v16925_v62, 2 }
 0x533   : > { %v8710_v51 = vsel %vm6102_vm9, %v8674_v61, %v8062_v17  ;;  %7680 = vrot.lane.b32.xlu1 %v7619_v22, %s10722_s10  ;;  %v8029_v17 = vrot.slane %v16924_v12, 2  ;;  %v8030_v61 = vrot.slane %v16925_v62, 3  ;;  %v10697_v22 = vld [vmem:[%s16409_s5 + $0xa8] sm:$0xff]  }
 0x534   : > { %9321 = vmatprep.mubr.bf16.mxu0 %v8710_v51  ;;  %8071 = vrot.lane.b32.xlu0 %v15498_v9, %s10728_s20  ;;  %v7824_v0 = vor.u32 %v7823_v27, %v7822_v41  ;;  %v15534_v27 = vsel %vm16930_vm12, %v7730_v6, %v7732_v7  ;;  %v7626_v51 = vrot.slane %v16925_v62, 1 }
 0x535   : > { %9322 = vmatmul.mubr.bf16.gmra.mrb[100].mxu0 %v8582_v33  ;;  %v15510_v14 = vpop.permute.xlu1 %7752  ;;  %v8031_v41 = vor.u32 %v8030_v61, %v8029_v17  ;;  %v7622_v33 = vor.u32 %v16913_v21, %v7618_v29 }
 0x536   : > { %v15512_v60 = vpop.permute.xlu0 %8311  ;;  %v7825_v26 = vsel %vm7774_vm11, %v7820_v39, %v7824_v0  ;;  %10140 = vmatpush3.bf16.msra.mxu0 %v10697_v22  ;;  %v16934_v39 = vld [vmem:[#allocation31_spill] sm:$0xff]  ;;  %v7734_v22 = vrot.slane %v16932_v5, 1 }
 0x537   : > { %16926 = vst [vmem:[#allocation18_spill] sm:$0xff] %v15512_v60  ;;  %7864 = vrot.lane.b32.xlu1 %v7821_v34, %s10728_s20  ;;  %v7627_v31 = vsel %vm16931_vm3, %v7622_v33, %v7626_v51  ;;  %v15544_v6 = vsel %vm1711_vm15, %v8027_v32, %v8031_v41  ;;  %v7826_v60 = vrot.slane %v16933_v13, 1  ;;  %v7827_v17 = vrot.slane %v16934_v39, 2 }
 0x538   : > { %7974 = vrot.lane.b32.xlu0 %v15517_v18, %s10727_s17  ;;  %v8033_v33 = vrot.slane %v16933_v13, 2  ;;  %v8034_v32 = vrot.slane %v16934_v39, 3  ;;  %v7634_v36 = vrot.slane %v16934_v39, 1 }
 0x539   : > { %v15529_v34 = vpop.permute.xlu1 %8169  ;;  %v7828_v35 = vor.u32 %v7827_v17, %v7826_v60  ;;  %v10698_v60 = vld [vmem:[%s16409_s5 + $0xf0] sm:$0xff]  }
 0x53a   : > { %16928 = vst [vmem:[#allocation16_spill] sm:$0xff] %v15529_v34  ;;  %v15531_v47 = vpop.permute.xlu0 %8477  ;;  %v8035_v11 = vor.u32 %v8034_v32, %v8033_v33  ;;  %10141 = vmatprep.subr.bf16.mxu0 %v10698_v60 }
 0x53b   : > { %16929 = vst [vmem:[#allocation25_spill] sm:$0xff] %v15531_v47  ;;  %7764 = vrot.lane.b32.xlu1 %v15534_v27, %s10727_s17  ;;  %v7944_v47 = vrot.slane %v16932_v5, 2 }
 0x53c   : > { %7908 = vrot.lane.b32.xlu0 %v7825_v26, %s10722_s10  ;;  %v15588_v32 = vsel %vm1711_vm15, %v8031_v41, %v8035_v11 }
 0x53d   : > { %v7671_v18 = vpop.permute.xlu1 %7670 }
 0x53e   : > { %v7965_v34 = vpop.permute.xlu0 %7964 }
 0x53f   : > { %7682 = vrot.lane.b32.xlu1 %v7627_v31, %s10722_s10  ;;  %v15559_v31 = vsel %vm7920_vm13, %v7942_v23, %v7944_v47  ;;  %v7829_v23 = vsel %vm7774_vm11, %v7824_v0, %v7828_v35 }
 0x540   : > { %8073 = vrot.lane.b32.xlu0 %v15544_v6, %s10728_s20  ;;  %16936 = vst [vmem:[#allocation17_spill] sm:$0xff] %v15559_v31 }
 0x541   : > { %v7855_v61 = vpop.permute.xlu1 %7854 }
 0x542   : > { %v15552_v29 = vpop.permute.xlu0 %8379 }
 0x543   : > { %16935 = vst [vmem:[#allocation27_spill] sm:$0xff] %v15552_v29  ;;  %7866 = vrot.lane.b32.xlu1 %v7825_v26, %s10728_s20  ;;  %v15566_v29 = vsel %vm16938_vm4, %v7732_v7, %v7734_v22  ;;  %v16940_v26 = vld [vmem:[#allocation6_spill] sm:$0xff]  ;;  %v7630_v7 = vor.u32 %v16924_v12, %v7626_v51 }
 0x544   : > { %7976 = vrot.lane.b32.xlu0 %v15559_v31, %s10727_s17  ;;  %v8516_v17 = vsel %vm1656_vm14, %v16940_v26, %v7671_v18  ;;  %v16943_v18 = vld [vmem:[#allocation22_spill] sm:$0xff] }
 0x545   : > { %v15563_v63 = vpop.permute.xlu1 %8103  ;;  %v7635_v31 = vsel %vm16942_vm7, %v7630_v7, %v7634_v36  ;;  %v7946_v26 = vrot.slane %v16943_v18, 2  ;;  %v16517_v7 = vrot.slane %v16943_v18, 1 }
 0x546   : > { %16937 = vst [vmem:[#allocation32_spill] sm:$0xff] %v15563_v63  ;;  %v7899_v50 = vpop.permute.xlu0 %7898  ;;  %v8548_v63 = vsel %vm6059_vm5, %v8516_v17, %v15510_v14 }
 0x547   : > { %v8634_v4 = vsel %vm1656_vm14, %v16939_v24, %v7899_v50  ;;  %7766 = vrot.lane.b32.xlu1 %v15566_v29, %s10727_s17  ;;  %v10699_v24 = vld [vmem:[%s16409_s5 + $0xb0] sm:$0xff]   ;;  %v15606_v14 = vsel %vm7920_vm13, %v7944_v47, %v7946_v26 }
 0x548   : > { %7910 = vrot.lane.b32.xlu0 %v7829_v23, %s10722_s10  ;;  %v8676_v0 = vsel %vm6059_vm5, %v8634_v4, %v7965_v34  ;;  %10142 = vmatpush3.bf16.msra.mxu0 %v10699_v24  ;;  %v8585_v4 = vsel %vm6102_vm9, %v8548_v63, %v7855_v61  ;;  %16946 = vst [vmem:[#allocation28_spill] sm:$0xff] %v15606_v14  ;;  %v8038_v24 = vrot.slane %v16945_v58, 3 }
 0x549   : > { %v15584_v50 = vpop.permute.xlu1 %8269 }
 0x54a   : > { %16941 = vst [vmem:[#allocation31_spill] sm:$0xff] %v15584_v50  ;;  %v8064_v33 = vpop.permute.xlu0 %8063  ;;  %v16944_v50 = vld [vmem:[#allocation35_spill] sm:$0xff] }
 0x54b   : > { %v8713_v51 = vsel %vm6102_vm9, %v8676_v0, %v8064_v33  ;;  %7684 = vrot.lane.b32.xlu1 %v7635_v31, %s10722_s10  ;;  %v7830_v60 = vrot.slane %v16944_v50, 1  ;;  %v8037_v17 = vrot.slane %v16944_v50, 2  ;;  %v15619_v33 = vsel %vm16947_vm8, %v7734_v22, %v16517_v7  ;;  %v10700_v0 = vld [vmem:[%s16409_s5 + $0xf8] sm:$0xff]  }
 0x54c   : > { %9329 = vmatprep.mubr.bf16.mxu0 %v8713_v51  ;;  %8075 = vrot.lane.b32.xlu0 %v15588_v32, %s10728_s20  ;;  %v10701_v51 = vld [vmem:[%s16409_s5 + $0xb8] sm:$0xff]  }
 0x54d   : > { %9330 = vmatmul.mubr.bf16.gmra.mrb[104].mxu0 %v8585_v4  ;;  %v7755_v34 = vpop.permute.xlu1 %7754  ;;  %v7832_v31 = vor.u32 %v7831_v43, %v7830_v60  ;;  %v8039_v47 = vor.u32 %v8038_v24, %v8037_v17  ;;  %v16948_v4 = vrot.slane %v16945_v58, 1  ;;  %10143 = vmatprep.subr.bf16.mxu0 %v10700_v0  ;;  %v16950_v24 = vrot.slane %v14858_v1, 2 }
 0x54e   : > { %v15601_v41 = vpop.permute.xlu0 %8313  ;;  %10144 = vmatpush3.bf16.msra.mxu0 %v10701_v51  ;;  %v8232_v51 = vrot.slane %v16914_v42, 4 }
 0x54f   : > { %7868 = vrot.lane.b32.xlu1 %v7829_v23, %s10728_s20  ;;  %v7833_v43 = vsel %vm7774_vm11, %v7828_v35, %v7832_v31  ;;  %v7638_v23 = vor.u32 %v16933_v13, %v7634_v36  ;;  %v15636_v35 = vsel %vm1711_vm15, %v8035_v11, %v8039_v47  ;;  %v15681_v42 = vsel %vm1711_vm15, %v8039_v47, %v15040_v55  ;;  %vm16966_vm15 = vmmov %vm16863_vm2 }
 0x550   : > { %7978 = vrot.lane.b32.xlu0 %v15606_v14, %s10727_s17  ;;  %v15647_v14 = vsel %vm7920_vm13, %v7946_v26, %v16950_v24  ;;  %v8231_v26 = vrot.slane %v16913_v21, 3  ;;  %v8355_v47 = vrot.slane %v16912_v37, 4  ;;  %vm16975_vm13 = vmmov %vm16938_vm4 }
 0x551   : > { %v15612_v63 = vpop.permute.xlu1 %8171  ;;  %v7643_v7 = vsel %vm16949_vm6, %v7638_v23, %v16948_v4  ;;  %16951 = vst [vmem:[#allocation6_spill] sm:$0xff] %v15647_v14  ;;  %v8145_v23 = vrot.slane %v14592_v16, 3  ;;  %v16952_v4 = vld [vmem:[#allocation9_spill] sm:$0xff] }
 0x552   : > { %v15614_v61 = vpop.permute.xlu0 %8479 }
 0x553   : > { %7768 = vrot.lane.b32.xlu1 %v15619_v33, %s10727_s17 }
 0x554   : > { %7912 = vrot.lane.b32.xlu0 %v7833_v43, %s10722_s10 }
 0x555   : > { %v7673_v22 = vpop.permute.xlu1 %7672 }
 0x556   : > { %v7967_v60 = vpop.permute.xlu0 %7966  ;;  %v8518_v24 = vsel %vm1656_vm14, %v16952_v4, %v7673_v22  ;;  %v8233_v22 = vor.u32 %v8232_v51, %v8231_v26  ;;  %v16955_v51 = vrot.slane %v14592_v16, 4 }
 0x557   : > { %7686 = vrot.lane.b32.xlu1 %v7643_v7, %s10722_s10 }
 0x558   : > { %8077 = vrot.lane.b32.xlu0 %v15636_v35, %s10728_s20  ;;  %v8234_v55 = vsel %vm8195_vm1, %v15426_v2, %v8233_v22  ;;  %v8236_v2 = vrot.slane %v16925_v62, 4  ;;  %v8357_v62 = vrot.slane %v16923_v38, 4 }
 0x559   : > { %v7857_v36 = vpop.permute.xlu1 %7856 }
 0x55a   : > { %v15641_v17 = vpop.permute.xlu0 %8381 }
 0x55b   : > { %7870 = vrot.lane.b32.xlu1 %v7833_v43, %s10728_s20  ;;  %v15660_v43 = vsel %vm7774_vm11, %v7832_v31, %v15038_v15  ;;  %v8550_v31 = vsel %vm6059_vm5, %v8518_v24, %v7755_v34  ;;  %v8235_v24 = vrot.slane %v16924_v12, 3  ;;  %vm16968_vm11 = vmmov %vm16938_vm4 }
 0x55c   : > { %7980 = vrot.lane.b32.xlu0 %v15647_v14, %s10727_s17 }
 0x55d   : > { %v15651_v11 = vpop.permute.xlu1 %8105 }
 0x55e   : > { %v7901_v7 = vpop.permute.xlu0 %7900 }
 0x55f   : > { %v8637_v0 = vsel %vm1656_vm14, %v14910_v46, %v7901_v7  ;;  %8111 = vrot.lane.b32.xlu1 %v15424_v49, %s10722_s10  ;;  %v16953_v49 = vrot.slane %v14568_v3, 3 }
 0x560   : > { %7914 = vrot.lane.b32.xlu0 %v15660_v43, %s10722_s10  ;;  %v8678_v7 = vsel %vm6059_vm5, %v8637_v0, %v7967_v60  ;;  %v8588_v60 = vsel %vm6102_vm9, %v8550_v31, %v7857_v36  ;;  %v8147_v36 = vrot.slane %v16912_v37, 3 }
 0x561   : > { %v15668_v14 = vpop.permute.xlu1 %8271  ;;  %v15674_v15 = vsel %vm8129_vm0, %v16953_v49, %v8145_v23 }
 0x562   : > { %v8066_v46 = vpop.permute.xlu0 %8065  ;;  %v15709_v49 = vsel %vm8129_vm0, %v8145_v23, %v8147_v36 }
 0x563   : > { %v8716_v21 = vsel %vm6102_vm9, %v8678_v7, %v8066_v46  ;;  %8177 = vrot.lane.b32.xlu1 %v15674_v15, %s10727_s17  ;;  %16956 = vst [vmem:[#allocation35_spill] sm:$0xff] %v15709_v49 }
 0x564   : > { %9337 = vmatprep.mubr.bf16.mxu0 %v8716_v21  ;;  %8079 = vrot.lane.b32.xlu0 %v15681_v42, %s10728_s20  ;;  %v8237_v21 = vor.u32 %v8236_v2, %v8235_v24  ;;  %v8358_v2 = vsel %vm8339_vm10, %v8355_v47, %v8357_v62 }
 0x565   : > { %9338 = vmatmul.mubr.bf16.gmra.mrb[108].mxu0 %v8588_v60  ;;  %v7757_v0 = vpop.permute.xlu1 %7756 }
 0x566   : > { %v15687_v4 = vpop.permute.xlu0 %8315  ;;  %v8238_v12 = vsel %vm8195_vm1, %v8233_v22, %v8237_v21  ;;  %v8240_v22 = vrot.slane %v16934_v39, 4 }
 0x567   : > { %8277 = vrot.lane.b32.xlu1 %v15445_v19, %s10728_s20  ;;  %v8356_v19 = vsel %vm8339_vm10, %v16955_v51, %v8355_v47  ;;  %v16961_v47 = vld [vmem:[#allocation33_spill] sm:$0xff] }
 0x568   : > { %8321 = vrot.lane.b32.xlu0 %v8234_v55, %s10722_s10 }
 0x569   : > { %v15695_v34 = vpop.permute.xlu1 %8173 }
 0x56a   : > { %16954 = vst [vmem:[#allocation22_spill] sm:$0xff] %v15695_v34  ;;  %v15697_v26 = vpop.permute.xlu0 %8481 }
 0x56b   : > { %8113 = vrot.lane.b32.xlu1 %v15498_v9, %s10722_s10  ;;  %v16957_v9 = vld [vmem:[#allocation26_spill] sm:$0xff] }
 0x56c   : > { %8387 = vrot.lane.b32.xlu0 %v8356_v19, %s10727_s17  ;;  %v8149_v19 = vrot.slane %v16923_v38, 3 }
 0x56d   : > { %v7675_v46 = vpop.permute.xlu1 %7674 }
 0x56e   : > { %v7969_v7 = vpop.permute.xlu0 %7968 }
 0x56f   : > { %8179 = vrot.lane.b32.xlu1 %v15709_v49, %s10727_s17 }
 0x570   : > { %8487 = vrot.lane.b32.xlu0 %v16957_v9, %s10728_s20  ;;  %v16960_v9 = vld [vmem:[#allocation10_spill] sm:$0xff] }
 0x571   : > { %v7859_v31 = vpop.permute.xlu1 %7858  ;;  %v8520_v49 = vsel %vm1656_vm14, %v16960_v9, %v7675_v46  ;;  %v16962_v9 = vld [vmem:[#allocation37_spill] sm:$0xff] }
 0x572   : > { %v15715_v60 = vpop.permute.xlu0 %8383 }
 0x573   : > { %16958 = vst [vmem:[#allocation34_spill] sm:$0xff] %v15715_v60  ;;  %8279 = vrot.lane.b32.xlu1 %v8234_v55, %s10728_s20  ;;  %v8239_v55 = vrot.slane %v16933_v13, 3  ;;  %v8552_v13 = vsel %vm6059_vm5, %v8520_v49, %v7757_v0 }
 0x574   : > { %8323 = vrot.lane.b32.xlu0 %v8238_v12, %s10722_s10  ;;  %v8591_v46 = vsel %vm6102_vm9, %v8552_v13, %v7859_v31  ;;  %v8153_v13 = vrot.slane %v16943_v18, 3 }
 0x575   : > { %v15721_v23 = vpop.permute.xlu1 %8107  ;;  %v8241_v39 = vor.u32 %v8240_v22, %v8239_v55 }
 0x576   : > { %16959 = vst [vmem:[#allocation9_spill] sm:$0xff] %v15721_v23  ;;  %v7903_v51 = vpop.permute.xlu0 %7902 }
 0x577   : > { %v8640_v24 = vsel %vm1656_vm14, %v15331_v53, %v7903_v51  ;;  %8115 = vrot.lane.b32.xlu1 %v15544_v6, %s10722_s10  ;;  %v15738_v53 = vsel %vm8129_vm0, %v8147_v36, %v8149_v19  ;;  %v8242_v36 = vsel %vm8195_vm1, %v8237_v21, %v8241_v39 }
 0x578   : > { %8389 = vrot.lane.b32.xlu0 %v8358_v2, %s10727_s17  ;;  %v8680_v60 = vsel %vm6059_vm5, %v8640_v24, %v7969_v7  ;;  %v8243_v24 = vrot.slane %v16944_v50, 3  ;;  %v8361_v50 = vrot.slane %v16943_v18, 4 }
 0x579   : > { %v15734_v34 = vpop.permute.xlu1 %8273 }
 0x57a   : > { %v8068_v23 = vpop.permute.xlu0 %8067 }
 0x57b   : > { %v8719_v6 = vsel %vm6102_vm9, %v8680_v60, %v8068_v23  ;;  %8181 = vrot.lane.b32.xlu1 %v15738_v53, %s10727_s17  ;;  %v8359_v60 = vrot.slane %v16932_v5, 4  ;;  %v8151_v23 = vrot.slane %v16932_v5, 3 }
 0x57c   : > { %9345 = vmatprep.mubr.bf16.mxu0 %v8719_v6  ;;  %8489 = vrot.lane.b32.xlu0 %v16961_v47, %s10728_s20 }
 0x57d   : > { %9346 = vmatmul.mubr.bf16.gmra.mrb[112].mxu0 %v8591_v46  ;;  %v7759_v51 = vpop.permute.xlu1 %7758  ;;  %v8360_v31 = vsel %vm8339_vm10, %v8357_v62, %v8359_v60  ;;  %v15765_v55 = vsel %vm8129_vm0, %v8149_v19, %v8151_v23  ;;  %v8362_v46 = vsel %vm8339_vm10, %v8359_v60, %v8361_v50  ;;  %v8363_v60 = vrot.slane %v14858_v1, 4 }
 0x57e   : > { %v15747_v7 = vpop.permute.xlu0 %8317 }
 0x57f   : > { %8281 = vrot.lane.b32.xlu1 %v8238_v12, %s10728_s20  ;;  %v8244_v12 = vrot.slane %v16945_v58, 4 }
 0x580   : > { %8325 = vrot.lane.b32.xlu0 %v8242_v36, %s10722_s10 }
 0x581   : > { %v15753_v0 = vpop.permute.xlu1 %8175  ;;  %v8245_v22 = vor.u32 %v8244_v12, %v8243_v24  ;;  %v15790_v12 = vsel %vm8129_vm0, %v8151_v23, %v8153_v13  ;;  %v8155_v23 = vrot.slane %v14858_v1, 3 }
 0x582   : > { %v15755_v49 = vpop.permute.xlu0 %8483 }
 0x583   : > { %8117 = vrot.lane.b32.xlu1 %v15588_v32, %s10722_s10  ;;  %v8246_v58 = vsel %vm8195_vm1, %v8241_v39, %v8245_v22 }
 0x584   : > { %8391 = vrot.lane.b32.xlu0 %v8360_v31, %s10727_s17 }
 0x585   : > { %v7677_v21 = vpop.permute.xlu1 %7676 }
 0x586   : > { %v7971_v2 = vpop.permute.xlu0 %7970  ;;  %v8522_v39 = vsel %vm1656_vm14, %v14525_v52, %v7677_v21  ;;  %v16963_v52 = vld [vmem:[#allocation40_spill] sm:$0xff] }
 0x587   : > { %8183 = vrot.lane.b32.xlu1 %v15765_v55, %s10727_s17 }
 0x588   : > { %8491 = vrot.lane.b32.xlu0 %v16962_v9, %s10728_s20 }
 0x589   : > { %v7861_v32 = vpop.permute.xlu1 %7860 }
 0x58a   : > { %v8386_v62 = vpop.permute.xlu0 %8385 }
 0x58b   : > { %8283 = vrot.lane.b32.xlu1 %v8242_v36, %s10728_s20 }
 0x58c   : > { %8327 = vrot.lane.b32.xlu0 %v8246_v58, %s10722_s10 }
 0x58d   : > { %v15775_v6 = vpop.permute.xlu1 %8109 }
 0x58e   : > { %v7905_v19 = vpop.permute.xlu0 %7904 }
 0x58f   : > { %v8643_v47 = vsel %vm1656_vm14, %v15437_v54, %v7905_v19  ;;  %8119 = vrot.lane.b32.xlu1 %v15636_v35, %s10722_s10  ;;  %v8554_v35 = vsel %vm6059_vm5, %v8522_v39, %v7759_v51  ;;  %v8364_v51 = vsel %vm8339_vm10, %v8361_v50, %v8363_v60  ;;  %v15807_v39 = vsel %vm8129_vm0, %v8153_v13, %v8155_v23 }
 0x590   : > { %8393 = vrot.lane.b32.xlu0 %v8362_v46, %s10727_s17  ;;  %v8682_v24 = vsel %vm6059_vm5, %v8643_v47, %v7971_v2  ;;  %v8594_v21 = vsel %vm6102_vm9, %v8554_v35, %v7861_v32 }
 0x591   : > { %v15786_v36 = vpop.permute.xlu1 %8275 }
 0x592   : > { %v8070_v31 = vpop.permute.xlu0 %8069 }
 0x593   : > { %v8722_v54 = vsel %vm6102_vm9, %v8682_v24, %v8070_v31  ;;  %8185 = vrot.lane.b32.xlu1 %v15790_v12, %s10727_s17  ;;  %v16964_v31 = vrot.slane %v14947_v48, 1  ;;  %v16965_v24 = vld [vmem:[#allocation39_spill] sm:$0xff] }
 0x594   : > { %9353 = vmatprep.mubr.bf16.mxu0 %v8722_v54  ;;  %8493 = vrot.lane.b32.xlu0 %v16963_v52, %s10728_s20 }
 0x595   : > { %9354 = vmatmul.mubr.bf16.gmra.mrb[116].mxu0 %v8594_v21  ;;  %v7761_v2 = vpop.permute.xlu1 %7760  ;;  %v8250_v21 = vsel %vm8195_vm1, %v8245_v22, %v15044_v28 }
 0x596   : > { %v8320_v9 = vpop.permute.xlu0 %8319 }
 0x597   : > { %v8893_v19 = vsel %vm1656_vm14, %v15674_v15, %v8320_v9  ;;  %8285 = vrot.lane.b32.xlu1 %v8246_v58, %s10728_s20  ;;  %v7651_v15 = vsel %vm16966_vm15, %v16965_v24, %v16964_v31  ;;  %v7738_v58 = vrot.slane %v14858_v1, 1 }
 0x598   : > { %8395 = vrot.lane.b32.xlu0 %v8364_v51, %s10727_s17  ;;  %v8934_v32 = vsel %vm6059_vm5, %v8893_v19, %v8386_v62  ;;  %v16967_v62 = vrot.slane %v16943_v18, 1 }
 0x599   : > { %v7679_v47 = vpop.permute.xlu1 %7678 }
 0x59a   : > { %v8486_v46 = vpop.permute.xlu0 %8485  ;;  %v15826_v35 = vsel %vm16968_vm11, %v16967_v62, %v7738_v58  ;;  %v16972_v62 = vrot.slane %v14932_v56, 4 }
 0x59b   : > { %8187 = vrot.lane.b32.xlu1 %v15807_v39, %s10727_s17  ;;  %v15818_v50 = vsel %vm6102_vm9, %v8934_v32, %v8486_v46  ;;  %v16969_v32 = vrot.slane %v14932_v56, 3 }
 0x59c   : > { %7688 = vrot.lane.b32.xlu0 %v7651_v15, %s10722_s10  ;;  %v16971_v15 = vld [vmem:[#allocation41_spill] sm:$0xff] }
 0x59d   : > { %v7863_v54 = vpop.permute.xlu1 %7862  ;;  %v15842_v31 = vsel %vm8129_vm0, %v8155_v23, %v16969_v32 }
 0x59e   : > { %v7973_v13 = vpop.permute.xlu0 %7972 }
 0x59f   : > { %8121 = vrot.lane.b32.xlu1 %v15681_v42, %s10722_s10  ;;  %v8524_v42 = vsel %vm1656_vm14, %v14568_v3, %v7679_v47  ;;  %v16970_v3 = vld [vmem:[#allocation42_spill] sm:$0xff] }
 0x5a0   : > { %7770 = vrot.lane.b32.xlu0 %v15826_v35, %s10727_s17 }
 0x5a1   : > { %v7763_v48 = vpop.permute.xlu1 %7762 }
 0x5a2   : > { %v7907_v52 = vpop.permute.xlu0 %7906 }
 0x5a3   : > { %v8646_v9 = vsel %vm1656_vm14, %v15481_v8, %v7907_v52  ;;  %8287 = vrot.lane.b32.xlu1 %v8250_v21, %s10728_s20  ;;  %v8556_v8 = vsel %vm6059_vm5, %v8524_v42, %v7761_v2  ;;  %v8366_v52 = vsel %vm8339_vm10, %v8363_v60, %v16972_v62  ;;  %v16976_v60 = vld [vmem:[#allocation45_spill] sm:$0xff] }
 0x5a4   : > { %8329 = vrot.lane.b32.xlu0 %v8250_v21, %s10722_s10  ;;  %v8684_v46 = vsel %vm6059_vm5, %v8646_v9, %v7973_v13  ;;  %v8597_v22 = vsel %vm6102_vm9, %v8556_v8, %v7863_v54  ;;  %v16973_v54 = vld [vmem:[#allocation44_spill] sm:$0xff] }
 0x5a5   : > { %v7681_v19 = vpop.permute.xlu1 %7680 }
 0x5a6   : > { %v8072_v51 = vpop.permute.xlu0 %8071  ;;  %v8526_v21 = vsel %vm1656_vm14, %v14592_v16, %v7681_v19 }
 0x5a7   : > { %v8725_v28 = vsel %vm6102_vm9, %v8684_v46, %v8072_v51  ;;  %8189 = vrot.lane.b32.xlu1 %v15842_v31, %s10727_s17  ;;  %v8558_v32 = vsel %vm6059_vm5, %v8526_v21, %v7763_v48 }
 0x5a8   : > { %9361 = vmatprep.mubr.bf16.mxu0 %v8725_v28  ;;  %8495 = vrot.lane.b32.xlu0 %v16970_v3, %s10728_s20  ;;  %v16978_v3 = vld [vmem:[#allocation46_spill] sm:$0xff] }
 0x5a9   : > { %9362 = vmatmul.mubr.bf16.gmra.mrb[120].mxu0 %v8597_v22  ;;  %v7865_v47 = vpop.permute.xlu1 %7864 }
 0x5aa   : > { %v7975_v24 = vpop.permute.xlu0 %7974  ;;  %v8600_v16 = vsel %vm6102_vm9, %v8558_v32, %v7865_v47  ;;  %v16981_v32 = vld [vmem:[#allocation53_spill] sm:$0xff] }
 0x5ab   : > { %7982 = vrot.lane.b32.xlu1 %v16971_v15, %s10727_s17 }
 0x5ac   : > { %7872 = vrot.lane.b32.xlu0 %v15660_v43, %s10728_s20 }
 0x5ad   : > { %v7765_v23 = vpop.permute.xlu1 %7764 }
 0x5ae   : > { %v7909_v13 = vpop.permute.xlu0 %7908 }
 0x5af   : > { %v8649_v2 = vsel %vm1656_vm14, %v15534_v27, %v7909_v13  ;;  %8123 = vrot.lane.b32.xlu1 %v16973_v54, %s10722_s10  ;;  %v16974_v27 = vrot.slane %v14932_v56, 1  ;;  %v16977_v56 = vld [vmem:[#allocation43_spill] sm:$0xff] }
 0x5b0   : > { %8397 = vrot.lane.b32.xlu0 %v8366_v52, %s10727_s17  ;;  %v8686_v43 = vsel %vm6059_vm5, %v8649_v2, %v7975_v24 }
 0x5b1   : > { %v7683_v9 = vpop.permute.xlu1 %7682  ;;  %v15870_v46 = vsel %vm16975_vm13, %v7738_v58, %v16974_v27 }
 0x5b2   : > { %v8074_v42 = vpop.permute.xlu0 %8073  ;;  %v8528_v22 = vsel %vm1656_vm14, %v16912_v37, %v7683_v9 }
 0x5b3   : > { %v8728_v51 = vsel %vm6102_vm9, %v8686_v43, %v8074_v42  ;;  %8289 = vrot.lane.b32.xlu1 %v16976_v60, %s10728_s20  ;;  %v16979_v42 = vld [vmem:[#allocation48_spill] sm:$0xff]  ;;  %v8560_v37 = vsel %vm6059_vm5, %v8528_v22, %v7765_v23  ;;  %v16980_v43 = vld [vmem:[#allocation47_spill] sm:$0xff]  ;;  %v16984_v22 = vld [vmem:[#allocation49_spill] sm:$0xff] }
 0x5b4   : > { %9369 = vmatprep.mubr.bf16.mxu0 %v8728_v51  ;;  %7772 = vrot.lane.b32.xlu0 %v15870_v46, %s10727_s17 }
 0x5b5   : > { %9370 = vmatmul.mubr.bf16.gmra.mrb[124].mxu0 %v8600_v16  ;;  %v7867_v19 = vpop.permute.xlu1 %7866  ;;  %v16982_v16 = vld [vmem:[#allocation51_spill] sm:$0xff] }
 0x5b6   : > { %v7977_v28 = vpop.permute.xlu0 %7976  ;;  %v8603_v51 = vsel %vm6102_vm9, %v8560_v37, %v7867_v19  ;;  %v16985_v37 = vld [vmem:[#allocation54_spill] sm:$0xff] }
 0x5b7   : > { %8081 = vrot.lane.b32.xlu1 %v16973_v54, %s10728_s20 }
 0x5b8   : > { %7690 = vrot.lane.b32.xlu0 %v16977_v56, %s10722_s10 }
 0x5b9   : > { %v7767_v58 = vpop.permute.xlu1 %7766 }
 0x5ba   : > { %v7911_v8 = vpop.permute.xlu0 %7910 }
 0x5bb   : > { %v8652_v48 = vsel %vm1656_vm14, %v15566_v29, %v7911_v8  ;;  %7984 = vrot.lane.b32.xlu1 %v16978_v3, %s10727_s17  ;;  %v16983_v8 = vld [vmem:[#allocation50_spill] sm:$0xff] }
 0x5bc   : > { %v10033_v47 = vpop.f32.mrb[84].mxu0  ;;  %8331 = vrot.lane.b32.xlu0 %v16976_v60, %s10722_s10  ;;  %v8688_v54 = vsel %vm6059_vm5, %v8652_v48, %v7977_v28 }
 0x5bd   : > { %v10034_v24 = vpop.f32.mrb[85].mxu0  ;;  %v7685_v13 = vpop.permute.xlu1 %7684 }
 0x5be   : > { %v15890_v2 = vadd.f32 %v10034_v24, %v10033_v47  ;;  %v10036_v62 = vpop.f32.mrb[86].mxu0  ;;  %v8076_v52 = vpop.permute.xlu0 %8075  ;;  %v8530_v19 = vsel %vm1656_vm14, %v16923_v38, %v7685_v13 }
 0x5bf   : > { %v10037_v21 = vpop.f32.mrb[87].mxu0  ;;  %v8731_v29 = vsel %vm6102_vm9, %v8688_v54, %v8076_v52  ;;  %8291 = vrot.lane.b32.xlu1 %v16979_v42, %s10728_s20  ;;  %v8562_v38 = vsel %vm6059_vm5, %v8530_v19, %v7767_v58 }
 0x5c0   : > { %v15897_v9 = vadd.f32 %v10037_v21, %v10036_v62  ;;  %9377 = vmatprep.mubr.bf16.mxu0 %v8731_v29  ;;  %8497 = vrot.lane.b32.xlu0 %v16980_v43, %s10728_s20 }
 0x5c1   : > { %9378 = vmatmul.mubr.bf16.gmra.mrb[128].mxu0 %v8603_v51  ;;  %v7869_v27 = vpop.permute.xlu1 %7868 }
 0x5c2   : > { %v7979_v60 = vpop.permute.xlu0 %7978  ;;  %v8606_v43 = vsel %vm6102_vm9, %v8562_v38, %v7869_v27  ;;  %v16991_v38 = vld [vmem:[#allocation11_spill] sm:$0xff] }
 0x5c3   : > { %8083 = vrot.lane.b32.xlu1 %v16981_v32, %s10728_s20 }
 0x5c4   : > { %7916 = vrot.lane.b32.xlu0 %v16982_v16, %s10722_s10 }
 0x5c5   : > { %v7769_v28 = vpop.permute.xlu1 %7768 }
 0x5c6   : > { %v7913_v56 = vpop.permute.xlu0 %7912 }
 0x5c7   : > { %v8655_v23 = vsel %vm1656_vm14, %v15619_v33, %v7913_v56  ;;  %8401 = vrot.lane.b32.xlu1 %v16983_v8, %s10727_s17 }
 0x5c8   : > { %v10039_v48 = vpop.f32.mrb[88].mxu0  ;;  %8399 = vrot.lane.b32.xlu0 %v16984_v22, %s10727_s17  ;;  %v8690_v21 = vsel %vm6059_vm5, %v8655_v23, %v7979_v60 }
 0x5c9   : > { %v10040_v47 = vpop.f32.mrb[89].mxu0  ;;  %v7687_v24 = vpop.permute.xlu1 %7686 }
 0x5ca   : > { %v15914_v62 = vadd.f32 %v10040_v47, %v10039_v48  ;;  %v10042_v52 = vpop.f32.mrb[90].mxu0  ;;  %v8078_v54 = vpop.permute.xlu0 %8077  ;;  %v8532_v27 = vsel %vm1656_vm14, %v16932_v5, %v7687_v24 }
 0x5cb   : > { %v10043_v29 = vpop.f32.mrb[91].mxu0  ;;  %v8734_v33 = vsel %vm6102_vm9, %v8690_v21, %v8078_v54  ;;  %8335 = vrot.lane.b32.xlu1 %v15217_v10, %s10722_s10  ;;  %v16988_v21 = vld [vmem:[#allocation5_spill] sm:$0xff] }
 0x5cc   : > { %v15921_v13 = vadd.f32 %v10043_v29, %v10042_v52  ;;  %9385 = vmatprep.mubr.bf16.mxu0 %v8734_v33  ;;  %8191 = vrot.lane.b32.xlu0 %v16985_v37, %s10727_s17  ;;  %v16989_v33 = vld [vmem:[#allocation55_spill] sm:$0xff] }
 0x5cd   : > { %9386 = vmatmul.mubr.bf16.gmra.mrb[132].mxu0 %v8606_v43  ;;  %v7871_v51 = vpop.permute.xlu1 %7870 }
 0x5ce   : > { %v7981_v56 = vpop.permute.xlu0 %7980 }
 0x5cf   : > { %8501 = vrot.lane.b32.xlu1 %v15222_v30, %s10728_s20  ;;  %v16986_v30 = vld [vmem:[#allocation12_spill] sm:$0xff] }
 0x5d0   : > { %8333 = vrot.lane.b32.xlu0 %v16979_v42, %s10722_s10  ;;  %v8875_v8 = vsel %vm1656_vm14, %v16986_v30, %v15309_v59  ;;  %v16994_v30 = vld [vmem:[#allocation56_spill] sm:$0xff] }
 0x5d1   : > { %v15930_v60 = vpop.permute.xlu1 %8111  ;;  %v8922_v59 = vsel %vm6059_vm5, %v8875_v8, %v15233_v25  ;;  %v16995_v8 = vld [vmem:[#allocation65_spill] sm:$0xff] }
 0x5d2   : > { %v7915_v58 = vpop.permute.xlu0 %7914  ;;  %v8954_v24 = vsel %vm6102_vm9, %v8922_v59, %v15324_v20  ;;  %v16990_v20 = vld [vmem:[#allocation3_spill] sm:$0xff] }
 0x5d3   : > { %v8658_v23 = vsel %vm1656_vm14, %v15826_v35, %v7915_v58  ;;  %8403 = vrot.lane.b32.xlu1 %v15202_v44, %s10727_s17  ;;  %v8564_v44 = vsel %vm6059_vm5, %v8532_v27, %v7769_v28  ;;  %v8878_v43 = vsel %vm1656_vm14, %v16991_v38, %v16990_v20  ;;  %v16992_v58 = vld [vmem:[#allocation52_spill] sm:$0xff]  ;;  %v17003_v20 = vld [vmem:[#allocation14_spill] sm:$0xff] }
 0x5d4   : > { %8499 = vrot.lane.b32.xlu0 %v15211_v45, %s10728_s20  ;;  %v8692_v48 = vsel %vm6059_vm5, %v8658_v23, %v7981_v56  ;;  %v8609_v45 = vsel %vm6102_vm9, %v8564_v44, %v7871_v51  ;;  %v16993_v23 = vld [vmem:[#allocation62_spill] sm:$0xff] }
 0x5d5   : > { %v15943_v42 = vpop.permute.xlu1 %8177 }
 0x5d6   : > { %v8080_v19 = vpop.permute.xlu0 %8079 }
 0x5d7   : > { %v8737_v35 = vsel %vm6102_vm9, %v8692_v48, %v8080_v19  ;;  %8337 = vrot.lane.b32.xlu1 %v15225_v57, %s10722_s10  ;;  %v8924_v19 = vsel %vm6059_vm5, %v8878_v43, %v16995_v8  ;;  %v17004_v43 = vld [vmem:[#allocation24_spill] sm:$0xff] }
 0x5d8   : > { %v10045_v5 = vpop.f32.mrb[92].mxu0  ;;  %9393 = vmatprep.mubr.bf16.mxu0 %v8737_v35  ;;  %8125 = vrot.lane.b32.xlu0 %v16981_v32, %s10722_s10  ;;  %v16987_v32 = vld [vmem:[#allocation60_spill] sm:$0xff]  ;;  %v16996_v35 = vld [vmem:[#allocation69_spill] sm:$0xff] }
 0x5d9   : > { %v10046_v22 = vpop.f32.mrb[93].mxu0  ;;  %9394 = vmatmul.mubr.bf16.gmra.mrb[136].mxu0 %v8609_v45  ;;  %v15955_v47 = vpop.permute.xlu1 %8277  ;;  %v8747_v25 = vsel %vm1656_vm14, %v16988_v21, %v16987_v32  ;;  %v8957_v44 = vsel %vm6102_vm9, %v8924_v19, %v16996_v35  ;;  %v16997_v45 = vld [vmem:[#allocation67_spill] sm:$0xff]  ;;  %v17006_v19 = vld [vmem:[#allocation21_spill] sm:$0xff] }
 0x5da   : > { %v15959_v57 = vadd.f32 %v10046_v22, %v10045_v5  ;;  %v10048_v28 = vpop.f32.mrb[94].mxu0  ;;  %9450 = vmatprep.mubr.bf16.mxu0 %v8954_v24  ;;  %v15961_v52 = vpop.permute.xlu0 %8321  ;;  %v16999_v22 = vld [vmem:[#allocation61_spill] sm:$0xff]  ;;  %v17000_v24 = vld [vmem:[#allocation18_spill] sm:$0xff] }
 0x5db   : > { %v10049_v54 = vpop.f32.mrb[95].mxu0  ;;  %8503 = vrot.lane.b32.xlu1 %v15247_v40, %s10728_s20  ;;  %v8794_v40 = vsel %vm6059_vm5, %v8747_v25, %v16992_v58  ;;  %v17002_v25 = vld [vmem:[#allocation63_spill] sm:$0xff]  ;;  %v17007_v35 = vld [vmem:[#allocation13_spill] sm:$0xff] }
 0x5dc   : > { %v15968_v29 = vadd.f32 %v10049_v54, %v10048_v28  ;;  %7918 = vrot.lane.b32.xlu0 %v16989_v33, %s10722_s10  ;;  %v8826_v27 = vsel %vm6102_vm9, %v8794_v40, %v16993_v23  ;;  %v17001_v28 = vld [vmem:[#allocation19_spill] sm:$0xff]  ;;  %v17005_v23 = vld [vmem:[#allocation25_spill] sm:$0xff] }
 0x5dd   : > { %v15975_v51 = vpop.permute.xlu1 %8113  ;;  %v8881_v54 = vsel %vm1656_vm14, %v17001_v28, %v17000_v24 }
 0x5de   : > { %v15977_v56 = vpop.permute.xlu0 %8387  ;;  %v8926_v58 = vsel %vm6059_vm5, %v8881_v54, %v17004_v43  ;;  %v17010_v54 = vld [vmem:[#allocation20_spill] sm:$0xff] }
 0x5df   : > { %8293 = vrot.lane.b32.xlu1 %v15217_v10, %s10728_s20  ;;  %v16998_v10 = vld [vmem:[#allocation7_spill] sm:$0xff] }
 0x5e0   : > { %8193 = vrot.lane.b32.xlu0 %v16994_v30, %s10727_s17  ;;  %v8750_v59 = vsel %vm1656_vm14, %v16998_v10, %v16997_v45 }
 0x5e1   : > { %9451 = vmatmul.mubr.bf16.vlgmr.msra.gmra.mrb[140].mxu0 %v8826_v27  ;;  %v15989_v48 = vpop.permute.xlu1 %8179  ;;  %v8796_v33 = vsel %vm6059_vm5, %v8750_v59, %v17002_v25  ;;  %v8960_v27 = vsel %vm6102_vm9, %v8926_v58, %v17005_v23 }
 0x5e2   : > { %9458 = vmatprep.mubr.bf16.mxu0 %v8957_v44  ;;  %v15993_v5 = vpop.permute.xlu0 %8487  ;;  %v8829_v38 = vsel %vm6102_vm9, %v8796_v33, %v17003_v20  ;;  %v8753_v44 = vsel %vm1656_vm14, %v17007_v35, %v17006_v19  ;;  %v17011_v33 = vld [vmem:[#allocation27_spill] sm:$0xff]  ;;  %v17012_v35 = vld [vmem:[#allocation32_spill] sm:$0xff] }
 0x5e4   : > { %8127 = vrot.lane.b32.xlu0 %v16999_v22, %s10722_s10  ;;  %v17009_v22 = vld [vmem:[#allocation68_spill] sm:$0xff]  ;;  %s9931_s10 = sshll.u32 %s17035_s22, 8 }
 0x5e5   : > { %v16003_v32 = vpop.permute.xlu1 %8279  ;;  %v8798_v24 = vsel %vm6059_vm5, %v8753_v44, %v17009_v22  ;;  %v17013_v44 = vld [vmem:[#allocation15_spill] sm:$0xff]  ;;  %s16307_s12 = scalar_lea.vmem %s16410_s6, %s9931_s10 }
 0x5e6   : > { %v16005_v21 = vpop.permute.xlu0 %8323  ;;  %v8832_v25 = vsel %vm6102_vm9, %v8798_v24, %v17010_v54 }
 0x5e8   : > { %7874 = vrot.lane.b32.xlu0 %v16982_v16, %s10728_s20  ;;  %v17008_v16 = vld [vmem:[#allocation29_spill] sm:$0xff] }
 0x5e9   : > { %9459 = vmatmul.mubr.bf16.gmra.mrb[144].mxu0 %v8829_v38  ;;  %v16015_v40 = vpop.permute.xlu1 %8115  ;;  %v8884_v45 = vsel %vm1656_vm14, %v17008_v16, %v15601_v41  ;;  %v8756_v16 = vsel %vm1656_vm14, %v17013_v44, %v17012_v35  ;;  %v17018_v44 = vld [vmem:[#allocation64_spill] sm:$0xff] }
 0x5ea   : > { %9466 = vmatprep.mubr.bf16.mxu0 %v8960_v27  ;;  %v16019_v8 = vpop.permute.xlu0 %8389  ;;  %v8928_v20 = vsel %vm6059_vm5, %v8884_v45, %v17011_v33  ;;  %v17014_v45 = vld [vmem:[#allocation36_spill] sm:$0xff]  ;;  %v17016_v33 = vld [vmem:[#allocation31_spill] sm:$0xff] }
 0x5eb   : > { %v8963_v41 = vsel %vm6102_vm9, %v8928_v20, %v15614_v61  ;;  %v8887_v24 = vsel %vm1656_vm14, %v17014_v45, %v15687_v4 }
 0x5ed   : > { %v16027_v10 = vpop.permute.xlu1 %8181 }
 0x5ee   : > { %v16029_v59 = vpop.permute.xlu0 %8489 }
 0x5f0   : > { %v10051_v28 = vpop.f32.mrb[96].mxu0 }
 0x5f1   : > { %v10052_v38 = vpop.f32.mrb[97].mxu0  ;;  %9467 = vmatmul.mubr.bf16.gmra.mrb[148].mxu0 %v8832_v25  ;;  %v16037_v43 = vpop.permute.xlu1 %8281 }
 0x5f2   : > { %v16041_v58 = vadd.f32 %v10052_v38, %v10051_v28  ;;  %v10054_v23 = vpop.f32.mrb[98].mxu0  ;;  %9474 = vmatprep.mubr.bf16.mxu0 %v8963_v41  ;;  %v16043_v27 = vpop.permute.xlu0 %8325  ;;  %v17015_v28 = vld [vmem:[#allocation16_spill] sm:$0xff]  ;;  %v8930_v38 = vsel %vm6059_vm5, %v8887_v24, %v15641_v17 }
 0x5f3   : > { %v10055_v19 = vpop.f32.mrb[99].mxu0  ;;  %v8800_v25 = vsel %vm6059_vm5, %v8756_v16, %v17015_v28  ;;  %v8890_v16 = vsel %vm1656_vm14, %v17018_v44, %v15747_v7  ;;  %v17019_v28 = vld [vmem:[#allocation34_spill] sm:$0xff] }
 0x5f4   : > { %v16048_v22 = vadd.f32 %v10055_v19, %v10054_v23  ;;  %v8835_v20 = vsel %vm6102_vm9, %v8800_v25, %v17016_v33  ;;  %v8966_v23 = vsel %vm6102_vm9, %v8930_v38, %v15697_v26  ;;  %v17017_v19 = vld [vmem:[#allocation23_spill] sm:$0xff]  ;;  %v8932_v25 = vsel %vm6059_vm5, %v8890_v16, %v17019_v28  ;;  %v17021_v38 = vld [vmem:[#allocation30_spill] sm:$0xff] }
 0x5f5   : > { %v16053_v54 = vpop.permute.xlu1 %8117  ;;  %v8759_v35 = vsel %vm1656_vm14, %v17017_v19, %v15651_v11  ;;  %v8969_v11 = vsel %vm6102_vm9, %v8932_v25, %v15755_v49 }
 0x5f6   : > { %v16055_v61 = vpop.permute.xlu0 %8391  ;;  %v8802_v24 = vsel %vm6059_vm5, %v8759_v35, %v15612_v63 }
 0x5f7   : > { %v8838_v26 = vsel %vm6102_vm9, %v8802_v24, %v15668_v14  ;;  %v17022_v14 = vld [vmem:[#allocation22_spill] sm:$0xff] }
 0x5f9   : > { %9475 = vmatmul.mubr.bf16.gmra.mrb[152].mxu0 %v8835_v20  ;;  %v16063_v41 = vpop.permute.xlu1 %8183  ;;  %v17020_v20 = vld [vmem:[#allocation9_spill] sm:$0xff] }
 0x5fa   : > { %9482 = vmatprep.mubr.bf16.mxu0 %v8966_v23  ;;  %v16067_v4 = vpop.permute.xlu0 %8491  ;;  %v8762_v23 = vsel %vm1656_vm14, %v17021_v38, %v17020_v20  ;;  %v17023_v20 = vld [vmem:[#allocation38_spill] sm:$0xff] }
 0x5fb   : > { %v8804_v35 = vsel %vm6059_vm5, %v8762_v23, %v17022_v14  ;;  %v8765_v38 = vsel %vm1656_vm14, %v17023_v20, %v15775_v6 }
 0x5fc   : > { %v8841_v16 = vsel %vm6102_vm9, %v8804_v35, %v15734_v34  ;;  %v17024_v35 = vld [vmem:[#allocation35_spill] sm:$0xff] }
 0x5fd   : > { %v16075_v45 = vpop.permute.xlu1 %8283 }
 0x5fe   : > { %v16077_v17 = vpop.permute.xlu0 %8327 }
 0x601   : > { %9483 = vmatmul.mubr.bf16.gmra.mrb[156].mxu0 %v8838_v26  ;;  %v16085_v33 = vpop.permute.xlu1 %8119 }
 0x602   : > { %9490 = vmatprep.mubr.bf16.mxu0 %v8969_v11  ;;  %v16089_v7 = vpop.permute.xlu0 %8393 }
 0x605   : > { %v16094_v63 = vpop.permute.xlu1 %8185 }
 0x606   : > { %v16096_v19 = vpop.permute.xlu0 %8493 }
 0x608   : > { %v10057_v44 = vpop.f32.mrb[100].mxu0 }
 0x609   : > { %v10058_v24 = vpop.f32.mrb[101].mxu0  ;;  %9491 = vmatmul.mubr.bf16.gmra.mrb[160].mxu0 %v8841_v16  ;;  %v16102_v49 = vpop.permute.xlu1 %8285 }
 0x60a   : > { %v16104_v26 = vadd.f32 %v10058_v24, %v10057_v44  ;;  %v10060_v28 = vpop.f32.mrb[102].mxu0  ;;  %9498 = vmatprep.mubr.bf16.mxu0 %v15818_v50  ;;  %v16107_v25 = vpop.permute.xlu0 %8395  ;;  %v8896_v44 = vsel %vm1656_vm14, %v17024_v35, %v15961_v52  ;;  %v8806_v50 = vsel %vm6059_vm5, %v8765_v38, %v15753_v0  ;;  %v17025_v52 = vld [vmem:[#allocation66_spill] sm:$0xff] }
 0x60b   : > { %v10061_v11 = vpop.f32.mrb[103].mxu0  ;;  %v8936_v16 = vsel %vm6059_vm5, %v8896_v44, %v15977_v56  ;;  %v8844_v24 = vsel %vm6102_vm9, %v8806_v50, %v15786_v36  ;;  %v8768_v0 = vsel %vm1656_vm14, %v17025_v52, %v15930_v60  ;;  %v8899_v36 = vsel %vm1656_vm14, %v15738_v53, %v16005_v21 }
 0x60c   : > { %v16112_v23 = vadd.f32 %v10061_v11, %v10060_v28  ;;  %v8975_v28 = vsel %vm6102_vm9, %v8936_v16, %v15993_v5  ;;  %v8808_v56 = vsel %vm6059_vm5, %v8768_v0, %v15943_v42  ;;  %v8938_v5 = vsel %vm6059_vm5, %v8899_v36, %v16019_v8  ;;  %v17026_v42 = vld [vmem:[#allocation8_spill] sm:$0xff] }
 0x60d   : > { %v16114_v14 = vpop.permute.xlu1 %8187  ;;  %v8847_v35 = vsel %vm6102_vm9, %v8808_v56, %v15955_v47  ;;  %v8978_v44 = vsel %vm6102_vm9, %v8938_v5, %v16029_v59  ;;  %v8902_v47 = vsel %vm1656_vm14, %v15765_v55, %v16043_v27  ;;  %v17027_v5 = vld [vmem:[#allocation4_spill] sm:$0xff] }
 0x60e   : > { %v16116_v34 = vpop.permute.xlu0 %7688  ;;  %v8940_v8 = vsel %vm6059_vm5, %v8902_v47, %v16055_v61 }
 0x611   : > { %9499 = vmatmul.mubr.bf16.gmra.mrb[164].mxu0 %v8844_v24  ;;  %v16127_v6 = vpop.permute.xlu1 %8121  ;;  %v8771_v24 = vsel %vm1656_vm14, %v17026_v42, %v15975_v51  ;;  %v8981_v51 = vsel %vm6102_vm9, %v8940_v8, %v16067_v4 }
 0x612   : > { %9506 = vmatprep.mubr.bf16.mxu0 %v8975_v28  ;;  %v16131_v11 = vpop.permute.xlu0 %7770  ;;  %v8810_v21 = vsel %vm6059_vm5, %v8771_v24, %v15989_v48 }
 0x613   : > { %v8850_v28 = vsel %vm6102_vm9, %v8810_v21, %v16003_v32  ;;  %v8774_v32 = vsel %vm1656_vm14, %v17027_v5, %v16015_v40 }
 0x614   : > { %v8812_v4 = vsel %vm6059_vm5, %v8774_v32, %v16027_v10 }
 0x615   : > { %v16133_v20 = vpop.permute.xlu1 %8287  ;;  %v8853_v24 = vsel %vm6102_vm9, %v8812_v4, %v16037_v43 }
 0x616   : > { %v8330_v38 = vpop.permute.xlu0 %8329 }
 0x617   : > { %v8908_v10 = vsel %vm1656_vm14, %v15807_v39, %v8330_v38 }
 0x619   : > { %9507 = vmatmul.mubr.bf16.gmra.mrb[168].mxu0 %v8847_v35  ;;  %v16149_v50 = vpop.permute.xlu1 %8189 }
 0x61a   : > { %9514 = vmatprep.mubr.bf16.mxu0 %v8978_v44  ;;  %v8496_v60 = vpop.permute.xlu0 %8495  ;;  %v8905_v44 = vsel %vm1656_vm14, %v15790_v12, %v16077_v17  ;;  %v17028_v12 = vld [vmem:[#allocation17_spill] sm:$0xff] }
 0x61b   : > { %v8942_v42 = vsel %vm6059_vm5, %v8905_v44, %v16089_v7  ;;  %v8777_v17 = vsel %vm1656_vm14, %v17028_v12, %v16053_v54 }
 0x61c   : > { %v8984_v21 = vsel %vm6102_vm9, %v8942_v42, %v16096_v19  ;;  %v8814_v43 = vsel %vm6059_vm5, %v8777_v17, %v16063_v41 }
 0x61d   : > { %v7983_v16 = vpop.permute.xlu1 %7982  ;;  %v8856_v19 = vsel %vm6102_vm9, %v8814_v43, %v16075_v45 }
 0x61e   : > { %v7873_v53 = vpop.permute.xlu0 %7872 }
 0x620   : > { %v10063_v59 = vpop.f32.mrb[104].mxu0 }
 0x621   : > { %v10064_v52 = vpop.f32.mrb[105].mxu0  ;;  %9515 = vmatmul.mubr.bf16.gmra.mrb[172].mxu0 %v8850_v28  ;;  %v16165_v0 = vpop.permute.xlu1 %8123 }
 0x622   : > { %v16167_v56 = vadd.f32 %v10064_v52, %v10063_v59  ;;  %v10066_v48 = vpop.f32.mrb[106].mxu0  ;;  %9522 = vmatprep.mubr.bf16.mxu0 %v8981_v51  ;;  %v8398_v36 = vpop.permute.xlu0 %8397  ;;  %v8944_v59 = vsel %vm6059_vm5, %v8908_v10, %v16107_v25  ;;  %v17029_v51 = vld [vmem:[#allocation28_spill] sm:$0xff] }
 0x623   : > { %v10067_v55 = vpop.f32.mrb[107].mxu0  ;;  %v8987_v28 = vsel %vm6102_vm9, %v8944_v59, %v8496_v60  ;;  %v8780_v41 = vsel %vm1656_vm14, %v17029_v51, %v16085_v33  ;;  %v8534_v60 = vsel %vm1656_vm14, %v16943_v18, %v16116_v34  ;;  %v17031_v51 = vld [vmem:[#allocation57_spill] sm:$0xff] }
 0x624   : > { %v16169_v27 = vadd.f32 %v10067_v55, %v10066_v48  ;;  %v8816_v45 = vsel %vm6059_vm5, %v8780_v41, %v16094_v63  ;;  %v8566_v33 = vsel %vm6059_vm5, %v8534_v60, %v16131_v11 }
 0x625   : > { %v16171_v61 = vpop.permute.xlu1 %8289  ;;  %v8612_v18 = vsel %vm6102_vm9, %v8566_v33, %v7873_v53 }
 0x626   : > { %v16176_v35 = vpop.permute.xlu0 %7772 }
 0x629   : > { %9523 = vmatmul.mubr.bf16.gmra.mrb[176].mxu0 %v8853_v24  ;;  %v8082_v40 = vpop.permute.xlu1 %8081 }
 0x62a   : > { %9530 = vmatprep.mubr.bf16.mxu0 %v8984_v21  ;;  %v16189_v47 = vpop.permute.xlu0 %7690 }
 0x62d   : > { %v16193_v8 = vpop.permute.xlu1 %7984 }
 0x62e   : > { %v8332_v7 = vpop.permute.xlu0 %8331 }
 0x62f   : > { %v8911_v52 = vsel %vm1656_vm14, %v15842_v31, %v8332_v7  ;;  %v8859_v31 = vsel %vm6102_vm9, %v8816_v45, %v16102_v49 }
 0x630   : > { %v8946_v32 = vsel %vm6059_vm5, %v8911_v52, %v8398_v36  ;;  %v17030_v36 = vld [vmem:[#allocation6_spill] sm:$0xff] }
 0x631   : > { %9531 = vmatmul.mubr.bf16.gmra.mrb[180].mxu0 %v8856_v19  ;;  %v8292_v39 = vpop.permute.xlu1 %8291  ;;  %v8783_v11 = vsel %vm1656_vm14, %v17030_v36, %v16127_v6  ;;  %v8786_v6 = vsel %vm1656_vm14, %v16971_v15, %v16165_v0 }
 0x632   : > { %9538 = vmatprep.mubr.bf16.mxu0 %v8987_v28  ;;  %v8498_v38 = vpop.permute.xlu0 %8497  ;;  %v8818_v10 = vsel %vm6059_vm5, %v8783_v11, %v16114_v14 }
 0x633   : > { %v8862_v53 = vsel %vm6102_vm9, %v8818_v10, %v16133_v20  ;;  %v8820_v20 = vsel %vm6059_vm5, %v8786_v6, %v16149_v50 }
 0x635   : > { %v8084_v54 = vpop.permute.xlu1 %8083 }
 0x636   : > { %v7917_v48 = vpop.permute.xlu0 %7916 }
 0x637   : > { %v8661_v25 = vsel %vm1656_vm14, %v15870_v46, %v7917_v48  ;;  %v8990_v46 = vsel %vm6102_vm9, %v8946_v32, %v8498_v38 }
 0x638   : > { %v10069_v55 = vpop.f32.mrb[108].mxu0  ;;  %v8694_v5 = vsel %vm6059_vm5, %v8661_v25, %v7983_v16  ;;  %v17032_v25 = vld [vmem:[#allocation58_spill] sm:$0xff] }
 0x639   : > { %v10070_v4 = vpop.f32.mrb[109].mxu0  ;;  %9539 = vmatmul.mubr.bf16.gmra.mrb[184].mxu0 %v8859_v31  ;;  %v8740_v63 = vsel %vm6102_vm9, %v8694_v5, %v8082_v40  ;;  %v8402_v44 = vpop.permute.xlu1 %8401 }
 0x63a   : > { %v16226_v34 = vadd.f32 %v10070_v4, %v10069_v55  ;;  %v10072_v42 = vpop.f32.mrb[110].mxu0  ;;  %9401 = vmatprep.mubr.bf16.mxu1 %v8740_v63  ;;  %9546 = vmatprep.mubr.bf16.mxu0 %v8990_v46  ;;  %v8400_v49 = vpop.permute.xlu0 %8399 }
 0x63b   : > { %v10073_v16 = vpop.f32.mrb[111].mxu0  ;;  %9402 = vmatmul.mubr.bf16.vlgmr.msra.gmra.mrb[88].mxu1 %v8612_v18 }
 0x63c   : > { %v16231_v24 = vadd.f32 %v10073_v16, %v10072_v42  ;;  %v17033_v42 = vld [vmem:[#allocation59_spill] sm:$0xff] }
 0x63d   : > { %v8336_v21 = vpop.permute.xlu1 %8335 }
 0x63e   : > { %v8192_v40 = vpop.permute.xlu0 %8191  ;;  %v8917_v43 = vsel %vm1656_vm14, %v16994_v30, %v8336_v21 }
 0x63f   : > { %v8950_v38 = vsel %vm6059_vm5, %v8917_v43, %v8402_v44 }
 0x641   : > { %9547 = vmatmul.mubr.bf16.gmra.mrb[188].mxu0 %v8862_v53  ;;  %v8502_v12 = vpop.permute.xlu1 %8501 }
 0x642   : > { %v8334_v17 = vpop.permute.xlu0 %8333  ;;  %v8996_v15 = vsel %vm6102_vm9, %v8950_v38, %v8502_v12 }
 0x643   : > { %v8914_v7 = vsel %vm1656_vm14, %v16985_v37, %v8334_v17  ;;  %v8865_v37 = vsel %vm6102_vm9, %v8820_v20, %v16171_v61 }
 0x644   : > { %v8948_v14 = vsel %vm6059_vm5, %v8914_v7, %v8400_v49 }
 0x645   : > { %v8404_v19 = vpop.permute.xlu1 %8403 }
 0x646   : > { %v8500_v59 = vpop.permute.xlu0 %8499 }
 0x647   : > { %v8993_v28 = vsel %vm6102_vm9, %v8948_v14, %v8500_v59 }
 0x648   : > { %9554 = vmatprep.mubr.bf16.mxu0 %v8993_v28 }
 0x649   : > { %9555 = vmatmul.mubr.bf16.gmra.mrb[192].mxu0 %v8865_v37  ;;  %v8338_v0 = vpop.permute.xlu1 %8337 }
 0x64a   : > { %v8126_v30 = vpop.permute.xlu0 %8125  ;;  %9562 = vmatprep.mubr.bf16.mxu0 %v8996_v15  ;;  %v8920_v41 = vsel %vm1656_vm14, %v17031_v51, %v8338_v0 }
 0x64b   : > { %v8789_v52 = vsel %vm1656_vm14, %v16978_v3, %v8126_v30  ;;  %v8952_v5 = vsel %vm6059_vm5, %v8920_v41, %v8404_v19 }
 0x64c   : > { %v8822_v50 = vsel %vm6059_vm5, %v8789_v52, %v8192_v40 }
 0x64d   : > { %v8504_v45 = vpop.permute.xlu1 %8503  ;;  %v8868_v55 = vsel %vm6102_vm9, %v8822_v50, %v8292_v39 }
 0x64e   : > { %v7919_v48 = vpop.permute.xlu0 %7918  ;;  %v8999_v33 = vsel %vm6102_vm9, %v8952_v5, %v8504_v45 }
 0x64f   : > { %v8664_v61 = vsel %vm1656_vm14, %v17032_v25, %v7919_v48 }
 0x650   : > { %v10075_v60 = vpop.f32.mrb[112].mxu0  ;;  %v8696_v31 = vsel %vm6059_vm5, %v8664_v61, %v16193_v8  ;;  %v8536_v8 = vsel %vm1656_vm14, %v14858_v1, %v16189_v47 }
 0x651   : > { %v10076_v32 = vpop.f32.mrb[113].mxu0  ;;  %9563 = vmatmul.mubr.bf16.gmra.mrb[196].mxu0 %v8868_v55  ;;  %v8743_v3 = vsel %vm6102_vm9, %v8696_v31, %v8084_v54  ;;  %v8294_v54 = vpop.permute.xlu1 %8293  ;;  %v8568_v21 = vsel %vm6059_vm5, %v8536_v8, %v16176_v35 }
 0x652   : > { %v16265_v4 = vadd.f32 %v10076_v32, %v10075_v60  ;;  %v10078_v63 = vpop.f32.mrb[114].mxu0  ;;  %9409 = vmatprep.mubr.bf16.mxu1 %v8743_v3  ;;  %v8194_v46 = vpop.permute.xlu0 %8193  ;;  %9570 = vmatprep.mubr.bf16.mxu0 %v8999_v33 }
 0x653   : > { %v10079_v44 = vpop.f32.mrb[115].mxu0 }
 0x654   : > { %v16267_v18 = vadd.f32 %v10079_v44, %v10078_v63 }
 0x656   : > { %v8128_v39 = vpop.permute.xlu0 %8127 }
 0x657   : > { %v8792_v49 = vsel %vm1656_vm14, %v17033_v42, %v8128_v39  ;;  %vm9579_vm14 = vcmask 15360  }
 0x658   : > { %v8824_v16 = vsel %vm6059_vm5, %v8792_v49, %v8194_v46 }
 0x659   : > { %v8871_v36 = vsel %vm6102_vm9, %v8824_v16, %v8294_v54 }
 0x65a   : > { %v7875_v11 = vpop.permute.xlu0 %7874  ;;  %9571 = vmatmul.mubr.bf16.gmra.mrb[200].mxu0 %v8871_v36 }
 0x65b   : > { %v8615_v40 = vsel %vm6102_vm9, %v8568_v21, %v7875_v11 }
 0x65c   : > { %9410 = vmatmul.mubr.bf16.gmra.mrb[92].mxu1 %v8615_v40 }
 0x668   : > { %v10081_v10 = vpop.f32.mrb[116].mxu0 }
 0x669   : > { %v10082_v53 = vpop.f32.mrb[117].mxu0 }
 0x66a   : > { %v16279_v12 = vadd.f32 %v10082_v53, %v10081_v10  ;;  %v10084_v1 = vpop.f32.mrb[118].mxu0 }
 0x66b   : > { %v10085_v47 = vpop.f32.mrb[119].mxu0 }
 0x66c   : > { %v16281_v17 = vadd.f32 %v10085_v47, %v10084_v1 }
 0x67c   : > { %v10087_v7 = vpop.f32.mrb[120].mxu0 }
 0x67d   : > { %v10088_v6 = vpop.f32.mrb[121].mxu0 }
 0x67e   : > { %v16283_v43 = vadd.f32 %v10088_v6, %v10087_v7  ;;  %v10090_v19 = vpop.f32.mrb[122].mxu0 }
 0x67f   : > { %v10091_v59 = vpop.f32.mrb[123].mxu0 }
 0x680   : > { %v16285_v14 = vadd.f32 %v10091_v59, %v10090_v19 }
 0x688   : > { %v10093_v35 = vpop.f32.mrb[124].mxu0 }
 0x689   : > { %v10094_v28 = vpop.f32.mrb[125].mxu0 }
 0x68a   : > { %v16287_v20 = vadd.f32 %v10094_v28, %v10093_v35  ;;  %v10096_v37 = vpop.f32.mrb[126].mxu0 }
 0x68b   : > { %v10097_v38 = vpop.f32.mrb[127].mxu0 }
 0x68c   : > { %v16289_v15 = vadd.f32 %v10097_v38, %v10096_v37 }
 0x694   : > { %v10099_v0 = vpop.f32.mrb[128].mxu0 }
 0x695   : > { %v10100_v30 = vpop.f32.mrb[129].mxu0 }
 0x696   : > { %v16291_v52 = vadd.f32 %v10100_v30, %v10099_v0  ;;  %v10102_v51 = vpop.f32.mrb[130].mxu0 }
 0x697   : > { %v10103_v41 = vpop.f32.mrb[131].mxu0 }
 0x698   : > { %v16293_v50 = vadd.f32 %v10103_v41, %v10102_v51 }
 0x6a0   : > { %v10105_v48 = vpop.f32.mrb[132].mxu0 }
 0x6a1   : > { %v10106_v45 = vpop.f32.mrb[133].mxu0 }
 0x6a2   : > { %v16295_v25 = vadd.f32 %v10106_v45, %v10105_v48  ;;  %v10108_v61 = vpop.f32.mrb[134].mxu0 }
 0x6a3   : > { %v10109_v60 = vpop.f32.mrb[135].mxu0 }
 0x6a4   : > { %v16297_v55 = vadd.f32 %v10109_v60, %v10108_v61 }
 0x6ac   : > { %v10111_v31 = vpop.f32.mrb[136].mxu0 }
 0x6ad   : > { %v10112_v5 = vpop.f32.mrb[137].mxu0 }
 0x6ae   : > { %v16299_v32 = vadd.f32 %v10112_v5, %v10111_v31  ;;  %v10114_v3 = vpop.f32.mrb[138].mxu0 }
 0x6af   : > { %v10115_v33 = vpop.f32.mrb[139].mxu0 }
 0x6b0   : > { %v16301_v63 = vadd.f32 %v10115_v33, %v10114_v3 }
 0x6b4   : > { %v10145_v46 = vpop.f32.mrb[140].mxu0 }
 0x6b5   : > { %v10146_v44 = vpop.f32.mrb[141].mxu0 }
 0x6b6   : > { %v10147_v39 = vadd.f32 %v10146_v44, %v10145_v46  ;;  %v10148_v8 = vpop.f32.mrb[142].mxu0 }
 0x6b7   : > { %v10149_v42 = vpop.f32.mrb[143].mxu0 }
 0x6b8   : > { %v9453_v49 = vadd.f32 %v10147_v39, %v15890_v2  ;;  %v10150_v54 = vadd.f32 %v10149_v42, %v10148_v8 }
 0x6ba   : > { %9580 = vst.msk [vmem:[%s16307_s12] sm:$0xff] %vm9579_vm14, %v9453_v49  ;;  %v9456_v16 = vadd.f32 %v10150_v54, %v15897_v9 }
 0x6bc   : > { %9581 = vst.msk [vmem:[%s16307_s12 + $0x8] sm:$0xff] %vm9579_vm14, %v9456_v16  ;;  %v10151_v36 = vpop.f32.mrb[144].mxu0 }
 0x6bd   : > { %v10152_v11 = vpop.f32.mrb[145].mxu0 }
 0x6be   : > { %v10153_v21 = vadd.f32 %v10152_v11, %v10151_v36  ;;  %v10154_v40 = vpop.f32.mrb[146].mxu0 }
 0x6bf   : > { %v10155_v10 = vpop.f32.mrb[147].mxu0 }
 0x6c0   : > { %v9461_v53 = vadd.f32 %v10153_v21, %v15914_v62  ;;  %v10156_v1 = vadd.f32 %v10155_v10, %v10154_v40 }
 0x6c2   : > { %9582 = vst.msk [vmem:[%s16307_s12 + $0x10] sm:$0xff] %vm9579_vm14, %v9461_v53  ;;  %v9464_v2 = vadd.f32 %v10156_v1, %v15921_v13 }
 0x6c4   : > { %9583 = vst.msk [vmem:[%s16307_s12 + $0x18] sm:$0xff] %vm9579_vm14, %v9464_v2  ;;  %v10157_v47 = vpop.f32.mrb[148].mxu0 }
 0x6c5   : > { %v10158_v9 = vpop.f32.mrb[149].mxu0 }
 0x6c6   : > { %v10159_v7 = vadd.f32 %v10158_v9, %v10157_v47  ;;  %v10160_v6 = vpop.f32.mrb[150].mxu0 }
 0x6c7   : > { %v10161_v19 = vpop.f32.mrb[151].mxu0 }
 0x6c8   : > { %v9469_v59 = vadd.f32 %v10159_v7, %v15959_v57  ;;  %v10162_v35 = vadd.f32 %v10161_v19, %v10160_v6 }
 0x6ca   : > { %9584 = vst.msk [vmem:[%s16307_s12 + $0x20] sm:$0xff] %vm9579_vm14, %v9469_v59  ;;  %v9472_v62 = vadd.f32 %v10162_v35, %v15968_v29 }
 0x6cc   : > { %9585 = vst.msk [vmem:[%s16307_s12 + $0x28] sm:$0xff] %vm9579_vm14, %v9472_v62  ;;  %v10163_v28 = vpop.f32.mrb[152].mxu0 }
 0x6cd   : > { %v10164_v13 = vpop.f32.mrb[153].mxu0 }
 0x6ce   : > { %v10165_v37 = vadd.f32 %v10164_v13, %v10163_v28  ;;  %v10166_v38 = vpop.f32.mrb[154].mxu0 }
 0x6cf   : > { %v10167_v0 = vpop.f32.mrb[155].mxu0 }
 0x6d0   : > { %v9477_v30 = vadd.f32 %v10165_v37, %v16041_v58  ;;  %v10168_v51 = vadd.f32 %v10167_v0, %v10166_v38 }
 0x6d2   : > { %9586 = vst.msk [vmem:[%s16307_s12 + $0x30] sm:$0xff] %vm9579_vm14, %v9477_v30  ;;  %v9480_v57 = vadd.f32 %v10168_v51, %v16048_v22 }
 0x6d4   : > { %9587 = vst.msk [vmem:[%s16307_s12 + $0x38] sm:$0xff] %vm9579_vm14, %v9480_v57  ;;  %v10169_v41 = vpop.f32.mrb[156].mxu0 }
 0x6d5   : > { %v10170_v29 = vpop.f32.mrb[157].mxu0 }
 0x6d6   : > { %v10171_v48 = vadd.f32 %v10170_v29, %v10169_v41  ;;  %v10172_v45 = vpop.f32.mrb[158].mxu0 }
 0x6d7   : > { %v10173_v61 = vpop.f32.mrb[159].mxu0 }
 0x6d8   : > { %v9485_v60 = vadd.f32 %v10171_v48, %v16104_v26  ;;  %v10174_v31 = vadd.f32 %v10173_v61, %v10172_v45 }
 0x6da   : > { %9588 = vst.msk [vmem:[%s16307_s12 + $0x40] sm:$0xff] %vm9579_vm14, %v9485_v60  ;;  %v9488_v58 = vadd.f32 %v10174_v31, %v16112_v23 }
 0x6dc   : > { %9589 = vst.msk [vmem:[%s16307_s12 + $0x48] sm:$0xff] %vm9579_vm14, %v9488_v58  ;;  %v10175_v5 = vpop.f32.mrb[160].mxu0 }
 0x6dd   : > { %v10176_v22 = vpop.f32.mrb[161].mxu0 }
 0x6de   : > { %v10177_v3 = vadd.f32 %v10176_v22, %v10175_v5  ;;  %v10178_v33 = vpop.f32.mrb[162].mxu0 }
 0x6df   : > { %v10179_v46 = vpop.f32.mrb[163].mxu0 }
 0x6e0   : > { %v9493_v44 = vadd.f32 %v10177_v3, %v16167_v56  ;;  %v10180_v39 = vadd.f32 %v10179_v46, %v10178_v33 }
 0x6e2   : > { %9590 = vst.msk [vmem:[%s16307_s12 + $0x50] sm:$0xff] %vm9579_vm14, %v9493_v44  ;;  %v9496_v26 = vadd.f32 %v10180_v39, %v16169_v27 }
 0x6e4   : > { %9591 = vst.msk [vmem:[%s16307_s12 + $0x58] sm:$0xff] %vm9579_vm14, %v9496_v26  ;;  %v10181_v8 = vpop.f32.mrb[164].mxu0 }
 0x6e5   : > { %v10182_v23 = vpop.f32.mrb[165].mxu0 }
 0x6e6   : > { %v10183_v42 = vadd.f32 %v10182_v23, %v10181_v8  ;;  %v10184_v49 = vpop.f32.mrb[166].mxu0 }
 0x6e7   : > { %v10185_v54 = vpop.f32.mrb[167].mxu0 }
 0x6e8   : > { %v9501_v16 = vadd.f32 %v10183_v42, %v16226_v34  ;;  %v10186_v36 = vadd.f32 %v10185_v54, %v10184_v49 }
 0x6ea   : > { %9592 = vst.msk [vmem:[%s16307_s12 + $0x60] sm:$0xff] %vm9579_vm14, %v9501_v16  ;;  %v9504_v56 = vadd.f32 %v10186_v36, %v16231_v24 }
 0x6ec   : > { %9593 = vst.msk [vmem:[%s16307_s12 + $0x68] sm:$0xff] %vm9579_vm14, %v9504_v56  ;;  %v10187_v11 = vpop.f32.mrb[168].mxu0 }
 0x6ed   : > { %v10188_v27 = vpop.f32.mrb[169].mxu0 }
 0x6ee   : > { %v10189_v21 = vadd.f32 %v10188_v27, %v10187_v11  ;;  %v10190_v40 = vpop.f32.mrb[170].mxu0 }
 0x6ef   : > { %v10191_v10 = vpop.f32.mrb[171].mxu0 }
 0x6f0   : > { %v9509_v53 = vadd.f32 %v10189_v21, %v16265_v4  ;;  %v10192_v1 = vadd.f32 %v10191_v10, %v10190_v40 }
 0x6f2   : > { %9594 = vst.msk [vmem:[%s16307_s12 + $0x70] sm:$0xff] %vm9579_vm14, %v9509_v53  ;;  %v9512_v34 = vadd.f32 %v10192_v1, %v16267_v18 }
 0x6f4   : > { %9595 = vst.msk [vmem:[%s16307_s12 + $0x78] sm:$0xff] %vm9579_vm14, %v9512_v34  ;;  %v10193_v2 = vpop.f32.mrb[172].mxu0 }
 0x6f5   : > { %v10194_v24 = vpop.f32.mrb[173].mxu0 }
 0x6f6   : > { %v10195_v47 = vadd.f32 %v10194_v24, %v10193_v2  ;;  %v10196_v9 = vpop.f32.mrb[174].mxu0 }
 0x6f7   : > { %v10197_v7 = vpop.f32.mrb[175].mxu0 }
 0x6f8   : > { %v9517_v6 = vadd.f32 %v10195_v47, %v16279_v12  ;;  %v10198_v19 = vadd.f32 %v10197_v7, %v10196_v9 }
 0x6fa   : > { %9596 = vst.msk [vmem:[%s16307_s12 + $0x80] sm:$0xff] %vm9579_vm14, %v9517_v6  ;;  %v9520_v4 = vadd.f32 %v10198_v19, %v16281_v17 }
 0x6fc   : > { %9597 = vst.msk [vmem:[%s16307_s12 + $0x88] sm:$0xff] %vm9579_vm14, %v9520_v4  ;;  %v10199_v59 = vpop.f32.mrb[176].mxu0 }
 0x6fd   : > { %v10200_v18 = vpop.f32.mrb[177].mxu0 }
 0x6fe   : > { %v10201_v35 = vadd.f32 %v10200_v18, %v10199_v59  ;;  %v10202_v62 = vpop.f32.mrb[178].mxu0 }
 0x6ff   : > { %v10203_v28 = vpop.f32.mrb[179].mxu0 }
 0x700   : > { %v9525_v13 = vadd.f32 %v10201_v35, %v16283_v43  ;;  %v10204_v37 = vadd.f32 %v10203_v28, %v10202_v62 }
 0x702   : > { %9598 = vst.msk [vmem:[%s16307_s12 + $0x90] sm:$0xff] %vm9579_vm14, %v9525_v13  ;;  %v9528_v12 = vadd.f32 %v10204_v37, %v16285_v14 }
 0x704   : > { %9599 = vst.msk [vmem:[%s16307_s12 + $0x98] sm:$0xff] %vm9579_vm14, %v9528_v12  ;;  %v10205_v38 = vpop.f32.mrb[180].mxu0 }
 0x705   : > { %v10206_v17 = vpop.f32.mrb[181].mxu0 }
 0x706   : > { %v10207_v0 = vadd.f32 %v10206_v17, %v10205_v38  ;;  %v10208_v30 = vpop.f32.mrb[182].mxu0 }
 0x707   : > { %v10209_v51 = vpop.f32.mrb[183].mxu0 }
 0x708   : > { %v9533_v57 = vadd.f32 %v10207_v0, %v16287_v20  ;;  %v10210_v41 = vadd.f32 %v10209_v51, %v10208_v30 }
 0x70a   : > { %9600 = vst.msk [vmem:[%s16307_s12 + $0xa0] sm:$0xff] %vm9579_vm14, %v9533_v57  ;;  %v9536_v43 = vadd.f32 %v10210_v41, %v16289_v15 }
 0x70c   : > { %9601 = vst.msk [vmem:[%s16307_s12 + $0xa8] sm:$0xff] %vm9579_vm14, %v9536_v43  ;;  %v10211_v29 = vpop.f32.mrb[184].mxu0 }
 0x70d   : > { %v10212_v14 = vpop.f32.mrb[185].mxu0 }
 0x70e   : > { %v10213_v48 = vadd.f32 %v10212_v14, %v10211_v29  ;;  %v10117_v45 = vpop.f32.mrb[88].mxu1  ;;  %v10214_v61 = vpop.f32.mrb[186].mxu0 }
 0x70f   : > { %v10118_v60 = vpop.f32.mrb[89].mxu1  ;;  %v10215_v31 = vpop.f32.mrb[187].mxu0 }
 0x710   : > { %v9541_v58 = vadd.f32 %v10213_v48, %v16291_v52  ;;  %v10119_v20 = vadd.f32 %v10118_v60, %v10117_v45  ;;  %v10216_v5 = vadd.f32 %v10215_v31, %v10214_v61  ;;  %v10120_v22 = vpop.f32.mrb[90].mxu1 }
 0x711   : > { %v10121_v3 = vpop.f32.mrb[91].mxu1 }
 0x712   : > { %9602 = vst.msk [vmem:[%s16307_s12 + $0xb0] sm:$0xff] %vm9579_vm14, %v9541_v58  ;;  %v9544_v15 = vadd.f32 %v10216_v5, %v16293_v50  ;;  %v10122_v33 = vadd.f32 %v10121_v3, %v10120_v22 }
 0x714   : > { %9603 = vst.msk [vmem:[%s16307_s12 + $0xb8] sm:$0xff] %vm9579_vm14, %v9544_v15  ;;  %v10217_v46 = vpop.f32.mrb[188].mxu0 }
 0x715   : > { %v10218_v44 = vpop.f32.mrb[189].mxu0 }
 0x716   : > { %v10219_v39 = vadd.f32 %v10218_v44, %v10217_v46  ;;  %v10220_v26 = vpop.f32.mrb[190].mxu0 }
 0x717   : > { %v10221_v52 = vpop.f32.mrb[191].mxu0 }
 0x718   : > { %v9549_v8 = vadd.f32 %v10219_v39, %v16295_v25  ;;  %v10222_v23 = vadd.f32 %v10221_v52, %v10220_v26 }
 0x71a   : > { %9604 = vst.msk [vmem:[%s16307_s12 + $0xc0] sm:$0xff] %vm9579_vm14, %v9549_v8  ;;  %v9552_v42 = vadd.f32 %v10222_v23, %v16297_v55 }
 0x71c   : > { %9605 = vst.msk [vmem:[%s16307_s12 + $0xc8] sm:$0xff] %vm9579_vm14, %v9552_v42  ;;  %v10223_v50 = vpop.f32.mrb[192].mxu0 }
 0x71d   : > { %v10224_v49 = vpop.f32.mrb[193].mxu0 }
 0x71e   : > { %v10225_v54 = vadd.f32 %v10224_v49, %v10223_v50  ;;  %v10226_v16 = vpop.f32.mrb[194].mxu0 }
 0x71f   : > { %v10227_v36 = vpop.f32.mrb[195].mxu0 }
 0x720   : > { %v9557_v56 = vadd.f32 %v10225_v54, %v16299_v32  ;;  %v10228_v11 = vadd.f32 %v10227_v36, %v10226_v16 }
 0x722   : > { %9606 = vst.msk [vmem:[%s16307_s12 + $0xd0] sm:$0xff] %vm9579_vm14, %v9557_v56  ;;  %v9560_v25 = vadd.f32 %v10228_v11, %v16301_v63 }
 0x724   : > { %9607 = vst.msk [vmem:[%s16307_s12 + $0xd8] sm:$0xff] %vm9579_vm14, %v9560_v25  ;;  %v10229_v27 = vpop.f32.mrb[196].mxu0 }
 0x725   : > { %v10230_v55 = vpop.f32.mrb[197].mxu0 }
 0x726   : > { %v10231_v21 = vadd.f32 %v10230_v55, %v10229_v27  ;;  %v10232_v40 = vpop.f32.mrb[198].mxu0 }
 0x727   : > { %v10233_v10 = vpop.f32.mrb[199].mxu0 }
 0x728   : > { %v9565_v53 = vadd.f32 %v10231_v21, %v10119_v20  ;;  %v10234_v1 = vadd.f32 %v10233_v10, %v10232_v40 }
 0x72a   : > { %9608 = vst.msk [vmem:[%s16307_s12 + $0xe0] sm:$0xff] %vm9579_vm14, %v9565_v53  ;;  %v9568_v34 = vadd.f32 %v10234_v1, %v10122_v33 }
 0x72c   : > { %9609 = vst.msk [vmem:[%s16307_s12 + $0xe8] sm:$0xff] %vm9579_vm14, %v9568_v34 }
 0x72d   : > { %v10235_v32 = vpop.f32.mrb[200].mxu0 }
 0x72e   : > { %v10236_v2 = vpop.f32.mrb[201].mxu0 }
 0x72f   : > { %v10237_v24 = vadd.f32 %v10236_v2, %v10235_v32  ;;  %v10123_v63 = vpop.f32.mrb[92].mxu1  ;;  %v10238_v47 = vpop.f32.mrb[202].mxu0 }
 0x730   : > { %v10124_v9 = vpop.f32.mrb[93].mxu1  ;;  %v10239_v7 = vpop.f32.mrb[203].mxu0 }
 0x731   : > { %v10125_v6 = vadd.f32 %v10124_v9, %v10123_v63  ;;  %v10240_v19 = vadd.f32 %v10239_v7, %v10238_v47  ;;  %v10126_v4 = vpop.f32.mrb[94].mxu1 }
 0x732   : > { %v10127_v59 = vpop.f32.mrb[95].mxu1 }
 0x733   : > { %v9573_v18 = vadd.f32 %v10237_v24, %v10125_v6  ;;  %v10128_v35 = vadd.f32 %v10127_v59, %v10126_v4 }
 0x735   : > { %9610 = vst.msk [vmem:[%s16307_s12 + $0xf0] sm:$0xff] %vm9579_vm14, %v9573_v18  ;;  %v9576_v62 = vadd.f32 %v10240_v19, %v10128_v35 }
 0x737   : > { %9611 = vst.msk [vmem:[%s16307_s12 + $0xf8] sm:$0xff] %vm9579_vm14, %v9576_v62 }
 0x738 PF: > { %s16_s21 = sadd.s32 1, %s10713_s21  }
 0x739   : > { %p13_p4 = scmp.ge.s32.totalorder %s16_s21, 4  }
 0x73b   :  { %15 = sbr.rel (!%p13_p4) target bundleno = 1 (0x1), region = 74 }

</bundles_post_ra>
